<compile_context>
chip_gen: v5e
topology: v5e:2x2
jax: 0.10.0
libtpu: 0.0.40
codegen_flags: <defaults>
</compile_context>

<pallas_src>
import functools

import numpy as np
import jax
import jax.numpy as jnp
from jax import lax
from jax.experimental import pallas as pl
from jax.experimental.pallas import tpu as pltpu

BN_EPS = 1e-5
COMPUTE_DTYPE = jnp.bfloat16      # MXU operand dtype; accumulation is always f32


# ---------------------------------------------------------------------------
# Single fused kernel: upconv GEMM + pixel shuffle + concat + conv1 + conv2
# ---------------------------------------------------------------------------
def _upconv_fused_kernel(fu_ref, down_ref, wup_ref, bup_ref, s_ref,
                         w1_ref, b1_ref, w2_ref, b2_ref,
                         o_ref, xpad_ref, ypad_ref,
                         *, Cout, Hu, Wu, H, W, WS, GL):
    """fu_ref   : (1, Cin, Hu*Wu)   bf16    from_up (NCHW, spatial flattened)
       down_ref : (1, Cout, H*W)    bf16    from_down
       wup_ref  : (4*Cout, Cin)     bf16    ConvT weight, rows ordered (di, dj, co)
       bup_ref  : (4*Cout, 1)       f32     ConvT bias (tiled per (di, dj))
       s_ref    : (Wu, W)           bf16    column-duplication matrix S[j,2j]=S[j,2j+1]=1
       w1_ref   : (9, Cout, 2*Cout) bf16    conv_in  weights, tap-major, BN folded
       w2_ref   : (9, Cout, Cout)   bf16    conv_out weights, tap-major, BN folded
       b1_ref, b2_ref : (Cout, 1)   f32     folded biases
       o_ref    : (1, Cout, H*W)    bf16
       xpad_ref : (2*Cout, MPAD)    bf16    padded concat(up, down) scratch
       ypad_ref : (Cout, MPAD)      bf16    padded conv_in output scratch
       Layout: flat = GL + r*WS + c, r in [0, H+2) padded rows, interior at c in [0, W).
    """
    C2 = 2 * Cout
    Lc = H * WS                       # contiguous lane range the convs compute over
    MPAD = xpad_ref.shape[1]
    bot = GL + (H + 1) * WS           # start of bottom pad row

    # ---- zero ONLY the never-overwritten pad/guard regions (every step) -----
    xpad_ref[:, pl.ds(0, GL + WS)] = jnp.zeros((C2, GL + WS), xpad_ref.dtype)
    xpad_ref[:, pl.ds(bot, MPAD - bot)] = jnp.zeros((C2, MPAD - bot), xpad_ref.dtype)
    ypad_ref[:, pl.ds(0, GL + WS)] = jnp.zeros((Cout, GL + WS), ypad_ref.dtype)
    ypad_ref[:, pl.ds(bot, MPAD - bot)] = jnp.zeros((Cout, MPAD - bot), ypad_ref.dtype)
    zx = jnp.zeros((C2, WS - W), xpad_ref.dtype)
    zy = jnp.zeros((Cout, WS - W), ypad_ref.dtype)
    for h in range(H):                                 # per-row pad strips [W, WS)
        pad0 = GL + (h + 1) * WS + W
        xpad_ref[:, pl.ds(pad0, WS - W)] = zx
        ypad_ref[:, pl.ds(pad0, WS - W)] = zy

    # ---- ConvTranspose2d(k=2,s=2): one GEMM over the whole low-res image ----
    up4 = jnp.dot(wup_ref[...], fu_ref[0], preferred_element_type=jnp.float32)
    up4 = (up4 + bup_ref[...]).astype(xpad_ref.dtype)  # (4*Cout, Hu*Wu) bf16

    # lane-parity mask for the 2x interleave (hoisted out of the row loop)
    even = lax.broadcasted_iota(jnp.int32, (Cout, W), 1) % 2 == 0

    # ---- pixel shuffle + channel concat, packed straight into xpad ----------
    for i in range(Hu):
        # duplicate every low-res column: (4*Cout, Wu) @ (Wu, W) -> (4*Cout, W)
        sp = jnp.dot(up4[:, i * Wu:(i + 1) * Wu], s_ref[...],
                     preferred_element_type=jnp.float32)
        for di in range(2):
            h = 2 * i + di
            dst = GL + (h + 1) * WS                    # 128-aligned row start
            row = jnp.where(even,
                            sp[(2 * di) * Cout:(2 * di + 1) * Cout, :],
                            sp[(2 * di + 1) * Cout:(2 * di + 2) * Cout, :])
            xpad_ref[pl.ds(0, Cout), pl.ds(dst, W)] = row.astype(xpad_ref.dtype)
            xpad_ref[pl.ds(Cout, Cout), pl.ds(dst, W)] = down_ref[0, :, pl.ds(h * W, W)]

    # ---- 3x3 conv = 9 lane-shifted MXU matmuls, accumulator seeded by tap 0 -
    def conv3x3(src_ref, w_ref, b_ref):
        acc = None
        for kh in range(3):
            for kw in range(3):
                off = GL + WS + (kh - 1) * WS + (kw - 1)      # static lane offset
                d = jnp.dot(w_ref[kh * 3 + kw], src_ref[:, pl.ds(off, Lc)],
                            preferred_element_type=jnp.float32)
                acc = d if acc is None else acc + d
        return jnp.maximum(acc + b_ref[...], 0.0)             # (Cout, Lc) f32

    # ---- conv_in (+ folded BN) + ReLU; interior rows -> padded scratch ------
    y1 = conv3x3(xpad_ref, w1_ref, b1_ref)
    for h in range(H):
        dst = GL + (h + 1) * WS
        ypad_ref[:, pl.ds(dst, W)] = y1[:, h * WS:h * WS + W].astype(ypad_ref.dtype)

    # ---- conv_out (+ folded BN) + ReLU; interior rows -> lane-dense output --
    y2 = conv3x3(ypad_ref, w2_ref, b2_ref)
    for h in range(H):
        o_ref[0, :, pl.ds(h * W, W)] = y2[:, h * WS:h * WS + W].astype(o_ref.dtype)


# ---------------------------------------------------------------------------
# Wrapper
# ---------------------------------------------------------------------------
def _fold_bn_into_conv(w, b, eps=BN_EPS):
    # eval-mode BatchNorm2d with fresh params: gamma=1, beta=0, mean=0, var=1
    s = 1.0 / np.sqrt(1.0 + eps)
    return w * s, b * s


def upconv_forward(from_down, from_up, params, out_dtype=jnp.bfloat16):
    """Inputs/outputs in NCHW (PyTorch convention)."""
    w_t, b_t = params["w_t"], params["b_t"]          # (Cin, Cout, 2, 2), (Cout,)
    w1, b1 = params["w1"], params["b1"]              # (Cout, 2*Cout, 3, 3), (Cout,)
    w2, b2 = params["w2"], params["b2"]              # (Cout, Cout, 3, 3), (Cout,)

    N, Cin, Hu, Wu = from_up.shape
    Cout = w_t.shape[1]
    H, W = 2 * Hu, 2 * Wu
    assert from_down.shape == (N, Cout, H, W)
    HW, HuWu = H * W, Hu * Wu
    cd = COMPUTE_DTYPE

    # lane-aligned padded-row layout: interior at column 0, pad columns at the end
    GL = 128                                       # guard / alignment margin (lanes)
    WS = ((W + 2 + 127) // 128) * 128              # padded row stride (mult of 128)
    MPAD = GL + (H + 2) * WS + 128                 # guard | (H+2) rows of WS | guard

    fu = from_up.reshape(N, Cin, HuWu).astype(cd)                  # free reshape
    down = from_down.reshape(N, Cout, HW).astype(cd)               # free reshape

    # ConvTranspose weight rows ordered (di, dj, co); bias tiled per (di, dj)
    w_up = jnp.transpose(w_t, (2, 3, 1, 0)).reshape(4 * Cout, Cin).astype(cd)
    b_up = jnp.tile(b_t, 4).reshape(4 * Cout, 1).astype(jnp.float32)

    # column-duplication matrix for the 2x interleave: S[j, 2j] = S[j, 2j+1] = 1
    spread = (jnp.arange(W)[None, :] // 2 == jnp.arange(Wu)[:, None]).astype(cd)

    # fold eval-mode BN into conv weights
    w1f, b1f = _fold_bn_into_conv(w1, b1)
    w2f, b2f = _fold_bn_into_conv(w2, b2)
    w1m = jnp.transpose(w1f, (2, 3, 0, 1)).reshape(9, Cout, 2 * Cout).astype(cd)
    w2m = jnp.transpose(w2f, (2, 3, 0, 1)).reshape(9, Cout, Cout).astype(cd)
    b1m = b1f.reshape(Cout, 1).astype(jnp.float32)
    b2m = b2f.reshape(Cout, 1).astype(jnp.float32)

    kernel = functools.partial(_upconv_fused_kernel, Cout=Cout, Hu=Hu, Wu=Wu,
                               H=H, W=W, WS=WS, GL=GL)
    out = pl.pallas_call(
        kernel,
        out_shape=jax.ShapeDtypeStruct((N, Cout, HW), out_dtype),
        grid=(N,),
        in_specs=[
            pl.BlockSpec((1, Cin, HuWu), lambda n: (n, 0, 0)),       # from_up
            pl.BlockSpec((1, Cout, HW), lambda n: (n, 0, 0)),        # from_down
            pl.BlockSpec((4 * Cout, Cin), lambda n: (0, 0)),         # upconv weight
            pl.BlockSpec((4 * Cout, 1), lambda n: (0, 0)),           # upconv bias
            pl.BlockSpec((Wu, W), lambda n: (0, 0)),                 # spread matrix
            pl.BlockSpec((9, Cout, 2 * Cout), lambda n: (0, 0, 0)),  # w1 (folded)
            pl.BlockSpec((Cout, 1), lambda n: (0, 0)),               # b1 (folded)
            pl.BlockSpec((9, Cout, Cout), lambda n: (0, 0, 0)),      # w2 (folded)
            pl.BlockSpec((Cout, 1), lambda n: (0, 0)),               # b2 (folded)
        ],
        out_specs=pl.BlockSpec((1, Cout, HW), lambda n: (n, 0, 0)),
        scratch_shapes=[
            pltpu.VMEM((2 * Cout, MPAD), cd),   # padded concat(up, down)
            pltpu.VMEM((Cout, MPAD), cd),       # padded conv_in output
        ],
        compiler_params=pltpu.CompilerParams(dimension_semantics=("parallel",)),
    )(fu, down, w_up, b_up, spread, w1m, b1m, w2m, b2m)

    return out.reshape(N, Cout, H, W)           # free reshape back to NCHW


# ---------------------------------------------------------------------------
# Independent numpy reference (PyTorch semantics, eval-mode BN)
# ---------------------------------------------------------------------------
def reference_forward(from_down, from_up, params):
    fd = np.asarray(from_down, np.float32)
    fu = np.asarray(from_up, np.float32)
    wt = np.asarray(params["w_t"]); bt = np.asarray(params["b_t"])
    w1 = np.asarray(params["w1"]);  b1 = np.asarray(params["b1"])
    w2 = np.asarray(params["w2"]);  b2 = np.asarray(params["b2"])

    N, Cin, Hu, Wu = fu.shape
    Cout = wt.shape[1]
    H, W = 2 * Hu, 2 * Wu

    up = np.zeros((N, Cout, H, W), np.float32)
    for di in range(2):
        for dj in range(2):
            up[:, :, di::2, dj::2] = (
                np.einsum("ncij,cd->ndij", fu, wt[:, :, di, dj])
                + bt[None, :, None, None]
            )
    x = np.concatenate([up, fd], axis=1)

    def conv_bn_relu(x, w, b):
        co, ci, _, _ = w.shape
        n_, c_, h_, w_sz = x.shape
        xp = np.pad(x, ((0, 0), (0, 0), (1, 1), (1, 1)))
        y = np.zeros((n_, co, h_, w_sz), np.float32)
        for kh in range(3):
            for kw in range(3):
                y += np.einsum("ncij,dc->ndij",
                               xp[:, :, kh:kh + h_, kw:kw + w_sz], w[:, :, kh, kw])
        y = (y + b[None, :, None, None]) / np.sqrt(1.0 + BN_EPS)
        return np.maximum(y, 0.0)

    y = conv_bn_relu(x, w1, b1)
    y = conv_bn_relu(y, w2, b2)
    return y


# ---------------------------------------------------------------------------
if __name__ == "__main__":
    in_channels, out_channels = 8, 4
    N, Hu, Wu = 2, 8, 8
    H, W = 2 * Hu, 2 * Wu

    key = jax.random.PRNGKey(0)
    ks = jax.random.split(key, 8)
    from_down = jax.random.normal(ks[0], (N, out_channels, H, W), jnp.float32)
    from_up = jax.random.normal(ks[1], (N, in_channels, Hu, Wu), jnp.float32)

    params = {
        # ConvTranspose2d weight: (in_channels, out_channels, 2, 2)
        "w_t": 0.1 * jax.random.normal(ks[2], (in_channels, out_channels, 2, 2), jnp.float32),
        "b_t": 0.1 * jax.random.normal(ks[3], (out_channels,), jnp.float32),
        # conv_in: Conv2d(2*out_channels -> out_channels, 3x3)
        "w1": 0.1 * jax.random.normal(ks[4], (out_channels, 2 * out_channels, 3, 3), jnp.float32),
        "b1": 0.1 * jax.random.normal(ks[5], (out_channels,), jnp.float32),
        # conv_out: Conv2d(out_channels -> out_channels, 3x3)
        "w2": 0.1 * jax.random.normal(ks[6], (out_channels, out_channels, 3, 3), jnp.float32),
        "b2": 0.1 * jax.random.normal(ks[7], (out_channels,), jnp.float32),
    }

    out = jax.jit(upconv_forward)(from_down, from_up, params)
    out = jax.block_until_ready(out)
    assert out.shape == (N, out_channels, H, W), out.shape

    ref = reference_forward(from_down, from_up, params)
    out_f32 = np.asarray(out.astype(jnp.float32))
    # Tolerance sized for bf16 MXU operands / bf16 output (f32 accumulation).
    np.testing.assert_allclose(out_f32, ref, rtol=5e-2, atol=5e-2)

    print("KERNEL_OK")
</pallas_src>

<mosaic_0001>
module attributes {stable_mosaic.version = 11 : i64} {
  func.func @_upconv_fused_kernel(%arg0: i32, %arg1: memref<1x8x64xbf16, #tpu.memory_space<vmem>>, %arg2: memref<1x4x256xbf16, #tpu.memory_space<vmem>>, %arg3: memref<16x8xbf16, #tpu.memory_space<vmem>>, %arg4: memref<16x1xf32, #tpu.memory_space<vmem>>, %arg5: memref<8x16xbf16, #tpu.memory_space<vmem>>, %arg6: memref<9x4x8xbf16, #tpu.memory_space<vmem>>, %arg7: memref<4x1xf32, #tpu.memory_space<vmem>>, %arg8: memref<9x4x4xbf16, #tpu.memory_space<vmem>>, %arg9: memref<4x1xf32, #tpu.memory_space<vmem>>, %arg10: memref<1x4x256xbf16, #tpu.memory_space<vmem>>, %arg11: memref<8x2560xbf16, #tpu.memory_space<vmem>>, %arg12: memref<4x2560xbf16, #tpu.memory_space<vmem>>) attributes {dimension_semantics = [#tpu.dimension_semantics<parallel>], iteration_bounds = array<i64: 2>, scalar_prefetch = 0 : i64, scratch_operands = 2 : i64, tpu.core_type = #tpu.core_type<tc>, window_params = [{transform_indices = @transform_0, window_bounds = array<i64: 1, 8, 64>}, {transform_indices = @transform_1, window_bounds = array<i64: 1, 4, 256>}, {pipeline_mode = #tpu.pipeline_mode<synchronous>, transform_indices = @transform_2, window_bounds = array<i64: 16, 8>}, {pipeline_mode = #tpu.pipeline_mode<synchronous>, transform_indices = @transform_3, window_bounds = array<i64: 16, 1>}, {pipeline_mode = #tpu.pipeline_mode<synchronous>, transform_indices = @transform_4, window_bounds = array<i64: 8, 16>}, {pipeline_mode = #tpu.pipeline_mode<synchronous>, transform_indices = @transform_5, window_bounds = array<i64: 9, 4, 8>}, {pipeline_mode = #tpu.pipeline_mode<synchronous>, transform_indices = @transform_6, window_bounds = array<i64: 4, 1>}, {pipeline_mode = #tpu.pipeline_mode<synchronous>, transform_indices = @transform_7, window_bounds = array<i64: 9, 4, 4>}, {pipeline_mode = #tpu.pipeline_mode<synchronous>, transform_indices = @transform_8, window_bounds = array<i64: 4, 1>}, {transform_indices = @transform_9, window_bounds = array<i64: 1, 4, 256>}]} {
    %cst = arith.constant 0.000000e+00 : bf16
    %0 = vector.broadcast %cst : bf16 to vector<8x256xbf16>
    %c0 = arith.constant 0 : index
    %c0_0 = arith.constant 0 : index
    %1 = vector.load %arg11[%c0, %c0_0] : memref<8x2560xbf16, #tpu.memory_space<vmem>>, vector<8x256xbf16>
    tpu.vector_store %arg11[%c0, %c0_0], %0 {strides = array<i32>} : memref<8x2560xbf16, #tpu.memory_space<vmem>>, vector<8x256xbf16>,
    %cst_1 = arith.constant 0.000000e+00 : bf16
    %2 = vector.broadcast %cst_1 : bf16 to vector<8x256xbf16>
    %c0_2 = arith.constant 0 : index
    %c2304 = arith.constant 2304 : index
    %3 = vector.load %arg11[%c0_2, %c2304] : memref<8x2560xbf16, #tpu.memory_space<vmem>>, vector<8x256xbf16>
    tpu.vector_store %arg11[%c0_2, %c2304], %2 {strides = array<i32>} : memref<8x2560xbf16, #tpu.memory_space<vmem>>, vector<8x256xbf16>,
    %cst_3 = arith.constant 0.000000e+00 : bf16
    %4 = vector.broadcast %cst_3 : bf16 to vector<4x256xbf16>
    %c0_4 = arith.constant 0 : index
    %c0_5 = arith.constant 0 : index
    %5 = vector.load %arg12[%c0_4, %c0_5] : memref<4x2560xbf16, #tpu.memory_space<vmem>>, vector<4x256xbf16>
    tpu.vector_store %arg12[%c0_4, %c0_5], %4 {strides = array<i32>} : memref<4x2560xbf16, #tpu.memory_space<vmem>>, vector<4x256xbf16>,
    %cst_6 = arith.constant 0.000000e+00 : bf16
    %6 = vector.broadcast %cst_6 : bf16 to vector<4x256xbf16>
    %c0_7 = arith.constant 0 : index
    %c2304_8 = arith.constant 2304 : index
    %7 = vector.load %arg12[%c0_7, %c2304_8] : memref<4x2560xbf16, #tpu.memory_space<vmem>>, vector<4x256xbf16>
    tpu.vector_store %arg12[%c0_7, %c2304_8], %6 {strides = array<i32>} : memref<4x2560xbf16, #tpu.memory_space<vmem>>, vector<4x256xbf16>,
    %cst_9 = arith.constant 0.000000e+00 : bf16
    %8 = vector.broadcast %cst_9 : bf16 to vector<8x112xbf16>
    %cst_10 = arith.constant 0.000000e+00 : bf16
    %9 = vector.broadcast %cst_10 : bf16 to vector<4x112xbf16>
    %c0_11 = arith.constant 0 : index
    %c272 = arith.constant 272 : index
    %10 = vector.load %arg11[%c0_11, %c272] : memref<8x2560xbf16, #tpu.memory_space<vmem>>, vector<8x112xbf16>
    tpu.vector_store %arg11[%c0_11, %c272], %8 {strides = array<i32>} : memref<8x2560xbf16, #tpu.memory_space<vmem>>, vector<8x112xbf16>,
    %c0_12 = arith.constant 0 : index
    %c272_13 = arith.constant 272 : index
    %11 = vector.load %arg12[%c0_12, %c272_13] : memref<4x2560xbf16, #tpu.memory_space<vmem>>, vector<4x112xbf16>
    tpu.vector_store %arg12[%c0_12, %c272_13], %9 {strides = array<i32>} : memref<4x2560xbf16, #tpu.memory_space<vmem>>, vector<4x112xbf16>,
    %c0_14 = arith.constant 0 : index
    %c400 = arith.constant 400 : index
    %12 = vector.load %arg11[%c0_14, %c400] : memref<8x2560xbf16, #tpu.memory_space<vmem>>, vector<8x112xbf16>
    tpu.vector_store %arg11[%c0_14, %c400], %8 {strides = array<i32>} : memref<8x2560xbf16, #tpu.memory_space<vmem>>, vector<8x112xbf16>,
    %c0_15 = arith.constant 0 : index
    %c400_16 = arith.constant 400 : index
    %13 = vector.load %arg12[%c0_15, %c400_16] : memref<4x2560xbf16, #tpu.memory_space<vmem>>, vector<4x112xbf16>
    tpu.vector_store %arg12[%c0_15, %c400_16], %9 {strides = array<i32>} : memref<4x2560xbf16, #tpu.memory_space<vmem>>, vector<4x112xbf16>,
    %c0_17 = arith.constant 0 : index
    %c528 = arith.constant 528 : index
    %14 = vector.load %arg11[%c0_17, %c528] : memref<8x2560xbf16, #tpu.memory_space<vmem>>, vector<8x112xbf16>
    tpu.vector_store %arg11[%c0_17, %c528], %8 {strides = array<i32>} : memref<8x2560xbf16, #tpu.memory_space<vmem>>, vector<8x112xbf16>,
    %c0_18 = arith.constant 0 : index
    %c528_19 = arith.constant 528 : index
    %15 = vector.load %arg12[%c0_18, %c528_19] : memref<4x2560xbf16, #tpu.memory_space<vmem>>, vector<4x112xbf16>
    tpu.vector_store %arg12[%c0_18, %c528_19], %9 {strides = array<i32>} : memref<4x2560xbf16, #tpu.memory_space<vmem>>, vector<4x112xbf16>,
    %c0_20 = arith.constant 0 : index
    %c656 = arith.constant 656 : index
    %16 = vector.load %arg11[%c0_20, %c656] : memref<8x2560xbf16, #tpu.memory_space<vmem>>, vector<8x112xbf16>
    tpu.vector_store %arg11[%c0_20, %c656], %8 {strides = array<i32>} : memref<8x2560xbf16, #tpu.memory_space<vmem>>, vector<8x112xbf16>,
    %c0_21 = arith.constant 0 : index
    %c656_22 = arith.constant 656 : index
    %17 = vector.load %arg12[%c0_21, %c656_22] : memref<4x2560xbf16, #tpu.memory_space<vmem>>, vector<4x112xbf16>
    tpu.vector_store %arg12[%c0_21, %c656_22], %9 {strides = array<i32>} : memref<4x2560xbf16, #tpu.memory_space<vmem>>, vector<4x112xbf16>,
    %c0_23 = arith.constant 0 : index
    %c784 = arith.constant 784 : index
    %18 = vector.load %arg11[%c0_23, %c784] : memref<8x2560xbf16, #tpu.memory_space<vmem>>, vector<8x112xbf16>
    tpu.vector_store %arg11[%c0_23, %c784], %8 {strides = array<i32>} : memref<8x2560xbf16, #tpu.memory_space<vmem>>, vector<8x112xbf16>,
    %c0_24 = arith.constant 0 : index
    %c784_25 = arith.constant 784 : index
    %19 = vector.load %arg12[%c0_24, %c784_25] : memref<4x2560xbf16, #tpu.memory_space<vmem>>, vector<4x112xbf16>
    tpu.vector_store %arg12[%c0_24, %c784_25], %9 {strides = array<i32>} : memref<4x2560xbf16, #tpu.memory_space<vmem>>, vector<4x112xbf16>,
    %c0_26 = arith.constant 0 : index
    %c912 = arith.constant 912 : index
    %20 = vector.load %arg11[%c0_26, %c912] : memref<8x2560xbf16, #tpu.memory_space<vmem>>, vector<8x112xbf16>
    tpu.vector_store %arg11[%c0_26, %c912], %8 {strides = array<i32>} : memref<8x2560xbf16, #tpu.memory_space<vmem>>, vector<8x112xbf16>,
    %c0_27 = arith.constant 0 : index
    %c912_28 = arith.constant 912 : index
    %21 = vector.load %arg12[%c0_27, %c912_28] : memref<4x2560xbf16, #tpu.memory_space<vmem>>, vector<4x112xbf16>
    tpu.vector_store %arg12[%c0_27, %c912_28], %9 {strides = array<i32>} : memref<4x2560xbf16, #tpu.memory_space<vmem>>, vector<4x112xbf16>,
    %c0_29 = arith.constant 0 : index
    %c1040 = arith.constant 1040 : index
    %22 = vector.load %arg11[%c0_29, %c1040] : memref<8x2560xbf16, #tpu.memory_space<vmem>>, vector<8x112xbf16>
    tpu.vector_store %arg11[%c0_29, %c1040], %8 {strides = array<i32>} : memref<8x2560xbf16, #tpu.memory_space<vmem>>, vector<8x112xbf16>,
    %c0_30 = arith.constant 0 : index
    %c1040_31 = arith.constant 1040 : index
    %23 = vector.load %arg12[%c0_30, %c1040_31] : memref<4x2560xbf16, #tpu.memory_space<vmem>>, vector<4x112xbf16>
    tpu.vector_store %arg12[%c0_30, %c1040_31], %9 {strides = array<i32>} : memref<4x2560xbf16, #tpu.memory_space<vmem>>, vector<4x112xbf16>,
    %c0_32 = arith.constant 0 : index
    %c1168 = arith.constant 1168 : index
    %24 = vector.load %arg11[%c0_32, %c1168] : memref<8x2560xbf16, #tpu.memory_space<vmem>>, vector<8x112xbf16>
    tpu.vector_store %arg11[%c0_32, %c1168], %8 {strides = array<i32>} : memref<8x2560xbf16, #tpu.memory_space<vmem>>, vector<8x112xbf16>,
    %c0_33 = arith.constant 0 : index
    %c1168_34 = arith.constant 1168 : index
    %25 = vector.load %arg12[%c0_33, %c1168_34] : memref<4x2560xbf16, #tpu.memory_space<vmem>>, vector<4x112xbf16>
    tpu.vector_store %arg12[%c0_33, %c1168_34], %9 {strides = array<i32>} : memref<4x2560xbf16, #tpu.memory_space<vmem>>, vector<4x112xbf16>,
    %c0_35 = arith.constant 0 : index
    %c1296 = arith.constant 1296 : index
    %26 = vector.load %arg11[%c0_35, %c1296] : memref<8x2560xbf16, #tpu.memory_space<vmem>>, vector<8x112xbf16>
    tpu.vector_store %arg11[%c0_35, %c1296], %8 {strides = array<i32>} : memref<8x2560xbf16, #tpu.memory_space<vmem>>, vector<8x112xbf16>,
    %c0_36 = arith.constant 0 : index
    %c1296_37 = arith.constant 1296 : index
    %27 = vector.load %arg12[%c0_36, %c1296_37] : memref<4x2560xbf16, #tpu.memory_space<vmem>>, vector<4x112xbf16>
    tpu.vector_store %arg12[%c0_36, %c1296_37], %9 {strides = array<i32>} : memref<4x2560xbf16, #tpu.memory_space<vmem>>, vector<4x112xbf16>,
    %c0_38 = arith.constant 0 : index
    %c1424 = arith.constant 1424 : index
    %28 = vector.load %arg11[%c0_38, %c1424] : memref<8x2560xbf16, #tpu.memory_space<vmem>>, vector<8x112xbf16>
    tpu.vector_store %arg11[%c0_38, %c1424], %8 {strides = array<i32>} : memref<8x2560xbf16, #tpu.memory_space<vmem>>, vector<8x112xbf16>,
    %c0_39 = arith.constant 0 : index
    %c1424_40 = arith.constant 1424 : index
    %29 = vector.load %arg12[%c0_39, %c1424_40] : memref<4x2560xbf16, #tpu.memory_space<vmem>>, vector<4x112xbf16>
    tpu.vector_store %arg12[%c0_39, %c1424_40], %9 {strides = array<i32>} : memref<4x2560xbf16, #tpu.memory_space<vmem>>, vector<4x112xbf16>,
    %c0_41 = arith.constant 0 : index
    %c1552 = arith.constant 1552 : index
    %30 = vector.load %arg11[%c0_41, %c1552] : memref<8x2560xbf16, #tpu.memory_space<vmem>>, vector<8x112xbf16>
    tpu.vector_store %arg11[%c0_41, %c1552], %8 {strides = array<i32>} : memref<8x2560xbf16, #tpu.memory_space<vmem>>, vector<8x112xbf16>,
    %c0_42 = arith.constant 0 : index
    %c1552_43 = arith.constant 1552 : index
    %31 = vector.load %arg12[%c0_42, %c1552_43] : memref<4x2560xbf16, #tpu.memory_space<vmem>>, vector<4x112xbf16>
    tpu.vector_store %arg12[%c0_42, %c1552_43], %9 {strides = array<i32>} : memref<4x2560xbf16, #tpu.memory_space<vmem>>, vector<4x112xbf16>,
    %c0_44 = arith.constant 0 : index
    %c1680 = arith.constant 1680 : index
    %32 = vector.load %arg11[%c0_44, %c1680] : memref<8x2560xbf16, #tpu.memory_space<vmem>>, vector<8x112xbf16>
    tpu.vector_store %arg11[%c0_44, %c1680], %8 {strides = array<i32>} : memref<8x2560xbf16, #tpu.memory_space<vmem>>, vector<8x112xbf16>,
    %c0_45 = arith.constant 0 : index
    %c1680_46 = arith.constant 1680 : index
    %33 = vector.load %arg12[%c0_45, %c1680_46] : memref<4x2560xbf16, #tpu.memory_space<vmem>>, vector<4x112xbf16>
    tpu.vector_store %arg12[%c0_45, %c1680_46], %9 {strides = array<i32>} : memref<4x2560xbf16, #tpu.memory_space<vmem>>, vector<4x112xbf16>,
    %c0_47 = arith.constant 0 : index
    %c1808 = arith.constant 1808 : index
    %34 = vector.load %arg11[%c0_47, %c1808] : memref<8x2560xbf16, #tpu.memory_space<vmem>>, vector<8x112xbf16>
    tpu.vector_store %arg11[%c0_47, %c1808], %8 {strides = array<i32>} : memref<8x2560xbf16, #tpu.memory_space<vmem>>, vector<8x112xbf16>,
    %c0_48 = arith.constant 0 : index
    %c1808_49 = arith.constant 1808 : index
    %35 = vector.load %arg12[%c0_48, %c1808_49] : memref<4x2560xbf16, #tpu.memory_space<vmem>>, vector<4x112xbf16>
    tpu.vector_store %arg12[%c0_48, %c1808_49], %9 {strides = array<i32>} : memref<4x2560xbf16, #tpu.memory_space<vmem>>, vector<4x112xbf16>,
    %c0_50 = arith.constant 0 : index
    %c1936 = arith.constant 1936 : index
    %36 = vector.load %arg11[%c0_50, %c1936] : memref<8x2560xbf16, #tpu.memory_space<vmem>>, vector<8x112xbf16>
    tpu.vector_store %arg11[%c0_50, %c1936], %8 {strides = array<i32>} : memref<8x2560xbf16, #tpu.memory_space<vmem>>, vector<8x112xbf16>,
    %c0_51 = arith.constant 0 : index
    %c1936_52 = arith.constant 1936 : index
    %37 = vector.load %arg12[%c0_51, %c1936_52] : memref<4x2560xbf16, #tpu.memory_space<vmem>>, vector<4x112xbf16>
    tpu.vector_store %arg12[%c0_51, %c1936_52], %9 {strides = array<i32>} : memref<4x2560xbf16, #tpu.memory_space<vmem>>, vector<4x112xbf16>,
    %c0_53 = arith.constant 0 : index
    %c2064 = arith.constant 2064 : index
    %38 = vector.load %arg11[%c0_53, %c2064] : memref<8x2560xbf16, #tpu.memory_space<vmem>>, vector<8x112xbf16>
    tpu.vector_store %arg11[%c0_53, %c2064], %8 {strides = array<i32>} : memref<8x2560xbf16, #tpu.memory_space<vmem>>, vector<8x112xbf16>,
    %c0_54 = arith.constant 0 : index
    %c2064_55 = arith.constant 2064 : index
    %39 = vector.load %arg12[%c0_54, %c2064_55] : memref<4x2560xbf16, #tpu.memory_space<vmem>>, vector<4x112xbf16>
    tpu.vector_store %arg12[%c0_54, %c2064_55], %9 {strides = array<i32>} : memref<4x2560xbf16, #tpu.memory_space<vmem>>, vector<4x112xbf16>,
    %c0_56 = arith.constant 0 : index
    %c2192 = arith.constant 2192 : index
    %40 = vector.load %arg11[%c0_56, %c2192] : memref<8x2560xbf16, #tpu.memory_space<vmem>>, vector<8x112xbf16>
    tpu.vector_store %arg11[%c0_56, %c2192], %8 {strides = array<i32>} : memref<8x2560xbf16, #tpu.memory_space<vmem>>, vector<8x112xbf16>,
    %c0_57 = arith.constant 0 : index
    %c2192_58 = arith.constant 2192 : index
    %41 = vector.load %arg12[%c0_57, %c2192_58] : memref<4x2560xbf16, #tpu.memory_space<vmem>>, vector<4x112xbf16>
    tpu.vector_store %arg12[%c0_57, %c2192_58], %9 {strides = array<i32>} : memref<4x2560xbf16, #tpu.memory_space<vmem>>, vector<4x112xbf16>,
    %c0_59 = arith.constant 0 : index
    %c0_60 = arith.constant 0 : index
    %42 = vector.load %arg3[%c0_59, %c0_60] : memref<16x8xbf16, #tpu.memory_space<vmem>>, vector<16x8xbf16>
    %c0_61 = arith.constant 0 : index
    %c0_62 = arith.constant 0 : index
    %c0_63 = arith.constant 0 : index
    %43 = vector.load %arg1[%c0_61, %c0_62, %c0_63] : memref<1x8x64xbf16, #tpu.memory_space<vmem>>, vector<1x8x64xbf16>
    %44 = vector.shape_cast %43 : vector<1x8x64xbf16> to vector<8x64xbf16>
    %cst_64 = arith.constant dense<0.000000e+00> : vector<16x64xf32>
    %45 = tpu.matmul %42, %44, %cst_64 {dimension_numbers = #tpu.dot_dimension_numbers<[1], [0], [0], [1], [0, 0, 1, 1], [], []>} : vector<16x8xbf16>, vector<8x64xbf16>, vector<16x64xf32> -> vector<16x64xf32>
    %c0_65 = arith.constant 0 : index
    %c0_66 = arith.constant 0 : index
    %46 = vector.load %arg4[%c0_65, %c0_66] : memref<16x1xf32, #tpu.memory_space<vmem>>, vector<16x1xf32>
    %47 = vector.broadcast %46 : vector<16x1xf32> to vector<16x64xf32>
    %48 = arith.addf %45, %47 : vector<16x64xf32>
    %49 = arith.truncf %48 : vector<16x64xf32> to vector<16x64xbf16>
    %50 = tpu.iota {dimensions = array<i32: 1>} : vector<4x16xi32>
    %c2_i32 = arith.constant 2 : i32
    %c0_i32 = arith.constant 0 : i32
    %51 = arith.cmpi eq, %c2_i32, %c0_i32 : i32
    %c1_i32 = arith.constant 1 : i32
    %52 = arith.select %51, %c1_i32, %c2_i32 : i32
    %53 = vector.broadcast %52 : i32 to vector<4x16xi32>
    %54 = arith.remsi %50, %53 : vector<4x16xi32>
    %c0_i32_67 = arith.constant 0 : i32
    %55 = vector.broadcast %c0_i32_67 : i32 to vector<4x16xi32>
    %56 = arith.cmpi ne, %54, %55 : vector<4x16xi32>
    %c0_i32_68 = arith.constant 0 : i32
    %57 = vector.broadcast %c0_i32_68 : i32 to vector<4x16xi32>
    %58 = arith.cmpi slt, %54, %57 : vector<4x16xi32>
    %c0_i32_69 = arith.constant 0 : i32
    %59 = arith.cmpi slt, %52, %c0_i32_69 : i32
    %60 = vector.broadcast %59 : i1 to vector<4x16xi1>
    %61 = vector.broadcast %60 : vector<4x16xi1> to vector<4x16xi1>
    %62 = arith.xori %58, %61 : vector<4x16xi1>
    %63 = arith.andi %62, %56 : vector<4x16xi1>
    %64 = vector.broadcast %52 : i32 to vector<4x16xi32>
    %65 = arith.addi %54, %64 : vector<4x16xi32>
    %66 = arith.select %63, %65, %54 : vector<4x16xi1>, vector<4x16xi32>
    %c0_i32_70 = arith.constant 0 : i32
    %67 = vector.broadcast %c0_i32_70 : i32 to vector<4x16xi32>
    %68 = arith.cmpi eq, %66, %67 : vector<4x16xi32>
    %69 = vector.extract_strided_slice %49 {offsets = [0, 0], sizes = [16, 8], strides = [1, 1]} : vector<16x64xbf16> to vector<16x8xbf16>
    %c0_71 = arith.constant 0 : index
    %c0_72 = arith.constant 0 : index
    %70 = vector.load %arg5[%c0_71, %c0_72] : memref<8x16xbf16, #tpu.memory_space<vmem>>, vector<8x16xbf16>
    %cst_73 = arith.constant dense<0.000000e+00> : vector<16x16xf32>
    %71 = tpu.matmul %69, %70, %cst_73 {dimension_numbers = #tpu.dot_dimension_numbers<[1], [0], [0], [1], [0, 0, 1, 1], [], []>} : vector<16x8xbf16>, vector<8x16xbf16>, vector<16x16xf32> -> vector<16x16xf32>
    %72 = vector.extract_strided_slice %71 {offsets = [0, 0], sizes = [4, 16], strides = [1, 1]} : vector<16x16xf32> to vector<4x16xf32>
    %73 = vector.extract_strided_slice %71 {offsets = [4, 0], sizes = [4, 16], strides = [1, 1]} : vector<16x16xf32> to vector<4x16xf32>
    %74 = arith.select %68, %72, %73 : vector<4x16xi1>, vector<4x16xf32>
    %75 = arith.truncf %74 : vector<4x16xf32> to vector<4x16xbf16>
    %c0_74 = arith.constant 0 : index
    %c256 = arith.constant 256 : index
    %76 = vector.load %arg11[%c0_74, %c256] : memref<8x2560xbf16, #tpu.memory_space<vmem>>, vector<4x16xbf16>
    tpu.vector_store %arg11[%c0_74, %c256], %75 {strides = array<i32>} : memref<8x2560xbf16, #tpu.memory_space<vmem>>, vector<4x16xbf16>,
    %c0_75 = arith.constant 0 : index
    %c0_76 = arith.constant 0 : index
    %c0_77 = arith.constant 0 : index
    %77 = vector.load %arg2[%c0_75, %c0_76, %c0_77] : memref<1x4x256xbf16, #tpu.memory_space<vmem>>, vector<1x4x16xbf16>
    %78 = vector.shape_cast %77 : vector<1x4x16xbf16> to vector<4x16xbf16>
    %c4 = arith.constant 4 : index
    %c256_78 = arith.constant 256 : index
    %79 = vector.load %arg11[%c4, %c256_78] : memref<8x2560xbf16, #tpu.memory_space<vmem>>, vector<4x16xbf16>
    tpu.vector_store %arg11[%c4, %c256_78], %78 {strides = array<i32>} : memref<8x2560xbf16, #tpu.memory_space<vmem>>, vector<4x16xbf16>,
    %80 = vector.extract_strided_slice %71 {offsets = [8, 0], sizes = [4, 16], strides = [1, 1]} : vector<16x16xf32> to vector<4x16xf32>
    %81 = vector.extract_strided_slice %71 {offsets = [12, 0], sizes = [4, 16], strides = [1, 1]} : vector<16x16xf32> to vector<4x16xf32>
    %82 = arith.select %68, %80, %81 : vector<4x16xi1>, vector<4x16xf32>
    %83 = arith.truncf %82 : vector<4x16xf32> to vector<4x16xbf16>
    %c0_79 = arith.constant 0 : index
    %c384 = arith.constant 384 : index
    %84 = vector.load %arg11[%c0_79, %c384] : memref<8x2560xbf16, #tpu.memory_space<vmem>>, vector<4x16xbf16>
    tpu.vector_store %arg11[%c0_79, %c384], %83 {strides = array<i32>} : memref<8x2560xbf16, #tpu.memory_space<vmem>>, vector<4x16xbf16>,
    %c0_80 = arith.constant 0 : index
    %c0_81 = arith.constant 0 : index
    %c16 = arith.constant 16 : index
    %85 = vector.load %arg2[%c0_80, %c0_81, %c16] : memref<1x4x256xbf16, #tpu.memory_space<vmem>>, vector<1x4x16xbf16>
    %86 = vector.shape_cast %85 : vector<1x4x16xbf16> to vector<4x16xbf16>
    %c4_82 = arith.constant 4 : index
    %c384_83 = arith.constant 384 : index
    %87 = vector.load %arg11[%c4_82, %c384_83] : memref<8x2560xbf16, #tpu.memory_space<vmem>>, vector<4x16xbf16>
    tpu.vector_store %arg11[%c4_82, %c384_83], %86 {strides = array<i32>} : memref<8x2560xbf16, #tpu.memory_space<vmem>>, vector<4x16xbf16>,
    %88 = vector.extract_strided_slice %49 {offsets = [0, 8], sizes = [16, 8], strides = [1, 1]} : vector<16x64xbf16> to vector<16x8xbf16>
    %c0_84 = arith.constant 0 : index
    %c0_85 = arith.constant 0 : index
    %89 = vector.load %arg5[%c0_84, %c0_85] : memref<8x16xbf16, #tpu.memory_space<vmem>>, vector<8x16xbf16>
    %cst_86 = arith.constant dense<0.000000e+00> : vector<16x16xf32>
    %90 = tpu.matmul %88, %89, %cst_86 {dimension_numbers = #tpu.dot_dimension_numbers<[1], [0], [0], [1], [0, 0, 1, 1], [], []>} : vector<16x8xbf16>, vector<8x16xbf16>, vector<16x16xf32> -> vector<16x16xf32>
    %91 = vector.extract_strided_slice %90 {offsets = [0, 0], sizes = [4, 16], strides = [1, 1]} : vector<16x16xf32> to vector<4x16xf32>
    %92 = vector.extract_strided_slice %90 {offsets = [4, 0], sizes = [4, 16], strides = [1, 1]} : vector<16x16xf32> to vector<4x16xf32>
    %93 = arith.select %68, %91, %92 : vector<4x16xi1>, vector<4x16xf32>
    %94 = arith.truncf %93 : vector<4x16xf32> to vector<4x16xbf16>
    %c0_87 = arith.constant 0 : index
    %c512 = arith.constant 512 : index
    %95 = vector.load %arg11[%c0_87, %c512] : memref<8x2560xbf16, #tpu.memory_space<vmem>>, vector<4x16xbf16>
    tpu.vector_store %arg11[%c0_87, %c512], %94 {strides = array<i32>} : memref<8x2560xbf16, #tpu.memory_space<vmem>>, vector<4x16xbf16>,
    %c0_88 = arith.constant 0 : index
    %c0_89 = arith.constant 0 : index
    %c32 = arith.constant 32 : index
    %96 = vector.load %arg2[%c0_88, %c0_89, %c32] : memref<1x4x256xbf16, #tpu.memory_space<vmem>>, vector<1x4x16xbf16>
    %97 = vector.shape_cast %96 : vector<1x4x16xbf16> to vector<4x16xbf16>
    %c4_90 = arith.constant 4 : index
    %c512_91 = arith.constant 512 : index
    %98 = vector.load %arg11[%c4_90, %c512_91] : memref<8x2560xbf16, #tpu.memory_space<vmem>>, vector<4x16xbf16>
    tpu.vector_store %arg11[%c4_90, %c512_91], %97 {strides = array<i32>} : memref<8x2560xbf16, #tpu.memory_space<vmem>>, vector<4x16xbf16>,
    %99 = vector.extract_strided_slice %90 {offsets = [8, 0], sizes = [4, 16], strides = [1, 1]} : vector<16x16xf32> to vector<4x16xf32>
    %100 = vector.extract_strided_slice %90 {offsets = [12, 0], sizes = [4, 16], strides = [1, 1]} : vector<16x16xf32> to vector<4x16xf32>
    %101 = arith.select %68, %99, %100 : vector<4x16xi1>, vector<4x16xf32>
    %102 = arith.truncf %101 : vector<4x16xf32> to vector<4x16xbf16>
    %c0_92 = arith.constant 0 : index
    %c640 = arith.constant 640 : index
    %103 = vector.load %arg11[%c0_92, %c640] : memref<8x2560xbf16, #tpu.memory_space<vmem>>, vector<4x16xbf16>
    tpu.vector_store %arg11[%c0_92, %c640], %102 {strides = array<i32>} : memref<8x2560xbf16, #tpu.memory_space<vmem>>, vector<4x16xbf16>,
    %c0_93 = arith.constant 0 : index
    %c0_94 = arith.constant 0 : index
    %c48 = arith.constant 48 : index
    %104 = vector.load %arg2[%c0_93, %c0_94, %c48] : memref<1x4x256xbf16, #tpu.memory_space<vmem>>, vector<1x4x16xbf16>
    %105 = vector.shape_cast %104 : vector<1x4x16xbf16> to vector<4x16xbf16>
    %c4_95 = arith.constant 4 : index
    %c640_96 = arith.constant 640 : index
    %106 = vector.load %arg11[%c4_95, %c640_96] : memref<8x2560xbf16, #tpu.memory_space<vmem>>, vector<4x16xbf16>
    tpu.vector_store %arg11[%c4_95, %c640_96], %105 {strides = array<i32>} : memref<8x2560xbf16, #tpu.memory_space<vmem>>, vector<4x16xbf16>,
    %107 = vector.extract_strided_slice %49 {offsets = [0, 16], sizes = [16, 8], strides = [1, 1]} : vector<16x64xbf16> to vector<16x8xbf16>
    %c0_97 = arith.constant 0 : index
    %c0_98 = arith.constant 0 : index
    %108 = vector.load %arg5[%c0_97, %c0_98] : memref<8x16xbf16, #tpu.memory_space<vmem>>, vector<8x16xbf16>
    %cst_99 = arith.constant dense<0.000000e+00> : vector<16x16xf32>
    %109 = tpu.matmul %107, %108, %cst_99 {dimension_numbers = #tpu.dot_dimension_numbers<[1], [0], [0], [1], [0, 0, 1, 1], [], []>} : vector<16x8xbf16>, vector<8x16xbf16>, vector<16x16xf32> -> vector<16x16xf32>
    %110 = vector.extract_strided_slice %109 {offsets = [0, 0], sizes = [4, 16], strides = [1, 1]} : vector<16x16xf32> to vector<4x16xf32>
    %111 = vector.extract_strided_slice %109 {offsets = [4, 0], sizes = [4, 16], strides = [1, 1]} : vector<16x16xf32> to vector<4x16xf32>
    %112 = arith.select %68, %110, %111 : vector<4x16xi1>, vector<4x16xf32>
    %113 = arith.truncf %112 : vector<4x16xf32> to vector<4x16xbf16>
    %c0_100 = arith.constant 0 : index
    %c768 = arith.constant 768 : index
    %114 = vector.load %arg11[%c0_100, %c768] : memref<8x2560xbf16, #tpu.memory_space<vmem>>, vector<4x16xbf16>
    tpu.vector_store %arg11[%c0_100, %c768], %113 {strides = array<i32>} : memref<8x2560xbf16, #tpu.memory_space<vmem>>, vector<4x16xbf16>,
    %c0_101 = arith.constant 0 : index
    %c0_102 = arith.constant 0 : index
    %c64 = arith.constant 64 : index
    %115 = vector.load %arg2[%c0_101, %c0_102, %c64] : memref<1x4x256xbf16, #tpu.memory_space<vmem>>, vector<1x4x16xbf16>
    %116 = vector.shape_cast %115 : vector<1x4x16xbf16> to vector<4x16xbf16>
    %c4_103 = arith.constant 4 : index
    %c768_104 = arith.constant 768 : index
    %117 = vector.load %arg11[%c4_103, %c768_104] : memref<8x2560xbf16, #tpu.memory_space<vmem>>, vector<4x16xbf16>
    tpu.vector_store %arg11[%c4_103, %c768_104], %116 {strides = array<i32>} : memref<8x2560xbf16, #tpu.memory_space<vmem>>, vector<4x16xbf16>,
    %118 = vector.extract_strided_slice %109 {offsets = [8, 0], sizes = [4, 16], strides = [1, 1]} : vector<16x16xf32> to vector<4x16xf32>
    %119 = vector.extract_strided_slice %109 {offsets = [12, 0], sizes = [4, 16], strides = [1, 1]} : vector<16x16xf32> to vector<4x16xf32>
    %120 = arith.select %68, %118, %119 : vector<4x16xi1>, vector<4x16xf32>
    %121 = arith.truncf %120 : vector<4x16xf32> to vector<4x16xbf16>
    %c0_105 = arith.constant 0 : index
    %c896 = arith.constant 896 : index
    %122 = vector.load %arg11[%c0_105, %c896] : memref<8x2560xbf16, #tpu.memory_space<vmem>>, vector<4x16xbf16>
    tpu.vector_store %arg11[%c0_105, %c896], %121 {strides = array<i32>} : memref<8x2560xbf16, #tpu.memory_space<vmem>>, vector<4x16xbf16>,
    %c0_106 = arith.constant 0 : index
    %c0_107 = arith.constant 0 : index
    %c80 = arith.constant 80 : index
    %123 = vector.load %arg2[%c0_106, %c0_107, %c80] : memref<1x4x256xbf16, #tpu.memory_space<vmem>>, vector<1x4x16xbf16>
    %124 = vector.shape_cast %123 : vector<1x4x16xbf16> to vector<4x16xbf16>
    %c4_108 = arith.constant 4 : index
    %c896_109 = arith.constant 896 : index
    %125 = vector.load %arg11[%c4_108, %c896_109] : memref<8x2560xbf16, #tpu.memory_space<vmem>>, vector<4x16xbf16>
    tpu.vector_store %arg11[%c4_108, %c896_109], %124 {strides = array<i32>} : memref<8x2560xbf16, #tpu.memory_space<vmem>>, vector<4x16xbf16>,
    %126 = vector.extract_strided_slice %49 {offsets = [0, 24], sizes = [16, 8], strides = [1, 1]} : vector<16x64xbf16> to vector<16x8xbf16>
    %c0_110 = arith.constant 0 : index
    %c0_111 = arith.constant 0 : index
    %127 = vector.load %arg5[%c0_110, %c0_111] : memref<8x16xbf16, #tpu.memory_space<vmem>>, vector<8x16xbf16>
    %cst_112 = arith.constant dense<0.000000e+00> : vector<16x16xf32>
    %128 = tpu.matmul %126, %127, %cst_112 {dimension_numbers = #tpu.dot_dimension_numbers<[1], [0], [0], [1], [0, 0, 1, 1], [], []>} : vector<16x8xbf16>, vector<8x16xbf16>, vector<16x16xf32> -> vector<16x16xf32>
    %129 = vector.extract_strided_slice %128 {offsets = [0, 0], sizes = [4, 16], strides = [1, 1]} : vector<16x16xf32> to vector<4x16xf32>
    %130 = vector.extract_strided_slice %128 {offsets = [4, 0], sizes = [4, 16], strides = [1, 1]} : vector<16x16xf32> to vector<4x16xf32>
    %131 = arith.select %68, %129, %130 : vector<4x16xi1>, vector<4x16xf32>
    %132 = arith.truncf %131 : vector<4x16xf32> to vector<4x16xbf16>
    %c0_113 = arith.constant 0 : index
    %c1024 = arith.constant 1024 : index
    %133 = vector.load %arg11[%c0_113, %c1024] : memref<8x2560xbf16, #tpu.memory_space<vmem>>, vector<4x16xbf16>
    tpu.vector_store %arg11[%c0_113, %c1024], %132 {strides = array<i32>} : memref<8x2560xbf16, #tpu.memory_space<vmem>>, vector<4x16xbf16>,
    %c0_114 = arith.constant 0 : index
    %c0_115 = arith.constant 0 : index
    %c96 = arith.constant 96 : index
    %134 = vector.load %arg2[%c0_114, %c0_115, %c96] : memref<1x4x256xbf16, #tpu.memory_space<vmem>>, vector<1x4x16xbf16>
    %135 = vector.shape_cast %134 : vector<1x4x16xbf16> to vector<4x16xbf16>
    %c4_116 = arith.constant 4 : index
    %c1024_117 = arith.constant 1024 : index
    %136 = vector.load %arg11[%c4_116, %c1024_117] : memref<8x2560xbf16, #tpu.memory_space<vmem>>, vector<4x16xbf16>
    tpu.vector_store %arg11[%c4_116, %c1024_117], %135 {strides = array<i32>} : memref<8x2560xbf16, #tpu.memory_space<vmem>>, vector<4x16xbf16>,
    %137 = vector.extract_strided_slice %128 {offsets = [8, 0], sizes = [4, 16], strides = [1, 1]} : vector<16x16xf32> to vector<4x16xf32>
    %138 = vector.extract_strided_slice %128 {offsets = [12, 0], sizes = [4, 16], strides = [1, 1]} : vector<16x16xf32> to vector<4x16xf32>
    %139 = arith.select %68, %137, %138 : vector<4x16xi1>, vector<4x16xf32>
    %140 = arith.truncf %139 : vector<4x16xf32> to vector<4x16xbf16>
    %c0_118 = arith.constant 0 : index
    %c1152 = arith.constant 1152 : index
    %141 = vector.load %arg11[%c0_118, %c1152] : memref<8x2560xbf16, #tpu.memory_space<vmem>>, vector<4x16xbf16>
    tpu.vector_store %arg11[%c0_118, %c1152], %140 {strides = array<i32>} : memref<8x2560xbf16, #tpu.memory_space<vmem>>, vector<4x16xbf16>,
    %c0_119 = arith.constant 0 : index
    %c0_120 = arith.constant 0 : index
    %c112 = arith.constant 112 : index
    %142 = vector.load %arg2[%c0_119, %c0_120, %c112] : memref<1x4x256xbf16, #tpu.memory_space<vmem>>, vector<1x4x16xbf16>
    %143 = vector.shape_cast %142 : vector<1x4x16xbf16> to vector<4x16xbf16>
    %c4_121 = arith.constant 4 : index
    %c1152_122 = arith.constant 1152 : index
    %144 = vector.load %arg11[%c4_121, %c1152_122] : memref<8x2560xbf16, #tpu.memory_space<vmem>>, vector<4x16xbf16>
    tpu.vector_store %arg11[%c4_121, %c1152_122], %143 {strides = array<i32>} : memref<8x2560xbf16, #tpu.memory_space<vmem>>, vector<4x16xbf16>,
    %145 = vector.extract_strided_slice %49 {offsets = [0, 32], sizes = [16, 8], strides = [1, 1]} : vector<16x64xbf16> to vector<16x8xbf16>
    %c0_123 = arith.constant 0 : index
    %c0_124 = arith.constant 0 : index
    %146 = vector.load %arg5[%c0_123, %c0_124] : memref<8x16xbf16, #tpu.memory_space<vmem>>, vector<8x16xbf16>
    %cst_125 = arith.constant dense<0.000000e+00> : vector<16x16xf32>
    %147 = tpu.matmul %145, %146, %cst_125 {dimension_numbers = #tpu.dot_dimension_numbers<[1], [0], [0], [1], [0, 0, 1, 1], [], []>} : vector<16x8xbf16>, vector<8x16xbf16>, vector<16x16xf32> -> vector<16x16xf32>
    %148 = vector.extract_strided_slice %147 {offsets = [0, 0], sizes = [4, 16], strides = [1, 1]} : vector<16x16xf32> to vector<4x16xf32>
    %149 = vector.extract_strided_slice %147 {offsets = [4, 0], sizes = [4, 16], strides = [1, 1]} : vector<16x16xf32> to vector<4x16xf32>
    %150 = arith.select %68, %148, %149 : vector<4x16xi1>, vector<4x16xf32>
    %151 = arith.truncf %150 : vector<4x16xf32> to vector<4x16xbf16>
    %c0_126 = arith.constant 0 : index
    %c1280 = arith.constant 1280 : index
    %152 = vector.load %arg11[%c0_126, %c1280] : memref<8x2560xbf16, #tpu.memory_space<vmem>>, vector<4x16xbf16>
    tpu.vector_store %arg11[%c0_126, %c1280], %151 {strides = array<i32>} : memref<8x2560xbf16, #tpu.memory_space<vmem>>, vector<4x16xbf16>,
    %c0_127 = arith.constant 0 : index
    %c0_128 = arith.constant 0 : index
    %c128 = arith.constant 128 : index
    %153 = vector.load %arg2[%c0_127, %c0_128, %c128] : memref<1x4x256xbf16, #tpu.memory_space<vmem>>, vector<1x4x16xbf16>
    %154 = vector.shape_cast %153 : vector<1x4x16xbf16> to vector<4x16xbf16>
    %c4_129 = arith.constant 4 : index
    %c1280_130 = arith.constant 1280 : index
    %155 = vector.load %arg11[%c4_129, %c1280_130] : memref<8x2560xbf16, #tpu.memory_space<vmem>>, vector<4x16xbf16>
    tpu.vector_store %arg11[%c4_129, %c1280_130], %154 {strides = array<i32>} : memref<8x2560xbf16, #tpu.memory_space<vmem>>, vector<4x16xbf16>,
    %156 = vector.extract_strided_slice %147 {offsets = [8, 0], sizes = [4, 16], strides = [1, 1]} : vector<16x16xf32> to vector<4x16xf32>
    %157 = vector.extract_strided_slice %147 {offsets = [12, 0], sizes = [4, 16], strides = [1, 1]} : vector<16x16xf32> to vector<4x16xf32>
    %158 = arith.select %68, %156, %157 : vector<4x16xi1>, vector<4x16xf32>
    %159 = arith.truncf %158 : vector<4x16xf32> to vector<4x16xbf16>
    %c0_131 = arith.constant 0 : index
    %c1408 = arith.constant 1408 : index
    %160 = vector.load %arg11[%c0_131, %c1408] : memref<8x2560xbf16, #tpu.memory_space<vmem>>, vector<4x16xbf16>
    tpu.vector_store %arg11[%c0_131, %c1408], %159 {strides = array<i32>} : memref<8x2560xbf16, #tpu.memory_space<vmem>>, vector<4x16xbf16>,
    %c0_132 = arith.constant 0 : index
    %c0_133 = arith.constant 0 : index
    %c144 = arith.constant 144 : index
    %161 = vector.load %arg2[%c0_132, %c0_133, %c144] : memref<1x4x256xbf16, #tpu.memory_space<vmem>>, vector<1x4x16xbf16>
    %162 = vector.shape_cast %161 : vector<1x4x16xbf16> to vector<4x16xbf16>
    %c4_134 = arith.constant 4 : index
    %c1408_135 = arith.constant 1408 : index
    %163 = vector.load %arg11[%c4_134, %c1408_135] : memref<8x2560xbf16, #tpu.memory_space<vmem>>, vector<4x16xbf16>
    tpu.vector_store %arg11[%c4_134, %c1408_135], %162 {strides = array<i32>} : memref<8x2560xbf16, #tpu.memory_space<vmem>>, vector<4x16xbf16>,
    %164 = vector.extract_strided_slice %49 {offsets = [0, 40], sizes = [16, 8], strides = [1, 1]} : vector<16x64xbf16> to vector<16x8xbf16>
    %c0_136 = arith.constant 0 : index
    %c0_137 = arith.constant 0 : index
    %165 = vector.load %arg5[%c0_136, %c0_137] : memref<8x16xbf16, #tpu.memory_space<vmem>>, vector<8x16xbf16>
    %cst_138 = arith.constant dense<0.000000e+00> : vector<16x16xf32>
    %166 = tpu.matmul %164, %165, %cst_138 {dimension_numbers = #tpu.dot_dimension_numbers<[1], [0], [0], [1], [0, 0, 1, 1], [], []>} : vector<16x8xbf16>, vector<8x16xbf16>, vector<16x16xf32> -> vector<16x16xf32>
    %167 = vector.extract_strided_slice %166 {offsets = [0, 0], sizes = [4, 16], strides = [1, 1]} : vector<16x16xf32> to vector<4x16xf32>
    %168 = vector.extract_strided_slice %166 {offsets = [4, 0], sizes = [4, 16], strides = [1, 1]} : vector<16x16xf32> to vector<4x16xf32>
    %169 = arith.select %68, %167, %168 : vector<4x16xi1>, vector<4x16xf32>
    %170 = arith.truncf %169 : vector<4x16xf32> to vector<4x16xbf16>
    %c0_139 = arith.constant 0 : index
    %c1536 = arith.constant 1536 : index
    %171 = vector.load %arg11[%c0_139, %c1536] : memref<8x2560xbf16, #tpu.memory_space<vmem>>, vector<4x16xbf16>
    tpu.vector_store %arg11[%c0_139, %c1536], %170 {strides = array<i32>} : memref<8x2560xbf16, #tpu.memory_space<vmem>>, vector<4x16xbf16>,
    %c0_140 = arith.constant 0 : index
    %c0_141 = arith.constant 0 : index
    %c160 = arith.constant 160 : index
    %172 = vector.load %arg2[%c0_140, %c0_141, %c160] : memref<1x4x256xbf16, #tpu.memory_space<vmem>>, vector<1x4x16xbf16>
    %173 = vector.shape_cast %172 : vector<1x4x16xbf16> to vector<4x16xbf16>
    %c4_142 = arith.constant 4 : index
    %c1536_143 = arith.constant 1536 : index
    %174 = vector.load %arg11[%c4_142, %c1536_143] : memref<8x2560xbf16, #tpu.memory_space<vmem>>, vector<4x16xbf16>
    tpu.vector_store %arg11[%c4_142, %c1536_143], %173 {strides = array<i32>} : memref<8x2560xbf16, #tpu.memory_space<vmem>>, vector<4x16xbf16>,
    %175 = vector.extract_strided_slice %166 {offsets = [8, 0], sizes = [4, 16], strides = [1, 1]} : vector<16x16xf32> to vector<4x16xf32>
    %176 = vector.extract_strided_slice %166 {offsets = [12, 0], sizes = [4, 16], strides = [1, 1]} : vector<16x16xf32> to vector<4x16xf32>
    %177 = arith.select %68, %175, %176 : vector<4x16xi1>, vector<4x16xf32>
    %178 = arith.truncf %177 : vector<4x16xf32> to vector<4x16xbf16>
    %c0_144 = arith.constant 0 : index
    %c1664 = arith.constant 1664 : index
    %179 = vector.load %arg11[%c0_144, %c1664] : memref<8x2560xbf16, #tpu.memory_space<vmem>>, vector<4x16xbf16>
    tpu.vector_store %arg11[%c0_144, %c1664], %178 {strides = array<i32>} : memref<8x2560xbf16, #tpu.memory_space<vmem>>, vector<4x16xbf16>,
    %c0_145 = arith.constant 0 : index
    %c0_146 = arith.constant 0 : index
    %c176 = arith.constant 176 : index
    %180 = vector.load %arg2[%c0_145, %c0_146, %c176] : memref<1x4x256xbf16, #tpu.memory_space<vmem>>, vector<1x4x16xbf16>
    %181 = vector.shape_cast %180 : vector<1x4x16xbf16> to vector<4x16xbf16>
    %c4_147 = arith.constant 4 : index
    %c1664_148 = arith.constant 1664 : index
    %182 = vector.load %arg11[%c4_147, %c1664_148] : memref<8x2560xbf16, #tpu.memory_space<vmem>>, vector<4x16xbf16>
    tpu.vector_store %arg11[%c4_147, %c1664_148], %181 {strides = array<i32>} : memref<8x2560xbf16, #tpu.memory_space<vmem>>, vector<4x16xbf16>,
    %183 = vector.extract_strided_slice %49 {offsets = [0, 48], sizes = [16, 8], strides = [1, 1]} : vector<16x64xbf16> to vector<16x8xbf16>
    %c0_149 = arith.constant 0 : index
    %c0_150 = arith.constant 0 : index
    %184 = vector.load %arg5[%c0_149, %c0_150] : memref<8x16xbf16, #tpu.memory_space<vmem>>, vector<8x16xbf16>
    %cst_151 = arith.constant dense<0.000000e+00> : vector<16x16xf32>
    %185 = tpu.matmul %183, %184, %cst_151 {dimension_numbers = #tpu.dot_dimension_numbers<[1], [0], [0], [1], [0, 0, 1, 1], [], []>} : vector<16x8xbf16>, vector<8x16xbf16>, vector<16x16xf32> -> vector<16x16xf32>
    %186 = vector.extract_strided_slice %185 {offsets = [0, 0], sizes = [4, 16], strides = [1, 1]} : vector<16x16xf32> to vector<4x16xf32>
    %187 = vector.extract_strided_slice %185 {offsets = [4, 0], sizes = [4, 16], strides = [1, 1]} : vector<16x16xf32> to vector<4x16xf32>
    %188 = arith.select %68, %186, %187 : vector<4x16xi1>, vector<4x16xf32>
    %189 = arith.truncf %188 : vector<4x16xf32> to vector<4x16xbf16>
    %c0_152 = arith.constant 0 : index
    %c1792 = arith.constant 1792 : index
    %190 = vector.load %arg11[%c0_152, %c1792] : memref<8x2560xbf16, #tpu.memory_space<vmem>>, vector<4x16xbf16>
    tpu.vector_store %arg11[%c0_152, %c1792], %189 {strides = array<i32>} : memref<8x2560xbf16, #tpu.memory_space<vmem>>, vector<4x16xbf16>,
    %c0_153 = arith.constant 0 : index
    %c0_154 = arith.constant 0 : index
    %c192 = arith.constant 192 : index
    %191 = vector.load %arg2[%c0_153, %c0_154, %c192] : memref<1x4x256xbf16, #tpu.memory_space<vmem>>, vector<1x4x16xbf16>
    %192 = vector.shape_cast %191 : vector<1x4x16xbf16> to vector<4x16xbf16>
    %c4_155 = arith.constant 4 : index
    %c1792_156 = arith.constant 1792 : index
    %193 = vector.load %arg11[%c4_155, %c1792_156] : memref<8x2560xbf16, #tpu.memory_space<vmem>>, vector<4x16xbf16>
    tpu.vector_store %arg11[%c4_155, %c1792_156], %192 {strides = array<i32>} : memref<8x2560xbf16, #tpu.memory_space<vmem>>, vector<4x16xbf16>,
    %194 = vector.extract_strided_slice %185 {offsets = [8, 0], sizes = [4, 16], strides = [1, 1]} : vector<16x16xf32> to vector<4x16xf32>
    %195 = vector.extract_strided_slice %185 {offsets = [12, 0], sizes = [4, 16], strides = [1, 1]} : vector<16x16xf32> to vector<4x16xf32>
    %196 = arith.select %68, %194, %195 : vector<4x16xi1>, vector<4x16xf32>
    %197 = arith.truncf %196 : vector<4x16xf32> to vector<4x16xbf16>
    %c0_157 = arith.constant 0 : index
    %c1920 = arith.constant 1920 : index
    %198 = vector.load %arg11[%c0_157, %c1920] : memref<8x2560xbf16, #tpu.memory_space<vmem>>, vector<4x16xbf16>
    tpu.vector_store %arg11[%c0_157, %c1920], %197 {strides = array<i32>} : memref<8x2560xbf16, #tpu.memory_space<vmem>>, vector<4x16xbf16>,
    %c0_158 = arith.constant 0 : index
    %c0_159 = arith.constant 0 : index
    %c208 = arith.constant 208 : index
    %199 = vector.load %arg2[%c0_158, %c0_159, %c208] : memref<1x4x256xbf16, #tpu.memory_space<vmem>>, vector<1x4x16xbf16>
    %200 = vector.shape_cast %199 : vector<1x4x16xbf16> to vector<4x16xbf16>
    %c4_160 = arith.constant 4 : index
    %c1920_161 = arith.constant 1920 : index
    %201 = vector.load %arg11[%c4_160, %c1920_161] : memref<8x2560xbf16, #tpu.memory_space<vmem>>, vector<4x16xbf16>
    tpu.vector_store %arg11[%c4_160, %c1920_161], %200 {strides = array<i32>} : memref<8x2560xbf16, #tpu.memory_space<vmem>>, vector<4x16xbf16>,
    %202 = vector.extract_strided_slice %49 {offsets = [0, 56], sizes = [16, 8], strides = [1, 1]} : vector<16x64xbf16> to vector<16x8xbf16>
    %c0_162 = arith.constant 0 : index
    %c0_163 = arith.constant 0 : index
    %203 = vector.load %arg5[%c0_162, %c0_163] : memref<8x16xbf16, #tpu.memory_space<vmem>>, vector<8x16xbf16>
    %cst_164 = arith.constant dense<0.000000e+00> : vector<16x16xf32>
    %204 = tpu.matmul %202, %203, %cst_164 {dimension_numbers = #tpu.dot_dimension_numbers<[1], [0], [0], [1], [0, 0, 1, 1], [], []>} : vector<16x8xbf16>, vector<8x16xbf16>, vector<16x16xf32> -> vector<16x16xf32>
    %205 = vector.extract_strided_slice %204 {offsets = [0, 0], sizes = [4, 16], strides = [1, 1]} : vector<16x16xf32> to vector<4x16xf32>
    %206 = vector.extract_strided_slice %204 {offsets = [4, 0], sizes = [4, 16], strides = [1, 1]} : vector<16x16xf32> to vector<4x16xf32>
    %207 = arith.select %68, %205, %206 : vector<4x16xi1>, vector<4x16xf32>
    %208 = arith.truncf %207 : vector<4x16xf32> to vector<4x16xbf16>
    %c0_165 = arith.constant 0 : index
    %c2048 = arith.constant 2048 : index
    %209 = vector.load %arg11[%c0_165, %c2048] : memref<8x2560xbf16, #tpu.memory_space<vmem>>, vector<4x16xbf16>
    tpu.vector_store %arg11[%c0_165, %c2048], %208 {strides = array<i32>} : memref<8x2560xbf16, #tpu.memory_space<vmem>>, vector<4x16xbf16>,
    %c0_166 = arith.constant 0 : index
    %c0_167 = arith.constant 0 : index
    %c224 = arith.constant 224 : index
    %210 = vector.load %arg2[%c0_166, %c0_167, %c224] : memref<1x4x256xbf16, #tpu.memory_space<vmem>>, vector<1x4x16xbf16>
    %211 = vector.shape_cast %210 : vector<1x4x16xbf16> to vector<4x16xbf16>
    %c4_168 = arith.constant 4 : index
    %c2048_169 = arith.constant 2048 : index
    %212 = vector.load %arg11[%c4_168, %c2048_169] : memref<8x2560xbf16, #tpu.memory_space<vmem>>, vector<4x16xbf16>
    tpu.vector_store %arg11[%c4_168, %c2048_169], %211 {strides = array<i32>} : memref<8x2560xbf16, #tpu.memory_space<vmem>>, vector<4x16xbf16>,
    %213 = vector.extract_strided_slice %204 {offsets = [8, 0], sizes = [4, 16], strides = [1, 1]} : vector<16x16xf32> to vector<4x16xf32>
    %214 = vector.extract_strided_slice %204 {offsets = [12, 0], sizes = [4, 16], strides = [1, 1]} : vector<16x16xf32> to vector<4x16xf32>
    %215 = arith.select %68, %213, %214 : vector<4x16xi1>, vector<4x16xf32>
    %216 = arith.truncf %215 : vector<4x16xf32> to vector<4x16xbf16>
    %c0_170 = arith.constant 0 : index
    %c2176 = arith.constant 2176 : index
    %217 = vector.load %arg11[%c0_170, %c2176] : memref<8x2560xbf16, #tpu.memory_space<vmem>>, vector<4x16xbf16>
    tpu.vector_store %arg11[%c0_170, %c2176], %216 {strides = array<i32>} : memref<8x2560xbf16, #tpu.memory_space<vmem>>, vector<4x16xbf16>,
    %c0_171 = arith.constant 0 : index
    %c0_172 = arith.constant 0 : index
    %c240 = arith.constant 240 : index
    %218 = vector.load %arg2[%c0_171, %c0_172, %c240] : memref<1x4x256xbf16, #tpu.memory_space<vmem>>, vector<1x4x16xbf16>
    %219 = vector.shape_cast %218 : vector<1x4x16xbf16> to vector<4x16xbf16>
    %c4_173 = arith.constant 4 : index
    %c2176_174 = arith.constant 2176 : index
    %220 = vector.load %arg11[%c4_173, %c2176_174] : memref<8x2560xbf16, #tpu.memory_space<vmem>>, vector<4x16xbf16>
    tpu.vector_store %arg11[%c4_173, %c2176_174], %219 {strides = array<i32>} : memref<8x2560xbf16, #tpu.memory_space<vmem>>, vector<4x16xbf16>,
    %c0_175 = arith.constant 0 : index
    %c0_176 = arith.constant 0 : index
    %c0_177 = arith.constant 0 : index
    %221 = vector.load %arg6[%c0_175, %c0_176, %c0_177] : memref<9x4x8xbf16, #tpu.memory_space<vmem>>, vector<1x4x8xbf16>
    %222 = vector.shape_cast %221 : vector<1x4x8xbf16> to vector<4x8xbf16>
    %c0_178 = arith.constant 0 : index
    %c127 = arith.constant 127 : index
    %223 = vector.load %arg11[%c0_178, %c127] : memref<8x2560xbf16, #tpu.memory_space<vmem>>, vector<8x2048xbf16>
    %cst_179 = arith.constant dense<0.000000e+00> : vector<4x2048xf32>
    %224 = tpu.matmul %222, %223, %cst_179 {dimension_numbers = #tpu.dot_dimension_numbers<[1], [0], [0], [1], [0, 0, 1, 1], [], []>} : vector<4x8xbf16>, vector<8x2048xbf16>, vector<4x2048xf32> -> vector<4x2048xf32>
    %c1 = arith.constant 1 : index
    %c0_180 = arith.constant 0 : index
    %c0_181 = arith.constant 0 : index
    %225 = vector.load %arg6[%c1, %c0_180, %c0_181] : memref<9x4x8xbf16, #tpu.memory_space<vmem>>, vector<1x4x8xbf16>
    %226 = vector.shape_cast %225 : vector<1x4x8xbf16> to vector<4x8xbf16>
    %c0_182 = arith.constant 0 : index
    %c128_183 = arith.constant 128 : index
    %227 = vector.load %arg11[%c0_182, %c128_183] : memref<8x2560xbf16, #tpu.memory_space<vmem>>, vector<8x2048xbf16>
    %cst_184 = arith.constant dense<0.000000e+00> : vector<4x2048xf32>
    %228 = tpu.matmul %226, %227, %cst_184 {dimension_numbers = #tpu.dot_dimension_numbers<[1], [0], [0], [1], [0, 0, 1, 1], [], []>} : vector<4x8xbf16>, vector<8x2048xbf16>, vector<4x2048xf32> -> vector<4x2048xf32>
    %229 = arith.addf %224, %228 : vector<4x2048xf32>
    %c2 = arith.constant 2 : index
    %c0_185 = arith.constant 0 : index
    %c0_186 = arith.constant 0 : index
    %230 = vector.load %arg6[%c2, %c0_185, %c0_186] : memref<9x4x8xbf16, #tpu.memory_space<vmem>>, vector<1x4x8xbf16>
    %231 = vector.shape_cast %230 : vector<1x4x8xbf16> to vector<4x8xbf16>
    %c0_187 = arith.constant 0 : index
    %c129 = arith.constant 129 : index
    %232 = vector.load %arg11[%c0_187, %c129] : memref<8x2560xbf16, #tpu.memory_space<vmem>>, vector<8x2048xbf16>
    %cst_188 = arith.constant dense<0.000000e+00> : vector<4x2048xf32>
    %233 = tpu.matmul %231, %232, %cst_188 {dimension_numbers = #tpu.dot_dimension_numbers<[1], [0], [0], [1], [0, 0, 1, 1], [], []>} : vector<4x8xbf16>, vector<8x2048xbf16>, vector<4x2048xf32> -> vector<4x2048xf32>
    %234 = arith.addf %229, %233 : vector<4x2048xf32>
    %c3 = arith.constant 3 : index
    %c0_189 = arith.constant 0 : index
    %c0_190 = arith.constant 0 : index
    %235 = vector.load %arg6[%c3, %c0_189, %c0_190] : memref<9x4x8xbf16, #tpu.memory_space<vmem>>, vector<1x4x8xbf16>
    %236 = vector.shape_cast %235 : vector<1x4x8xbf16> to vector<4x8xbf16>
    %c0_191 = arith.constant 0 : index
    %c255 = arith.constant 255 : index
    %237 = vector.load %arg11[%c0_191, %c255] : memref<8x2560xbf16, #tpu.memory_space<vmem>>, vector<8x2048xbf16>
    %cst_192 = arith.constant dense<0.000000e+00> : vector<4x2048xf32>
    %238 = tpu.matmul %236, %237, %cst_192 {dimension_numbers = #tpu.dot_dimension_numbers<[1], [0], [0], [1], [0, 0, 1, 1], [], []>} : vector<4x8xbf16>, vector<8x2048xbf16>, vector<4x2048xf32> -> vector<4x2048xf32>
    %239 = arith.addf %234, %238 : vector<4x2048xf32>
    %c4_193 = arith.constant 4 : index
    %c0_194 = arith.constant 0 : index
    %c0_195 = arith.constant 0 : index
    %240 = vector.load %arg6[%c4_193, %c0_194, %c0_195] : memref<9x4x8xbf16, #tpu.memory_space<vmem>>, vector<1x4x8xbf16>
    %241 = vector.shape_cast %240 : vector<1x4x8xbf16> to vector<4x8xbf16>
    %c0_196 = arith.constant 0 : index
    %c256_197 = arith.constant 256 : index
    %242 = vector.load %arg11[%c0_196, %c256_197] : memref<8x2560xbf16, #tpu.memory_space<vmem>>, vector<8x2048xbf16>
    %cst_198 = arith.constant dense<0.000000e+00> : vector<4x2048xf32>
    %243 = tpu.matmul %241, %242, %cst_198 {dimension_numbers = #tpu.dot_dimension_numbers<[1], [0], [0], [1], [0, 0, 1, 1], [], []>} : vector<4x8xbf16>, vector<8x2048xbf16>, vector<4x2048xf32> -> vector<4x2048xf32>
    %244 = arith.addf %239, %243 : vector<4x2048xf32>
    %c5 = arith.constant 5 : index
    %c0_199 = arith.constant 0 : index
    %c0_200 = arith.constant 0 : index
    %245 = vector.load %arg6[%c5, %c0_199, %c0_200] : memref<9x4x8xbf16, #tpu.memory_space<vmem>>, vector<1x4x8xbf16>
    %246 = vector.shape_cast %245 : vector<1x4x8xbf16> to vector<4x8xbf16>
    %c0_201 = arith.constant 0 : index
    %c257 = arith.constant 257 : index
    %247 = vector.load %arg11[%c0_201, %c257] : memref<8x2560xbf16, #tpu.memory_space<vmem>>, vector<8x2048xbf16>
    %cst_202 = arith.constant dense<0.000000e+00> : vector<4x2048xf32>
    %248 = tpu.matmul %246, %247, %cst_202 {dimension_numbers = #tpu.dot_dimension_numbers<[1], [0], [0], [1], [0, 0, 1, 1], [], []>} : vector<4x8xbf16>, vector<8x2048xbf16>, vector<4x2048xf32> -> vector<4x2048xf32>
    %249 = arith.addf %244, %248 : vector<4x2048xf32>
    %c6 = arith.constant 6 : index
    %c0_203 = arith.constant 0 : index
    %c0_204 = arith.constant 0 : index
    %250 = vector.load %arg6[%c6, %c0_203, %c0_204] : memref<9x4x8xbf16, #tpu.memory_space<vmem>>, vector<1x4x8xbf16>
    %251 = vector.shape_cast %250 : vector<1x4x8xbf16> to vector<4x8xbf16>
    %c0_205 = arith.constant 0 : index
    %c383 = arith.constant 383 : index
    %252 = vector.load %arg11[%c0_205, %c383] : memref<8x2560xbf16, #tpu.memory_space<vmem>>, vector<8x2048xbf16>
    %cst_206 = arith.constant dense<0.000000e+00> : vector<4x2048xf32>
    %253 = tpu.matmul %251, %252, %cst_206 {dimension_numbers = #tpu.dot_dimension_numbers<[1], [0], [0], [1], [0, 0, 1, 1], [], []>} : vector<4x8xbf16>, vector<8x2048xbf16>, vector<4x2048xf32> -> vector<4x2048xf32>
    %254 = arith.addf %249, %253 : vector<4x2048xf32>
    %c7 = arith.constant 7 : index
    %c0_207 = arith.constant 0 : index
    %c0_208 = arith.constant 0 : index
    %255 = vector.load %arg6[%c7, %c0_207, %c0_208] : memref<9x4x8xbf16, #tpu.memory_space<vmem>>, vector<1x4x8xbf16>
    %256 = vector.shape_cast %255 : vector<1x4x8xbf16> to vector<4x8xbf16>
    %c0_209 = arith.constant 0 : index
    %c384_210 = arith.constant 384 : index
    %257 = vector.load %arg11[%c0_209, %c384_210] : memref<8x2560xbf16, #tpu.memory_space<vmem>>, vector<8x2048xbf16>
    %cst_211 = arith.constant dense<0.000000e+00> : vector<4x2048xf32>
    %258 = tpu.matmul %256, %257, %cst_211 {dimension_numbers = #tpu.dot_dimension_numbers<[1], [0], [0], [1], [0, 0, 1, 1], [], []>} : vector<4x8xbf16>, vector<8x2048xbf16>, vector<4x2048xf32> -> vector<4x2048xf32>
    %259 = arith.addf %254, %258 : vector<4x2048xf32>
    %c8 = arith.constant 8 : index
    %c0_212 = arith.constant 0 : index
    %c0_213 = arith.constant 0 : index
    %260 = vector.load %arg6[%c8, %c0_212, %c0_213] : memref<9x4x8xbf16, #tpu.memory_space<vmem>>, vector<1x4x8xbf16>
    %261 = vector.shape_cast %260 : vector<1x4x8xbf16> to vector<4x8xbf16>
    %c0_214 = arith.constant 0 : index
    %c385 = arith.constant 385 : index
    %262 = vector.load %arg11[%c0_214, %c385] : memref<8x2560xbf16, #tpu.memory_space<vmem>>, vector<8x2048xbf16>
    %cst_215 = arith.constant dense<0.000000e+00> : vector<4x2048xf32>
    %263 = tpu.matmul %261, %262, %cst_215 {dimension_numbers = #tpu.dot_dimension_numbers<[1], [0], [0], [1], [0, 0, 1, 1], [], []>} : vector<4x8xbf16>, vector<8x2048xbf16>, vector<4x2048xf32> -> vector<4x2048xf32>
    %264 = arith.addf %259, %263 : vector<4x2048xf32>
    %c0_216 = arith.constant 0 : index
    %c0_217 = arith.constant 0 : index
    %265 = vector.load %arg7[%c0_216, %c0_217] : memref<4x1xf32, #tpu.memory_space<vmem>>, vector<4x1xf32>
    %266 = vector.broadcast %265 : vector<4x1xf32> to vector<4x2048xf32>
    %267 = arith.addf %264, %266 : vector<4x2048xf32>
    %cst_218 = arith.constant 0.000000e+00 : f32
    %268 = vector.broadcast %cst_218 : f32 to vector<4x2048xf32>
    %269 = arith.maximumf %267, %268 : vector<4x2048xf32>
    %270 = vector.extract_strided_slice %269 {offsets = [0, 0], sizes = [4, 16], strides = [1, 1]} : vector<4x2048xf32> to vector<4x16xf32>
    %271 = arith.truncf %270 : vector<4x16xf32> to vector<4x16xbf16>
    %c0_219 = arith.constant 0 : index
    %c256_220 = arith.constant 256 : index
    %272 = vector.load %arg12[%c0_219, %c256_220] : memref<4x2560xbf16, #tpu.memory_space<vmem>>, vector<4x16xbf16>
    tpu.vector_store %arg12[%c0_219, %c256_220], %271 {strides = array<i32>} : memref<4x2560xbf16, #tpu.memory_space<vmem>>, vector<4x16xbf16>,
    %273 = vector.extract_strided_slice %269 {offsets = [0, 128], sizes = [4, 16], strides = [1, 1]} : vector<4x2048xf32> to vector<4x16xf32>
    %274 = arith.truncf %273 : vector<4x16xf32> to vector<4x16xbf16>
    %c0_221 = arith.constant 0 : index
    %c384_222 = arith.constant 384 : index
    %275 = vector.load %arg12[%c0_221, %c384_222] : memref<4x2560xbf16, #tpu.memory_space<vmem>>, vector<4x16xbf16>
    tpu.vector_store %arg12[%c0_221, %c384_222], %274 {strides = array<i32>} : memref<4x2560xbf16, #tpu.memory_space<vmem>>, vector<4x16xbf16>,
    %276 = vector.extract_strided_slice %269 {offsets = [0, 256], sizes = [4, 16], strides = [1, 1]} : vector<4x2048xf32> to vector<4x16xf32>
    %277 = arith.truncf %276 : vector<4x16xf32> to vector<4x16xbf16>
    %c0_223 = arith.constant 0 : index
    %c512_224 = arith.constant 512 : index
    %278 = vector.load %arg12[%c0_223, %c512_224] : memref<4x2560xbf16, #tpu.memory_space<vmem>>, vector<4x16xbf16>
    tpu.vector_store %arg12[%c0_223, %c512_224], %277 {strides = array<i32>} : memref<4x2560xbf16, #tpu.memory_space<vmem>>, vector<4x16xbf16>,
    %279 = vector.extract_strided_slice %269 {offsets = [0, 384], sizes = [4, 16], strides = [1, 1]} : vector<4x2048xf32> to vector<4x16xf32>
    %280 = arith.truncf %279 : vector<4x16xf32> to vector<4x16xbf16>
    %c0_225 = arith.constant 0 : index
    %c640_226 = arith.constant 640 : index
    %281 = vector.load %arg12[%c0_225, %c640_226] : memref<4x2560xbf16, #tpu.memory_space<vmem>>, vector<4x16xbf16>
    tpu.vector_store %arg12[%c0_225, %c640_226], %280 {strides = array<i32>} : memref<4x2560xbf16, #tpu.memory_space<vmem>>, vector<4x16xbf16>,
    %282 = vector.extract_strided_slice %269 {offsets = [0, 512], sizes = [4, 16], strides = [1, 1]} : vector<4x2048xf32> to vector<4x16xf32>
    %283 = arith.truncf %282 : vector<4x16xf32> to vector<4x16xbf16>
    %c0_227 = arith.constant 0 : index
    %c768_228 = arith.constant 768 : index
    %284 = vector.load %arg12[%c0_227, %c768_228] : memref<4x2560xbf16, #tpu.memory_space<vmem>>, vector<4x16xbf16>
    tpu.vector_store %arg12[%c0_227, %c768_228], %283 {strides = array<i32>} : memref<4x2560xbf16, #tpu.memory_space<vmem>>, vector<4x16xbf16>,
    %285 = vector.extract_strided_slice %269 {offsets = [0, 640], sizes = [4, 16], strides = [1, 1]} : vector<4x2048xf32> to vector<4x16xf32>
    %286 = arith.truncf %285 : vector<4x16xf32> to vector<4x16xbf16>
    %c0_229 = arith.constant 0 : index
    %c896_230 = arith.constant 896 : index
    %287 = vector.load %arg12[%c0_229, %c896_230] : memref<4x2560xbf16, #tpu.memory_space<vmem>>, vector<4x16xbf16>
    tpu.vector_store %arg12[%c0_229, %c896_230], %286 {strides = array<i32>} : memref<4x2560xbf16, #tpu.memory_space<vmem>>, vector<4x16xbf16>,
    %288 = vector.extract_strided_slice %269 {offsets = [0, 768], sizes = [4, 16], strides = [1, 1]} : vector<4x2048xf32> to vector<4x16xf32>
    %289 = arith.truncf %288 : vector<4x16xf32> to vector<4x16xbf16>
    %c0_231 = arith.constant 0 : index
    %c1024_232 = arith.constant 1024 : index
    %290 = vector.load %arg12[%c0_231, %c1024_232] : memref<4x2560xbf16, #tpu.memory_space<vmem>>, vector<4x16xbf16>
    tpu.vector_store %arg12[%c0_231, %c1024_232], %289 {strides = array<i32>} : memref<4x2560xbf16, #tpu.memory_space<vmem>>, vector<4x16xbf16>,
    %291 = vector.extract_strided_slice %269 {offsets = [0, 896], sizes = [4, 16], strides = [1, 1]} : vector<4x2048xf32> to vector<4x16xf32>
    %292 = arith.truncf %291 : vector<4x16xf32> to vector<4x16xbf16>
    %c0_233 = arith.constant 0 : index
    %c1152_234 = arith.constant 1152 : index
    %293 = vector.load %arg12[%c0_233, %c1152_234] : memref<4x2560xbf16, #tpu.memory_space<vmem>>, vector<4x16xbf16>
    tpu.vector_store %arg12[%c0_233, %c1152_234], %292 {strides = array<i32>} : memref<4x2560xbf16, #tpu.memory_space<vmem>>, vector<4x16xbf16>,
    %294 = vector.extract_strided_slice %269 {offsets = [0, 1024], sizes = [4, 16], strides = [1, 1]} : vector<4x2048xf32> to vector<4x16xf32>
    %295 = arith.truncf %294 : vector<4x16xf32> to vector<4x16xbf16>
    %c0_235 = arith.constant 0 : index
    %c1280_236 = arith.constant 1280 : index
    %296 = vector.load %arg12[%c0_235, %c1280_236] : memref<4x2560xbf16, #tpu.memory_space<vmem>>, vector<4x16xbf16>
    tpu.vector_store %arg12[%c0_235, %c1280_236], %295 {strides = array<i32>} : memref<4x2560xbf16, #tpu.memory_space<vmem>>, vector<4x16xbf16>,
    %297 = vector.extract_strided_slice %269 {offsets = [0, 1152], sizes = [4, 16], strides = [1, 1]} : vector<4x2048xf32> to vector<4x16xf32>
    %298 = arith.truncf %297 : vector<4x16xf32> to vector<4x16xbf16>
    %c0_237 = arith.constant 0 : index
    %c1408_238 = arith.constant 1408 : index
    %299 = vector.load %arg12[%c0_237, %c1408_238] : memref<4x2560xbf16, #tpu.memory_space<vmem>>, vector<4x16xbf16>
    tpu.vector_store %arg12[%c0_237, %c1408_238], %298 {strides = array<i32>} : memref<4x2560xbf16, #tpu.memory_space<vmem>>, vector<4x16xbf16>,
    %300 = vector.extract_strided_slice %269 {offsets = [0, 1280], sizes = [4, 16], strides = [1, 1]} : vector<4x2048xf32> to vector<4x16xf32>
    %301 = arith.truncf %300 : vector<4x16xf32> to vector<4x16xbf16>
    %c0_239 = arith.constant 0 : index
    %c1536_240 = arith.constant 1536 : index
    %302 = vector.load %arg12[%c0_239, %c1536_240] : memref<4x2560xbf16, #tpu.memory_space<vmem>>, vector<4x16xbf16>
    tpu.vector_store %arg12[%c0_239, %c1536_240], %301 {strides = array<i32>} : memref<4x2560xbf16, #tpu.memory_space<vmem>>, vector<4x16xbf16>,
    %303 = vector.extract_strided_slice %269 {offsets = [0, 1408], sizes = [4, 16], strides = [1, 1]} : vector<4x2048xf32> to vector<4x16xf32>
    %304 = arith.truncf %303 : vector<4x16xf32> to vector<4x16xbf16>
    %c0_241 = arith.constant 0 : index
    %c1664_242 = arith.constant 1664 : index
    %305 = vector.load %arg12[%c0_241, %c1664_242] : memref<4x2560xbf16, #tpu.memory_space<vmem>>, vector<4x16xbf16>
    tpu.vector_store %arg12[%c0_241, %c1664_242], %304 {strides = array<i32>} : memref<4x2560xbf16, #tpu.memory_space<vmem>>, vector<4x16xbf16>,
    %306 = vector.extract_strided_slice %269 {offsets = [0, 1536], sizes = [4, 16], strides = [1, 1]} : vector<4x2048xf32> to vector<4x16xf32>
    %307 = arith.truncf %306 : vector<4x16xf32> to vector<4x16xbf16>
    %c0_243 = arith.constant 0 : index
    %c1792_244 = arith.constant 1792 : index
    %308 = vector.load %arg12[%c0_243, %c1792_244] : memref<4x2560xbf16, #tpu.memory_space<vmem>>, vector<4x16xbf16>
    tpu.vector_store %arg12[%c0_243, %c1792_244], %307 {strides = array<i32>} : memref<4x2560xbf16, #tpu.memory_space<vmem>>, vector<4x16xbf16>,
    %309 = vector.extract_strided_slice %269 {offsets = [0, 1664], sizes = [4, 16], strides = [1, 1]} : vector<4x2048xf32> to vector<4x16xf32>
    %310 = arith.truncf %309 : vector<4x16xf32> to vector<4x16xbf16>
    %c0_245 = arith.constant 0 : index
    %c1920_246 = arith.constant 1920 : index
    %311 = vector.load %arg12[%c0_245, %c1920_246] : memref<4x2560xbf16, #tpu.memory_space<vmem>>, vector<4x16xbf16>
    tpu.vector_store %arg12[%c0_245, %c1920_246], %310 {strides = array<i32>} : memref<4x2560xbf16, #tpu.memory_space<vmem>>, vector<4x16xbf16>,
    %312 = vector.extract_strided_slice %269 {offsets = [0, 1792], sizes = [4, 16], strides = [1, 1]} : vector<4x2048xf32> to vector<4x16xf32>
    %313 = arith.truncf %312 : vector<4x16xf32> to vector<4x16xbf16>
    %c0_247 = arith.constant 0 : index
    %c2048_248 = arith.constant 2048 : index
    %314 = vector.load %arg12[%c0_247, %c2048_248] : memref<4x2560xbf16, #tpu.memory_space<vmem>>, vector<4x16xbf16>
    tpu.vector_store %arg12[%c0_247, %c2048_248], %313 {strides = array<i32>} : memref<4x2560xbf16, #tpu.memory_space<vmem>>, vector<4x16xbf16>,
    %315 = vector.extract_strided_slice %269 {offsets = [0, 1920], sizes = [4, 16], strides = [1, 1]} : vector<4x2048xf32> to vector<4x16xf32>
    %316 = arith.truncf %315 : vector<4x16xf32> to vector<4x16xbf16>
    %c0_249 = arith.constant 0 : index
    %c2176_250 = arith.constant 2176 : index
    %317 = vector.load %arg12[%c0_249, %c2176_250] : memref<4x2560xbf16, #tpu.memory_space<vmem>>, vector<4x16xbf16>
    tpu.vector_store %arg12[%c0_249, %c2176_250], %316 {strides = array<i32>} : memref<4x2560xbf16, #tpu.memory_space<vmem>>, vector<4x16xbf16>,
    %c0_251 = arith.constant 0 : index
    %c0_252 = arith.constant 0 : index
    %c0_253 = arith.constant 0 : index
    %318 = vector.load %arg8[%c0_251, %c0_252, %c0_253] : memref<9x4x4xbf16, #tpu.memory_space<vmem>>, vector<1x4x4xbf16>
    %319 = vector.shape_cast %318 : vector<1x4x4xbf16> to vector<4x4xbf16>
    %c0_254 = arith.constant 0 : index
    %c127_255 = arith.constant 127 : index
    %320 = vector.load %arg12[%c0_254, %c127_255] : memref<4x2560xbf16, #tpu.memory_space<vmem>>, vector<4x2048xbf16>
    %cst_256 = arith.constant dense<0.000000e+00> : vector<4x2048xf32>
    %321 = tpu.matmul %319, %320, %cst_256 {dimension_numbers = #tpu.dot_dimension_numbers<[1], [0], [0], [1], [0, 0, 1, 1], [], []>} : vector<4x4xbf16>, vector<4x2048xbf16>, vector<4x2048xf32> -> vector<4x2048xf32>
    %c1_257 = arith.constant 1 : index
    %c0_258 = arith.constant 0 : index
    %c0_259 = arith.constant 0 : index
    %322 = vector.load %arg8[%c1_257, %c0_258, %c0_259] : memref<9x4x4xbf16, #tpu.memory_space<vmem>>, vector<1x4x4xbf16>
    %323 = vector.shape_cast %322 : vector<1x4x4xbf16> to vector<4x4xbf16>
    %c0_260 = arith.constant 0 : index
    %c128_261 = arith.constant 128 : index
    %324 = vector.load %arg12[%c0_260, %c128_261] : memref<4x2560xbf16, #tpu.memory_space<vmem>>, vector<4x2048xbf16>
    %cst_262 = arith.constant dense<0.000000e+00> : vector<4x2048xf32>
    %325 = tpu.matmul %323, %324, %cst_262 {dimension_numbers = #tpu.dot_dimension_numbers<[1], [0], [0], [1], [0, 0, 1, 1], [], []>} : vector<4x4xbf16>, vector<4x2048xbf16>, vector<4x2048xf32> -> vector<4x2048xf32>
    %326 = arith.addf %321, %325 : vector<4x2048xf32>
    %c2_263 = arith.constant 2 : index
    %c0_264 = arith.constant 0 : index
    %c0_265 = arith.constant 0 : index
    %327 = vector.load %arg8[%c2_263, %c0_264, %c0_265] : memref<9x4x4xbf16, #tpu.memory_space<vmem>>, vector<1x4x4xbf16>
    %328 = vector.shape_cast %327 : vector<1x4x4xbf16> to vector<4x4xbf16>
    %c0_266 = arith.constant 0 : index
    %c129_267 = arith.constant 129 : index
    %329 = vector.load %arg12[%c0_266, %c129_267] : memref<4x2560xbf16, #tpu.memory_space<vmem>>, vector<4x2048xbf16>
    %cst_268 = arith.constant dense<0.000000e+00> : vector<4x2048xf32>
    %330 = tpu.matmul %328, %329, %cst_268 {dimension_numbers = #tpu.dot_dimension_numbers<[1], [0], [0], [1], [0, 0, 1, 1], [], []>} : vector<4x4xbf16>, vector<4x2048xbf16>, vector<4x2048xf32> -> vector<4x2048xf32>
    %331 = arith.addf %326, %330 : vector<4x2048xf32>
    %c3_269 = arith.constant 3 : index
    %c0_270 = arith.constant 0 : index
    %c0_271 = arith.constant 0 : index
    %332 = vector.load %arg8[%c3_269, %c0_270, %c0_271] : memref<9x4x4xbf16, #tpu.memory_space<vmem>>, vector<1x4x4xbf16>
    %333 = vector.shape_cast %332 : vector<1x4x4xbf16> to vector<4x4xbf16>
    %c0_272 = arith.constant 0 : index
    %c255_273 = arith.constant 255 : index
    %334 = vector.load %arg12[%c0_272, %c255_273] : memref<4x2560xbf16, #tpu.memory_space<vmem>>, vector<4x2048xbf16>
    %cst_274 = arith.constant dense<0.000000e+00> : vector<4x2048xf32>
    %335 = tpu.matmul %333, %334, %cst_274 {dimension_numbers = #tpu.dot_dimension_numbers<[1], [0], [0], [1], [0, 0, 1, 1], [], []>} : vector<4x4xbf16>, vector<4x2048xbf16>, vector<4x2048xf32> -> vector<4x2048xf32>
    %336 = arith.addf %331, %335 : vector<4x2048xf32>
    %c4_275 = arith.constant 4 : index
    %c0_276 = arith.constant 0 : index
    %c0_277 = arith.constant 0 : index
    %337 = vector.load %arg8[%c4_275, %c0_276, %c0_277] : memref<9x4x4xbf16, #tpu.memory_space<vmem>>, vector<1x4x4xbf16>
    %338 = vector.shape_cast %337 : vector<1x4x4xbf16> to vector<4x4xbf16>
    %c0_278 = arith.constant 0 : index
    %c256_279 = arith.constant 256 : index
    %339 = vector.load %arg12[%c0_278, %c256_279] : memref<4x2560xbf16, #tpu.memory_space<vmem>>, vector<4x2048xbf16>
    %cst_280 = arith.constant dense<0.000000e+00> : vector<4x2048xf32>
    %340 = tpu.matmul %338, %339, %cst_280 {dimension_numbers = #tpu.dot_dimension_numbers<[1], [0], [0], [1], [0, 0, 1, 1], [], []>} : vector<4x4xbf16>, vector<4x2048xbf16>, vector<4x2048xf32> -> vector<4x2048xf32>
    %341 = arith.addf %336, %340 : vector<4x2048xf32>
    %c5_281 = arith.constant 5 : index
    %c0_282 = arith.constant 0 : index
    %c0_283 = arith.constant 0 : index
    %342 = vector.load %arg8[%c5_281, %c0_282, %c0_283] : memref<9x4x4xbf16, #tpu.memory_space<vmem>>, vector<1x4x4xbf16>
    %343 = vector.shape_cast %342 : vector<1x4x4xbf16> to vector<4x4xbf16>
    %c0_284 = arith.constant 0 : index
    %c257_285 = arith.constant 257 : index
    %344 = vector.load %arg12[%c0_284, %c257_285] : memref<4x2560xbf16, #tpu.memory_space<vmem>>, vector<4x2048xbf16>
    %cst_286 = arith.constant dense<0.000000e+00> : vector<4x2048xf32>
    %345 = tpu.matmul %343, %344, %cst_286 {dimension_numbers = #tpu.dot_dimension_numbers<[1], [0], [0], [1], [0, 0, 1, 1], [], []>} : vector<4x4xbf16>, vector<4x2048xbf16>, vector<4x2048xf32> -> vector<4x2048xf32>
    %346 = arith.addf %341, %345 : vector<4x2048xf32>
    %c6_287 = arith.constant 6 : index
    %c0_288 = arith.constant 0 : index
    %c0_289 = arith.constant 0 : index
    %347 = vector.load %arg8[%c6_287, %c0_288, %c0_289] : memref<9x4x4xbf16, #tpu.memory_space<vmem>>, vector<1x4x4xbf16>
    %348 = vector.shape_cast %347 : vector<1x4x4xbf16> to vector<4x4xbf16>
    %c0_290 = arith.constant 0 : index
    %c383_291 = arith.constant 383 : index
    %349 = vector.load %arg12[%c0_290, %c383_291] : memref<4x2560xbf16, #tpu.memory_space<vmem>>, vector<4x2048xbf16>
    %cst_292 = arith.constant dense<0.000000e+00> : vector<4x2048xf32>
    %350 = tpu.matmul %348, %349, %cst_292 {dimension_numbers = #tpu.dot_dimension_numbers<[1], [0], [0], [1], [0, 0, 1, 1], [], []>} : vector<4x4xbf16>, vector<4x2048xbf16>, vector<4x2048xf32> -> vector<4x2048xf32>
    %351 = arith.addf %346, %350 : vector<4x2048xf32>
    %c7_293 = arith.constant 7 : index
    %c0_294 = arith.constant 0 : index
    %c0_295 = arith.constant 0 : index
    %352 = vector.load %arg8[%c7_293, %c0_294, %c0_295] : memref<9x4x4xbf16, #tpu.memory_space<vmem>>, vector<1x4x4xbf16>
    %353 = vector.shape_cast %352 : vector<1x4x4xbf16> to vector<4x4xbf16>
    %c0_296 = arith.constant 0 : index
    %c384_297 = arith.constant 384 : index
    %354 = vector.load %arg12[%c0_296, %c384_297] : memref<4x2560xbf16, #tpu.memory_space<vmem>>, vector<4x2048xbf16>
    %cst_298 = arith.constant dense<0.000000e+00> : vector<4x2048xf32>
    %355 = tpu.matmul %353, %354, %cst_298 {dimension_numbers = #tpu.dot_dimension_numbers<[1], [0], [0], [1], [0, 0, 1, 1], [], []>} : vector<4x4xbf16>, vector<4x2048xbf16>, vector<4x2048xf32> -> vector<4x2048xf32>
    %356 = arith.addf %351, %355 : vector<4x2048xf32>
    %c8_299 = arith.constant 8 : index
    %c0_300 = arith.constant 0 : index
    %c0_301 = arith.constant 0 : index
    %357 = vector.load %arg8[%c8_299, %c0_300, %c0_301] : memref<9x4x4xbf16, #tpu.memory_space<vmem>>, vector<1x4x4xbf16>
    %358 = vector.shape_cast %357 : vector<1x4x4xbf16> to vector<4x4xbf16>
    %c0_302 = arith.constant 0 : index
    %c385_303 = arith.constant 385 : index
    %359 = vector.load %arg12[%c0_302, %c385_303] : memref<4x2560xbf16, #tpu.memory_space<vmem>>, vector<4x2048xbf16>
    %cst_304 = arith.constant dense<0.000000e+00> : vector<4x2048xf32>
    %360 = tpu.matmul %358, %359, %cst_304 {dimension_numbers = #tpu.dot_dimension_numbers<[1], [0], [0], [1], [0, 0, 1, 1], [], []>} : vector<4x4xbf16>, vector<4x2048xbf16>, vector<4x2048xf32> -> vector<4x2048xf32>
    %361 = arith.addf %356, %360 : vector<4x2048xf32>
    %c0_305 = arith.constant 0 : index
    %c0_306 = arith.constant 0 : index
    %362 = vector.load %arg9[%c0_305, %c0_306] : memref<4x1xf32, #tpu.memory_space<vmem>>, vector<4x1xf32>
    %363 = vector.broadcast %362 : vector<4x1xf32> to vector<4x2048xf32>
    %364 = arith.addf %361, %363 : vector<4x2048xf32>
    %cst_307 = arith.constant 0.000000e+00 : f32
    %365 = vector.broadcast %cst_307 : f32 to vector<4x2048xf32>
    %366 = arith.maximumf %364, %365 : vector<4x2048xf32>
    %367 = vector.extract_strided_slice %366 {offsets = [0, 0], sizes = [4, 16], strides = [1, 1]} : vector<4x2048xf32> to vector<4x16xf32>
    %368 = arith.truncf %367 : vector<4x16xf32> to vector<4x16xbf16>
    %c0_308 = arith.constant 0 : index
    %c0_309 = arith.constant 0 : index
    %c0_310 = arith.constant 0 : index
    %369 = vector.load %arg10[%c0_308, %c0_309, %c0_310] : memref<1x4x256xbf16, #tpu.memory_space<vmem>>, vector<1x4x16xbf16>
    %370 = vector.shape_cast %369 : vector<1x4x16xbf16> to vector<4x16xbf16>
    %371 = vector.shape_cast %368 : vector<4x16xbf16> to vector<1x4x16xbf16>
    tpu.vector_store %arg10[%c0_308, %c0_309, %c0_310], %371 {strides = array<i32>} : memref<1x4x256xbf16, #tpu.memory_space<vmem>>, vector<1x4x16xbf16>,
    %372 = vector.extract_strided_slice %366 {offsets = [0, 128], sizes = [4, 16], strides = [1, 1]} : vector<4x2048xf32> to vector<4x16xf32>
    %373 = arith.truncf %372 : vector<4x16xf32> to vector<4x16xbf16>
    %c0_311 = arith.constant 0 : index
    %c0_312 = arith.constant 0 : index
    %c16_313 = arith.constant 16 : index
    %374 = vector.load %arg10[%c0_311, %c0_312, %c16_313] : memref<1x4x256xbf16, #tpu.memory_space<vmem>>, vector<1x4x16xbf16>
    %375 = vector.shape_cast %374 : vector<1x4x16xbf16> to vector<4x16xbf16>
    %376 = vector.shape_cast %373 : vector<4x16xbf16> to vector<1x4x16xbf16>
    tpu.vector_store %arg10[%c0_311, %c0_312, %c16_313], %376 {strides = array<i32>} : memref<1x4x256xbf16, #tpu.memory_space<vmem>>, vector<1x4x16xbf16>,
    %377 = vector.extract_strided_slice %366 {offsets = [0, 256], sizes = [4, 16], strides = [1, 1]} : vector<4x2048xf32> to vector<4x16xf32>
    %378 = arith.truncf %377 : vector<4x16xf32> to vector<4x16xbf16>
    %c0_314 = arith.constant 0 : index
    %c0_315 = arith.constant 0 : index
    %c32_316 = arith.constant 32 : index
    %379 = vector.load %arg10[%c0_314, %c0_315, %c32_316] : memref<1x4x256xbf16, #tpu.memory_space<vmem>>, vector<1x4x16xbf16>
    %380 = vector.shape_cast %379 : vector<1x4x16xbf16> to vector<4x16xbf16>
    %381 = vector.shape_cast %378 : vector<4x16xbf16> to vector<1x4x16xbf16>
    tpu.vector_store %arg10[%c0_314, %c0_315, %c32_316], %381 {strides = array<i32>} : memref<1x4x256xbf16, #tpu.memory_space<vmem>>, vector<1x4x16xbf16>,
    %382 = vector.extract_strided_slice %366 {offsets = [0, 384], sizes = [4, 16], strides = [1, 1]} : vector<4x2048xf32> to vector<4x16xf32>
    %383 = arith.truncf %382 : vector<4x16xf32> to vector<4x16xbf16>
    %c0_317 = arith.constant 0 : index
    %c0_318 = arith.constant 0 : index
    %c48_319 = arith.constant 48 : index
    %384 = vector.load %arg10[%c0_317, %c0_318, %c48_319] : memref<1x4x256xbf16, #tpu.memory_space<vmem>>, vector<1x4x16xbf16>
    %385 = vector.shape_cast %384 : vector<1x4x16xbf16> to vector<4x16xbf16>
    %386 = vector.shape_cast %383 : vector<4x16xbf16> to vector<1x4x16xbf16>
    tpu.vector_store %arg10[%c0_317, %c0_318, %c48_319], %386 {strides = array<i32>} : memref<1x4x256xbf16, #tpu.memory_space<vmem>>, vector<1x4x16xbf16>,
    %387 = vector.extract_strided_slice %366 {offsets = [0, 512], sizes = [4, 16], strides = [1, 1]} : vector<4x2048xf32> to vector<4x16xf32>
    %388 = arith.truncf %387 : vector<4x16xf32> to vector<4x16xbf16>
    %c0_320 = arith.constant 0 : index
    %c0_321 = arith.constant 0 : index
    %c64_322 = arith.constant 64 : index
    %389 = vector.load %arg10[%c0_320, %c0_321, %c64_322] : memref<1x4x256xbf16, #tpu.memory_space<vmem>>, vector<1x4x16xbf16>
    %390 = vector.shape_cast %389 : vector<1x4x16xbf16> to vector<4x16xbf16>
    %391 = vector.shape_cast %388 : vector<4x16xbf16> to vector<1x4x16xbf16>
    tpu.vector_store %arg10[%c0_320, %c0_321, %c64_322], %391 {strides = array<i32>} : memref<1x4x256xbf16, #tpu.memory_space<vmem>>, vector<1x4x16xbf16>,
    %392 = vector.extract_strided_slice %366 {offsets = [0, 640], sizes = [4, 16], strides = [1, 1]} : vector<4x2048xf32> to vector<4x16xf32>
    %393 = arith.truncf %392 : vector<4x16xf32> to vector<4x16xbf16>
    %c0_323 = arith.constant 0 : index
    %c0_324 = arith.constant 0 : index
    %c80_325 = arith.constant 80 : index
    %394 = vector.load %arg10[%c0_323, %c0_324, %c80_325] : memref<1x4x256xbf16, #tpu.memory_space<vmem>>, vector<1x4x16xbf16>
    %395 = vector.shape_cast %394 : vector<1x4x16xbf16> to vector<4x16xbf16>
    %396 = vector.shape_cast %393 : vector<4x16xbf16> to vector<1x4x16xbf16>
    tpu.vector_store %arg10[%c0_323, %c0_324, %c80_325], %396 {strides = array<i32>} : memref<1x4x256xbf16, #tpu.memory_space<vmem>>, vector<1x4x16xbf16>,
    %397 = vector.extract_strided_slice %366 {offsets = [0, 768], sizes = [4, 16], strides = [1, 1]} : vector<4x2048xf32> to vector<4x16xf32>
    %398 = arith.truncf %397 : vector<4x16xf32> to vector<4x16xbf16>
    %c0_326 = arith.constant 0 : index
    %c0_327 = arith.constant 0 : index
    %c96_328 = arith.constant 96 : index
    %399 = vector.load %arg10[%c0_326, %c0_327, %c96_328] : memref<1x4x256xbf16, #tpu.memory_space<vmem>>, vector<1x4x16xbf16>
    %400 = vector.shape_cast %399 : vector<1x4x16xbf16> to vector<4x16xbf16>
    %401 = vector.shape_cast %398 : vector<4x16xbf16> to vector<1x4x16xbf16>
    tpu.vector_store %arg10[%c0_326, %c0_327, %c96_328], %401 {strides = array<i32>} : memref<1x4x256xbf16, #tpu.memory_space<vmem>>, vector<1x4x16xbf16>,
    %402 = vector.extract_strided_slice %366 {offsets = [0, 896], sizes = [4, 16], strides = [1, 1]} : vector<4x2048xf32> to vector<4x16xf32>
    %403 = arith.truncf %402 : vector<4x16xf32> to vector<4x16xbf16>
    %c0_329 = arith.constant 0 : index
    %c0_330 = arith.constant 0 : index
    %c112_331 = arith.constant 112 : index
    %404 = vector.load %arg10[%c0_329, %c0_330, %c112_331] : memref<1x4x256xbf16, #tpu.memory_space<vmem>>, vector<1x4x16xbf16>
    %405 = vector.shape_cast %404 : vector<1x4x16xbf16> to vector<4x16xbf16>
    %406 = vector.shape_cast %403 : vector<4x16xbf16> to vector<1x4x16xbf16>
    tpu.vector_store %arg10[%c0_329, %c0_330, %c112_331], %406 {strides = array<i32>} : memref<1x4x256xbf16, #tpu.memory_space<vmem>>, vector<1x4x16xbf16>,
    %407 = vector.extract_strided_slice %366 {offsets = [0, 1024], sizes = [4, 16], strides = [1, 1]} : vector<4x2048xf32> to vector<4x16xf32>
    %408 = arith.truncf %407 : vector<4x16xf32> to vector<4x16xbf16>
    %c0_332 = arith.constant 0 : index
    %c0_333 = arith.constant 0 : index
    %c128_334 = arith.constant 128 : index
    %409 = vector.load %arg10[%c0_332, %c0_333, %c128_334] : memref<1x4x256xbf16, #tpu.memory_space<vmem>>, vector<1x4x16xbf16>
    %410 = vector.shape_cast %409 : vector<1x4x16xbf16> to vector<4x16xbf16>
    %411 = vector.shape_cast %408 : vector<4x16xbf16> to vector<1x4x16xbf16>
    tpu.vector_store %arg10[%c0_332, %c0_333, %c128_334], %411 {strides = array<i32>} : memref<1x4x256xbf16, #tpu.memory_space<vmem>>, vector<1x4x16xbf16>,
    %412 = vector.extract_strided_slice %366 {offsets = [0, 1152], sizes = [4, 16], strides = [1, 1]} : vector<4x2048xf32> to vector<4x16xf32>
    %413 = arith.truncf %412 : vector<4x16xf32> to vector<4x16xbf16>
    %c0_335 = arith.constant 0 : index
    %c0_336 = arith.constant 0 : index
    %c144_337 = arith.constant 144 : index
    %414 = vector.load %arg10[%c0_335, %c0_336, %c144_337] : memref<1x4x256xbf16, #tpu.memory_space<vmem>>, vector<1x4x16xbf16>
    %415 = vector.shape_cast %414 : vector<1x4x16xbf16> to vector<4x16xbf16>
    %416 = vector.shape_cast %413 : vector<4x16xbf16> to vector<1x4x16xbf16>
    tpu.vector_store %arg10[%c0_335, %c0_336, %c144_337], %416 {strides = array<i32>} : memref<1x4x256xbf16, #tpu.memory_space<vmem>>, vector<1x4x16xbf16>,
    %417 = vector.extract_strided_slice %366 {offsets = [0, 1280], sizes = [4, 16], strides = [1, 1]} : vector<4x2048xf32> to vector<4x16xf32>
    %418 = arith.truncf %417 : vector<4x16xf32> to vector<4x16xbf16>
    %c0_338 = arith.constant 0 : index
    %c0_339 = arith.constant 0 : index
    %c160_340 = arith.constant 160 : index
    %419 = vector.load %arg10[%c0_338, %c0_339, %c160_340] : memref<1x4x256xbf16, #tpu.memory_space<vmem>>, vector<1x4x16xbf16>
    %420 = vector.shape_cast %419 : vector<1x4x16xbf16> to vector<4x16xbf16>
    %421 = vector.shape_cast %418 : vector<4x16xbf16> to vector<1x4x16xbf16>
    tpu.vector_store %arg10[%c0_338, %c0_339, %c160_340], %421 {strides = array<i32>} : memref<1x4x256xbf16, #tpu.memory_space<vmem>>, vector<1x4x16xbf16>,
    %422 = vector.extract_strided_slice %366 {offsets = [0, 1408], sizes = [4, 16], strides = [1, 1]} : vector<4x2048xf32> to vector<4x16xf32>
    %423 = arith.truncf %422 : vector<4x16xf32> to vector<4x16xbf16>
    %c0_341 = arith.constant 0 : index
    %c0_342 = arith.constant 0 : index
    %c176_343 = arith.constant 176 : index
    %424 = vector.load %arg10[%c0_341, %c0_342, %c176_343] : memref<1x4x256xbf16, #tpu.memory_space<vmem>>, vector<1x4x16xbf16>
    %425 = vector.shape_cast %424 : vector<1x4x16xbf16> to vector<4x16xbf16>
    %426 = vector.shape_cast %423 : vector<4x16xbf16> to vector<1x4x16xbf16>
    tpu.vector_store %arg10[%c0_341, %c0_342, %c176_343], %426 {strides = array<i32>} : memref<1x4x256xbf16, #tpu.memory_space<vmem>>, vector<1x4x16xbf16>,
    %427 = vector.extract_strided_slice %366 {offsets = [0, 1536], sizes = [4, 16], strides = [1, 1]} : vector<4x2048xf32> to vector<4x16xf32>
    %428 = arith.truncf %427 : vector<4x16xf32> to vector<4x16xbf16>
    %c0_344 = arith.constant 0 : index
    %c0_345 = arith.constant 0 : index
    %c192_346 = arith.constant 192 : index
    %429 = vector.load %arg10[%c0_344, %c0_345, %c192_346] : memref<1x4x256xbf16, #tpu.memory_space<vmem>>, vector<1x4x16xbf16>
    %430 = vector.shape_cast %429 : vector<1x4x16xbf16> to vector<4x16xbf16>
    %431 = vector.shape_cast %428 : vector<4x16xbf16> to vector<1x4x16xbf16>
    tpu.vector_store %arg10[%c0_344, %c0_345, %c192_346], %431 {strides = array<i32>} : memref<1x4x256xbf16, #tpu.memory_space<vmem>>, vector<1x4x16xbf16>,
    %432 = vector.extract_strided_slice %366 {offsets = [0, 1664], sizes = [4, 16], strides = [1, 1]} : vector<4x2048xf32> to vector<4x16xf32>
    %433 = arith.truncf %432 : vector<4x16xf32> to vector<4x16xbf16>
    %c0_347 = arith.constant 0 : index
    %c0_348 = arith.constant 0 : index
    %c208_349 = arith.constant 208 : index
    %434 = vector.load %arg10[%c0_347, %c0_348, %c208_349] : memref<1x4x256xbf16, #tpu.memory_space<vmem>>, vector<1x4x16xbf16>
    %435 = vector.shape_cast %434 : vector<1x4x16xbf16> to vector<4x16xbf16>
    %436 = vector.shape_cast %433 : vector<4x16xbf16> to vector<1x4x16xbf16>
    tpu.vector_store %arg10[%c0_347, %c0_348, %c208_349], %436 {strides = array<i32>} : memref<1x4x256xbf16, #tpu.memory_space<vmem>>, vector<1x4x16xbf16>,
    %437 = vector.extract_strided_slice %366 {offsets = [0, 1792], sizes = [4, 16], strides = [1, 1]} : vector<4x2048xf32> to vector<4x16xf32>
    %438 = arith.truncf %437 : vector<4x16xf32> to vector<4x16xbf16>
    %c0_350 = arith.constant 0 : index
    %c0_351 = arith.constant 0 : index
    %c224_352 = arith.constant 224 : index
    %439 = vector.load %arg10[%c0_350, %c0_351, %c224_352] : memref<1x4x256xbf16, #tpu.memory_space<vmem>>, vector<1x4x16xbf16>
    %440 = vector.shape_cast %439 : vector<1x4x16xbf16> to vector<4x16xbf16>
    %441 = vector.shape_cast %438 : vector<4x16xbf16> to vector<1x4x16xbf16>
    tpu.vector_store %arg10[%c0_350, %c0_351, %c224_352], %441 {strides = array<i32>} : memref<1x4x256xbf16, #tpu.memory_space<vmem>>, vector<1x4x16xbf16>,
    %442 = vector.extract_strided_slice %366 {offsets = [0, 1920], sizes = [4, 16], strides = [1, 1]} : vector<4x2048xf32> to vector<4x16xf32>
    %443 = arith.truncf %442 : vector<4x16xf32> to vector<4x16xbf16>
    %c0_353 = arith.constant 0 : index
    %c0_354 = arith.constant 0 : index
    %c240_355 = arith.constant 240 : index
    %444 = vector.load %arg10[%c0_353, %c0_354, %c240_355] : memref<1x4x256xbf16, #tpu.memory_space<vmem>>, vector<1x4x16xbf16>
    %445 = vector.shape_cast %444 : vector<1x4x16xbf16> to vector<4x16xbf16>
    %446 = vector.shape_cast %443 : vector<4x16xbf16> to vector<1x4x16xbf16>
    tpu.vector_store %arg10[%c0_353, %c0_354, %c240_355], %446 {strides = array<i32>} : memref<1x4x256xbf16, #tpu.memory_space<vmem>>, vector<1x4x16xbf16>,
    return
  }
  func.func @transform_0(%arg0: i32) -> (i32, i32, i32) {
    %c0_i32 = arith.constant 0 : i32
    %c0_i32_0 = arith.constant 0 : i32
    %c0_i32_1 = arith.constant 0 : i32
    return %arg0, %c0_i32, %c0_i32_0 : i32, i32, i32
  }
  func.func @transform_1(%arg0: i32) -> (i32, i32, i32) {
    %c0_i32 = arith.constant 0 : i32
    %c0_i32_0 = arith.constant 0 : i32
    %c0_i32_1 = arith.constant 0 : i32
    return %arg0, %c0_i32, %c0_i32_0 : i32, i32, i32
  }
  func.func @transform_2(%arg0: i32) -> (i32, i32) {
    %c0_i32 = arith.constant 0 : i32
    %c0_i32_0 = arith.constant 0 : i32
    %c0_i32_1 = arith.constant 0 : i32
    return %c0_i32, %c0_i32_0 : i32, i32
  }
  func.func @transform_3(%arg0: i32) -> (i32, i32) {
    %c0_i32 = arith.constant 0 : i32
    %c0_i32_0 = arith.constant 0 : i32
    %c0_i32_1 = arith.constant 0 : i32
    return %c0_i32, %c0_i32_0 : i32, i32
  }
  func.func @transform_4(%arg0: i32) -> (i32, i32) {
    %c0_i32 = arith.constant 0 : i32
    %c0_i32_0 = arith.constant 0 : i32
    %c0_i32_1 = arith.constant 0 : i32
    return %c0_i32, %c0_i32_0 : i32, i32
  }
  func.func @transform_5(%arg0: i32) -> (i32, i32, i32) {
    %c0_i32 = arith.constant 0 : i32
    %c0_i32_0 = arith.constant 0 : i32
    %c0_i32_1 = arith.constant 0 : i32
    %c0_i32_2 = arith.constant 0 : i32
    return %c0_i32, %c0_i32_0, %c0_i32_1 : i32, i32, i32
  }
  func.func @transform_6(%arg0: i32) -> (i32, i32) {
    %c0_i32 = arith.constant 0 : i32
    %c0_i32_0 = arith.constant 0 : i32
    %c0_i32_1 = arith.constant 0 : i32
    return %c0_i32, %c0_i32_0 : i32, i32
  }
  func.func @transform_7(%arg0: i32) -> (i32, i32, i32) {
    %c0_i32 = arith.constant 0 : i32
    %c0_i32_0 = arith.constant 0 : i32
    %c0_i32_1 = arith.constant 0 : i32
    %c0_i32_2 = arith.constant 0 : i32
    return %c0_i32, %c0_i32_0, %c0_i32_1 : i32, i32, i32
  }
  func.func @transform_8(%arg0: i32) -> (i32, i32) {
    %c0_i32 = arith.constant 0 : i32
    %c0_i32_0 = arith.constant 0 : i32
    %c0_i32_1 = arith.constant 0 : i32
    return %c0_i32, %c0_i32_0 : i32, i32
  }
  func.func @transform_9(%arg0: i32) -> (i32, i32, i32) {
    %c0_i32 = arith.constant 0 : i32
    %c0_i32_0 = arith.constant 0 : i32
    %c0_i32_1 = arith.constant 0 : i32
    return %arg0, %c0_i32, %c0_i32_0 : i32, i32, i32
  }
}

</mosaic_0001>

<bundles_post_ra>
// kernel: tile.8
= control target key start
LH: loop header
LB: loop body
LE: loop exit
PB: predicated region body
PF: predicated region fallthrough
CT: control target
= control target key end

     0   :  { %s22_s0 = inlined_call_operand.vmem [shape: f32[4], index: 0, kind: input, shape index: {}]   ;;  %s23_s1 = inlined_call_operand.vmem [shape: f32[4,4], index: 1, kind: output, shape index: {}]  }
   0x1   :  { %v4_v0 = vld [vmem:[%s22_s0] ss:$0 sm:$0xff] }
   0x2   :  { %5 = vst [vmem:[%s23_s1] sm:$0xf] %v4_v0 }

// kernel: tile.0
= control target key start
LH: loop header
LB: loop body
LE: loop exit
PB: predicated region body
PF: predicated region fallthrough
CT: control target
= control target key end

     0   :  { %s34_s8 = smov 125   ;;  %s35_s9 = smov 126   ;;  %vm7_vm0 = vcmask 7168   ;;  %s61_s0 = inlined_call_operand.vmem [shape: f32[4,4], index: 0, kind: input, shape index: {}]   ;;  %s62_s1 = inlined_call_operand.vmem [shape: f32[16,1], index: 1, kind: output, shape index: {}]  }
   0x1   :  { %v4_v0 = vld [vmem:[%s61_s0] sm:$0xf]  ;;  %s33_s0 = smov 127  }
   0x2   :  { %5 = vst [vmem:[#allocation0] sm:$0xf] %v4_v0 }
   0x9   :  { %v9_v1 = vld [vmem:[#allocation0] sm:$0xf]  }
   0xa   :  { %v21_v2 = vld [vmem:[#allocation0] sm:$0xf]   ;;  %10 = vrot.lane.b32.xlu0 %v9_v1, %s33_s0 }
   0xb   :  { %22 = vrot.lane.b32.xlu1 %v21_v2, %s34_s8  ;;  %v15_v3 = vld [vmem:[#allocation0] sm:$0xf]  }
   0xc   :  { %v6_v4 = vld [vmem:[#allocation0] sm:$0xf]  }
   0xd   :  { %8 = vst.msk [vmem:[%s62_s1] ss:$4 sm:$0xf] %vm7_vm0, %v6_v4  }
  0x12   :  { %16 = vrot.lane.b32.xlu0 %v15_v3, %s35_s9 }
  0x7c   :  { %v11_v5 = vpop.permute.xlu0 %10  }
  0x7d   :  { %v23_v6 = vpop.permute.xlu1 %22   ;;  %27 = vst.msk [vmem:[%s62_s1 + $0x1] ss:$4 sm:$0xf] %vm7_vm0, %v11_v5  }
  0x7e   :  { %29 = vst.msk [vmem:[%s62_s1 + $0x3] ss:$4 sm:$0xf] %vm7_vm0, %v23_v6  }
  0x84   :  { %v17_v7 = vpop.permute.xlu0 %16  }
  0x85   :  { %28 = vst.msk [vmem:[%s62_s1 + $0x2] ss:$4 sm:$0xf] %vm7_vm0, %v17_v7  }

// kernel: upconv_forward.1
= control target key start
LH: loop header
LB: loop body
LE: loop exit
PB: predicated region body
PF: predicated region fallthrough
CT: control target
= control target key end

     0   :  { %s7872_s30 = smov 0   ;;  %s10903_s0 = inlined_call_operand.vmem [shape: bf16[2,8,64], index: 0, kind: input, shape index: {}]   ;;  %s10904_s1 = inlined_call_operand.vmem [shape: bf16[2,4,256], index: 1, kind: input, shape index: {}]   ;;  %s10905_s2 = inlined_call_operand.vmem [shape: bf16[16,8], index: 2, kind: input, shape index: {}]   ;;  %s10906_s3 = inlined_call_operand.vmem [shape: f32[16,1], index: 3, kind: input, shape index: {}]   ;;  %s10907_s4 = inlined_call_operand.vmem [shape: bf16[8,16], index: 4, kind: input, shape index: {}]   ;;  %s10908_s5 = inlined_call_operand.vmem [shape: bf16[9,4,8], index: 5, kind: input, shape index: {}]   ;;  %s10909_s6 = inlined_call_operand.vmem [shape: f32[4,1], index: 6, kind: input, shape index: {}]   ;;  %s10910_s7 = inlined_call_operand.vmem [shape: bf16[9,4,4], index: 7, kind: input, shape index: {}]   ;;  %s10911_s8 = inlined_call_operand.vmem [shape: f32[4,1], index: 8, kind: input, shape index: {}]   ;;  %s10912_s9 = inlined_call_operand.vmem [shape: bf16[2,4,256], index: 9, kind: output, shape index: {}]  }
   0x1 LB: > { %s7442_s10 = sadd.s32 4294967295, %s7806_s30   ;;  %p7446_p0 = scmp.ge.s32.totalorder %s7806_s30, 1  ;;  %s7806_s30 = sphi %s7872_s30, %s19_s30  }
   0x2   : > { %p296_p1 = scmp.lt.s32.totalorder %s7806_s30, 3 }
   0x4   : > { %p297_p2 = pnand %p7446_p0, %p296_p1 }
   0x6   : > { %300 = sbr.rel (%p297_p2) target bundleno = 2116 (0x844), region = 56 }
   0xb   : > { %p336_p3 = scmp.lt.s32.totalorder %s7442_s10, 1  ;;  %v392_v0 = vld [vmem:[%s10906_s3] sm:$0xff]  ;;  %v7808_v1 = vmov 0   ;;  %vm413_vm0 = vcmask 1043456   ;;  %v393_v6 = vld [vmem:[%s10906_s3 + $0x8] sm:$0xff]  ;;  %vm409_vm1 = vcmask 64512  }
   0xc   : > { %7796 = vset.pattern.permute.xlu0 %v7808_v1  ;;  %351 = vst [vmem:[#allocation2] sm:$0xff] %v7808_v1  ;;  %7797 = vset.pattern.permute.xlu1 %v7808_v1  ;;  %v7773_v5 = vld [vmem:[%s10905_s2] sm:$0xff]  ;;  %s7809_s28 = smov 88   ;;  %s7810_s29 = smov 104   ;;  %vm355_vm2 = vcmask 1043584   ;;  %v1216_v61 = vunpack.c.h.b16 %v7808_v1  ;;  %vm487_vm3 = vcmask 125954  }
   0xd   : > { %s10950_s10 = smov (!%p336_p3, %s7442_s10), 1  ;;  %352 = vst [vmem:[#allocation2 + $0x48] sm:$0xff] %v7808_v1  ;;  %396 = vperm.xlu0 %7796, %v392_v0   ;;  %v448_v34 = vld [vmem:[%s10907_s4] sm:$0xf]  ;;  %s7812_s11 = smov 96   ;;  %vm479_vm5 = vcmask 123904  }
   0xe   : > { %353 = vst [vmem:[#allocation3] sm:$0xf] %v7808_v1  ;;  %s7888_s13 = sshll.u32 %s10950_s10, 2  ;;  %v458_v35 = vsel %vm413_vm0, %v448_v34, 0  ;;  %v615_v41 = vld [vmem:[%s10907_s4] sm:$0xf]  ;;  %v1233_v62 = vpack.c.b16 %v1216_v61, %v1216_v61 }
   0xf   : > { %354 = vst [vmem:[#allocation3 + $0x24] sm:$0xf] %v7808_v1  ;;  %s339_s16 = scalar_lea.vmem %s10903_s0, %s7888_s13  ;;  %s7899_s19 = scalar_lea.vmem %s10904_s1, %s7888_s13  ;;  %467 = vmatpush.bf16.msra.mxu1 %v458_v35  ;;  %v622_v42 = vsel %vm413_vm0, %v615_v41, 0  ;;  %v670_v52 = vld [vmem:[%s10907_s4] sm:$0xf]  ;;  %vm1283_vm6 = vcmask 7168  }
  0x10   : > { %v391_v2 = vld [vmem:[%s339_s16] sm:$0xf]  ;;  %s7811_s10 = smov 120   ;;  %s7813_s12 = smov 112   ;;  %v677_v53 = vsel %vm413_vm0, %v670_v52, 0  ;;  %vm1647_vm7 = vcmask 1039360  }
  0x11   : > { %v481_v3 = vld [vmem:[%s7899_s19] sm:$0x3]  ;;  %v415_v4 = vsel %vm413_vm0, %v391_v2, 0  ;;  %v699_v21 = vld [vmem:[%s7899_s19 + $0x2] sm:$0x3]  ;;  %s7814_s14 = smov 72  }
  0x12   : > { %484 = vst [vmem:[#allocation1 + $0x1] ss:$2 sm:$0xff] %v481_v3  ;;  %424 = vmatpush.bf16.msra.mxu0 %v415_v4  ;;  %v495_v7 = vld [vmem:[%s7899_s19] sm:$0x3]  ;;  %v712_v23 = vld [vmem:[%s7899_s19 + $0x2] sm:$0x3] }
  0x13   : > { %v534_v9 = vld [vmem:[%s7899_s19] sm:$0x3]  ;;  %v751_v25 = vld [vmem:[%s7899_s19 + $0x2] sm:$0x3]  ;;  %s7815_s15 = smov 64   ;;  %s7816_s16 = smov 80   ;;  %686 = vmatpush.bf16.msrb.mxu1 %v677_v53 }
  0x14   : > { %v550_v11 = vld [vmem:[%s7899_s19] sm:$0x3]  ;;  %v767_v27 = vld [vmem:[%s7899_s19 + $0x2] sm:$0x3]  ;;  %s7817_s17 = smov 16   ;;  %s7818_s18 = smov 32  }
  0x15   : > { %401 = vperm.xlu0 %7796, %v393_v6   ;;  %7456 = vmatmul.msk.bf16.vlgmr.msra.gmra.mxu0 %vm409_vm1, %v7773_v5  ;;  %v589_v13 = vld [vmem:[%s7899_s19] sm:$0x3]  ;;  %v806_v29 = vld [vmem:[%s7899_s19 + $0x2] sm:$0x3]  ;;  %356 = vst.msk [vmem:[#allocation2 + $0x8] sm:$0xf] %vm355_vm2, %v7808_v1 }
  0x16   : > { %v605_v15 = vld [vmem:[%s7899_s19] sm:$0x3]  ;;  %v822_v31 = vld [vmem:[%s7899_s19 + $0x2] sm:$0x3]  ;;  %631 = vmatpush.bf16.msrb.mxu0 %v622_v42  ;;  %359 = vst.msk [vmem:[#allocation2 + $0xc] sm:$0xf] %vm355_vm2, %v7808_v1 }
  0x17   : > { %v644_v17 = vld [vmem:[%s7899_s19] sm:$0x3]  ;;  %v861_v33 = vld [vmem:[%s7899_s19 + $0x2] sm:$0x3]  ;;  %361 = vst.msk [vmem:[#allocation2 + $0x10] sm:$0xf] %vm355_vm2, %v7808_v1 }
  0x18   : > { %v660_v19 = vld [vmem:[%s7899_s19] sm:$0x3]  ;;  %v877_v37 = vld [vmem:[%s7899_s19 + $0x2] sm:$0x3]  ;;  %s7819_s19 = smov 48   ;;  %s7821_s23 = smov 127  }
  0x19   : > { %v7911_v8 = vld.sshfl [vmem:[#allocation1] sm:$0xff pattern:$0x75643120]  ;;  %363 = vst.msk [vmem:[#allocation2 + $0x14] sm:$0xf] %vm355_vm2, %v7808_v1  ;;  %vm357_vm8 = vcmask 1041536  }
  0x1a   : > { %498 = vst [vmem:[#allocation1 + $0x1] ss:$2 sm:$0xff] %v495_v7  ;;  %v832_v54 = vld [vmem:[%s10907_s4] sm:$0xf]  ;;  %v433_v7 = vlaneseq  ;;  %vm4112_vm9 = vcmask 1041408   ;;  %vm4108_vm10 = vcmask 31744  }
  0x1b   : > { %v839_v55 = vsel %vm413_vm0, %v832_v54, 0  ;;  %v505_v56 = vld [vmem:[%s10907_s4] sm:$0xf]  ;;  %365 = vst.msk [vmem:[#allocation2 + $0x18] sm:$0xf] %vm355_vm2, %v7808_v1  ;;  %vm7222_vm11 = vcmask 255104  }
  0x1c   : > { %848 = vmatpush.bf16.msra.mxu0 %v839_v55  ;;  %v512_v57 = vsel %vm413_vm0, %v505_v56, 0  ;;  %v560_v58 = vld [vmem:[%s10907_s4] sm:$0xf]  ;;  %367 = vst.msk [vmem:[#allocation2 + $0x1c] sm:$0xf] %vm355_vm2, %v7808_v1  ;;  %vm7234_vm12 = vcmask 386304  }
  0x1d   : > { %521 = vmatpush.bf16.msra.mxu2 %v512_v57  ;;  %v567_v59 = vsel %vm413_vm0, %v560_v58, 0  ;;  %v722_v63 = vld [vmem:[%s10907_s4] sm:$0xf]  ;;  %369 = vst.msk [vmem:[#allocation2 + $0x20] sm:$0xf] %vm355_vm2, %v7808_v1  ;;  %vm7246_vm13 = vcmask 517504  }
  0x1e   : > { %576 = vmatpush.bf16.msra.mxu3 %v567_v59  ;;  %v729_v0 = vsel %vm413_vm0, %v722_v63, 0  ;;  %488 = vst.msk [vmem:[#allocation2 + $0x8] sm:$0xc] %vm487_vm3, %v7911_v8  ;;  %v777_v3 = vld [vmem:[%s10907_s4] sm:$0xf]  ;;  %vm7258_vm14 = vcmask 648704  }
  0x1f   : > { %371 = vst.msk [vmem:[#allocation2 + $0x24] sm:$0xf] %vm355_vm2, %v7808_v1  ;;  %v784_v4 = vsel %vm413_vm0, %v777_v3, 0  ;;  %vm7270_vm15 = vcmask 779904  }
  0x20   : > { %373 = vst.msk [vmem:[#allocation2 + $0x28] sm:$0xf] %vm355_vm2, %v7808_v1 }
  0x21   : > { %v7914_v10 = vld.sshfl [vmem:[#allocation1] sm:$0xff pattern:$0x75643120]  ;;  %738 = vmatpush.bf16.msrb.mxu2 %v729_v0  ;;  %375 = vst.msk [vmem:[#allocation2 + $0x2c] sm:$0xf] %vm355_vm2, %v7808_v1 }
  0x22   : > { %537 = vst [vmem:[#allocation1 + $0x1] ss:$2 sm:$0xff] %v534_v9  ;;  %793 = vmatpush.bf16.msrb.mxu3 %v784_v4  ;;  %v434_v9 = vand.u32 127, %v433_v7 }
  0x23   : > { %377 = vst.msk [vmem:[#allocation2 + $0x30] sm:$0xf] %vm355_vm2, %v7808_v1 }
  0x24   : > { %379 = vst.msk [vmem:[#allocation2 + $0x34] sm:$0xf] %vm355_vm2, %v7808_v1 }
  0x25   : > { %381 = vst.msk [vmem:[#allocation2 + $0x38] sm:$0xf] %vm355_vm2, %v7808_v1 }
  0x26   : > { %383 = vst.msk [vmem:[#allocation2 + $0x3c] sm:$0xf] %vm355_vm2, %v7808_v1 }
  0x27   : > { %385 = vst.msk [vmem:[#allocation2 + $0x40] sm:$0xf] %vm355_vm2, %v7808_v1 }
  0x28   : > { %387 = vst.msk [vmem:[#allocation2 + $0x44] sm:$0xf] %vm355_vm2, %v7808_v1 }
  0x29   : > { %v7917_v12 = vld.sshfl [vmem:[#allocation1] sm:$0xff pattern:$0x75643120] }
  0x2a   : > { %553 = vst [vmem:[#allocation1 + $0x1] ss:$2 sm:$0xff] %v550_v11  ;;  %v439_v11 = vand.u32 1, %v434_v9 }
  0x2c   : > { %vm8041_vm4 = vcmp.eq.s32.totalorder %v439_v11, 0 }
  0x31   : > { %v7920_v14 = vld.sshfl [vmem:[#allocation1] sm:$0xff pattern:$0x75643120] }
  0x32   : > { %592 = vst [vmem:[#allocation1 + $0x1] ss:$2 sm:$0xff] %v589_v13 }
  0x39   : > { %v7923_v16 = vld.sshfl [vmem:[#allocation1] sm:$0xff pattern:$0x75643120] }
  0x3a   : > { %608 = vst [vmem:[#allocation1 + $0x1] ss:$2 sm:$0xff] %v605_v15 }
  0x41   : > { %v7926_v18 = vld.sshfl [vmem:[#allocation1] sm:$0xff pattern:$0x75643120] }
  0x42   : > { %647 = vst [vmem:[#allocation1 + $0x1] ss:$2 sm:$0xff] %v644_v17 }
  0x49   : > { %v7929_v20 = vld.sshfl [vmem:[#allocation1] sm:$0xff pattern:$0x75643120] }
  0x4a   : > { %663 = vst [vmem:[#allocation1 + $0x1] ss:$2 sm:$0xff] %v660_v19 }
  0x51   : > { %v664_v22 = vld.sshfl [vmem:[#allocation1] sm:$0xff pattern:$0x75643120] }
  0x52   : > { %702 = vst [vmem:[#allocation1 + $0x1] ss:$2 sm:$0xff] %v699_v21 }
  0x59   : > { %v7933_v24 = vld.sshfl [vmem:[#allocation1] sm:$0xff pattern:$0x75643120] }
  0x5a   : > { %715 = vst [vmem:[#allocation1 + $0x1] ss:$2 sm:$0xff] %v712_v23 }
  0x5b   : > { %705 = vst.msk [vmem:[#allocation2 + $0x28] sm:$0xc] %vm487_vm3, %v7933_v24 }
  0x61   : > { %v716_v26 = vld.sshfl [vmem:[#allocation1] sm:$0xff pattern:$0x75643120] }
  0x62   : > { %754 = vst [vmem:[#allocation1 + $0x1] ss:$2 sm:$0xff] %v751_v25 }
  0x69   : > { %v755_v28 = vld.sshfl [vmem:[#allocation1] sm:$0xff pattern:$0x75643120] }
  0x6a   : > { %770 = vst [vmem:[#allocation1 + $0x1] ss:$2 sm:$0xff] %v767_v27 }
  0x71   : > { %v771_v30 = vld.sshfl [vmem:[#allocation1] sm:$0xff pattern:$0x75643120] }
  0x72   : > { %809 = vst [vmem:[#allocation1 + $0x1] ss:$2 sm:$0xff] %v806_v29 }
  0x79   : > { %v810_v32 = vld.sshfl [vmem:[#allocation1] sm:$0xff pattern:$0x75643120] }
  0x7a   : > { %825 = vst [vmem:[#allocation1 + $0x1] ss:$2 sm:$0xff] %v822_v31 }
  0x7f   : > { %v397_v39 = vpop.permute.xlu0 %396 }
  0x81   : > { %v826_v36 = vld.sshfl [vmem:[#allocation1] sm:$0xff pattern:$0x75643120] }
  0x82   : > { %864 = vst [vmem:[#allocation1 + $0x1] ss:$2 sm:$0xff] %v861_v33 }
  0x87   : > { %v402_v44 = vpop.permute.xlu0 %401 }
  0x89   : > { %v865_v38 = vld.sshfl [vmem:[#allocation1] sm:$0xff pattern:$0x75643120] }
  0x8a   : > { %880 = vst [vmem:[#allocation1 + $0x1] ss:$2 sm:$0xff] %v877_v37 }
  0x92   : > { %v426_v40 = vpop.f32.mrf.mxu0 }
  0x93   : > { %v427_v43 = vadd.f32 %v426_v40, %v397_v39 }
  0x95   : > { %v431_v46 = vpack.c.bf16 %v427_v43, %v427_v43 }
  0x97   : > { %v451_v49 = vunpack.c.l.b16 %v431_v46  ;;  %v1215_v46 = vunpack.c.l.b16 %v7808_v1 }
  0x9a   : > { %v428_v45 = vpop.f32.mrf.mxu0 }
  0x9b   : > { %v429_v47 = vadd.f32 %v428_v45, %v402_v44 }
  0x9d   : > { %v432_v48 = vpack.c.bf16 %v429_v47, %v429_v47 }
  0x9f   : > { %v452_v50 = vunpack.c.l.b16 %v432_v48  ;;  %v1232_v48 = vpack.c.b16 %v1215_v46, %v1215_v46 }
  0xa1   : > { %v453_v51 = vpack.c.b16 %v452_v50, %v451_v49 }
  0xa3   : > { %723 = vrot.lane.b32.xlu0 %v453_v51, %s7809_s28  ;;  %616 = vrot.lane.b32.xlu2 %v453_v51, %s7810_s29 }
  0xa4   : > { %506 = vrot.lane.b32.xlu1 %v453_v51, %s7811_s10  ;;  %7457 = vmatmul.msk.bf16.vlgmr.msra.gmra.mxu1 %vm409_vm1, %v453_v51  ;;  %s7820_s10 = smov 1  }
  0xab   : > { %671 = vrot.lane.b32.xlu2 %v453_v51, %s7812_s11  ;;  %501 = vrot.lane.b32.xlu0 %v7914_v10, %s7813_s12 }
  0xac   : > { %561 = vrot.lane.b32.xlu1 %v453_v51, %s7813_s12 }
  0xb3   : > { %833 = vrot.lane.b32.xlu2 %v453_v51, %s7814_s14  ;;  %595 = vrot.lane.b32.xlu0 %v7923_v16, %s7815_s15 }
  0xb4   : > { %778 = vrot.lane.b32.xlu1 %v453_v51, %s7816_s16 }
  0xbb   : > { %666 = vrot.lane.b32.xlu0 %v664_v22, %s7817_s17  ;;  %556 = vrot.lane.b32.xlu2 %v7920_v14, %s7816_s16 }
  0xbc   : > { %540 = vrot.lane.b32.xlu1 %v7917_v12, %s7812_s11 }
  0xc3   : > { %773 = vrot.lane.b32.xlu0 %v771_v30, %s7816_s16  ;;  %650 = vrot.lane.b32.xlu2 %v7929_v20, %s7818_s18 }
  0xc4   : > { %611 = vrot.lane.b32.xlu1 %v7926_v18, %s7819_s19 }
  0xcb   : > { %867 = vrot.lane.b32.xlu0 %v865_v38, %s7818_s18  ;;  %757 = vrot.lane.b32.xlu2 %v755_v28, %s7812_s11 }
  0xcc   : > { %718 = vrot.lane.b32.xlu1 %v716_v26, %s7813_s12 }
  0xd3   : > { %828 = vrot.lane.b32.xlu2 %v826_v36, %s7819_s19 }
  0xd4   : > { %812 = vrot.lane.b32.xlu1 %v810_v32, %s7815_s15 }
  0xdc   : > { %1251 = vrot.lane.b32.xlu1 %v1233_v62, %s7820_s10 }
  0xe4   : > { %1249 = vrot.lane.b32.xlu1 %v1232_v48, %s7820_s10 }
  0xfd   : > { %v617_v60 = vpop.permute.xlu2 %616 }
  0xfe   : > { %7460 = vmatmul.msk.bf16.vlgmr.msrb.gmra.mxu0 %vm409_vm1, %v617_v60  ;;  %v8092_v60 = vld [vmem:[%s10908_s5 + $0x2] sm:$0x3] }
 0x105   : > { %v672_v2 = vpop.permute.xlu2 %671 }
 0x106   : > { %7461 = vmatmul.msk.bf16.vlgmr.msrb.gmra.mxu1 %vm409_vm1, %v672_v2 }
 0x10d   : > { %v834_v5 = vpop.permute.xlu2 %833 }
 0x10e   : > { %7464 = vmatmul.msk.bf16.vlgmr.msra.gmra.mxu0 %vm409_vm1, %v834_v5 }
 0x115   : > { %v724_v6 = vpop.permute.xlu0 %723  ;;  %v557_v10 = vpop.permute.xlu2 %556 }
 0x116   : > { %v507_v8 = vpop.permute.xlu1 %506  ;;  %559 = vst.msk [vmem:[#allocation2 + $0x14] sm:$0xc] %vm487_vm3, %v557_v10 }
 0x117   : > { %7458 = vmatmul.msk.bf16.vlgmr.msra.gmra.mxu2 %vm409_vm1, %v507_v8 }
 0x11d   : > { %v502_v12 = vpop.permute.xlu0 %501  ;;  %v651_v38 = vpop.permute.xlu2 %650 }
 0x11e   : > { %v562_v13 = vpop.permute.xlu1 %561  ;;  %504 = vst.msk [vmem:[#allocation2 + $0xc] sm:$0xc] %vm487_vm3, %v502_v12 }
 0x11f   : > { %7459 = vmatmul.msk.bf16.vlgmr.msra.gmra.mxu3 %vm409_vm1, %v562_v13  ;;  %653 = vst.msk [vmem:[#allocation2 + $0x20] sm:$0xc] %vm487_vm3, %v651_v38 }
 0x121   : > { %v469_v15 = vpop.f32.mrf.mxu1 }
 0x122   : > { %v475_v16 = vrot.slane %v469_v15, 4 }
 0x124   : > { %v477_v17 = vsel %vm8041_vm4, %v469_v15, %v475_v16 }
 0x125   : > { %v478_v18 = vpack.c.bf16 %v477_v17, %v477_v17  ;;  %v596_v19 = vpop.permute.xlu0 %595  ;;  %v758_v41 = vpop.permute.xlu2 %757 }
 0x126   : > { %598 = vst.msk [vmem:[#allocation2 + $0x18] sm:$0xc] %vm487_vm3, %v596_v19  ;;  %v779_v20 = vpop.permute.xlu1 %778 }
 0x127   : > { %480 = vst.msk [vmem:[#allocation2 + $0x8] sm:$0x3] %vm479_vm5, %v478_v18  ;;  %7462 = vmatmul.msk.bf16.vlgmr.msrb.gmra.mxu2 %vm409_vm1, %v724_v6 }
 0x128   : > { %760 = vst.msk [vmem:[#allocation2 + $0x30] sm:$0xc] %vm487_vm3, %v758_v41 }
 0x129   : > { %v471_v21 = vpop.f32.mrf.mxu1 }
 0x12a   : > { %v490_v22 = vrot.slane %v471_v21, 4 }
 0x12c   : > { %v492_v23 = vsel %vm8041_vm4, %v471_v21, %v490_v22 }
 0x12d   : > { %v493_v24 = vpack.c.bf16 %v492_v23, %v492_v23  ;;  %v667_v40 = vpop.permute.xlu0 %666  ;;  %v829_v44 = vpop.permute.xlu2 %828 }
 0x12e   : > { %v899_v25 = vld [vmem:[#allocation2 + $0x4] sm:$0xff]  ;;  %v541_v28 = vpop.permute.xlu1 %540  ;;  %669 = vst.msk [vmem:[#allocation2 + $0x24] sm:$0xc] %vm487_vm3, %v667_v40 }
 0x12f   : > { %494 = vst.msk [vmem:[#allocation2 + $0xc] sm:$0x3] %vm479_vm5, %v493_v24  ;;  %7463 = vmatmul.msk.bf16.vlgmr.msrb.gmra.mxu3 %vm409_vm1, %v779_v20  ;;  %v915_v26 = vunpack.c.l.b16 %v899_v25  ;;  %v916_v27 = vunpack.c.h.b16 %v899_v25 }
 0x130   : > { %543 = vst.msk [vmem:[#allocation2 + $0x10] sm:$0xc] %vm487_vm3, %v541_v28 }
 0x131   : > { %v8055_v29 = vpack.c.b16 %v915_v26, %v915_v26  ;;  %v8057_v30 = vpack.c.b16 %v916_v27, %v916_v27  ;;  %831 = vst.msk [vmem:[#allocation2 + $0x3c] sm:$0xc] %vm487_vm3, %v829_v44 }
 0x133   : > { %v951_v31 = vsel %vm413_vm0, %v8055_v29, 0  ;;  %v954_v32 = vsel %vm413_vm0, %v8057_v30, 0 }
 0x134   : > { %1005 = vmatpush.bf16.msra.mxu1 %v951_v31  ;;  %1018 = vmatpush.bf16.msra.mxu2 %v954_v32 }
 0x135   : > { %v774_v43 = vpop.permute.xlu0 %773 }
 0x136   : > { %v889_v33 = vld [vmem:[#allocation2 + $0x8] sm:$0xff]  ;;  %v612_v39 = vpop.permute.xlu1 %611  ;;  %776 = vst.msk [vmem:[#allocation2 + $0x34] sm:$0xc] %vm487_vm3, %v774_v43 }
 0x137   : > { %v1218_v34 = vunpack.c.h.b16 %v889_v33  ;;  %v1217_v35 = vunpack.c.l.b16 %v889_v33  ;;  %614 = vst.msk [vmem:[#allocation2 + $0x1c] sm:$0xc] %vm487_vm3, %v612_v39  ;;  %7467 = vmatmul.msk.bf16.vlgmr.msra.gmra.mxu2 %vm409_vm1, %v8092_v60  ;;  %7466 = vmatmul.msk.bf16.vlgmr.msra.gmra.mxu1 %vm409_vm1, %v8092_v60 }
 0x139   : > { %v8063_v36 = vpack.c.b16 %v1218_v34, %v1218_v34  ;;  %v8065_v37 = vpack.c.b16 %v1217_v35, %v1217_v35 }
 0x13b   : > { %1255 = vrot.lane.b32.xlu0 %v8063_v36, %s7820_s10  ;;  %1253 = vrot.lane.b32.xlu2 %v8065_v37, %s7820_s10 }
 0x13d   : > { %v868_v47 = vpop.permute.xlu0 %867 }
 0x13e   : > { %v719_v42 = vpop.permute.xlu1 %718  ;;  %870 = vst.msk [vmem:[#allocation2 + $0x40] sm:$0xc] %vm487_vm3, %v868_v47 }
 0x13f   : > { %721 = vst.msk [vmem:[#allocation2 + $0x2c] sm:$0xc] %vm487_vm3, %v719_v42 }
 0x146   : > { %v813_v45 = vpop.permute.xlu1 %812 }
 0x147   : > { %815 = vst.msk [vmem:[#allocation2 + $0x38] sm:$0xc] %vm487_vm3, %v813_v45 }
 0x17b   : > { %v633_v49 = vpop.f32.mrf.mxu0 }
 0x17c   : > { %v639_v50 = vrot.slane %v633_v49, 4 }
 0x17e   : > { %v641_v51 = vsel %vm8041_vm4, %v633_v49, %v639_v50 }
 0x17f   : > { %v642_v52 = vpack.c.bf16 %v641_v51, %v641_v51 }
 0x181   : > { %643 = vst.msk [vmem:[#allocation2 + $0x20] sm:$0x3] %vm479_vm5, %v642_v52 }
 0x183   : > { %v635_v53 = vpop.f32.mrf.mxu0  ;;  %v688_v54 = vpop.f32.mrf.mxu1 }
 0x184   : > { %v655_v55 = vrot.slane %v635_v53, 4  ;;  %v694_v56 = vrot.slane %v688_v54, 4 }
 0x186   : > { %v657_v1 = vsel %vm8041_vm4, %v635_v53, %v655_v55  ;;  %v696_v57 = vsel %vm8041_vm4, %v688_v54, %v694_v56 }
 0x187   : > { %v658_v58 = vpack.c.bf16 %v657_v1, %v657_v1  ;;  %v697_v59 = vpack.c.bf16 %v696_v57, %v696_v57 }
 0x189   : > { %659 = vst.msk [vmem:[#allocation2 + $0x24] sm:$0x3] %vm479_vm5, %v658_v58 }
 0x18a   : > { %698 = vst.msk [vmem:[#allocation2 + $0x28] sm:$0x3] %vm479_vm5, %v697_v59 }
 0x18b   : > { %v690_v61 = vpop.f32.mrf.mxu1  ;;  %v850_v62 = vpop.f32.mrf.mxu0 }
 0x18c   : > { %v707_v63 = vrot.slane %v690_v61, 4  ;;  %v856_v0 = vrot.slane %v850_v62, 4 }
 0x18e   : > { %v709_v2 = vsel %vm8041_vm4, %v690_v61, %v707_v63  ;;  %v858_v3 = vsel %vm8041_vm4, %v850_v62, %v856_v0 }
 0x18f   : > { %v710_v4 = vpack.c.bf16 %v709_v2, %v709_v2  ;;  %v859_v5 = vpack.c.bf16 %v858_v3, %v858_v3 }
 0x191   : > { %711 = vst.msk [vmem:[#allocation2 + $0x2c] sm:$0x3] %vm479_vm5, %v710_v4  ;;  %v903_v34 = vld [vmem:[#allocation2 + $0x24] sm:$0xff] }
 0x192   : > { %860 = vst.msk [vmem:[#allocation2 + $0x40] sm:$0x3] %vm479_vm5, %v859_v5  ;;  %v923_v43 = vunpack.c.l.b16 %v903_v34  ;;  %v924_v44 = vunpack.c.h.b16 %v903_v34 }
 0x193   : > { %v852_v6 = vpop.f32.mrf.mxu0 }
 0x194   : > { %v872_v7 = vrot.slane %v852_v6, 4  ;;  %v8138_v53 = vpack.c.b16 %v923_v43, %v923_v43  ;;  %v8140_v54 = vpack.c.b16 %v924_v44, %v924_v44 }
 0x196   : > { %v874_v8 = vsel %vm8041_vm4, %v852_v6, %v872_v7  ;;  %v975_v2 = vsel %vm413_vm0, %v8138_v53, 0  ;;  %v978_v3 = vsel %vm413_vm0, %v8140_v54, 0 }
 0x197   : > { %v875_v9 = vpack.c.bf16 %v874_v8, %v874_v8 }
 0x199   : > { %876 = vst.msk [vmem:[#allocation2 + $0x44] sm:$0x3] %vm479_vm5, %v875_v9 }
 0x19a   : > { %v523_v10 = vpop.f32.mrf.mxu2 }
 0x19b   : > { %v529_v11 = vrot.slane %v523_v10, 4 }
 0x19d   : > { %v531_v12 = vsel %vm8041_vm4, %v523_v10, %v529_v11 }
 0x19e   : > { %v532_v13 = vpack.c.bf16 %v531_v12, %v531_v12 }
 0x1a0   : > { %533 = vst.msk [vmem:[#allocation2 + $0x10] sm:$0x3] %vm479_vm5, %v532_v13 }
 0x1a2   : > { %v525_v15 = vpop.f32.mrf.mxu2  ;;  %v578_v16 = vpop.f32.mrf.mxu3 }
 0x1a3   : > { %v545_v17 = vrot.slane %v525_v15, 4  ;;  %v584_v18 = vrot.slane %v578_v16, 4 }
 0x1a5   : > { %v547_v19 = vsel %vm8041_vm4, %v525_v15, %v545_v17  ;;  %v586_v20 = vsel %vm8041_vm4, %v578_v16, %v584_v18 }
 0x1a6   : > { %v548_v21 = vpack.c.bf16 %v547_v19, %v547_v19  ;;  %v587_v22 = vpack.c.bf16 %v586_v20, %v586_v20 }
 0x1a7   : > { %v900_v23 = vld [vmem:[#allocation2 + $0xc] sm:$0xff] }
 0x1a8   : > { %549 = vst.msk [vmem:[#allocation2 + $0x14] sm:$0x3] %vm479_vm5, %v548_v21  ;;  %v917_v24 = vunpack.c.l.b16 %v900_v23  ;;  %v918_v25 = vunpack.c.h.b16 %v900_v23 }
 0x1a9   : > { %588 = vst.msk [vmem:[#allocation2 + $0x18] sm:$0x3] %vm479_vm5, %v587_v22 }
 0x1aa   : > { %v580_v26 = vpop.f32.mrf.mxu3  ;;  %v740_v27 = vpop.f32.mrf.mxu2  ;;  %v8118_v28 = vpack.c.b16 %v917_v24, %v917_v24  ;;  %v8120_v31 = vpack.c.b16 %v918_v25, %v918_v25  ;;  %v893_v24 = vld [vmem:[#allocation2 + $0x28] sm:$0xff]  ;;  %v892_v25 = vld [vmem:[#allocation2 + $0x20] sm:$0xff] }
 0x1ab   : > { %v600_v32 = vrot.slane %v580_v26, 4  ;;  %v746_v33 = vrot.slane %v740_v27, 4 }
 0x1ac   : > { %v957_v35 = vsel %vm413_vm0, %v8118_v28, 0  ;;  %v960_v38 = vsel %vm413_vm0, %v8120_v31, 0 }
 0x1ad   : > { %v602_v39 = vsel %vm8041_vm4, %v580_v26, %v600_v32  ;;  %v748_v40 = vsel %vm8041_vm4, %v740_v27, %v746_v33  ;;  %1031 = vmatpush.bf16.msra.mxu3 %v957_v35  ;;  %1044 = vmatpush.bf16.msrb.mxu0 %v960_v38  ;;  %v1225_v38 = vunpack.c.l.b16 %v893_v24 }
 0x1ae   : > { %v603_v41 = vpack.c.bf16 %v602_v39, %v602_v39  ;;  %v749_v42 = vpack.c.bf16 %v748_v40, %v748_v40  ;;  %v1224_v39 = vunpack.c.h.b16 %v892_v25  ;;  %v1226_v40 = vunpack.c.h.b16 %v893_v24 }
 0x1af   : > { %v890_v45 = vld [vmem:[#allocation2 + $0x10] sm:$0xff]  ;;  %v8201_v43 = vpack.c.b16 %v1225_v38, %v1225_v38  ;;  %v881_v38 = vld.sshfl [vmem:[#allocation1] sm:$0xff pattern:$0x75643120] }
 0x1b0   : > { %604 = vst.msk [vmem:[#allocation2 + $0x1c] sm:$0x3] %vm479_vm5, %v603_v41  ;;  %7468 = vmatmul.msk.bf16.vlgmr.msra.gmra.mxu3 %vm409_vm1, %v8092_v60  ;;  %v1220_v46 = vunpack.c.h.b16 %v890_v45  ;;  %v901_v47 = vld [vmem:[#allocation2 + $0x14] sm:$0xff]  ;;  %7469 = vmatmul.msk.bf16.vlgmr.msrb.gmra.mxu0 %vm409_vm1, %v8092_v60  ;;  %v1219_v5 = vunpack.c.l.b16 %v890_v45  ;;  %v8203_v44 = vpack.c.b16 %v1224_v39, %v1224_v39  ;;  %v8205_v45 = vpop.permute.xlu1 %1251 }
 0x1b1   : > { %750 = vst.msk [vmem:[#allocation2 + $0x30] sm:$0x3] %vm479_vm5, %v749_v42  ;;  %v919_v48 = vunpack.c.l.b16 %v901_v47  ;;  %v920_v49 = vunpack.c.h.b16 %v901_v47  ;;  %v8207_v47 = vpack.c.b16 %v1226_v40, %v1226_v40 }
 0x1b2   : > { %v742_v50 = vpop.f32.mrf.mxu2  ;;  %v795_v51 = vpop.f32.mrf.mxu3  ;;  %v8136_v52 = vpack.c.b16 %v1220_v46, %v1220_v46  ;;  %v8174_v21 = vpack.c.b16 %v1219_v5, %v1219_v5 }
 0x1b3   : > { %v762_v55 = vrot.slane %v742_v50, 4  ;;  %v801_v56 = vrot.slane %v795_v51, 4  ;;  %v8142_v1 = vpack.c.b16 %v919_v48, %v919_v48  ;;  %v8144_v57 = vpack.c.b16 %v920_v49, %v920_v49  ;;  %v1254_v46 = vpop.permute.xlu2 %1253  ;;  %v8232_v5 = vpop.permute.xlu0 %1255 }
 0x1b4   : > { %1259 = vrot.lane.b32.xlu2 %v8136_v52, %s7820_s10 }
 0x1b5   : > { %v764_v58 = vsel %vm8041_vm4, %v742_v50, %v762_v55  ;;  %v803_v59 = vsel %vm8041_vm4, %v795_v51, %v801_v56  ;;  %v963_v61 = vsel %vm413_vm0, %v8142_v1, 0  ;;  %v966_v62 = vsel %vm413_vm0, %v8144_v57, 0 }
 0x1b6   : > { %v765_v63 = vpack.c.bf16 %v764_v58, %v764_v58  ;;  %v804_v0 = vpack.c.bf16 %v803_v59, %v803_v59  ;;  %1057 = vmatpush.bf16.msrb.mxu1 %v963_v61  ;;  %1070 = vmatpush.bf16.msrb.mxu2 %v966_v62  ;;  %v1223_v56 = vunpack.c.l.b16 %v892_v25  ;;  %v1285_v58 = vsel %vm1283_vm6, %v8205_v45, %v1254_v46 }
 0x1b7   : > { %v891_v4 = vld [vmem:[#allocation2 + $0x18] sm:$0xff] }
 0x1b8   : > { %v902_v6 = vld [vmem:[#allocation2 + $0x1c] sm:$0xff]  ;;  %766 = vst.msk [vmem:[#allocation2 + $0x34] sm:$0x3] %vm479_vm5, %v765_v63  ;;  %v1222_v7 = vunpack.c.h.b16 %v891_v4  ;;  %v1221_v8 = vunpack.c.l.b16 %v891_v4  ;;  %v904_v11 = vld [vmem:[#allocation2 + $0x2c] sm:$0xff]  ;;  %v8228_v4 = vpack.c.b16 %v1223_v56, %v1223_v56 }
 0x1b9   : > { %v921_v9 = vunpack.c.l.b16 %v902_v6  ;;  %v922_v10 = vunpack.c.h.b16 %v902_v6  ;;  %805 = vst.msk [vmem:[#allocation2 + $0x38] sm:$0x3] %vm479_vm5, %v804_v0  ;;  %7471 = vmatmul.msk.bf16.vlgmr.msrb.gmra.mxu2 %vm409_vm1, %v8092_v60  ;;  %v925_v12 = vunpack.c.l.b16 %v904_v11  ;;  %v926_v13 = vunpack.c.h.b16 %v904_v11  ;;  %7470 = vmatmul.msk.bf16.vlgmr.msrb.gmra.mxu1 %vm409_vm1, %v8092_v60 }
 0x1ba   : > { %1109 = vmatpush.bf16.msra.mxu1 %v975_v2  ;;  %1122 = vmatpush.bf16.msra.mxu2 %v978_v3  ;;  %v797_v15 = vpop.f32.mrf.mxu3  ;;  %v8166_v16 = vpack.c.b16 %v1222_v7, %v1222_v7  ;;  %v8168_v17 = vpack.c.b16 %v1221_v8, %v1221_v8  ;;  %v1307_v3 = vsel %vm413_vm0, %v1285_v58, 0 }
 0x1bb   : > { %v8170_v18 = vpack.c.b16 %v921_v9, %v921_v9  ;;  %v8172_v19 = vpack.c.b16 %v922_v10, %v922_v10  ;;  %v817_v20 = vrot.slane %v797_v15, 4  ;;  %v8176_v22 = vpack.c.b16 %v925_v12, %v925_v12 }
 0x1bc   : > { %v8178_v23 = vpack.c.b16 %v926_v13, %v926_v13  ;;  %1263 = vrot.lane.b32.xlu1 %v8166_v16, %s7820_s10  ;;  %1261 = vrot.lane.b32.xlu0 %v8168_v17, %s7820_s10  ;;  %v1286_v12 = vsel %vm1283_vm6, %v1254_v46, %v8232_v5 }
 0x1bd   : > { %v969_v26 = vsel %vm413_vm0, %v8170_v18, 0  ;;  %v972_v27 = vsel %vm413_vm0, %v8172_v19, 0  ;;  %v819_v32 = vsel %vm8041_vm4, %v797_v15, %v817_v20  ;;  %1257 = vrot.lane.b32.xlu2 %v8174_v21, %s7820_s10  ;;  %v981_v33 = vsel %vm413_vm0, %v8176_v22, 0 }
 0x1be   : > { %1083 = vmatpush.bf16.msrb.mxu3 %v969_v26  ;;  %v984_v34 = vsel %vm413_vm0, %v8178_v23, 0  ;;  %v820_v35 = vpack.c.bf16 %v819_v32, %v819_v32  ;;  %1096 = vmatpush.bf16.msra.mxu0 %v972_v27  ;;  %v1310_v20 = vsel %vm413_vm0, %v1286_v12, 0  ;;  %v896_v26 = vld [vmem:[#allocation2 + $0x40] sm:$0xf] }
 0x1bf   : > { %v894_v50 = vld [vmem:[#allocation2 + $0x30] sm:$0xff]  ;;  %v1231_v27 = vunpack.c.l.b16 %v896_v26 }
 0x1c0   : > { %821 = vst.msk [vmem:[#allocation2 + $0x3c] sm:$0x3] %vm479_vm5, %v820_v35  ;;  %v905_v14 = vld [vmem:[#allocation2 + $0x34] sm:$0xff]  ;;  %v1228_v59 = vunpack.c.h.b16 %v894_v50  ;;  %v1227_v13 = vunpack.c.l.b16 %v894_v50 }
 0x1c1   : > { %7472 = vmatmul.msk.bf16.vlgmr.msrb.gmra.mxu3 %vm409_vm1, %v8092_v60  ;;  %v927_v41 = vunpack.c.l.b16 %v905_v14  ;;  %v928_v42 = vunpack.c.h.b16 %v905_v14  ;;  %7473 = vmatmul.msk.bf16.vlgmr.msra.gmra.mxu0 %vm409_vm1, %v8092_v60  ;;  %v1248_v32 = vpack.c.b16 %v1231_v27, %v1231_v27  ;;  %v8293_v35 = vld [vmem:[%s10908_s5] sm:$0x3] }
 0x1c2   : > { %1135 = vmatpush.bf16.msra.mxu3 %v981_v33  ;;  %1148 = vmatpush.bf16.msrb.mxu0 %v984_v34  ;;  %v8234_v6 = vpack.c.b16 %v1228_v59, %v1228_v59  ;;  %v8259_v24 = vpack.c.b16 %v1227_v13, %v1227_v13  ;;  %v1250_v33 = vpop.permute.xlu1 %1249 }
 0x1c3   : > { %v8209_v48 = vpack.c.b16 %v927_v41, %v927_v41  ;;  %v8211_v49 = vpack.c.b16 %v928_v42, %v928_v42  ;;  %v1284_v34 = vsel %vm1283_vm6, %v1250_v33, %v8205_v45  ;;  %v8352_v45 = vpop.f32.mrf.mxu2 }
 0x1c4   : > { %1269 = vrot.lane.b32.xlu1 %v8201_v43, %s7820_s10  ;;  %1267 = vrot.lane.b32.xlu0 %v8203_v44, %s7820_s10 }
 0x1c5   : > { %1271 = vrot.lane.b32.xlu2 %v8207_v47, %s7820_s10  ;;  %v987_v51 = vsel %vm413_vm0, %v8209_v48, 0  ;;  %v990_v55 = vsel %vm413_vm0, %v8211_v49, 0 }
 0x1c6   : > { %1161 = vmatpush.bf16.msrb.mxu1 %v987_v51  ;;  %1174 = vmatpush.bf16.msrb.mxu2 %v990_v55 }
 0x1c7   : > { %v895_v61 = vld [vmem:[#allocation2 + $0x38] sm:$0xff] }
 0x1c8   : > { %v906_v62 = vld [vmem:[#allocation2 + $0x3c] sm:$0xff]  ;;  %v1229_v63 = vunpack.c.l.b16 %v895_v61  ;;  %v1230_v15 = vunpack.c.h.b16 %v895_v61 }
 0x1c9   : > { %v929_v0 = vunpack.c.l.b16 %v906_v62  ;;  %v930_v2 = vunpack.c.h.b16 %v906_v62  ;;  %7475 = vmatmul.msk.bf16.vlgmr.msra.gmra.mxu2 %vm409_vm1, %v8092_v60  ;;  %7474 = vmatmul.msk.bf16.vlgmr.msra.gmra.mxu1 %vm409_vm1, %v8092_v60 }
 0x1ca   : > { %1371 = vmatpush.bf16.msra.mxu2 %v1307_v3  ;;  %v8236_v7 = vpack.c.b16 %v1229_v63, %v1229_v63  ;;  %v8261_v25 = vpack.c.b16 %v1230_v15, %v1230_v15 }
 0x1cb   : > { %v8238_v8 = vpack.c.b16 %v929_v0, %v929_v0  ;;  %v8240_v9 = vpack.c.b16 %v930_v2, %v930_v2  ;;  %v1022_v56 = vpop.f32.mrf.mxu2 }
 0x1cc   : > { %1275 = vrot.lane.b32.xlu1 %v8234_v6, %s7820_s10  ;;  %1265 = vrot.lane.b32.xlu0 %v8228_v4, %s7820_s10 }
 0x1cd   : > { %v993_v10 = vsel %vm413_vm0, %v8238_v8, 0  ;;  %v996_v11 = vsel %vm413_vm0, %v8240_v9, 0  ;;  %1277 = vrot.lane.b32.xlu2 %v8236_v7, %s7820_s10 }
 0x1ce   : > { %1187 = vmatpush.bf16.msrb.mxu3 %v993_v10  ;;  %1200 = vmatpush.bf16.msra.mxu0 %v996_v11 }
 0x1d1   : > { %7476 = vmatmul.msk.bf16.vlgmr.msra.gmra.mxu3 %vm409_vm1, %v8092_v60  ;;  %7477 = vmatmul.msk.bf16.vlgmr.msrb.gmra.mxu0 %vm409_vm1, %v8092_v60 }
 0x1d2   : > { %1384 = vmatpush.bf16.msra.mxu3 %v1310_v20 }
 0x1d4   : > { %1273 = vrot.lane.b32.xlu1 %v8259_v24, %s7820_s10  ;;  %1279 = vrot.lane.b32.xlu0 %v8261_v25, %s7820_s10 }
 0x1d5   : > { %1615 = vrot.lane.b32.xlu2 %v8057_v30, %s7821_s23 }
 0x1d9   : > { %7479 = vmatmul.msk.bf16.vlgmr.msrb.gmra.mxu2 %vm409_vm1, %v8092_v60  ;;  %7478 = vmatmul.msk.bf16.vlgmr.msrb.gmra.mxu1 %vm409_vm1, %v8092_v60 }
 0x1dc   : > { %1619 = vrot.lane.b32.xlu1 %v8120_v31, %s7821_s23  ;;  %1617 = vrot.lane.b32.xlu0 %v8118_v28, %s7821_s23 }
 0x1dd   : > { %1281 = vrot.lane.b32.xlu2 %v1248_v32, %s7820_s10 }
 0x1e1   : > { %7480 = vmatmul.msk.bf16.vlgmr.msrb.gmra.mxu3 %vm409_vm1, %v8092_v60  ;;  %7481 = vmatmul.msk.bf16.vlgmr.msra.gmra.mxu0 %vm409_vm1, %v8092_v60  ;;  %v1304_v60 = vsel %vm413_vm0, %v1284_v34, 0 }
 0x1e2   : > { %1358 = vmatpush.bf16.msra.mxu1 %v1304_v60 }
 0x1e4   : > { %1623 = vrot.lane.b32.xlu1 %v8144_v57, %s7821_s23  ;;  %1613 = vrot.lane.b32.xlu0 %v8055_v29, %s7821_s23 }
 0x1e5   : > { %1625 = vrot.lane.b32.xlu2 %v8170_v18, %s7821_s23 }
 0x1e9   : > { %7483 = vmatmul.msk.bf16.vlgmr.msra.gmra.mxu2 %vm409_vm1, %v8293_v35  ;;  %7482 = vmatmul.msk.bf16.vlgmr.msra.gmra.mxu1 %vm409_vm1, %v8293_v35 }
 0x1ec   : > { %883 = vrot.lane.b32.xlu1 %v881_v38, %s7817_s17  ;;  %1627 = vrot.lane.b32.xlu0 %v8172_v19, %s7821_s23 }
 0x1ed   : > { %1621 = vrot.lane.b32.xlu2 %v8142_v1, %s7821_s23 }
 0x1f1   : > { %7484 = vmatmul.msk.bf16.vlgmr.msra.gmra.mxu3 %vm409_vm1, %v8293_v35 }
 0x1f4   : > { %1633 = vrot.lane.b32.xlu1 %v8176_v22, %s7821_s23  ;;  %1631 = vrot.lane.b32.xlu0 %v8140_v54, %s7821_s23 }
 0x1f5   : > { %1635 = vrot.lane.b32.xlu2 %v8178_v23, %s7821_s23 }
 0x1fc   : > { %1639 = vrot.lane.b32.xlu1 %v8211_v49, %s7821_s23  ;;  %1629 = vrot.lane.b32.xlu0 %v8138_v53, %s7821_s23 }
 0x1fd   : > { %1641 = vrot.lane.b32.xlu2 %v8238_v8, %s7821_s23 }
 0x204   : > { %1637 = vrot.lane.b32.xlu1 %v8209_v48, %s7821_s23  ;;  %1643 = vrot.lane.b32.xlu0 %v8240_v9, %s7821_s23 }
 0x205   : > { %1943 = vrot.lane.b32.xlu2 %v8057_v30, %s7820_s10 }
 0x20c   : > { %1947 = vrot.lane.b32.xlu1 %v8120_v31, %s7820_s10  ;;  %1945 = vrot.lane.b32.xlu0 %v8118_v28, %s7820_s10 }
 0x20e   : > { %v1260_v39 = vpop.permute.xlu2 %1259 }
 0x214   : > { %1951 = vrot.lane.b32.xlu1 %v8144_v57, %s7820_s10  ;;  %1941 = vrot.lane.b32.xlu0 %v8055_v29, %s7820_s10  ;;  %v8350_v57 = vpop.f32.mrf.mxu1 }
 0x217   : > { %v1258_v40 = vpop.permute.xlu2 %1257 }
 0x218   : > { %v1287_v14 = vsel %vm1283_vm6, %v8232_v5, %v1258_v40  ;;  %v1288_v41 = vsel %vm1283_vm6, %v1258_v40, %v1260_v39 }
 0x219   : > { %v1313_v30 = vsel %vm413_vm0, %v1287_v14, 0  ;;  %v1316_v42 = vsel %vm413_vm0, %v1288_v41, 0 }
 0x21a   : > { %1397 = vmatpush.bf16.msrb.mxu0 %v1313_v30  ;;  %1410 = vmatpush.bf16.msrb.mxu1 %v1316_v42 }
 0x21c   : > { %1949 = vrot.lane.b32.xlu1 %v8142_v1, %s7820_s10  ;;  %1955 = vrot.lane.b32.xlu0 %v8172_v19, %s7820_s10  ;;  %v1009_v51 = vpop.f32.mrf.mxu1 }
 0x21d   : > { %7485 = vmatmul.msk.bf16.vlgmr.msrb.gmra.mxu0 %vm409_vm1, %v8293_v35  ;;  %7486 = vmatmul.msk.bf16.vlgmr.msrb.gmra.mxu1 %vm409_vm1, %v8293_v35 }
 0x21f   : > { %v1272_v29 = vpop.permute.xlu2 %1271 }
 0x224   : > { %1963 = vrot.lane.b32.xlu1 %v8178_v23, %s7820_s10  ;;  %1961 = vrot.lane.b32.xlu0 %v8176_v22, %s7820_s10 }
 0x227   : > { %v1278_v1 = vpop.permute.xlu2 %1277 }
 0x22c   : > { %1969 = vrot.lane.b32.xlu1 %v8238_v8, %s7820_s10  ;;  %1967 = vrot.lane.b32.xlu0 %v8211_v49, %s7820_s10 }
 0x22d   : > { %v8378_v10 = vpop.f32.mrf.mxu0 }
 0x22e   : > { %v1264_v19 = vpop.permute.xlu1 %1263  ;;  %v1262_v46 = vpop.permute.xlu0 %1261 }
 0x22f   : > { %v1289_v50 = vsel %vm1283_vm6, %v1260_v39, %v1262_v46  ;;  %v1290_v23 = vsel %vm1283_vm6, %v1262_v46, %v1264_v19  ;;  %v8362_v58 = vpop.permute.xlu2 %1615 }
 0x230   : > { %v1319_v22 = vsel %vm413_vm0, %v1289_v50, 0  ;;  %v1322_v55 = vsel %vm413_vm0, %v1290_v23, 0 }
 0x231   : > { %1423 = vmatpush.bf16.msrb.mxu2 %v1319_v22  ;;  %1436 = vmatpush.bf16.msrb.mxu3 %v1322_v55 }
 0x233   : > { %v8364_v59 = vpop.f32.mrf.mxu3 }
 0x234   : > { %1965 = vrot.lane.b32.xlu0 %v8209_v48, %s7820_s10  ;;  %7487 = vmatmul.msk.bf16.vlgmr.msrb.gmra.mxu2 %vm409_vm1, %v8293_v35 }
 0x235   : > { %7488 = vmatmul.msk.bf16.vlgmr.msrb.gmra.mxu3 %vm409_vm1, %v8293_v35  ;;  %v1048_v39 = vpop.f32.mrf.mxu0 }
 0x236   : > { %v1270_v61 = vpop.permute.xlu1 %1269  ;;  %v1268_v62 = vpop.permute.xlu0 %1267 }
 0x237   : > { %v1294_v63 = vsel %vm1283_vm6, %v1270_v61, %v1272_v29  ;;  %v1293_v0 = vsel %vm1283_vm6, %v1268_v62, %v1270_v61  ;;  %v8376_v5 = vpop.f32.mrf.mxu1  ;;  %v1282_v13 = vpop.permute.xlu2 %1281 }
 0x238   : > { %v1331_v2 = vsel %vm413_vm0, %v1293_v0, 0  ;;  %v1334_v3 = vsel %vm413_vm0, %v1294_v63, 0 }
 0x239   : > { %1475 = vmatpush.bf16.msra.mxu2 %v1331_v2  ;;  %1488 = vmatpush.bf16.msra.mxu3 %v1334_v3 }
 0x23b   : > { %v1035_v11 = vpop.f32.mrf.mxu3 }
 0x23c   : > { %2649 = vrot.lane.b32.xlu0 %v8174_v21, %s7821_s23  ;;  %v8382_v12 = vpop.f32.mrf.mxu2 }
 0x23e   : > { %v1276_v15 = vpop.permute.xlu1 %1275  ;;  %v1266_v20 = vpop.permute.xlu0 %1265 }
 0x23f   : > { %v1297_v26 = vsel %vm1283_vm6, %v1276_v15, %v1278_v1  ;;  %v1291_v27 = vsel %vm1283_vm6, %v1264_v19, %v1266_v20  ;;  %v1292_v32 = vsel %vm1283_vm6, %v1266_v20, %v1268_v62  ;;  %v1061_v38 = vpop.f32.mrf.mxu1  ;;  %v1626_v42 = vpop.permute.xlu2 %1625 }
 0x240   : > { %v1325_v33 = vsel %vm413_vm0, %v1291_v27, 0  ;;  %v1328_v34 = vsel %vm413_vm0, %v1292_v32, 0  ;;  %v1343_v60 = vsel %vm413_vm0, %v1297_v26, 0  ;;  %v8412_v62 = vpop.f32.mrf.mxu0 }
 0x241   : > { %1449 = vmatpush.bf16.msra.mxu0 %v1325_v33  ;;  %1462 = vmatpush.bf16.msra.mxu1 %v1328_v34 }
 0x242   : > { %1527 = vmatpush.bf16.msrb.mxu2 %v1343_v60 }
 0x244   : > { %v8390_v40 = vpop.f32.mrf.mxu3  ;;  %2655 = vrot.lane.b32.xlu0 %v8166_v16, %s7821_s23  ;;  %7489 = vmatmul.msk.bf16.vlgmr.msra.gmra.mxu0 %vm409_vm1, %v8293_v35  ;;  %v1074_v14 = vpop.f32.mrf.mxu2 }
 0x245   : > { %7490 = vmatmul.msk.bf16.vlgmr.msra.gmra.mxu1 %vm409_vm1, %v8293_v35  ;;  %7491 = vmatmul.msk.bf16.vlgmr.msra.gmra.mxu2 %vm409_vm1, %v8293_v35 }
 0x246   : > { %7492 = vmatmul.msk.bf16.vlgmr.msra.gmra.mxu3 %vm409_vm1, %v8293_v35  ;;  %v1274_v41 = vpop.permute.xlu1 %1273  ;;  %v1280_v30 = vpop.permute.xlu0 %1279 }
 0x247   : > { %v1295_v19 = vsel %vm1283_vm6, %v1272_v29, %v1274_v41  ;;  %v1296_v46 = vsel %vm1283_vm6, %v1274_v41, %v1276_v15  ;;  %v1298_v50 = vsel %vm1283_vm6, %v1278_v1, %v1280_v30  ;;  %v1299_v23 = vsel %vm1283_vm6, %v1280_v30, %v1282_v13  ;;  %v8410_v61 = vpop.f32.mrf.mxu1  ;;  %v1622_v26 = vpop.permute.xlu2 %1621 }
 0x248   : > { %v1337_v51 = vsel %vm413_vm0, %v1295_v19, 0  ;;  %v1340_v22 = vsel %vm413_vm0, %v1296_v46, 0  ;;  %v1346_v55 = vsel %vm413_vm0, %v1298_v50, 0  ;;  %v1349_v56 = vsel %vm413_vm0, %v1299_v23, 0  ;;  %v1100_v20 = vpop.f32.mrf.mxu0 }
 0x249   : > { %1501 = vmatpush.bf16.msrb.mxu0 %v1337_v51  ;;  %1514 = vmatpush.bf16.msrb.mxu1 %v1340_v22 }
 0x24a   : > { %1540 = vmatpush.bf16.msrb.mxu3 %v1346_v55 }
 0x24c   : > { %v1087_v29 = vpop.f32.mrf.mxu3  ;;  %2653 = vrot.lane.b32.xlu0 %v8168_v17, %s7821_s23  ;;  %v8416_v1 = vpop.f32.mrf.mxu2 }
 0x24d   : > { %1553 = vmatpush.bf16.msra.mxu0 %v1349_v56 }
 0x24e   : > { %v1620_v63 = vpop.permute.xlu1 %1619  ;;  %v1618_v0 = vpop.permute.xlu0 %1617 }
 0x24f   : > { %v1649_v2 = vsel %vm1647_vm7, %v8362_v58, %v1618_v0  ;;  %v1650_v3 = vsel %vm1647_vm7, %v1618_v0, %v1620_v63  ;;  %v1113_v15 = vpop.f32.mrf.mxu1  ;;  %v1651_v27 = vsel %vm1647_vm7, %v1620_v63, %v1622_v26 }
 0x250   : > { %v1671_v11 = vsel %vm413_vm0, %v1649_v2, 0  ;;  %v1674_v13 = vsel %vm413_vm0, %v1650_v3, 0  ;;  %v1677_v34 = vsel %vm413_vm0, %v1651_v27, 0  ;;  %v8446_v23 = vpop.f32.mrf.mxu0  ;;  %v8456_v2 = vld [vmem:[%s10908_s5 + $0x4] sm:$0x3] }
 0x251   : > { %1735 = vmatpush.bf16.msra.mxu2 %v1671_v11  ;;  %1748 = vmatpush.bf16.msra.mxu3 %v1674_v13  ;;  %v1636_v13 = vpop.permute.xlu2 %1635 }
 0x254   : > { %v8424_v32 = vpop.f32.mrf.mxu3  ;;  %2667 = vrot.lane.b32.xlu0 %v8234_v6, %s7821_s23  ;;  %7493 = vmatmul.msk.bf16.vlgmr.msrb.gmra.mxu0 %vm409_vm1, %v8293_v35  ;;  %v1126_v33 = vpop.f32.mrf.mxu2 }
 0x255   : > { %7494 = vmatmul.msk.bf16.vlgmr.msrb.gmra.mxu1 %vm409_vm1, %v8293_v35  ;;  %7495 = vmatmul.msk.bf16.vlgmr.msrb.gmra.mxu2 %vm409_vm1, %v8293_v35 }
 0x256   : > { %7496 = vmatmul.msk.bf16.vlgmr.msrb.gmra.mxu3 %vm409_vm1, %v8293_v35  ;;  %1761 = vmatpush.bf16.msrb.mxu0 %v1677_v34  ;;  %v1624_v60 = vpop.permute.xlu1 %1623  ;;  %v1614_v38 = vpop.permute.xlu0 %1613 }
 0x257   : > { %v1652_v39 = vsel %vm1647_vm7, %v1622_v26, %v1624_v60  ;;  %v1653_v14 = vsel %vm1647_vm7, %v1624_v60, %v1626_v42  ;;  %v1648_v41 = vsel %vm1647_vm7, %v1614_v38, %v8362_v58  ;;  %v8444_v50 = vpop.f32.mrf.mxu1 }
 0x258   : > { %v1668_v30 = vsel %vm413_vm0, %v1648_v41, 0  ;;  %v1683_v19 = vsel %vm413_vm0, %v1653_v14, 0  ;;  %v1680_v46 = vsel %vm413_vm0, %v1652_v39, 0  ;;  %v1152_v0 = vpop.f32.mrf.mxu0 }
 0x259   : > { %1722 = vmatpush.bf16.msra.mxu1 %v1668_v30  ;;  %1787 = vmatpush.bf16.msrb.mxu2 %v1683_v19 }
 0x25c   : > { %v1139_v51 = vpop.f32.mrf.mxu3  ;;  %v8448_v22 = vpop.f32.mrf.mxu2 }
 0x25d   : > { %1774 = vmatpush.bf16.msrb.mxu1 %v1680_v46 }
 0x25e   : > { %v884_v55 = vpop.permute.xlu1 %883  ;;  %v1628_v56 = vpop.permute.xlu0 %1627 }
 0x25f   : > { %886 = vst.msk [vmem:[#allocation2 + $0x44] sm:$0xc] %vm487_vm3, %v884_v55  ;;  %v1654_v58 = vsel %vm1647_vm7, %v1626_v42, %v1628_v56  ;;  %v1165_v63 = vpop.f32.mrf.mxu1 }
 0x260   : > { %v1686_v29 = vsel %vm413_vm0, %v1654_v58, 0  ;;  %v8475_v14 = vpop.f32.mrf.mxu0 }
 0x261   : > { %1800 = vmatpush.bf16.msrb.mxu3 %v1686_v29 }
 0x264   : > { %v8458_v3 = vpop.f32.mrf.mxu3  ;;  %7497 = vmatmul.msk.bf16.vlgmr.msra.gmra.mxu0 %vm409_vm1, %v8293_v35  ;;  %v1178_v11 = vpop.f32.mrf.mxu2 }
 0x265   : > { %7499 = vmatmul.msk.bf16.vlgmr.msra.gmra.mxu1 %vm409_vm1, %v8456_v2  ;;  %7500 = vmatmul.msk.bf16.vlgmr.msra.gmra.mxu2 %vm409_vm1, %v8456_v2 }
 0x266   : > { %7501 = vmatmul.msk.bf16.vlgmr.msra.gmra.mxu3 %vm409_vm1, %v8456_v2  ;;  %v1634_v42 = vpop.permute.xlu1 %1633  ;;  %v1632_v15 = vpop.permute.xlu0 %1631  ;;  %v1569_v20 = vld [vmem:[#allocation2 + $0x44] sm:$0xff]  }
 0x267   : > { %v8468_v26 = vld [vmem:[#allocation2 + $0x40] sm:$0xff]  ;;  %v1658_v27 = vsel %vm1647_vm7, %v1634_v42, %v1636_v13  ;;  %v1657_v35 = vsel %vm1647_vm7, %v1632_v15, %v1634_v42  ;;  %v1595_v33 = vunpack.c.l.b16 %v1569_v20  ;;  %v1360_v39 = vpop.f32.mrf.mxu1 }
 0x268   : > { %v2625_v34 = vunpack.c.l.b16 %v8468_v26  ;;  %v1695_v60 = vsel %vm413_vm0, %v1657_v35, 0  ;;  %v1698_v38 = vsel %vm413_vm0, %v1658_v27, 0  ;;  %v8480_v19 = vadd.f32 %v1360_v39, %v8350_v57  ;;  %v1204_v42 = vpop.f32.mrf.mxu0  ;;  %v1642_v35 = vpop.permute.xlu2 %1641 }
 0x269   : > { %1839 = vmatpush.bf16.msra.mxu2 %v1695_v60  ;;  %1852 = vmatpush.bf16.msra.mxu3 %v1698_v38  ;;  %v1612_v41 = vpack.c.b16 %v1595_v33, %v1595_v33  ;;  %v2627_v60 = vunpack.c.h.b16 %v1569_v20 }
 0x26a   : > { %v8477_v30 = vpack.c.b16 %v2625_v34, %v2625_v34 }
 0x26b   : > { %1973 = vrot.lane.b32.xlu1 %v1612_v41, %s7820_s10  ;;  %1645 = vrot.lane.b32.xlu2 %v1612_v41, %s7821_s23 }
 0x26c   : > { %2673 = vrot.lane.b32.xlu0 %v8477_v30, %s7821_s23  ;;  %v1191_v46 = vpop.f32.mrf.mxu3  ;;  %v1373_v51 = vpop.f32.mrf.mxu2 }
 0x26d   : > { %v8487_v55 = vadd.f32 %v1373_v51, %v8352_v45 }
 0x26e   : > { %v1640_v58 = vpop.permute.xlu1 %1639  ;;  %v1630_v29 = vpop.permute.xlu0 %1629 }
 0x26f   : > { %v1655_v63 = vsel %vm1647_vm7, %v1628_v56, %v1630_v29  ;;  %v1656_v0 = vsel %vm1647_vm7, %v1630_v29, %v1632_v15  ;;  %v1362_v27 = vpop.f32.mrf.mxu1  ;;  %v1661_v33 = vsel %vm1647_vm7, %v1640_v58, %v1642_v35  ;;  %v8521_v29 = vpack.c.b16 %v2627_v60, %v2627_v60 }
 0x270   : > { %v1689_v57 = vsel %vm413_vm0, %v1655_v63, 0  ;;  %v1692_v11 = vsel %vm413_vm0, %v1656_v0, 0  ;;  %v1707_v34 = vsel %vm413_vm0, %v1661_v33, 0  ;;  %v1944_v0 = vpop.permute.xlu2 %1943 }
 0x271   : > { %1813 = vmatpush.bf16.msra.mxu0 %v1689_v57  ;;  %1826 = vmatpush.bf16.msra.mxu1 %v1692_v11 }
 0x273   : > { %2651 = vrot.lane.b32.xlu1 %v8136_v52, %s7821_s23  ;;  %1953 = vrot.lane.b32.xlu2 %v8170_v18, %s7820_s10 }
 0x274   : > { %2974 = vrot.lane.b32.xlu0 %v8063_v36, %s7820_s10  ;;  %v1386_v45 = vpop.f32.mrf.mxu3  ;;  %7502 = vmatmul.msk.bf16.vlgmr.msrb.gmra.mxu0 %vm409_vm1, %v8456_v2  ;;  %v1375_v15 = vpop.f32.mrf.mxu2 }
 0x275   : > { %v8503_v56 = vadd.f32 %v1386_v45, %v8364_v59  ;;  %7503 = vmatmul.msk.bf16.vlgmr.msrb.gmra.mxu1 %vm409_vm1, %v8456_v2  ;;  %7504 = vmatmul.msk.bf16.vlgmr.msrb.gmra.mxu2 %vm409_vm1, %v8456_v2  ;;  %v2626_v45 = vunpack.c.h.b16 %v8468_v26 }
 0x276   : > { %7505 = vmatmul.msk.bf16.vlgmr.msrb.gmra.mxu3 %vm409_vm1, %v8456_v2  ;;  %1891 = vmatpush.bf16.msrb.mxu2 %v1707_v34  ;;  %v1638_v18 = vpop.permute.xlu1 %1637  ;;  %v8512_v38 = vpop.permute.xlu0 %1643 }
 0x277   : > { %v1659_v59 = vsel %vm1647_vm7, %v1636_v13, %v1638_v18  ;;  %v1660_v39 = vsel %vm1647_vm7, %v1638_v18, %v1640_v58  ;;  %v1662_v41 = vsel %vm1647_vm7, %v1642_v35, %v8512_v38  ;;  %v8561_v34 = vpack.c.b16 %v2626_v45, %v2626_v45 }
 0x278   : > { %v1701_v46 = vsel %vm413_vm0, %v1659_v59, 0  ;;  %v1704_v51 = vsel %vm413_vm0, %v1660_v39, 0  ;;  %v1710_v20 = vsel %vm413_vm0, %v1662_v41, 0  ;;  %v8637_v39 = vld [vmem:[#allocation2 + $0x14] sm:$0xff] }
 0x279   : > { %1865 = vmatpush.bf16.msrb.mxu0 %v1701_v46  ;;  %1878 = vmatpush.bf16.msrb.mxu1 %v1704_v51 }
 0x27a   : > { %1904 = vmatpush.bf16.msrb.mxu3 %v1710_v20 }
 0x27b   : > { %2657 = vrot.lane.b32.xlu1 %v8228_v4, %s7821_s23  ;;  %1959 = vrot.lane.b32.xlu2 %v8140_v54, %s7820_s10 }
 0x27c   : > { %2677 = vrot.lane.b32.xlu0 %v8521_v29, %s7821_s23  ;;  %v1388_v13 = vpop.f32.mrf.mxu3 }
 0x27e   : > { %v8529_v58 = vpop.permute.xlu1 %1947  ;;  %v1946_v63 = vpop.permute.xlu0 %1945 }
 0x27f   : > { %v1976_v57 = vsel %vm1283_vm6, %v1944_v0, %v1946_v63  ;;  %v1977_v11 = vsel %vm1283_vm6, %v1946_v63, %v8529_v58 }
 0x280   : > { %v1998_v42 = vsel %vm413_vm0, %v1976_v57, 0 }
 0x283   : > { %2663 = vrot.lane.b32.xlu1 %v8207_v47, %s7821_s23  ;;  %1957 = vrot.lane.b32.xlu2 %v8138_v53, %s7820_s10 }
 0x284   : > { %2984 = vrot.lane.b32.xlu0 %v8228_v4, %s7820_s10  ;;  %7506 = vmatmul.msk.bf16.vlgmr.msra.gmra.mxu0 %vm409_vm1, %v8456_v2  ;;  %v2001_v4 = vsel %vm413_vm0, %v1977_v11, 0 }
 0x285   : > { %7507 = vmatmul.msk.bf16.vlgmr.msra.gmra.mxu1 %vm409_vm1, %v8456_v2  ;;  %7508 = vmatmul.msk.bf16.vlgmr.msra.gmra.mxu2 %vm409_vm1, %v8456_v2 }
 0x286   : > { %7509 = vmatmul.msk.bf16.vlgmr.msra.gmra.mxu3 %vm409_vm1, %v8456_v2  ;;  %2062 = vmatpush.bf16.msra.mxu2 %v1998_v42  ;;  %v8550_v27 = vpop.permute.xlu1 %1951  ;;  %v1942_v53 = vpop.permute.xlu0 %1941 }
 0x287   : > { %2075 = vmatpush.bf16.msra.mxu3 %v2001_v4  ;;  %v1975_v35 = vsel %vm1283_vm6, %v1942_v53, %v1944_v0 }
 0x288   : > { %v1995_v33 = vsel %vm413_vm0, %v1975_v35, 0 }
 0x289   : > { %2049 = vmatpush.bf16.msra.mxu1 %v1995_v33 }
 0x28b   : > { %2661 = vrot.lane.b32.xlu1 %v8201_v43, %s7821_s23  ;;  %1971 = vrot.lane.b32.xlu2 %v8240_v9, %s7820_s10 }
 0x28c   : > { %2990 = vrot.lane.b32.xlu0 %v8207_v47, %s7820_s10 }
 0x28e   : > { %v1950_v15 = vpop.permute.xlu1 %1949 }
 0x28f   : > { %v1979_v60 = vsel %vm1283_vm6, %v1950_v15, %v8550_v27 }
 0x290   : > { %v2007_v47 = vsel %vm413_vm0, %v1979_v60, 0 }
 0x293   : > { %2675 = vrot.lane.b32.xlu1 %v8561_v34, %s7821_s23  ;;  %2647 = vrot.lane.b32.xlu2 %v8063_v36, %s7821_s23  ;;  %v8593_v36 = vld [vmem:[%s10908_s5 + $0x6] sm:$0x3] }
 0x294   : > { %2988 = vrot.lane.b32.xlu0 %v8201_v43, %s7820_s10  ;;  %7510 = vmatmul.msk.bf16.vlgmr.msrb.gmra.mxu0 %vm409_vm1, %v8456_v2 }
 0x295   : > { %7511 = vmatmul.msk.bf16.vlgmr.msrb.gmra.mxu1 %vm409_vm1, %v8456_v2  ;;  %7512 = vmatmul.msk.bf16.vlgmr.msrb.gmra.mxu2 %vm409_vm1, %v8456_v2 }
 0x296   : > { %7513 = vmatmul.msk.bf16.vlgmr.msrb.gmra.mxu3 %vm409_vm1, %v8456_v2  ;;  %2101 = vmatpush.bf16.msrb.mxu1 %v2007_v47  ;;  %v1964_v20 = vpop.permute.xlu1 %1963 }
 0x29a   : > { %v8580_v26 = vpop.f32.mrf.mxu0  ;;  %v8582_v43 = vpop.f32.mrf.mxu1 }
 0x29b   : > { %2976 = vrot.lane.b32.xlu1 %v8174_v21, %s7820_s10  ;;  %2645 = vrot.lane.b32.xlu2 %v8065_v37, %s7821_s23 }
 0x29c   : > { %3002 = vrot.lane.b32.xlu0 %v8561_v34, %s7820_s10 }
 0x2a2   : > { %v1401_v18 = vpop.f32.mrf.mxu0  ;;  %v1414_v59 = vpop.f32.mrf.mxu1 }
 0x2a3   : > { %2972 = vrot.lane.b32.xlu1 %v8065_v37, %s7820_s10  ;;  %2659 = vrot.lane.b32.xlu2 %v8203_v44, %s7821_s23 }
 0x2a4   : > { %3678 = vrot.lane.b32.xlu0 %v8120_v31, %s7821_s23 }
 0x2a5   : > { %7516 = vmatmul.msk.bf16.vlgmr.msra.gmra.mxu1 %vm409_vm1, %v8593_v36  ;;  %7517 = vmatmul.msk.bf16.vlgmr.msra.gmra.mxu2 %vm409_vm1, %v8593_v36 }
 0x2a6   : > { %7518 = vmatmul.msk.bf16.vlgmr.msra.gmra.mxu3 %vm409_vm1, %v8593_v36 }
 0x2ab   : > { %2986 = vrot.lane.b32.xlu1 %v8203_v44, %s7820_s10  ;;  %2665 = vrot.lane.b32.xlu2 %v8259_v24, %s7821_s23 }
 0x2ac   : > { %3676 = vrot.lane.b32.xlu0 %v8118_v28, %s7821_s23  ;;  %v8629_v28 = vpop.permute.xlu0 %1955 }
 0x2b3   : > { %2992 = vrot.lane.b32.xlu1 %v8259_v24, %s7820_s10  ;;  %2671 = vrot.lane.b32.xlu2 %v8261_v25, %s7821_s23 }
 0x2b4   : > { %3690 = vrot.lane.b32.xlu0 %v8140_v54, %s7821_s23  ;;  %v1962_v41 = vpop.permute.xlu0 %1961 }
 0x2b5   : > { %7520 = vmatmul.msk.bf16.vlgmr.msrb.gmra.mxu1 %vm409_vm1, %v8593_v36  ;;  %v1985_v11 = vsel %vm1283_vm6, %v1962_v41, %v1964_v20 }
 0x2b7   : > { %v8621_v37 = vpop.f32.mrf.mxu2 }
 0x2b8   : > { %v8623_v31 = vpop.f32.mrf.mxu3 }
 0x2bb   : > { %2998 = vrot.lane.b32.xlu1 %v8261_v25, %s7820_s10  ;;  %2669 = vrot.lane.b32.xlu2 %v8236_v7, %s7821_s23  ;;  %v1978_v25 = vsel %vm1283_vm6, %v8529_v58, %v1950_v15  ;;  %v3626_v58 = vld [vmem:[#allocation2 + $0x1c] sm:$0xff]  ;;  %v2025_v15 = vsel %vm413_vm0, %v1985_v11, 0 }
 0x2bc   : > { %3696 = vrot.lane.b32.xlu0 %v8209_v48, %s7821_s23  ;;  %v3644_v48 = vunpack.c.l.b16 %v8637_v39  ;;  %v1968_v35 = vpop.permute.xlu0 %1967  ;;  %v3646_v18 = vunpack.c.l.b16 %v3626_v58 }
 0x2be   : > { %v3661_v0 = vpack.c.b16 %v3644_v48, %v3644_v48 }
 0x2bf   : > { %v1427_v54 = vpop.f32.mrf.mxu2 }
 0x2c0   : > { %v1440_v21 = vpop.f32.mrf.mxu3 }
 0x2c1   : > { %v8633_v44 = vpop.f32.mrf.mxu0 }
 0x2c2   : > { %v8635_v24 = vpop.f32.mrf.mxu1 }
 0x2c3   : > { %2996 = vrot.lane.b32.xlu1 %v8236_v7, %s7820_s10  ;;  %2978 = vrot.lane.b32.xlu2 %v8136_v52, %s7820_s10  ;;  %v2004_v52 = vsel %vm413_vm0, %v1978_v25, 0 }
 0x2c4   : > { %3702 = vrot.lane.b32.xlu0 %v8240_v9, %s7821_s23 }
 0x2c5   : > { %v1646_v46 = vpop.permute.xlu2 %1645 }
 0x2c6   : > { %v1663_v51 = vsel %vm1647_vm7, %v8512_v38, %v1646_v46  ;;  %v3647_v38 = vunpack.c.h.b16 %v3626_v58 }
 0x2c7   : > { %v1713_v13 = vsel %vm413_vm0, %v1663_v51, 0 }
 0x2c8   : > { %v8651_v7 = vpop.f32.mrf.mxu2  ;;  %1917 = vmatpush.bf16.msra.mxu0 %v1713_v13  ;;  %v3664_v60 = vpack.c.b16 %v3647_v38, %v3647_v38  ;;  %v3663_v13 = vpack.c.b16 %v3646_v18, %v3646_v18 }
 0x2c9   : > { %v8653_v63 = vpop.f32.mrf.mxu3  ;;  %v1453_v9 = vpop.f32.mrf.mxu0 }
 0x2ca   : > { %v1466_v57 = vpop.f32.mrf.mxu1  ;;  %v2268_v9 = vld [vmem:[#allocation2 + $0x8] sm:$0xff] }
 0x2cb   : > { %3680 = vrot.lane.b32.xlu1 %v3661_v0, %s7821_s23  ;;  %2982 = vrot.lane.b32.xlu2 %v8166_v16, %s7820_s10  ;;  %v1966_v0 = vpop.permute.xlu0 %1965  ;;  %v2284_v57 = vunpack.c.l.b16 %v2268_v9 }
 0x2cc   : > { %2088 = vmatpush.bf16.msrb.mxu0 %v2004_v52  ;;  %3700 = vrot.lane.b32.xlu0 %v8238_v8, %s7821_s23  ;;  %v1986_v58 = vsel %vm1283_vm6, %v1964_v20, %v1966_v0  ;;  %v1987_v38 = vsel %vm1283_vm6, %v1966_v0, %v1968_v35 }
 0x2cd   : > { %7514 = vmatmul.msk.bf16.vlgmr.msra.gmra.mxu0 %vm409_vm1, %v8456_v2  ;;  %v1954_v42 = vpop.permute.xlu2 %1953 }
 0x2ce   : > { %v1980_v4 = vsel %vm1283_vm6, %v8550_v27, %v1954_v42  ;;  %v1981_v53 = vsel %vm1283_vm6, %v1954_v42, %v8629_v28  ;;  %v1970_v27 = vpop.permute.xlu1 %1969  ;;  %v8697_v42 = vld [vmem:[#allocation2 + $0x10] sm:$0xff] }
 0x2cf   : > { %v2010_v8 = vsel %vm413_vm0, %v1980_v4, 0  ;;  %v2013_v45 = vsel %vm413_vm0, %v1981_v53, 0  ;;  %v1988_v59 = vsel %vm1283_vm6, %v1968_v35, %v1970_v27  ;;  %v2028_v35 = vsel %vm413_vm0, %v1986_v58, 0 }
 0x2d0   : > { %v1479_v33 = vpop.f32.mrf.mxu2  ;;  %2114 = vmatpush.bf16.msrb.mxu2 %v2010_v8  ;;  %2127 = vmatpush.bf16.msrb.mxu3 %v2013_v45  ;;  %v2034_v51 = vsel %vm413_vm0, %v1988_v59, 0  ;;  %v8709_v59 = vld [vmem:[#allocation2 + $0x44] sm:$0xff] }
 0x2d1   : > { %v1492_v16 = vpop.f32.mrf.mxu3  ;;  %v8670_v2 = vpop.f32.mrf.mxu0 }
 0x2d2   : > { %v8673_v47 = vpop.f32.mrf.mxu1  ;;  %v2300_v16 = vpack.c.b16 %v2284_v57, %v2284_v57 }
 0x2d3   : > { %3686 = vrot.lane.b32.xlu1 %v3664_v60, %s7821_s23  ;;  %2980 = vrot.lane.b32.xlu2 %v8168_v17, %s7820_s10  ;;  %v2031_v60 = vsel %vm413_vm0, %v1987_v38, 0 }
 0x2d4   : > { %2179 = vmatpush.bf16.msra.mxu3 %v2025_v15  ;;  %7521 = vmatmul.msk.bf16.vlgmr.msrb.gmra.mxu2 %vm409_vm1, %v8593_v36 }
 0x2d5   : > { %7522 = vmatmul.msk.bf16.vlgmr.msrb.gmra.mxu3 %vm409_vm1, %v8593_v36  ;;  %v1960_v54 = vpop.permute.xlu2 %1959 }
 0x2d6   : > { %v1984_v21 = vsel %vm1283_vm6, %v1960_v54, %v1962_v41  ;;  %v2285_v41 = vunpack.c.h.b16 %v2268_v9 }
 0x2d7   : > { %v2022_v25 = vsel %vm413_vm0, %v1984_v21, 0 }
 0x2d8   : > { %v8684_v48 = vpop.f32.mrf.mxu2  ;;  %2166 = vmatpush.bf16.msra.mxu2 %v2022_v25  ;;  %v2301_v45 = vpack.c.b16 %v2285_v41, %v2285_v41 }
 0x2d9   : > { %v8687_v46 = vpop.f32.mrf.mxu3  ;;  %v1505_v17 = vpop.f32.mrf.mxu0 }
 0x2da   : > { %v1518_v52 = vpop.f32.mrf.mxu1  ;;  %v2323_v21 = vsel %vm413_vm0, %v2301_v45, 0  ;;  %v3656_v17 = vunpack.c.l.b16 %v8709_v59 }
 0x2db   : > { %3684 = vrot.lane.b32.xlu1 %v3663_v13, %s7821_s23  ;;  %2994 = vrot.lane.b32.xlu2 %v8234_v6, %s7820_s10 }
 0x2dc   : > { %2218 = vmatpush.bf16.msrb.mxu2 %v2034_v51 }
 0x2dd   : > { %7519 = vmatmul.msk.bf16.vlgmr.msrb.gmra.mxu0 %vm409_vm1, %v8593_v36  ;;  %v1958_v11 = vpop.permute.xlu2 %1957  ;;  %v1974_v13 = vpop.permute.xlu1 %1973 }
 0x2de   : > { %v1982_v4 = vsel %vm1283_vm6, %v8629_v28, %v1958_v11  ;;  %v1983_v53 = vsel %vm1283_vm6, %v1958_v11, %v1960_v54  ;;  %v2286_v28 = vunpack.c.l.b16 %v8697_v42  ;;  %v3673_v11 = vpack.c.b16 %v3656_v17, %v3656_v17 }
 0x2df   : > { %v2016_v6 = vsel %vm413_vm0, %v1982_v4, 0  ;;  %v2019_v8 = vsel %vm413_vm0, %v1983_v53, 0 }
 0x2e0   : > { %v1531_v33 = vpop.f32.mrf.mxu2  ;;  %2140 = vmatpush.bf16.msra.mxu0 %v2016_v6  ;;  %2153 = vmatpush.bf16.msra.mxu1 %v2019_v8  ;;  %v2302_v25 = vpack.c.b16 %v2286_v28, %v2286_v28 }
 0x2e1   : > { %v1544_v15 = vpop.f32.mrf.mxu3  ;;  %v8704_v20 = vpop.f32.mrf.mxu0  ;;  %v8738_v33 = vld [vmem:[#allocation2 + $0x20] sm:$0xff] }
 0x2e2   : > { %v1724_v18 = vpop.f32.mrf.mxu1  ;;  %v2326_v38 = vsel %vm413_vm0, %v2302_v25, 0  ;;  %v2290_v45 = vunpack.c.l.b16 %v8738_v33 }
 0x2e3   : > { %v8712_v54 = vadd.f32 %v1724_v18, %v8480_v19  ;;  %3698 = vrot.lane.b32.xlu1 %v8211_v49, %s7821_s23  ;;  %3000 = vrot.lane.b32.xlu2 %v8477_v30, %s7820_s10  ;;  %v2320_v19 = vsel %vm413_vm0, %v2300_v16, 0  ;;  %v1400_v16 = vadd.f32 %v8580_v26, %v8378_v10  ;;  %v2287_v10 = vunpack.c.h.b16 %v8697_v42 }
 0x2e4   : > { %2192 = vmatpush.bf16.msrb.mxu0 %v2028_v35  ;;  %2205 = vmatpush.bf16.msrb.mxu1 %v2031_v60  ;;  %v1413_v35 = vadd.f32 %v8582_v43, %v8376_v5  ;;  %v2306_v17 = vpack.c.b16 %v2290_v45, %v2290_v45  ;;  %v1439_v42 = vadd.f32 %v8623_v31, %v8390_v40 }
 0x2e5   : > { %7524 = vmatmul.msk.bf16.vlgmr.msra.gmra.mxu1 %vm409_vm1, %v8593_v36  ;;  %7525 = vmatmul.msk.bf16.vlgmr.msra.gmra.mxu2 %vm409_vm1, %v8593_v36  ;;  %v1972_v49 = vpop.permute.xlu2 %1971 }
 0x2e6   : > { %7526 = vmatmul.msk.bf16.vlgmr.msra.gmra.mxu3 %vm409_vm1, %v8593_v36  ;;  %2387 = vmatpush.bf16.msra.mxu2 %v2323_v21  ;;  %v1989_v51 = vsel %vm1283_vm6, %v1970_v27, %v1972_v49  ;;  %v1990_v0 = vsel %vm1283_vm6, %v1972_v49, %v1974_v13  ;;  %v2270_v27 = vld [vmem:[#allocation2 + $0x18] sm:$0xff]  ;;  %v2338_v43 = vsel %vm413_vm0, %v2306_v17, 0  ;;  %v1426_v13 = vadd.f32 %v8621_v37, %v8382_v12 }
 0x2e7   : > { %v2037_v52 = vsel %vm413_vm0, %v1989_v51, 0  ;;  %v2288_v6 = vunpack.c.l.b16 %v2270_v27  ;;  %v2289_v8 = vunpack.c.h.b16 %v2270_v27  ;;  %v2272_v27 = vld [vmem:[#allocation2 + $0x28] sm:$0xff] }
 0x2e8   : > { %2374 = vmatpush.bf16.msra.mxu1 %v2320_v19  ;;  %v1737_v9 = vpop.f32.mrf.mxu2  ;;  %2231 = vmatpush.bf16.msrb.mxu3 %v2037_v52  ;;  %v2303_v52 = vpack.c.b16 %v2287_v10, %v2287_v10  ;;  %v2292_v40 = vunpack.c.l.b16 %v2272_v27  ;;  %v2293_v37 = vunpack.c.h.b16 %v2272_v27  ;;  %v1517_v27 = vadd.f32 %v8673_v47, %v8444_v50 }
 0x2e9   : > { %v8731_v41 = vadd.f32 %v1737_v9, %v8487_v55  ;;  %v1750_v57 = vpop.f32.mrf.mxu3  ;;  %v1557_v58 = vpop.f32.mrf.mxu0  ;;  %v2040_v55 = vsel %vm413_vm0, %v1990_v0, 0  ;;  %v2304_v28 = vpack.c.b16 %v2288_v6, %v2288_v6  ;;  %v2305_v18 = vpack.c.b16 %v2289_v8, %v2289_v8  ;;  %v8774_v6 = vld [vmem:[#allocation2 + $0x30] sm:$0xff] }
 0x2ea   : > { %v8735_v4 = vadd.f32 %v1750_v57, %v8503_v56  ;;  %v1726_v53 = vpop.f32.mrf.mxu1  ;;  %v3645_v56 = vunpack.c.h.b16 %v8637_v39  ;;  %v7798_v39 = vld [vmem:[#allocation2 + $0x24] sm:$0xff]  ;;  %v2329_v12 = vsel %vm413_vm0, %v2303_v52, 0  ;;  %v2294_v8 = vunpack.c.l.b16 %v8774_v6 }
 0x2eb   : > { %3704 = vrot.lane.b32.xlu1 %v3673_v11, %s7821_s23  ;;  %3004 = vrot.lane.b32.xlu2 %v8521_v29, %s7820_s10  ;;  %v2332_v5 = vsel %vm413_vm0, %v2304_v28, 0  ;;  %v2335_v26 = vsel %vm413_vm0, %v2305_v18, 0  ;;  %v3648_v51 = vunpack.c.l.b16 %v7798_v39  ;;  %v2309_v28 = vpack.c.b16 %v2293_v37, %v2293_v37 }
 0x2ec   : > { %2400 = vmatpush.bf16.msra.mxu3 %v2326_v38  ;;  %v3662_v25 = vpack.c.b16 %v3645_v56, %v3645_v56  ;;  %v1452_v56 = vadd.f32 %v8633_v44, %v8412_v62  ;;  %v2310_v17 = vpack.c.b16 %v2294_v8, %v2294_v8 }
 0x2ed   : > { %7523 = vmatmul.msk.bf16.vlgmr.msra.gmra.mxu0 %vm409_vm1, %v8593_v36  ;;  %v3665_v53 = vpack.c.b16 %v3648_v51, %v3648_v51  ;;  %v2648_v50 = vpop.permute.xlu2 %2647 }
 0x2ee   : > { %2244 = vmatpush.bf16.msra.mxu0 %v2040_v55  ;;  %v3628_v55 = vld [vmem:[#allocation2 + $0x2c] sm:$0xff]  ;;  %v2350_v10 = vsel %vm413_vm0, %v2310_v17, 0 }
 0x2ef   : > { %v3651_v31 = vunpack.c.h.b16 %v3628_v55 }
 0x2f0   : > { %v1739_v15 = vpop.f32.mrf.mxu2 }
 0x2f1   : > { %v1752_v29 = vpop.f32.mrf.mxu3  ;;  %v1763_v60 = vpop.f32.mrf.mxu0 }
 0x2f2   : > { %v8751_v21 = vadd.f32 %v1763_v60, %v1400_v16  ;;  %v1776_v19 = vpop.f32.mrf.mxu1  ;;  %v1465_v16 = vadd.f32 %v8635_v24, %v8410_v61  ;;  %v8788_v29 = vld [vmem:[%s10908_s5 + $0x8] sm:$0x3]  ;;  %v2308_v60 = vpack.c.b16 %v2292_v40, %v2292_v40  ;;  %v2291_v61 = vunpack.c.h.b16 %v8738_v33 }
 0x2f3   : > { %v8753_v49 = vadd.f32 %v1776_v19, %v1413_v35  ;;  %3682 = vrot.lane.b32.xlu2 %v3662_v25, %s7821_s23  ;;  %v8792_v25 = vpack.c.b16 %v3651_v31, %v3651_v31  ;;  %v2347_v24 = vsel %vm413_vm0, %v2309_v28, 0  ;;  %v1491_v33 = vadd.f32 %v8653_v63, %v8424_v32  ;;  %v3632_v31 = vld [vmem:[#allocation2 + $0x4c] sm:$0xf] }
 0x2f4   : > { %v2344_v44 = vsel %vm413_vm0, %v2308_v60, 0  ;;  %v2307_v39 = vpack.c.b16 %v2291_v61, %v2291_v61  ;;  %v3657_v63 = vunpack.c.h.b16 %v8709_v59 }
 0x2f5   : > { %7528 = vmatmul.msk.bf16.vlgmr.msrb.gmra.mxu1 %vm409_vm1, %v8593_v36  ;;  %7529 = vmatmul.msk.bf16.vlgmr.msrb.gmra.mxu2 %vm409_vm1, %v8593_v36 }
 0x2f6   : > { %7530 = vmatmul.msk.bf16.vlgmr.msrb.gmra.mxu3 %vm409_vm1, %v8593_v36  ;;  %2426 = vmatpush.bf16.msrb.mxu1 %v2332_v5  ;;  %v3650_v5 = vunpack.c.l.b16 %v3628_v55 }
 0x2f7   : > { %2439 = vmatpush.bf16.msrb.mxu2 %v2335_v26  ;;  %2452 = vmatpush.bf16.msrb.mxu3 %v2338_v43  ;;  %v1478_v26 = vadd.f32 %v8651_v7, %v8416_v1  ;;  %v2341_v1 = vsel %vm413_vm0, %v2307_v39, 0 }
 0x2f8   : > { %v1789_v9 = vpop.f32.mrf.mxu2 }
 0x2f9   : > { %v8770_v0 = vadd.f32 %v1789_v9, %v1426_v13  ;;  %v1802_v57 = vpop.f32.mrf.mxu3  ;;  %v1765_v58 = vpop.f32.mrf.mxu0 }
 0x2fa   : > { %v8772_v38 = vadd.f32 %v1802_v57, %v1439_v42  ;;  %v1778_v11 = vpop.f32.mrf.mxu1  ;;  %v8816_v57 = vpack.c.b16 %v3650_v5, %v3650_v5  ;;  %v2274_v58 = vld [vmem:[#allocation2 + $0x38] sm:$0xff] }
 0x2fb   : > { %3688 = vrot.lane.b32.xlu2 %v3665_v53, %s7821_s23  ;;  %v2296_v32 = vunpack.c.l.b16 %v2274_v58  ;;  %v2297_v7 = vunpack.c.h.b16 %v2274_v58  ;;  %v1504_v11 = vadd.f32 %v8670_v2, %v8446_v23  ;;  %v3658_v23 = vunpack.c.l.b16 %v3632_v31 }
 0x2fc   : > { %v2295_v2 = vunpack.c.h.b16 %v8774_v6  ;;  %v1543_v6 = vadd.f32 %v8687_v46, %v8458_v3  ;;  %v2646_v3 = vpop.permute.xlu2 %2645 }
 0x2fd   : > { %7527 = vmatmul.msk.bf16.vlgmr.msrb.gmra.mxu0 %vm409_vm1, %v8593_v36  ;;  %v2312_v40 = vpack.c.b16 %v2296_v32, %v2296_v32  ;;  %v2313_v37 = vpack.c.b16 %v2297_v7, %v2297_v7  ;;  %v3675_v60 = vpack.c.b16 %v3658_v23, %v3658_v23 }
 0x2fe   : > { %2413 = vmatpush.bf16.msrb.mxu0 %v2329_v12  ;;  %v2311_v28 = vpack.c.b16 %v2295_v2, %v2295_v2 }
 0x2ff   : > { %v2356_v47 = vsel %vm413_vm0, %v2312_v40, 0  ;;  %v2359_v59 = vsel %vm413_vm0, %v2313_v37, 0 }
 0x300   : > { %v1791_v45 = vpop.f32.mrf.mxu2 }
 0x301   : > { %v1804_v15 = vpop.f32.mrf.mxu3  ;;  %v1815_v35 = vpop.f32.mrf.mxu0 }
 0x302   : > { %v8790_v18 = vadd.f32 %v1815_v35, %v1452_v56  ;;  %v1828_v19 = vpop.f32.mrf.mxu1  ;;  %v3674_v56 = vpack.c.b16 %v3657_v63, %v3657_v63  ;;  %v1530_v15 = vadd.f32 %v8684_v48, %v8448_v22  ;;  %v2353_v22 = vsel %vm413_vm0, %v2311_v28, 0 }
 0x303   : > { %v8794_v62 = vadd.f32 %v1828_v19, %v1465_v16  ;;  %3694 = vrot.lane.b32.xlu2 %v8792_v25, %s7821_s23  ;;  %v2362_v16 = vsel %vm413_vm0, %v8477_v30, 0  ;;  %v2652_v30 = vpop.permute.xlu1 %2651 }
 0x305   : > { %7533 = vmatmul.msk.bf16.vlgmr.msra.gmra.mxu1 %vm409_vm1, %v8788_v29  ;;  %7534 = vmatmul.msk.bf16.vlgmr.msra.gmra.mxu2 %vm409_vm1, %v8788_v29 }
 0x306   : > { %7535 = vmatmul.msk.bf16.vlgmr.msra.gmra.mxu3 %vm409_vm1, %v8788_v29  ;;  %2478 = vmatpush.bf16.msra.mxu1 %v2344_v44 }
 0x307   : > { %2491 = vmatpush.bf16.msra.mxu2 %v2347_v24  ;;  %2504 = vmatpush.bf16.msra.mxu3 %v2350_v10  ;;  %v2650_v10 = vpop.permute.xlu0 %2649 }
 0x308   : > { %v1841_v43 = vpop.f32.mrf.mxu2  ;;  %v2680_v5 = vsel %vm1647_vm7, %v2648_v50, %v2650_v10 }
 0x309   : > { %v8812_v51 = vadd.f32 %v1841_v43, %v1478_v26  ;;  %v1854_v13 = vpop.f32.mrf.mxu3  ;;  %v1817_v42 = vpop.f32.mrf.mxu0  ;;  %v2679_v26 = vsel %vm1647_vm7, %v2646_v3, %v2648_v50  ;;  %v2681_v43 = vsel %vm1647_vm7, %v2650_v10, %v2652_v30 }
 0x30a   : > { %v8814_v9 = vadd.f32 %v1854_v13, %v1491_v33  ;;  %v1830_v52 = vpop.f32.mrf.mxu1  ;;  %v2699_v42 = vsel %vm413_vm0, %v2679_v26, 0  ;;  %v2705_v58 = vsel %vm413_vm0, %v2681_v43, 0 }
 0x30b   : > { %3692 = vrot.lane.b32.xlu2 %v8816_v57, %s7821_s23  ;;  %v2702_v52 = vsel %vm413_vm0, %v2680_v5, 0 }
 0x30d   : > { %7531 = vmatmul.msk.bf16.vlgmr.msra.gmra.mxu0 %vm409_vm1, %v8593_v36 }
 0x30e   : > { %2465 = vmatpush.bf16.msra.mxu0 %v2341_v1 }
 0x30f   : > { %v2656_v13 = vpop.permute.xlu0 %2655 }
 0x310   : > { %v1843_v53 = vpop.f32.mrf.mxu2 }
 0x311   : > { %v1856_v55 = vpop.f32.mrf.mxu3  ;;  %v1867_v12 = vpop.f32.mrf.mxu0  ;;  %v2365_v53 = vsel %vm413_vm0, %v8561_v34, 0 }
 0x312   : > { %v8828_v36 = vadd.f32 %v1867_v12, %v1504_v11  ;;  %v1880_v8 = vpop.f32.mrf.mxu1  ;;  %v2658_v11 = vpop.permute.xlu1 %2657 }
 0x313   : > { %v8830_v45 = vadd.f32 %v1880_v8, %v1517_v27  ;;  %3706 = vrot.lane.b32.xlu2 %v3674_v56, %s7821_s23  ;;  %v2660_v55 = vpop.permute.xlu2 %2659  ;;  %v2684_v37 = vsel %vm1647_vm7, %v2656_v13, %v2658_v11 }
 0x314   : > { %v2714_v23 = vsel %vm413_vm0, %v2684_v37, 0 }
 0x315   : > { %7537 = vmatmul.msk.bf16.vlgmr.msrb.gmra.mxu1 %vm409_vm1, %v8788_v29  ;;  %7538 = vmatmul.msk.bf16.vlgmr.msrb.gmra.mxu2 %vm409_vm1, %v8788_v29 }
 0x316   : > { %7539 = vmatmul.msk.bf16.vlgmr.msrb.gmra.mxu3 %vm409_vm1, %v8788_v29  ;;  %2530 = vmatpush.bf16.msrb.mxu1 %v2356_v47 }
 0x317   : > { %2543 = vmatpush.bf16.msrb.mxu2 %v2359_v59  ;;  %2556 = vmatpush.bf16.msrb.mxu3 %v2362_v16  ;;  %v2654_v27 = vpop.permute.xlu0 %2653 }
 0x318   : > { %v1893_v35 = vpop.f32.mrf.mxu2 }
 0x319   : > { %v8848_v19 = vadd.f32 %v1893_v35, %v1530_v15  ;;  %v1906_v17 = vpop.f32.mrf.mxu3  ;;  %v1869_v61 = vpop.f32.mrf.mxu0  ;;  %v8903_v15 = vld [vmem:[%s10908_s5 + $0xa] sm:$0x3] }
 0x31a   : > { %v8850_v44 = vadd.f32 %v1906_v17, %v1543_v6  ;;  %v1882_v24 = vpop.f32.mrf.mxu1  ;;  %v2664_v56 = vpop.permute.xlu1 %2663 }
 0x31b   : > { %3708 = vrot.lane.b32.xlu2 %v3675_v60, %s7821_s23  ;;  %v2666_v47 = vpop.permute.xlu2 %2665 }
 0x31c   : > { %v2688_v60 = vsel %vm1647_vm7, %v2664_v56, %v2666_v47 }
 0x31d   : > { %7536 = vmatmul.msk.bf16.vlgmr.msrb.gmra.mxu0 %vm409_vm1, %v8788_v29  ;;  %v2726_v24 = vsel %vm413_vm0, %v2688_v60, 0 }
 0x31e   : > { %2517 = vmatpush.bf16.msrb.mxu0 %v2353_v22  ;;  %v1556_v22 = vadd.f32 %v8704_v20, %v8475_v14 }
 0x31f   : > { %v2668_v6 = vpop.permute.xlu0 %2667 }
 0x320   : > { %v1895_v48 = vpop.f32.mrf.mxu2  ;;  %v2689_v28 = vsel %vm1647_vm7, %v2666_v47, %v2668_v6 }
 0x321   : > { %v1908_v46 = vpop.f32.mrf.mxu3  ;;  %v2729_v10 = vsel %vm413_vm0, %v2689_v28, 0 }
 0x322   : > { %v2051_v33 = vpop.f32.mrf.mxu1  ;;  %v2662_v16 = vpop.permute.xlu1 %2661 }
 0x323   : > { %v8860_v39 = vadd.f32 %v2051_v33, %v8712_v54  ;;  %v2687_v35 = vsel %vm1647_vm7, %v2662_v16, %v2664_v56  ;;  %v2672_v17 = vpop.permute.xlu2 %2671  ;;  %v2686_v3 = vsel %vm1647_vm7, %v2660_v55, %v2662_v16 }
 0x324   : > { %v2723_v61 = vsel %vm413_vm0, %v2687_v35, 0  ;;  %v2720_v26 = vsel %vm413_vm0, %v2686_v3, 0 }
 0x325   : > { %7541 = vmatmul.msk.bf16.vlgmr.msra.gmra.mxu1 %vm409_vm1, %v8788_v29  ;;  %7542 = vmatmul.msk.bf16.vlgmr.msra.gmra.mxu2 %vm409_vm1, %v8788_v29 }
 0x326   : > { %7543 = vmatmul.msk.bf16.vlgmr.msra.gmra.mxu3 %vm409_vm1, %v8788_v29  ;;  %2753 = vmatpush.bf16.msra.mxu1 %v2699_v42 }
 0x327   : > { %2766 = vmatpush.bf16.msra.mxu2 %v2702_v52  ;;  %2779 = vmatpush.bf16.msra.mxu3 %v2705_v58  ;;  %v2674_v5 = vpop.permute.xlu0 %2673 }
 0x328   : > { %v2064_v54 = vpop.f32.mrf.mxu2 }
 0x329   : > { %v8872_v1 = vadd.f32 %v2064_v54, %v8731_v41  ;;  %v2077_v32 = vpop.f32.mrf.mxu3  ;;  %v2683_v41 = vsel %vm1647_vm7, %v2654_v27, %v2656_v13  ;;  %v2692_v13 = vsel %vm1647_vm7, %v2672_v17, %v2674_v5 }
 0x32a   : > { %v8875_v7 = vadd.f32 %v2077_v32, %v8735_v4  ;;  %v2053_v63 = vpop.f32.mrf.mxu1  ;;  %v2685_v4 = vsel %vm1647_vm7, %v2658_v11, %v2660_v55  ;;  %v2711_v34 = vsel %vm413_vm0, %v2683_v41, 0  ;;  %v2676_v46 = vpop.permute.xlu1 %2675  ;;  %v2738_v52 = vsel %vm413_vm0, %v2692_v13, 0 }
 0x32b   : > { %v2717_v2 = vsel %vm413_vm0, %v2685_v4, 0  ;;  %v2670_v33 = vpop.permute.xlu2 %2669  ;;  %v2693_v14 = vsel %vm1647_vm7, %v2674_v5, %v2676_v46 }
 0x32c   : > { %v2691_v42 = vsel %vm1647_vm7, %v2670_v33, %v2672_v17  ;;  %v2741_v54 = vsel %vm413_vm0, %v2693_v14, 0 }
 0x32d   : > { %7540 = vmatmul.msk.bf16.vlgmr.msra.gmra.mxu0 %vm409_vm1, %v8788_v29 }
 0x32e   : > { %2569 = vmatpush.bf16.msra.mxu0 %v2365_v53  ;;  %v2690_v53 = vsel %vm1647_vm7, %v2668_v6, %v2670_v33 }
 0x32f   : > { %v2975_v58 = vpop.permute.xlu0 %2974  ;;  %v2732_v41 = vsel %vm413_vm0, %v2690_v53, 0 }
 0x330   : > { %v2066_v12 = vpop.f32.mrf.mxu2 }
 0x331   : > { %v2079_v40 = vpop.f32.mrf.mxu3 }
 0x332   : > { %v2103_v31 = vpop.f32.mrf.mxu1  ;;  %v2977_v20 = vpop.permute.xlu1 %2976 }
 0x333   : > { %v8885_v8 = vadd.f32 %v2103_v31, %v8753_v49  ;;  %v2682_v49 = vsel %vm1647_vm7, %v2652_v30, %v2654_v27  ;;  %v2979_v40 = vpop.permute.xlu2 %2978 }
 0x334   : > { %v2708_v59 = vsel %vm413_vm0, %v2682_v49, 0 }
 0x335   : > { %7545 = vmatmul.msk.bf16.vlgmr.msrb.gmra.mxu1 %vm409_vm1, %v8788_v29  ;;  %7546 = vmatmul.msk.bf16.vlgmr.msrb.gmra.mxu2 %vm409_vm1, %v8788_v29 }
 0x336   : > { %7547 = vmatmul.msk.bf16.vlgmr.msrb.gmra.mxu3 %vm409_vm1, %v8788_v29  ;;  %2805 = vmatpush.bf16.msrb.mxu1 %v2711_v34 }
 0x337   : > { %2818 = vmatpush.bf16.msrb.mxu2 %v2714_v23  ;;  %2831 = vmatpush.bf16.msrb.mxu3 %v2717_v2  ;;  %v2678_v31 = vpop.permute.xlu0 %2677  ;;  %v3008_v2 = vsel %vm1283_vm6, %v2977_v20, %v2979_v40 }
 0x338   : > { %v2694_v6 = vsel %vm1647_vm7, %v2676_v46, %v2678_v31 }
 0x33a   : > { %v2105_v50 = vpop.f32.mrf.mxu1  ;;  %v2973_v37 = vpop.permute.xlu1 %2972 }
 0x33b   : > { %v3006_v23 = vsel %vm1283_vm6, %v2973_v37, %v2975_v58  ;;  %v2983_v50 = vpop.permute.xlu2 %2982 }
 0x33c   : > { %v3026_v49 = vsel %vm413_vm0, %v3006_v23, 0 }
 0x33d   : > { %7544 = vmatmul.msk.bf16.vlgmr.msrb.gmra.mxu0 %vm409_vm1, %v8788_v29 }
 0x33e   : > { %2792 = vmatpush.bf16.msrb.mxu0 %v2708_v59 }
 0x343   : > { %v2981_v3 = vpop.permute.xlu2 %2980 }
 0x345   : > { %7550 = vmatmul.msk.bf16.vlgmr.msra.gmra.mxu1 %vm409_vm1, %v8903_v15  ;;  %7551 = vmatmul.msk.bf16.vlgmr.msra.gmra.mxu2 %vm409_vm1, %v8903_v15 }
 0x346   : > { %7552 = vmatmul.msk.bf16.vlgmr.msra.gmra.mxu3 %vm409_vm1, %v8903_v15  ;;  %2857 = vmatpush.bf16.msra.mxu1 %v2723_v61 }
 0x347   : > { %2870 = vmatpush.bf16.msra.mxu2 %v2726_v24  ;;  %2883 = vmatpush.bf16.msra.mxu3 %v2729_v10  ;;  %v2985_v24 = vpop.permute.xlu0 %2984  ;;  %v2744_v10 = vsel %vm413_vm0, %v2694_v6, 0 }
 0x34a   : > { %v1919_v30 = vpop.f32.mrf.mxu0 }
 0x34b   : > { %v8920_v48 = vadd.f32 %v1919_v30, %v1556_v22  ;;  %v2987_v22 = vpop.permute.xlu1 %2986 }
 0x34c   : > { %v3012_v33 = vsel %vm1283_vm6, %v2985_v24, %v2987_v22 }
 0x34d   : > { %7548 = vmatmul.msk.bf16.vlgmr.msra.gmra.mxu0 %vm409_vm1, %v8788_v29  ;;  %v2735_v29 = vsel %vm413_vm0, %v2691_v42, 0  ;;  %v3044_v14 = vsel %vm413_vm0, %v3012_v33, 0 }
 0x34e   : > { %2844 = vmatpush.bf16.msra.mxu0 %v2720_v26  ;;  %v3010_v26 = vsel %vm1283_vm6, %v2981_v3, %v2983_v50 }
 0x34f   : > { %v3038_v13 = vsel %vm413_vm0, %v3010_v26, 0 }
 0x352   : > { %v1921_v43 = vpop.f32.mrf.mxu0 }
 0x353   : > { %v2991_v43 = vpop.permute.xlu0 %2990  ;;  %v2993_v53 = vpop.permute.xlu1 %2992 }
 0x355   : > { %7554 = vmatmul.msk.bf16.vlgmr.msrb.gmra.mxu1 %vm409_vm1, %v8903_v15  ;;  %7555 = vmatmul.msk.bf16.vlgmr.msrb.gmra.mxu2 %vm409_vm1, %v8903_v15 }
 0x356   : > { %7556 = vmatmul.msk.bf16.vlgmr.msrb.gmra.mxu3 %vm409_vm1, %v8903_v15  ;;  %2909 = vmatpush.bf16.msrb.mxu1 %v2735_v29  ;;  %v3009_v29 = vsel %vm1283_vm6, %v2979_v40, %v2981_v3  ;;  %v2995_v40 = vpop.permute.xlu2 %2994 }
 0x357   : > { %2922 = vmatpush.bf16.msrb.mxu2 %v2738_v52  ;;  %2935 = vmatpush.bf16.msrb.mxu3 %v2741_v54  ;;  %v2116_v32 = vpop.f32.mrf.mxu2 }
 0x358   : > { %v8938_v63 = vadd.f32 %v2116_v32, %v8770_v0  ;;  %v2129_v11 = vpop.f32.mrf.mxu3 }
 0x359   : > { %v8942_v27 = vadd.f32 %v2129_v11, %v8772_v38  ;;  %v3007_v38 = vsel %vm1283_vm6, %v2975_v58, %v2977_v20 }
 0x35a   : > { %v2090_v55 = vpop.f32.mrf.mxu0  ;;  %v3029_v47 = vsel %vm413_vm0, %v3007_v38, 0 }
 0x35b   : > { %v8945_v12 = vadd.f32 %v2090_v55, %v8751_v21  ;;  %v3035_v55 = vsel %vm413_vm0, %v3009_v29, 0  ;;  %v3299_v29 = vld [vmem:[#allocation2 + $0xc] sm:$0xff] }
 0x35d   : > { %7553 = vmatmul.msk.bf16.vlgmr.msrb.gmra.mxu0 %vm409_vm1, %v8903_v15 }
 0x35e   : > { %2896 = vmatpush.bf16.msrb.mxu0 %v2732_v41  ;;  %v2989_v41 = vpop.permute.xlu0 %2988 }
 0x35f   : > { %v2118_v0 = vpop.f32.mrf.mxu2 }
 0x360   : > { %v2131_v4 = vpop.f32.mrf.mxu3 }
 0x361   : > { %v3015_v4 = vsel %vm1283_vm6, %v2991_v43, %v2993_v53 }
 0x362   : > { %v2092_v56 = vpop.f32.mrf.mxu0  ;;  %v2155_v34 = vpop.f32.mrf.mxu1  ;;  %v3053_v23 = vsel %vm413_vm0, %v3015_v4, 0 }
 0x363   : > { %v8953_v21 = vadd.f32 %v2155_v34, %v8794_v62  ;;  %v3032_v62 = vsel %vm413_vm0, %v3008_v2, 0  ;;  %v3016_v34 = vsel %vm1283_vm6, %v2993_v53, %v2995_v40  ;;  %v2999_v2 = vpop.permute.xlu1 %2998  ;;  %v3315_v53 = vunpack.c.l.b16 %v3299_v29 }
 0x365   : > { %7558 = vmatmul.msk.bf16.vlgmr.msra.gmra.mxu1 %vm409_vm1, %v8903_v15  ;;  %7559 = vmatmul.msk.bf16.vlgmr.msra.gmra.mxu2 %vm409_vm1, %v8903_v15 }
 0x366   : > { %7560 = vmatmul.msk.bf16.vlgmr.msra.gmra.mxu3 %vm409_vm1, %v8903_v15  ;;  %3080 = vmatpush.bf16.msra.mxu1 %v3026_v49  ;;  %v3056_v49 = vsel %vm413_vm0, %v3016_v34, 0 }
 0x367   : > { %3093 = vmatpush.bf16.msra.mxu2 %v3029_v47  ;;  %3106 = vmatpush.bf16.msra.mxu3 %v3032_v62  ;;  %v3013_v47 = vsel %vm1283_vm6, %v2987_v22, %v2989_v41 }
 0x368   : > { %v2168_v59 = vpop.f32.mrf.mxu2 }
 0x369   : > { %v2181_v16 = vpop.f32.mrf.mxu3  ;;  %v8967_v35 = vadd.f32 %v2168_v59, %v8812_v51 }
 0x36a   : > { %v8970_v60 = vadd.f32 %v2181_v16, %v8814_v9  ;;  %v2142_v28 = vpop.f32.mrf.mxu0  ;;  %v2157_v17 = vpop.f32.mrf.mxu1  ;;  %v3011_v9 = vsel %vm1283_vm6, %v2983_v50, %v2985_v24 }
 0x36b   : > { %v8973_v61 = vadd.f32 %v2142_v28, %v8790_v18  ;;  %v3041_v42 = vsel %vm413_vm0, %v3011_v9, 0  ;;  %v3047_v17 = vsel %vm413_vm0, %v3013_v47, 0  ;;  %v2997_v24 = vpop.permute.xlu1 %2996 }
 0x36d   : > { %7557 = vmatmul.msk.bf16.vlgmr.msra.gmra.mxu0 %vm409_vm1, %v8903_v15 }
 0x36e   : > { %2948 = vmatpush.bf16.msra.mxu0 %v2744_v10  ;;  %v3001_v10 = vpop.permute.xlu2 %3000 }
 0x370   : > { %v2170_v30 = vpop.f32.mrf.mxu2 }
 0x371   : > { %v2183_v51 = vpop.f32.mrf.mxu3 }
 0x372   : > { %v2144_v46 = vpop.f32.mrf.mxu0  ;;  %v2207_v5 = vpop.f32.mrf.mxu1 }
 0x373   : > { %v8981_v18 = vadd.f32 %v2207_v5, %v8830_v45  ;;  %v3003_v51 = vpop.permute.xlu0 %3002  ;;  %v3019_v46 = vsel %vm1283_vm6, %v2999_v2, %v3001_v10 }
 0x374   : > { %v3020_v5 = vsel %vm1283_vm6, %v3001_v10, %v3003_v51  ;;  %v3065_v9 = vsel %vm413_vm0, %v3019_v46, 0 }
 0x375   : > { %7562 = vmatmul.msk.bf16.vlgmr.msrb.gmra.mxu1 %vm409_vm1, %v8903_v15  ;;  %7563 = vmatmul.msk.bf16.vlgmr.msrb.gmra.mxu2 %vm409_vm1, %v8903_v15  ;;  %v3068_v26 = vsel %vm413_vm0, %v3020_v5, 0 }
 0x376   : > { %7564 = vmatmul.msk.bf16.vlgmr.msrb.gmra.mxu3 %vm409_vm1, %v8903_v15  ;;  %3132 = vmatpush.bf16.msrb.mxu1 %v3038_v13  ;;  %v3005_v34 = vpop.permute.xlu2 %3004 }
 0x377   : > { %3145 = vmatpush.bf16.msrb.mxu2 %v3041_v42  ;;  %3158 = vmatpush.bf16.msrb.mxu3 %v3044_v14 }
 0x378   : > { %v2220_v45 = vpop.f32.mrf.mxu2 }
 0x379   : > { %v2233_v20 = vpop.f32.mrf.mxu3  ;;  %v8995_v52 = vadd.f32 %v2220_v45, %v8848_v19 }
 0x37a   : > { %v8998_v58 = vadd.f32 %v2233_v20, %v8850_v44  ;;  %v2194_v54 = vpop.f32.mrf.mxu0  ;;  %v2209_v32 = vpop.f32.mrf.mxu1  ;;  %v9009_v44 = vld [vmem:[%s10908_s5 + $0xc] sm:$0x3] }
 0x37b   : > { %v9001_v11 = vadd.f32 %v2194_v54, %v8828_v36  ;;  %v3014_v36 = vsel %vm1283_vm6, %v2989_v41, %v2991_v43  ;;  %v3017_v43 = vsel %vm1283_vm6, %v2995_v40, %v2997_v24  ;;  %v3300_v54 = vld [vmem:[#allocation2 + $0x14] sm:$0xff] }
 0x37c   : > { %v3050_v38 = vsel %vm413_vm0, %v3014_v36, 0  ;;  %v3059_v32 = vsel %vm413_vm0, %v3017_v43, 0  ;;  %v3318_v5 = vunpack.c.h.b16 %v3300_v54 }
 0x37d   : > { %7561 = vmatmul.msk.bf16.vlgmr.msrb.gmra.mxu0 %vm409_vm1, %v8903_v15 }
 0x37e   : > { %3119 = vmatpush.bf16.msrb.mxu0 %v3035_v55  ;;  %v3316_v55 = vunpack.c.h.b16 %v3299_v29 }
 0x380   : > { %v2222_v37 = vpop.f32.mrf.mxu2 }
 0x381   : > { %v2235_v19 = vpop.f32.mrf.mxu3 }
 0x382   : > { %v2196_v0 = vpop.f32.mrf.mxu0  ;;  %v2376_v31 = vpop.f32.mrf.mxu1  ;;  %v3331_v19 = vpack.c.b16 %v3315_v53, %v3315_v53 }
 0x383   : > { %v9014_v56 = vadd.f32 %v2376_v31, %v8860_v39  ;;  %v3332_v0 = vpack.c.b16 %v3316_v55, %v3316_v55 }
 0x384   : > { %v3351_v36 = vsel %vm413_vm0, %v3331_v19, 0  ;;  %v3375_v19 = vsel %vm413_vm0, %v8816_v57, 0 }
 0x385   : > { %7567 = vmatmul.msk.bf16.vlgmr.msra.gmra.mxu1 %vm409_vm1, %v9009_v44  ;;  %7568 = vmatmul.msk.bf16.vlgmr.msra.gmra.mxu2 %vm409_vm1, %v9009_v44  ;;  %v3354_v4 = vsel %vm413_vm0, %v3332_v0, 0  ;;  %v3378_v0 = vsel %vm413_vm0, %v8792_v25, 0  ;;  %v3305_v25 = vld [vmem:[#allocation2 + $0x3c] sm:$0xff] }
 0x386   : > { %7569 = vmatmul.msk.bf16.vlgmr.msra.gmra.mxu3 %vm409_vm1, %v9009_v44  ;;  %3184 = vmatpush.bf16.msra.mxu1 %v3050_v38 }
 0x387   : > { %3197 = vmatpush.bf16.msra.mxu2 %v3053_v23  ;;  %3210 = vmatpush.bf16.msra.mxu3 %v3056_v49 }
 0x388   : > { %v2389_v39 = vpop.f32.mrf.mxu2 }
 0x389   : > { %v2402_v50 = vpop.f32.mrf.mxu3  ;;  %v9028_v62 = vadd.f32 %v2389_v39, %v8872_v1 }
 0x38a   : > { %v9031_v59 = vadd.f32 %v2402_v50, %v8875_v7  ;;  %v2246_v16 = vpop.f32.mrf.mxu0  ;;  %v2378_v6 = vpop.f32.mrf.mxu1  ;;  %v3018_v7 = vsel %vm1283_vm6, %v2997_v24, %v2999_v2  ;;  %v3021_v2 = vsel %vm1283_vm6, %v3003_v51, %v3005_v34 }
 0x38b   : > { %v9034_v28 = vadd.f32 %v2246_v16, %v8920_v48  ;;  %v3301_v6 = vld [vmem:[#allocation2 + $0x1c] sm:$0xff]  ;;  %v3071_v24 = vsel %vm413_vm0, %v3021_v2, 0  ;;  %v3306_v2 = vld [vmem:[#allocation2 + $0x44] sm:$0xff] }
 0x38c   : > { %v3319_v10 = vunpack.c.l.b16 %v3301_v6 }
 0x38d   : > { %7565 = vmatmul.msk.bf16.vlgmr.msra.gmra.mxu0 %vm409_vm1, %v8903_v15  ;;  %v3062_v15 = vsel %vm413_vm0, %v3018_v7, 0 }
 0x38e   : > { %3171 = vmatpush.bf16.msra.mxu0 %v3047_v17  ;;  %v3302_v17 = vld [vmem:[#allocation2 + $0x24] sm:$0xff]  ;;  %v3335_v51 = vpack.c.b16 %v3319_v10, %v3319_v10 }
 0x390   : > { %v2391_v22 = vpop.f32.mrf.mxu2 }
 0x391   : > { %v2404_v3 = vpop.f32.mrf.mxu3  ;;  %v3320_v22 = vunpack.c.h.b16 %v3301_v6  ;;  %v3328_v6 = vunpack.c.h.b16 %v3305_v25 }
 0x392   : > { %v2248_v1 = vpop.f32.mrf.mxu0  ;;  %v2428_v30 = vpop.f32.mrf.mxu1 }
 0x393   : > { %v9042_v48 = vadd.f32 %v2428_v30, %v8885_v8  ;;  %v3336_v7 = vpack.c.b16 %v3320_v22, %v3320_v22 }
 0x395   : > { %7571 = vmatmul.msk.bf16.vlgmr.msrb.gmra.mxu1 %vm409_vm1, %v9009_v44  ;;  %7572 = vmatmul.msk.bf16.vlgmr.msrb.gmra.mxu2 %vm409_vm1, %v9009_v44 }
 0x396   : > { %7573 = vmatmul.msk.bf16.vlgmr.msrb.gmra.mxu3 %vm409_vm1, %v9009_v44  ;;  %3236 = vmatpush.bf16.msrb.mxu1 %v3062_v15  ;;  %v3363_v15 = vsel %vm413_vm0, %v3335_v51, 0 }
 0x397   : > { %3249 = vmatpush.bf16.msrb.mxu2 %v3065_v9  ;;  %3262 = vmatpush.bf16.msrb.mxu3 %v3068_v26  ;;  %v3366_v9 = vsel %vm413_vm0, %v3336_v7, 0 }
 0x398   : > { %v2441_v8 = vpop.f32.mrf.mxu2 }
 0x399   : > { %v2454_v33 = vpop.f32.mrf.mxu3  ;;  %v9056_v13 = vadd.f32 %v2441_v8, %v8938_v63  ;;  %v3317_v63 = vunpack.c.l.b16 %v3300_v54 }
 0x39a   : > { %v9059_v42 = vadd.f32 %v2454_v33, %v8942_v27  ;;  %v2415_v14 = vpop.f32.mrf.mxu0  ;;  %v2430_v45 = vpop.f32.mrf.mxu1  ;;  %v3334_v33 = vpack.c.b16 %v3318_v5, %v3318_v5 }
 0x39b   : > { %v9062_v20 = vadd.f32 %v2415_v14, %v8945_v12  ;;  %v3333_v31 = vpack.c.b16 %v3317_v63, %v3317_v63 }
 0x39c   : > { %v3360_v53 = vsel %vm413_vm0, %v3334_v33, 0 }
 0x39d   : > { %7570 = vmatmul.msk.bf16.vlgmr.msrb.gmra.mxu0 %vm409_vm1, %v9009_v44 }
 0x39e   : > { %3223 = vmatpush.bf16.msrb.mxu0 %v3059_v32  ;;  %v3304_v32 = vld [vmem:[#allocation2 + $0x34] sm:$0xff] }
 0x39f   : > { %v3325_v55 = vunpack.c.l.b16 %v3304_v32 }
 0x3a0   : > { %v2443_v41 = vpop.f32.mrf.mxu2 }
 0x3a1   : > { %v2456_v40 = vpop.f32.mrf.mxu3 }
 0x3a2   : > { %v2417_v27 = vpop.f32.mrf.mxu0  ;;  %v2480_v37 = vpop.f32.mrf.mxu1 }
 0x3a3   : > { %v9068_v12 = vadd.f32 %v2480_v37, %v8953_v21  ;;  %v3357_v21 = vsel %vm413_vm0, %v3333_v31, 0  ;;  %v3341_v27 = vpack.c.b16 %v3325_v55, %v3325_v55  ;;  %v3322_v37 = vunpack.c.h.b16 %v3302_v17 }
 0x3a5   : > { %7575 = vmatmul.msk.bf16.vlgmr.msra.gmra.mxu1 %vm409_vm1, %v9009_v44  ;;  %7576 = vmatmul.msk.bf16.vlgmr.msra.gmra.mxu2 %vm409_vm1, %v9009_v44 }
 0x3a6   : > { %7577 = vmatmul.msk.bf16.vlgmr.msra.gmra.mxu3 %vm409_vm1, %v9009_v44  ;;  %3405 = vmatpush.bf16.msra.mxu1 %v3351_v36 }
 0x3a7   : > { %3418 = vmatpush.bf16.msra.mxu2 %v3354_v4  ;;  %3431 = vmatpush.bf16.msra.mxu3 %v3357_v21  ;;  %v3338_v4 = vpack.c.b16 %v3322_v37, %v3322_v37 }
 0x3a8   : > { %v2493_v38 = vpop.f32.mrf.mxu2 }
 0x3a9   : > { %v2506_v23 = vpop.f32.mrf.mxu3  ;;  %v9081_v49 = vadd.f32 %v2493_v38, %v8967_v35  ;;  %v3321_v35 = vunpack.c.l.b16 %v3302_v17 }
 0x3aa   : > { %v9084_v39 = vadd.f32 %v2506_v23, %v8970_v60  ;;  %v2467_v50 = vpop.f32.mrf.mxu0  ;;  %v2482_v47 = vpop.f32.mrf.mxu1 }
 0x3ab   : > { %v9087_v16 = vadd.f32 %v2467_v50, %v8973_v61  ;;  %v3337_v46 = vpack.c.b16 %v3321_v35, %v3321_v35  ;;  %v3372_v50 = vsel %vm413_vm0, %v3338_v4, 0  ;;  %v3327_v47 = vunpack.c.l.b16 %v3305_v25 }
 0x3ac   : > { %v3344_v35 = vpack.c.b16 %v3328_v6, %v3328_v6 }
 0x3ad   : > { %7574 = vmatmul.msk.bf16.vlgmr.msra.gmra.mxu0 %vm409_vm1, %v9009_v44  ;;  %v3343_v22 = vpack.c.b16 %v3327_v47, %v3327_v47 }
 0x3ae   : > { %3275 = vmatpush.bf16.msra.mxu0 %v3071_v24 }
 0x3b0   : > { %v2495_v3 = vpop.f32.mrf.mxu2 }
 0x3b1   : > { %v2508_v1 = vpop.f32.mrf.mxu3 }
 0x3b2   : > { %v2469_v60 = vpop.f32.mrf.mxu0  ;;  %v2532_v30 = vpop.f32.mrf.mxu1 }
 0x3b3   : > { %v9093_v61 = vadd.f32 %v2532_v30, %v8981_v18  ;;  %v3369_v18 = vsel %vm413_vm0, %v3337_v46, 0  ;;  %v3679_v1 = vpop.permute.xlu0 %3678  ;;  %v3387_v60 = vsel %vm413_vm0, %v3343_v22, 0  ;;  %v3390_v30 = vsel %vm413_vm0, %v3344_v35, 0 }
 0x3b5   : > { %7579 = vmatmul.msk.bf16.vlgmr.msrb.gmra.mxu1 %vm409_vm1, %v9009_v44  ;;  %7580 = vmatmul.msk.bf16.vlgmr.msrb.gmra.mxu2 %vm409_vm1, %v9009_v44 }
 0x3b6   : > { %7581 = vmatmul.msk.bf16.vlgmr.msrb.gmra.mxu3 %vm409_vm1, %v9009_v44  ;;  %3457 = vmatpush.bf16.msrb.mxu1 %v3363_v15 }
 0x3b7   : > { %3470 = vmatpush.bf16.msrb.mxu2 %v3366_v9  ;;  %3483 = vmatpush.bf16.msrb.mxu3 %v3369_v18 }
 0x3b8   : > { %v2545_v26 = vpop.f32.mrf.mxu2 }
 0x3b9   : > { %v2558_v8 = vpop.f32.mrf.mxu3  ;;  %v9105_v43 = vadd.f32 %v2545_v26, %v8995_v52 }
 0x3ba   : > { %v9108_v14 = vadd.f32 %v2558_v8, %v8998_v58  ;;  %v2519_v45 = vpop.f32.mrf.mxu0  ;;  %v2534_v29 = vpop.f32.mrf.mxu1  ;;  %v9119_v58 = vld [vmem:[%s10908_s5 + $0xe] sm:$0x3] }
 0x3bb   : > { %v9111_v54 = vadd.f32 %v2519_v45, %v9001_v11  ;;  %v3681_v8 = vpop.permute.xlu1 %3680  ;;  %v3677_v45 = vpop.permute.xlu0 %3676 }
 0x3bc   : > { %v3683_v29 = vpop.permute.xlu2 %3682 }
 0x3bd   : > { %7578 = vmatmul.msk.bf16.vlgmr.msrb.gmra.mxu0 %vm409_vm1, %v9009_v44 }
 0x3be   : > { %3444 = vmatpush.bf16.msrb.mxu0 %v3360_v53 }
 0x3c0   : > { %v2547_v63 = vpop.f32.mrf.mxu2 }
 0x3c1   : > { %v2560_v41 = vpop.f32.mrf.mxu3  ;;  %v3711_v63 = vsel %vm1647_vm7, %v3679_v1, %v3681_v8 }
 0x3c2   : > { %v2521_v52 = vpop.f32.mrf.mxu0  ;;  %v2755_v40 = vpop.f32.mrf.mxu1  ;;  %v3712_v41 = vsel %vm1647_vm7, %v3681_v8, %v3683_v29 }
 0x3c3   : > { %v9122_v11 = vadd.f32 %v2755_v40, %v9014_v56  ;;  %v3381_v56 = vsel %vm413_vm0, %v3341_v27, 0  ;;  %v3330_v52 = vunpack.c.h.b16 %v3306_v2  ;;  %v3733_v27 = vsel %vm413_vm0, %v3711_v63, 0  ;;  %v3687_v37 = vpop.permute.xlu1 %3686 }
 0x3c4   : > { %v3689_v25 = vpop.permute.xlu2 %3688 }
 0x3c5   : > { %7584 = vmatmul.msk.bf16.vlgmr.msra.gmra.mxu1 %vm409_vm1, %v9119_v58  ;;  %7585 = vmatmul.msk.bf16.vlgmr.msra.gmra.mxu2 %vm409_vm1, %v9119_v58 }
 0x3c6   : > { %7586 = vmatmul.msk.bf16.vlgmr.msra.gmra.mxu3 %vm409_vm1, %v9119_v58  ;;  %3509 = vmatpush.bf16.msra.mxu1 %v3375_v19 }
 0x3c7   : > { %3522 = vmatpush.bf16.msra.mxu2 %v3378_v0  ;;  %3535 = vmatpush.bf16.msra.mxu3 %v3381_v56  ;;  %v3346_v56 = vpack.c.b16 %v3330_v52, %v3330_v52 }
 0x3c8   : > { %v2768_v31 = vpop.f32.mrf.mxu2 }
 0x3c9   : > { %v2781_v36 = vpop.f32.mrf.mxu3  ;;  %v9136_v34 = vadd.f32 %v2768_v31, %v9028_v62  ;;  %v3329_v62 = vunpack.c.l.b16 %v3306_v2  ;;  %v3396_v2 = vsel %vm413_vm0, %v3346_v56, 0 }
 0x3ca   : > { %v9139_v21 = vadd.f32 %v2781_v36, %v9031_v59  ;;  %v2571_v38 = vpop.f32.mrf.mxu0  ;;  %v2757_v23 = vpop.f32.mrf.mxu1 }
 0x3cb   : > { %v9142_v57 = vadd.f32 %v2571_v38, %v9034_v28  ;;  %v3345_v3 = vpack.c.b16 %v3329_v62, %v3329_v62  ;;  %v3685_v47 = vpop.permute.xlu1 %3684 }
 0x3cd   : > { %7582 = vmatmul.msk.bf16.vlgmr.msra.gmra.mxu0 %vm409_vm1, %v9009_v44  ;;  %v3326_v44 = vunpack.c.h.b16 %v3304_v32 }
 0x3ce   : > { %3496 = vmatpush.bf16.msra.mxu0 %v3372_v50  ;;  %v3691_v50 = vpop.permute.xlu0 %3690 }
 0x3cf   : > { %v3342_v46 = vpack.c.b16 %v3326_v44, %v3326_v44 }
 0x3d0   : > { %v2770_v17 = vpop.f32.mrf.mxu2 }
 0x3d1   : > { %v2783_v24 = vpop.f32.mrf.mxu3  ;;  %v3384_v33 = vsel %vm413_vm0, %v3342_v46, 0 }
 0x3d2   : > { %v2573_v59 = vpop.f32.mrf.mxu0  ;;  %v2807_v10 = vpop.f32.mrf.mxu1  ;;  %v3715_v24 = vsel %vm1647_vm7, %v3687_v37, %v3689_v25 }
 0x3d3   : > { %v9148_v28 = vadd.f32 %v2807_v10, %v9042_v48  ;;  %v3393_v48 = vsel %vm413_vm0, %v3345_v3, 0  ;;  %v3716_v10 = vsel %vm1647_vm7, %v3689_v25, %v3691_v50  ;;  %v3745_v35 = vsel %vm413_vm0, %v3715_v24, 0  ;;  %v3695_v3 = vpop.permute.xlu2 %3694  ;;  %v3699_v8 = vpop.permute.xlu1 %3698 }
 0x3d4   : > { %v3748_v44 = vsel %vm413_vm0, %v3716_v10, 0 }
 0x3d5   : > { %7588 = vmatmul.msk.bf16.vlgmr.msrb.gmra.mxu1 %vm409_vm1, %v9119_v58  ;;  %7589 = vmatmul.msk.bf16.vlgmr.msrb.gmra.mxu2 %vm409_vm1, %v9119_v58 }
 0x3d6   : > { %7590 = vmatmul.msk.bf16.vlgmr.msrb.gmra.mxu3 %vm409_vm1, %v9119_v58  ;;  %3561 = vmatpush.bf16.msrb.mxu1 %v3387_v60  ;;  %v3713_v60 = vsel %vm1647_vm7, %v3683_v29, %v3685_v47  ;;  %v3697_v46 = vpop.permute.xlu0 %3696 }
 0x3d7   : > { %3574 = vmatpush.bf16.msrb.mxu2 %v3390_v30  ;;  %3587 = vmatpush.bf16.msrb.mxu3 %v3393_v48 }
 0x3d8   : > { %v2820_v51 = vpop.f32.mrf.mxu2 }
 0x3d9   : > { %v2833_v7 = vpop.f32.mrf.mxu3  ;;  %v9160_v5 = vadd.f32 %v2820_v51, %v9056_v13 }
 0x3da   : > { %v9163_v15 = vadd.f32 %v2833_v7, %v9059_v42  ;;  %v2794_v9 = vpop.f32.mrf.mxu0  ;;  %v2809_v18 = vpop.f32.mrf.mxu1  ;;  %v3710_v42 = vsel %vm1647_vm7, %v3677_v45, %v3679_v1 }
 0x3db   : > { %v9166_v26 = vadd.f32 %v2794_v9, %v9062_v20  ;;  %v3730_v40 = vsel %vm413_vm0, %v3710_v42, 0  ;;  %v3739_v18 = vsel %vm413_vm0, %v3713_v60, 0  ;;  %v3705_v25 = vpop.permute.xlu1 %3704 }
 0x3dd   : > { %7587 = vmatmul.msk.bf16.vlgmr.msrb.gmra.mxu0 %vm409_vm1, %v9119_v58 }
 0x3de   : > { %3548 = vmatpush.bf16.msrb.mxu0 %v3384_v33  ;;  %v3693_v33 = vpop.permute.xlu2 %3692  ;;  %v3703_v42 = vpop.permute.xlu0 %3702 }
 0x3e0   : > { %v2822_v32 = vpop.f32.mrf.mxu2 }
 0x3e1   : > { %v2835_v13 = vpop.f32.mrf.mxu3 }
 0x3e2   : > { %v2796_v53 = vpop.f32.mrf.mxu0  ;;  %v2859_v55 = vpop.f32.mrf.mxu1  ;;  %v3718_v13 = vsel %vm1647_vm7, %v3693_v33, %v3695_v3 }
 0x3e3   : > { %v9174_v20 = vadd.f32 %v2859_v55, %v9068_v12  ;;  %v3736_v12 = vsel %vm413_vm0, %v3712_v41, 0  ;;  %v3720_v55 = vsel %vm1647_vm7, %v3697_v46, %v3699_v8  ;;  %v3754_v41 = vsel %vm413_vm0, %v3718_v13, 0 }
 0x3e4   : > { %v3760_v52 = vsel %vm413_vm0, %v3720_v55, 0 }
 0x3e5   : > { %7592 = vmatmul.msk.bf16.vlgmr.msra.gmra.mxu1 %vm409_vm1, %v9119_v58  ;;  %7593 = vmatmul.msk.bf16.vlgmr.msra.gmra.mxu2 %vm409_vm1, %v9119_v58 }
 0x3e6   : > { %7594 = vmatmul.msk.bf16.vlgmr.msra.gmra.mxu3 %vm409_vm1, %v9119_v58  ;;  %3784 = vmatpush.bf16.msra.mxu1 %v3730_v40 }
 0x3e7   : > { %3797 = vmatpush.bf16.msra.mxu2 %v3733_v27  ;;  %3810 = vmatpush.bf16.msra.mxu3 %v3736_v12  ;;  %v3717_v27 = vsel %vm1647_vm7, %v3691_v50, %v3693_v33 }
 0x3e8   : > { %v2872_v19 = vpop.f32.mrf.mxu2 }
 0x3e9   : > { %v2885_v0 = vpop.f32.mrf.mxu3  ;;  %v9187_v31 = vadd.f32 %v2872_v19, %v9081_v49 }
 0x3ea   : > { %v9190_v36 = vadd.f32 %v2885_v0, %v9084_v39  ;;  %v2846_v4 = vpop.f32.mrf.mxu0  ;;  %v2861_v38 = vpop.f32.mrf.mxu1  ;;  %v4001_v39 = vld [vmem:[%s10909_s6] sm:$0xf] }
 0x3eb   : > { %v9193_v23 = vadd.f32 %v2846_v4, %v9087_v16  ;;  %4004 = vperm.xlu1 %7797, %v4001_v39   ;;  %v3714_v16 = vsel %vm1647_vm7, %v3685_v47, %v3687_v37  ;;  %v3751_v4 = vsel %vm413_vm0, %v3717_v27, 0  ;;  %v3701_v38 = vpop.permute.xlu0 %3700 }
 0x3ec   : > { %v3742_v22 = vsel %vm413_vm0, %v3714_v16, 0  ;;  %v3721_v24 = vsel %vm1647_vm7, %v3699_v8, %v3701_v38 }
 0x3ed   : > { %7591 = vmatmul.msk.bf16.vlgmr.msra.gmra.mxu0 %vm409_vm1, %v9119_v58 }
 0x3ee   : > { %3600 = vmatpush.bf16.msra.mxu0 %v3396_v2  ;;  %v3707_v2 = vpop.permute.xlu2 %3706 }
 0x3ef   : > { %v3724_v39 = vsel %vm1647_vm7, %v3705_v25, %v3707_v2 }
 0x3f0   : > { %v2874_v6 = vpop.f32.mrf.mxu2 }
 0x3f1   : > { %v2887_v49 = vpop.f32.mrf.mxu3 }
 0x3f2   : > { %v2848_v62 = vpop.f32.mrf.mxu0  ;;  %v2911_v17 = vpop.f32.mrf.mxu1  ;;  %v3723_v49 = vsel %vm1647_vm7, %v3703_v42, %v3705_v25 }
 0x3f3   : > { %v9204_v59 = vadd.f32 %v2911_v17, %v9093_v61  ;;  %v3769_v62 = vsel %vm413_vm0, %v3723_v49, 0  ;;  %v3772_v17 = vsel %vm413_vm0, %v3724_v39, 0 }
 0x3f5   : > { %7596 = vmatmul.msk.bf16.vlgmr.msrb.gmra.mxu1 %vm409_vm1, %v9119_v58  ;;  %7597 = vmatmul.msk.bf16.vlgmr.msrb.gmra.mxu2 %vm409_vm1, %v9119_v58 }
 0x3f6   : > { %7598 = vmatmul.msk.bf16.vlgmr.msrb.gmra.mxu3 %vm409_vm1, %v9119_v58  ;;  %3836 = vmatpush.bf16.msrb.mxu1 %v3742_v22 }
 0x3f7   : > { %3849 = vmatpush.bf16.msrb.mxu2 %v3745_v35  ;;  %3862 = vmatpush.bf16.msrb.mxu3 %v3748_v44 }
 0x3f8   : > { %v2924_v61 = vpop.f32.mrf.mxu2 }
 0x3f9   : > { %v2937_v1 = vpop.f32.mrf.mxu3  ;;  %v9218_v30 = vadd.f32 %v2924_v61, %v9105_v43  ;;  %v3763_v61 = vsel %vm413_vm0, %v3721_v24, 0 }
 0x3fa   : > { %v9221_v48 = vadd.f32 %v2937_v1, %v9108_v14  ;;  %v2898_v51 = vpop.f32.mrf.mxu0  ;;  %v2913_v7 = vpop.f32.mrf.mxu1  ;;  %v9232_v14 = vld [vmem:[%s10908_s5 + $0x10] sm:$0x3] }
 0x3fb   : > { %v9224_v9 = vadd.f32 %v2898_v51, %v9111_v54  ;;  %v3719_v54 = vsel %vm1647_vm7, %v3695_v3, %v3697_v46 }
 0x3fc   : > { %v3757_v63 = vsel %vm413_vm0, %v3719_v54, 0 }
 0x3fd   : > { %7595 = vmatmul.msk.bf16.vlgmr.msrb.gmra.mxu0 %vm409_vm1, %v9119_v58 }
 0x3fe   : > { %3823 = vmatpush.bf16.msrb.mxu0 %v3739_v18 }
 0x400   : > { %v2926_v45 = vpop.f32.mrf.mxu2 }
 0x401   : > { %v2939_v43 = vpop.f32.mrf.mxu3 }
 0x402   : > { %v2900_v29 = vpop.f32.mrf.mxu0  ;;  %v3082_v32 = vpop.f32.mrf.mxu1 }
 0x403   : > { %v9237_v53 = vadd.f32 %v3082_v32, %v9122_v11 }
 0x405   : > { %7601 = vmatmul.msk.bf16.vlgmr.msra.gmra.mxu1 %vm409_vm1, %v9232_v14  ;;  %7602 = vmatmul.msk.bf16.vlgmr.msra.gmra.mxu2 %vm409_vm1, %v9232_v14 }
 0x406   : > { %7603 = vmatmul.msk.bf16.vlgmr.msra.gmra.mxu3 %vm409_vm1, %v9232_v14  ;;  %3888 = vmatpush.bf16.msra.mxu1 %v3754_v41 }
 0x407   : > { %3901 = vmatpush.bf16.msra.mxu2 %v3757_v63  ;;  %3914 = vmatpush.bf16.msra.mxu3 %v3760_v52 }
 0x408   : > { %v3095_v11 = vpop.f32.mrf.mxu2 }
 0x409   : > { %v3108_v40 = vpop.f32.mrf.mxu3  ;;  %v9251_v37 = vadd.f32 %v3095_v11, %v9136_v34 }
 0x40a   : > { %v9254_v12 = vadd.f32 %v3108_v40, %v9139_v21  ;;  %v2950_v19 = vpop.f32.mrf.mxu0  ;;  %v3084_v0 = vpop.f32.mrf.mxu1  ;;  %v3722_v21 = vsel %vm1647_vm7, %v3701_v38, %v3703_v42 }
 0x40b   : > { %v9257_v56 = vadd.f32 %v2950_v19, %v9142_v57 }
 0x40d   : > { %7599 = vmatmul.msk.bf16.vlgmr.msra.gmra.mxu0 %vm409_vm1, %v9119_v58  ;;  %v3766_v58 = vsel %vm413_vm0, %v3722_v21, 0 }
 0x40e   : > { %3875 = vmatpush.bf16.msra.mxu0 %v3751_v4 }
 0x410   : > { %v3097_v50 = vpop.f32.mrf.mxu2 }
 0x411   : > { %v3110_v34 = vpop.f32.mrf.mxu3 }
 0x412   : > { %v2952_v47 = vpop.f32.mrf.mxu0  ;;  %v3134_v6 = vpop.f32.mrf.mxu1 }
 0x413   : > { %v9265_v57 = vadd.f32 %v3134_v6, %v9148_v28 }
 0x415   : > { %7605 = vmatmul.msk.bf16.vlgmr.msrb.gmra.mxu1 %vm409_vm1, %v9232_v14  ;;  %7606 = vmatmul.msk.bf16.vlgmr.msrb.gmra.mxu2 %vm409_vm1, %v9232_v14 }
 0x416   : > { %7607 = vmatmul.msk.bf16.vlgmr.msrb.gmra.mxu3 %vm409_vm1, %v9232_v14  ;;  %3940 = vmatpush.bf16.msrb.mxu1 %v3766_v58 }
 0x417   : > { %3953 = vmatpush.bf16.msrb.mxu2 %v3769_v62  ;;  %3966 = vmatpush.bf16.msrb.mxu3 %v3772_v17 }
 0x418   : > { %v3147_v28 = vpop.f32.mrf.mxu2 }
 0x419   : > { %v3160_v16 = vpop.f32.mrf.mxu3  ;;  %v3286_v10 = vadd.f32 %v3147_v28, %v9160_v5  ;;  %v3709_v5 = vpop.permute.xlu2 %3708 }
 0x41a   : > { %v3287_v22 = vadd.f32 %v3160_v16, %v9163_v15  ;;  %v3121_v35 = vpop.f32.mrf.mxu0  ;;  %v3136_v3 = vpop.f32.mrf.mxu1  ;;  %v3725_v18 = vsel %vm1647_vm7, %v3707_v2, %v3709_v5 }
 0x41b   : > { %v3284_v44 = vadd.f32 %v3121_v35, %v9166_v26  ;;  %v3775_v29 = vsel %vm413_vm0, %v3725_v18, 0  ;;  %v7799_v35 = vld [vmem:[#allocation2] sm:$0xff]  ;;  %vm7282_vm0 = vcmask 911104  }
 0x41c   : > { %358 = vst.msk [vmem:[#allocation3 + $0x4] sm:$0x3] %vm357_vm8, %v7799_v35 }
 0x41d   : > { %7604 = vmatmul.msk.bf16.vlgmr.msrb.gmra.mxu0 %vm409_vm1, %v9232_v14  ;;  %360 = vst.msk [vmem:[#allocation3 + $0x6] sm:$0x3] %vm357_vm8, %v7799_v35 }
 0x41e   : > { %3927 = vmatpush.bf16.msrb.mxu0 %v3763_v61  ;;  %362 = vst.msk [vmem:[#allocation3 + $0x8] sm:$0x3] %vm357_vm8, %v7799_v35 }
 0x41f   : > { %364 = vst.msk [vmem:[#allocation3 + $0xa] sm:$0x3] %vm357_vm8, %v7799_v35 }
 0x420   : > { %v3149_v1 = vpop.f32.mrf.mxu2  ;;  %366 = vst.msk [vmem:[#allocation3 + $0xc] sm:$0x3] %vm357_vm8, %v7799_v35 }
 0x421   : > { %v3162_v60 = vpop.f32.mrf.mxu3  ;;  %368 = vst.msk [vmem:[#allocation3 + $0xe] sm:$0x3] %vm357_vm8, %v7799_v35 }
 0x422   : > { %v3123_v51 = vpop.f32.mrf.mxu0  ;;  %v3186_v7 = vpop.f32.mrf.mxu1  ;;  %370 = vst.msk [vmem:[#allocation3 + $0x10] sm:$0x3] %vm357_vm8, %v7799_v35 }
 0x423   : > { %v9285_v46 = vadd.f32 %v3186_v7, %v9174_v20  ;;  %372 = vst.msk [vmem:[#allocation3 + $0x12] sm:$0x3] %vm357_vm8, %v7799_v35 }
 0x424   : > { %374 = vst.msk [vmem:[#allocation3 + $0x14] sm:$0x3] %vm357_vm8, %v7799_v35 }
 0x425   : > { %7609 = vmatmul.msk.bf16.vlgmr.msra.gmra.mxu1 %vm409_vm1, %v9232_v14  ;;  %7610 = vmatmul.msk.bf16.vlgmr.msra.gmra.mxu2 %vm409_vm1, %v9232_v14  ;;  %376 = vst.msk [vmem:[#allocation3 + $0x16] sm:$0x3] %vm357_vm8, %v7799_v35 }
 0x426   : > { %7611 = vmatmul.msk.bf16.vlgmr.msra.gmra.mxu3 %vm409_vm1, %v9232_v14  ;;  %378 = vst.msk [vmem:[#allocation3 + $0x18] sm:$0x3] %vm357_vm8, %v7799_v35 }
 0x427   : > { %380 = vst.msk [vmem:[#allocation3 + $0x1a] sm:$0x3] %vm357_vm8, %v7799_v35 }
 0x428   : > { %v3199_v15 = vpop.f32.mrf.mxu2  ;;  %382 = vst.msk [vmem:[#allocation3 + $0x1c] sm:$0x3] %vm357_vm8, %v7799_v35 }
 0x429   : > { %v3212_v26 = vpop.f32.mrf.mxu3  ;;  %v9295_v8 = vadd.f32 %v3199_v15, %v9187_v31  ;;  %384 = vst.msk [vmem:[#allocation3 + $0x1e] sm:$0x3] %vm357_vm8, %v7799_v35 }
 0x42a   : > { %v9298_v20 = vadd.f32 %v3212_v26, %v9190_v36  ;;  %v3173_v33 = vpop.f32.mrf.mxu0  ;;  %v3188_v45 = vpop.f32.mrf.mxu1  ;;  %386 = vst.msk [vmem:[#allocation3 + $0x20] sm:$0x3] %vm357_vm8, %v7799_v35 }
 0x42b   : > { %v9301_v43 = vadd.f32 %v3173_v33, %v9193_v23  ;;  %388 = vst.msk [vmem:[#allocation3 + $0x22] sm:$0x3] %vm357_vm8, %v7799_v35 }
 0x42d   : > { %7608 = vmatmul.msk.bf16.vlgmr.msra.gmra.mxu0 %vm409_vm1, %v9232_v14 }
 0x42e   : > { %3979 = vmatpush.bf16.msra.mxu0 %v3775_v29 }
 0x430   : > { %v3201_v32 = vpop.f32.mrf.mxu2 }
 0x431   : > { %v3214_v54 = vpop.f32.mrf.mxu3 }
 0x432   : > { %v3175_v13 = vpop.f32.mrf.mxu0  ;;  %v3238_v55 = vpop.f32.mrf.mxu1 }
 0x433   : > { %v9307_v31 = vadd.f32 %v3238_v55, %v9204_v59 }
 0x435   : > { %7613 = vmatmul.msk.bf16.vlgmr.msrb.gmra.mxu1 %vm409_vm1, %v9232_v14  ;;  %7614 = vmatmul.msk.bf16.vlgmr.msrb.gmra.mxu2 %vm409_vm1, %v9232_v14 }
 0x436   : > { %7615 = vmatmul.msk.bf16.vlgmr.msrb.gmra.mxu3 %vm409_vm1, %v9232_v14 }
 0x438   : > { %v3251_v36 = vpop.f32.mrf.mxu2 }
 0x439   : > { %v3264_v23 = vpop.f32.mrf.mxu3  ;;  %v9316_v42 = vadd.f32 %v3251_v36, %v9218_v30 }
 0x43a   : > { %v9319_v63 = vadd.f32 %v3264_v23, %v9221_v48  ;;  %v3225_v41 = vpop.f32.mrf.mxu0  ;;  %v3240_v59 = vpop.f32.mrf.mxu1 }
 0x43b   : > { %v9322_v52 = vadd.f32 %v3225_v41, %v9224_v9 }
 0x43d   : > { %7612 = vmatmul.msk.bf16.vlgmr.msrb.gmra.mxu0 %vm409_vm1, %v9232_v14 }
 0x440   : > { %v3253_v11 = vpop.f32.mrf.mxu2 }
 0x441   : > { %v3266_v40 = vpop.f32.mrf.mxu3 }
 0x442   : > { %v3227_v27 = vpop.f32.mrf.mxu0  ;;  %v3407_v19 = vpop.f32.mrf.mxu1 }
 0x443   : > { %v3606_v15 = vadd.f32 %v3407_v19, %v9237_v53 }
 0x448   : > { %v3420_v0 = vpop.f32.mrf.mxu2 }
 0x449   : > { %v3433_v4 = vpop.f32.mrf.mxu3  ;;  %v3607_v13 = vadd.f32 %v3420_v0, %v9251_v37 }
 0x44a   : > { %v3277_v38 = vpop.f32.mrf.mxu0  ;;  %v3409_v30 = vpop.f32.mrf.mxu1  ;;  %v3608_v55 = vadd.f32 %v3433_v4, %v9254_v12 }
 0x44b   : > { %v9327_v25 = vadd.f32 %v3277_v38, %v9257_v56 }
 0x44d   : > { %7616 = vmatmul.msk.bf16.vlgmr.msra.gmra.mxu0 %vm409_vm1, %v9232_v14  ;;  %vm7294_vm1 = vcmask 1042304  }
 0x450   : > { %v3422_v48 = vpop.f32.mrf.mxu2 }
 0x451   : > { %v3435_v9 = vpop.f32.mrf.mxu3 }
 0x452   : > { %v3279_v2 = vpop.f32.mrf.mxu0  ;;  %v9331_v50 = vpop.f32.mrf.mxu1 }
 0x453   : > { %v3610_v4 = vadd.f32 %v9331_v50, %v9265_v57 }
 0x458   : > { %v3472_v34 = vpop.f32.mrf.mxu2 }
 0x459   : > { %v3485_v47 = vpop.f32.mrf.mxu3  ;;  %v9333_v6 = vadd.f32 %v3472_v34, %v3286_v10 }
 0x45a   : > { %v9335_v21 = vadd.f32 %v3485_v47, %v3287_v22  ;;  %v3446_v49 = vpop.f32.mrf.mxu0  ;;  %v3461_v39 = vpop.f32.mrf.mxu1 }
 0x45b   : > { %v9337_v58 = vadd.f32 %v3446_v49, %v3284_v44 }
 0x45d   : > { %v9371_v5 = vpop.permute.xlu1 %4004 }
 0x460   : > { %v3474_v56 = vpop.f32.mrf.mxu2 }
 0x461   : > { %v3487_v62 = vpop.f32.mrf.mxu3 }
 0x462   : > { %v3448_v17 = vpop.f32.mrf.mxu0  ;;  %v9339_v28 = vpop.f32.mrf.mxu1 }
 0x468   : > { %v9341_v14 = vpop.f32.mrf.mxu2 }
 0x469   : > { %v9343_v16 = vpop.f32.mrf.mxu3 }
 0x46a   : > { %v9345_v24 = vpop.f32.mrf.mxu0  ;;  %v3513_v10 = vpop.f32.mrf.mxu1 }
 0x470   : > { %v3526_v22 = vpop.f32.mrf.mxu2 }
 0x471   : > { %v3539_v3 = vpop.f32.mrf.mxu3 }
 0x472   : > { %v3500_v44 = vpop.f32.mrf.mxu0  ;;  %v9355_v61 = vpop.f32.mrf.mxu1 }
 0x478   : > { %v9364_v1 = vpop.f32.mrf.mxu2 }
 0x479   : > { %v9366_v60 = vpop.f32.mrf.mxu3 }
 0x47a   : > { %v9369_v51 = vpop.f32.mrf.mxu0  ;;  %v3565_v7 = vpop.f32.mrf.mxu1 }
 0x480   : > { %v3578_v26 = vpop.f32.mrf.mxu2 }
 0x481   : > { %v3591_v18 = vpop.f32.mrf.mxu3 }
 0x482   : > { %v3552_v33 = vpop.f32.mrf.mxu0  ;;  %v3786_v45 = vpop.f32.mrf.mxu1 }
 0x483   : > { %v3985_v29 = vadd.f32 %v3786_v45, %v3606_v15 }
 0x485   : > { %v4007_v32 = vadd.f32 %v9371_v5, %v3985_v29 }
 0x487   : > { %v4023_v54 = vmax.f32 %v4007_v32, 0.0 }
 0x488   : > { %v3799_v23 = vpop.f32.mrf.mxu2 }
 0x489   : > { %v4039_v36 = vpack.c.bf16 %v4023_v54, %v4023_v54  ;;  %v3812_v41 = vpop.f32.mrf.mxu3  ;;  %v3986_v59 = vadd.f32 %v3799_v23, %v3607_v13 }
 0x48a   : > { %v3987_v11 = vadd.f32 %v3812_v41, %v3608_v55  ;;  %v3602_v40 = vpop.f32.mrf.mxu0  ;;  %v3788_v27 = vpop.f32.mrf.mxu1 }
 0x48b   : > { %4040 = vst.msk [vmem:[#allocation3 + $0x4] sm:$0x3] %vm479_vm5, %v4039_v36  ;;  %v9379_v53 = vadd.f32 %v3602_v40, %v9327_v25  ;;  %v4008_v19 = vadd.f32 %v9371_v5, %v3986_v59 }
 0x48c   : > { %v4009_v38 = vadd.f32 %v9371_v5, %v3987_v11 }
 0x48d   : > { %v4024_v30 = vmax.f32 %v4008_v19, 0.0  ;;  %v3615_v19 = vadd.f32 %v9341_v14, %v9295_v8 }
 0x48e   : > { %v4025_v37 = vmax.f32 %v4009_v38, 0.0  ;;  %v3616_v38 = vadd.f32 %v9343_v16, %v9298_v20 }
 0x48f   : > { %v4041_v0 = vpack.c.bf16 %v4024_v30, %v4024_v30  ;;  %v3613_v30 = vadd.f32 %v9345_v24, %v9301_v43 }
 0x490   : > { %v4043_v12 = vpack.c.bf16 %v4025_v37, %v4025_v37  ;;  %v3801_v48 = vpop.f32.mrf.mxu2 }
 0x491   : > { %v3814_v9 = vpop.f32.mrf.mxu3  ;;  %4042 = vst.msk [vmem:[#allocation3 + $0x6] sm:$0x3] %vm479_vm5, %v4041_v0 }
 0x492   : > { %v3604_v2 = vpop.f32.mrf.mxu0  ;;  %v3838_v34 = vpop.f32.mrf.mxu1  ;;  %4044 = vst.msk [vmem:[#allocation3 + $0x8] sm:$0x3] %vm479_vm5, %v4043_v12 }
 0x493   : > { %v3989_v25 = vadd.f32 %v3838_v34, %v3610_v4 }
 0x495   : > { %v4011_v47 = vadd.f32 %v9371_v5, %v3989_v25 }
 0x497   : > { %v4027_v49 = vmax.f32 %v4011_v47, 0.0 }
 0x498   : > { %v3851_v56 = vpop.f32.mrf.mxu2 }
 0x499   : > { %v4047_v39 = vpack.c.bf16 %v4027_v49, %v4027_v49  ;;  %v3864_v62 = vpop.f32.mrf.mxu3  ;;  %v9388_v17 = vld [vmem:[#allocation3 + $0x2] sm:$0xff]  ;;  %v3990_v10 = vadd.f32 %v3851_v56, %v9333_v6 }
 0x49a   : > { %v3991_v57 = vadd.f32 %v3864_v62, %v9335_v21  ;;  %v3825_v50 = vpop.f32.mrf.mxu0  ;;  %v3840_v35 = vpop.f32.mrf.mxu1  ;;  %4084 = vst [vmem:[#allocation1] ss:$4 sm:$0xff] %v9388_v17  ;;  %v3614_v21 = vadd.f32 %v9339_v28, %v9285_v46 }
 0x49b   : > { %v3988_v22 = vadd.f32 %v3825_v50, %v9337_v58  ;;  %4048 = vst.msk [vmem:[#allocation3 + $0xc] sm:$0x3] %vm479_vm5, %v4047_v39  ;;  %v4012_v3 = vadd.f32 %v9371_v5, %v3990_v10  ;;  %v3618_v39 = vadd.f32 %v9355_v61, %v9307_v31 }
 0x49c   : > { %v4013_v44 = vadd.f32 %v9371_v5, %v3991_v57 }
 0x49d   : > { %v4010_v7 = vadd.f32 %v9371_v5, %v3988_v22  ;;  %v4028_v15 = vmax.f32 %v4012_v3, 0.0 }
 0x49e   : > { %v4029_v26 = vmax.f32 %v4013_v44, 0.0 }
 0x49f   : > { %v4026_v18 = vmax.f32 %v4010_v7, 0.0  ;;  %v4049_v6 = vpack.c.bf16 %v4028_v15, %v4028_v15 }
 0x4a0   : > { %v4051_v33 = vpack.c.bf16 %v4029_v26, %v4029_v26  ;;  %v3853_v45 = vpop.f32.mrf.mxu2 }
 0x4a1   : > { %v3866_v29 = vpop.f32.mrf.mxu3  ;;  %v4088_v58 = vld.sshfl [vmem:[#allocation1] sm:$0xff pattern:$0x73625140]  ;;  %v4089_v32 = vld.sshfl [vmem:[#allocation1 + $0x8] sm:$0xff pattern:$0x73625140]  ;;  %v4045_v54 = vpack.c.bf16 %v4026_v18, %v4026_v18 }
 0x4a2   : > { %v3827_v13 = vpop.f32.mrf.mxu0  ;;  %v3890_v55 = vpop.f32.mrf.mxu1  ;;  %v4090_v36 = vld.sshfl [vmem:[#allocation1 + $0x10] sm:$0xff pattern:$0x73625140]  ;;  %v4091_v23 = vld.sshfl [vmem:[#allocation1 + $0x18] sm:$0xff pattern:$0x73625140]  ;;  %v3617_v29 = vadd.f32 %v9369_v51, %v9322_v52 }
 0x4a3   : > { %v3993_v41 = vadd.f32 %v3890_v55, %v3614_v21  ;;  %4050 = vst.msk [vmem:[#allocation3 + $0xe] sm:$0x3] %vm479_vm5, %v4049_v6  ;;  %v4113_v59 = vsel %vm4112_vm9, %v4088_v58, 0  ;;  %v4115_v11 = vsel %vm4112_vm9, %v4089_v32, 0  ;;  %v4117_v46 = vsel %vm4112_vm9, %v4090_v36, 0 }
 0x4a4   : > { %v4119_v28 = vsel %vm4112_vm9, %v4091_v23, 0  ;;  %4052 = vst.msk [vmem:[#allocation3 + $0x10] sm:$0x3] %vm479_vm5, %v4051_v33  ;;  %4152 = vmatpush.bf16.msra.mxu1 %v4113_v59  ;;  %4165 = vmatpush.bf16.msra.mxu2 %v4115_v11  ;;  %v9433_v6 = vld [vmem:[%s10910_s7 + $0x2] sm:$0x3]  ;;  %v3619_v21 = vadd.f32 %v9364_v1, %v9316_v42  ;;  %v3620_v33 = vadd.f32 %v9366_v60, %v9319_v63 }
 0x4a5   : > { %v4015_v40 = vadd.f32 %v9371_v5, %v3993_v41  ;;  %4046 = vst.msk [vmem:[#allocation3 + $0xa] sm:$0x3] %vm479_vm5, %v4045_v54  ;;  %4178 = vmatpush.bf16.msra.mxu3 %v4117_v46  ;;  %4191 = vmatpush.bf16.msrb.mxu0 %v4119_v28 }
 0x4a7   : > { %v4031_v27 = vmax.f32 %v4015_v40, 0.0  ;;  %7618 = vmatmul.msk.bf16.vlgmr.msra.gmra.mxu1 %vm4108_vm10, %v9433_v6  ;;  %7619 = vmatmul.msk.bf16.vlgmr.msra.gmra.mxu2 %vm4108_vm10, %v9433_v6 }
 0x4a8   : > { %v3903_v0 = vpop.f32.mrf.mxu2  ;;  %7620 = vmatmul.msk.bf16.vlgmr.msra.gmra.mxu3 %vm4108_vm10, %v9433_v6  ;;  %7621 = vmatmul.msk.bf16.vlgmr.msrb.gmra.mxu0 %vm4108_vm10, %v9433_v6 }
 0x4a9   : > { %v4055_v37 = vpack.c.bf16 %v4031_v27, %v4031_v27  ;;  %v3916_v12 = vpop.f32.mrf.mxu3  ;;  %v3994_v4 = vadd.f32 %v3903_v0, %v3615_v19 }
 0x4aa   : > { %v3995_v48 = vadd.f32 %v3916_v12, %v3616_v38  ;;  %v3877_v9 = vpop.f32.mrf.mxu0  ;;  %v3892_v2 = vpop.f32.mrf.mxu1 }
 0x4ab   : > { %4056 = vst.msk [vmem:[#allocation3 + $0x14] sm:$0x3] %vm479_vm5, %v4055_v37  ;;  %v3992_v34 = vadd.f32 %v3877_v9, %v3613_v30  ;;  %v4016_v25 = vadd.f32 %v9371_v5, %v3994_v4  ;;  %v4072_v4 = vld [vmem:[#allocation3] sm:$0xff] }
 0x4ac   : > { %v4017_v8 = vadd.f32 %v9371_v5, %v3995_v48  ;;  %v9417_v14 = vld [vmem:[#allocation3 + $0xa] sm:$0xff] }
 0x4ad   : > { %v4014_v20 = vadd.f32 %v9371_v5, %v3992_v34  ;;  %4087 = vst [vmem:[#allocation1 + $0x20] ss:$4 sm:$0xff] %v9417_v14  ;;  %v4032_v43 = vmax.f32 %v4016_v25, 0.0 }
 0x4ae   : > { %v4033_v16 = vmax.f32 %v4017_v8, 0.0 }
 0x4af   : > { %v4030_v24 = vmax.f32 %v4014_v20, 0.0  ;;  %v4057_v47 = vpack.c.bf16 %v4032_v43, %v4032_v43 }
 0x4b0   : > { %v4059_v49 = vpack.c.bf16 %v4033_v16, %v4033_v16  ;;  %v3905_v62 = vpop.f32.mrf.mxu2 }
 0x4b1   : > { %v4053_v56 = vpack.c.bf16 %v4030_v24, %v4030_v24  ;;  %v3918_v10 = vpop.f32.mrf.mxu3  ;;  %4058 = vst.msk [vmem:[#allocation3 + $0x16] sm:$0x3] %vm479_vm5, %v4057_v47 }
 0x4b2   : > { %v3879_v57 = vpop.f32.mrf.mxu0  ;;  %v3942_v50 = vpop.f32.mrf.mxu1  ;;  %4060 = vst.msk [vmem:[#allocation3 + $0x18] sm:$0x3] %vm479_vm5, %v4059_v49 }
 0x4b3   : > { %v3997_v35 = vadd.f32 %v3942_v50, %v3618_v39  ;;  %4054 = vst.msk [vmem:[#allocation3 + $0x12] sm:$0x3] %vm479_vm5, %v4053_v56  ;;  %v4073_v39 = vld [vmem:[#allocation3 + $0x8] sm:$0xff] }
 0x4b4   : > { %v4092_v22 = vld.sshfl [vmem:[#allocation1 + $0x20] sm:$0xff pattern:$0x73625140]  ;;  %v4093_v3 = vld.sshfl [vmem:[#allocation1 + $0x28] sm:$0xff pattern:$0x73625140] }
 0x4b5   : > { %v4019_v44 = vadd.f32 %v9371_v5, %v3997_v35  ;;  %v4094_v7 = vld.sshfl [vmem:[#allocation1 + $0x30] sm:$0xff pattern:$0x73625140]  ;;  %v4095_v15 = vld.sshfl [vmem:[#allocation1 + $0x38] sm:$0xff pattern:$0x73625140] }
 0x4b6   : > { %v4121_v31 = vsel %vm4112_vm9, %v4092_v22, 0  ;;  %v4123_v61 = vsel %vm4112_vm9, %v4093_v3, 0  ;;  %v4125_v18 = vsel %vm4112_vm9, %v4094_v7, 0  ;;  %v4127_v45 = vsel %vm4112_vm9, %v4095_v15, 0 }
 0x4b7   : > { %v4035_v26 = vmax.f32 %v4019_v44, 0.0  ;;  %4204 = vmatpush.bf16.msrb.mxu1 %v4121_v31  ;;  %4217 = vmatpush.bf16.msrb.mxu2 %v4123_v61 }
 0x4b8   : > { %4230 = vmatpush.bf16.msrb.mxu3 %v4125_v18  ;;  %4243 = vmatpush.bf16.msra.mxu0 %v4127_v45  ;;  %v3955_v32 = vpop.f32.mrf.mxu2 }
 0x4b9   : > { %v4063_v58 = vpack.c.bf16 %v4035_v26, %v4035_v26  ;;  %v3968_v54 = vpop.f32.mrf.mxu3  ;;  %v3998_v13 = vadd.f32 %v3955_v32, %v3619_v21 }
 0x4ba   : > { %v3999_v55 = vadd.f32 %v3968_v54, %v3620_v33  ;;  %v3929_v36 = vpop.f32.mrf.mxu0  ;;  %v3944_v42 = vpop.f32.mrf.mxu1  ;;  %v9446_v63 = vld [vmem:[#allocation3 + $0x12] sm:$0xff]  ;;  %7622 = vmatmul.msk.bf16.vlgmr.msrb.gmra.mxu1 %vm4108_vm10, %v9433_v6  ;;  %7623 = vmatmul.msk.bf16.vlgmr.msrb.gmra.mxu2 %vm4108_vm10, %v9433_v6 }
 0x4bb   : > { %4064 = vst.msk [vmem:[#allocation3 + $0x1c] sm:$0x3] %vm479_vm5, %v4063_v58  ;;  %v3996_v52 = vadd.f32 %v3929_v36, %v3617_v29  ;;  %v4020_v1 = vadd.f32 %v9371_v5, %v3998_v13  ;;  %7624 = vmatmul.msk.bf16.vlgmr.msrb.gmra.mxu3 %vm4108_vm10, %v9433_v6  ;;  %7625 = vmatmul.msk.bf16.vlgmr.msra.gmra.mxu0 %vm4108_vm10, %v9433_v6  ;;  %v4074_v49 = vld [vmem:[#allocation3 + $0x10] sm:$0xff] }
 0x4bc   : > { %4097 = vst [vmem:[#allocation1] ss:$4 sm:$0xff] %v9446_v63  ;;  %v4021_v60 = vadd.f32 %v9371_v5, %v3999_v55 }
 0x4bd   : > { %v4018_v51 = vadd.f32 %v9371_v5, %v3996_v52  ;;  %v4036_v23 = vmax.f32 %v4020_v1, 0.0 }
 0x4be   : > { %v4037_v41 = vmax.f32 %v4021_v60, 0.0 }
 0x4bf   : > { %v4034_v59 = vmax.f32 %v4018_v51, 0.0  ;;  %v4065_v11 = vpack.c.bf16 %v4036_v23, %v4036_v23 }
 0x4c0   : > { %v4067_v46 = vpack.c.bf16 %v4037_v41, %v4037_v41  ;;  %v3957_v40 = vpop.f32.mrf.mxu2 }
 0x4c1   : > { %v4061_v28 = vpack.c.bf16 %v4034_v59, %v4034_v59  ;;  %v3970_v27 = vpop.f32.mrf.mxu3  ;;  %4066 = vst.msk [vmem:[#allocation3 + $0x1e] sm:$0x3] %vm479_vm5, %v4065_v11 }
 0x4c2   : > { %v3931_v19 = vpop.f32.mrf.mxu0  ;;  %4068 = vst.msk [vmem:[#allocation3 + $0x20] sm:$0x3] %vm479_vm5, %v4067_v46 }
 0x4c3   : > { %v4100_v38 = vld.sshfl [vmem:[#allocation1] sm:$0xff pattern:$0x73625140]  ;;  %4062 = vst.msk [vmem:[#allocation3 + $0x1a] sm:$0x3] %vm479_vm5, %v4061_v28 }
 0x4c4   : > { %v4129_v30 = vsel %vm4112_vm9, %v4100_v38, 0  ;;  %v4101_v37 = vld.sshfl [vmem:[#allocation1 + $0x8] sm:$0xff pattern:$0x73625140] }
 0x4c5   : > { %4256 = vmatpush.bf16.msra.mxu1 %v4129_v30  ;;  %v4131_v0 = vsel %vm4112_vm9, %v4101_v37, 0  ;;  %v4102_v12 = vld.sshfl [vmem:[#allocation1 + $0x10] sm:$0xff pattern:$0x73625140] }
 0x4c6   : > { %4269 = vmatpush.bf16.msra.mxu2 %v4131_v0  ;;  %v4133_v48 = vsel %vm4112_vm9, %v4102_v12, 0  ;;  %v4103_v9 = vld.sshfl [vmem:[#allocation1 + $0x18] sm:$0xff pattern:$0x73625140] }
 0x4c7   : > { %4282 = vmatpush.bf16.msra.mxu3 %v4133_v48  ;;  %v4135_v2 = vsel %vm4112_vm9, %v4103_v9, 0  ;;  %4354 = vst [vmem:[#allocation1] ss:$4 sm:$0xff] %v4072_v4 }
 0x4c8   : > { %4295 = vmatpush.bf16.msrb.mxu0 %v4135_v2  ;;  %v5464_v2 = vld [vmem:[#allocation3 + $0xc] sm:$0xff] }
 0x4c9   : > { %v4076_v7 = vld [vmem:[#allocation3 + $0x20] sm:$0x3] }
 0x4ca   : > { %v3981_v34 = vpop.f32.mrf.mxu0  ;;  %v9468_v25 = vld [vmem:[#allocation3 + $0x1a] sm:$0xff]  ;;  %7627 = vmatmul.msk.bf16.vlgmr.msra.gmra.mxu2 %vm4108_vm10, %v9433_v6  ;;  %7626 = vmatmul.msk.bf16.vlgmr.msra.gmra.mxu1 %vm4108_vm10, %v9433_v6 }
 0x4cb   : > { %v4000_v8 = vadd.f32 %v3981_v34, %v9379_v53  ;;  %4099 = vst [vmem:[#allocation1 + $0x20] ss:$4 sm:$0xff] %v9468_v25  ;;  %v4075_v18 = vld [vmem:[#allocation3 + $0x18] sm:$0xff]  ;;  %7628 = vmatmul.msk.bf16.vlgmr.msra.gmra.mxu3 %vm4108_vm10, %v9433_v6  ;;  %7629 = vmatmul.msk.bf16.vlgmr.msrb.gmra.mxu0 %vm4108_vm10, %v9433_v6 }
 0x4cd   : > { %v4022_v20 = vadd.f32 %v9371_v5, %v4000_v8 }
 0x4ce   : > { %v4364_v43 = vld.sshfl [vmem:[#allocation1 + $0x18] sm:$0xff pattern:$0x73625140]  ;;  %v4362_v16 = vld.sshfl [vmem:[#allocation1 + $0x10] sm:$0xff pattern:$0x73625140] }
 0x4cf   : > { %v4038_v24 = vmax.f32 %v4022_v20, 0.0  ;;  %4404 = vrot.lane.b32.xlu2 %v4364_v43, %s7820_s10  ;;  %4402 = vrot.lane.b32.xlu1 %v4362_v16, %s7820_s10  ;;  %v4360_v47 = vld.sshfl [vmem:[#allocation1 + $0x8] sm:$0xff pattern:$0x73625140] }
 0x4d0   : > { %4400 = vrot.lane.b32.xlu0 %v4360_v47, %s7820_s10  ;;  %v4358_v53 = vld.sshfl [vmem:[#allocation1] sm:$0xff pattern:$0x73625140] }
 0x4d1   : > { %4375 = vst [vmem:[#allocation1] ss:$4 sm:$0xff] %v4074_v49  ;;  %v4069_v56 = vpack.c.bf16 %v4038_v24, %v4038_v24 }
 0x4d2   : > { %v3983_v62 = vpop.f32.mrf.mxu0  ;;  %v4104_v10 = vld.sshfl [vmem:[#allocation1 + $0x20] sm:$0xff pattern:$0x73625140]  ;;  %v4105_v57 = vld.sshfl [vmem:[#allocation1 + $0x28] sm:$0xff pattern:$0x73625140] }
 0x4d3   : > { %v4106_v50 = vld.sshfl [vmem:[#allocation1 + $0x30] sm:$0xff pattern:$0x73625140]  ;;  %v4107_v5 = vld.sshfl [vmem:[#allocation1 + $0x38] sm:$0xff pattern:$0x73625140] }
 0x4d4   : > { %4357 = vst [vmem:[#allocation1 + $0x20] ss:$4 sm:$0xff] %v4073_v39  ;;  %v4137_v35 = vsel %vm4112_vm9, %v4104_v10, 0  ;;  %v4139_v22 = vsel %vm4112_vm9, %v4105_v57, 0  ;;  %v4141_v3 = vsel %vm4112_vm9, %v4106_v50, 0  ;;  %v4143_v44 = vsel %vm4112_vm9, %v4107_v5, 0 }
 0x4d5   : > { %4070 = vst.msk [vmem:[#allocation3 + $0x22] sm:$0x3] %vm479_vm5, %v4069_v56  ;;  %4308 = vmatpush.bf16.msrb.mxu1 %v4137_v35  ;;  %4321 = vmatpush.bf16.msrb.mxu2 %v4139_v22  ;;  %v9573_v10 = vld [vmem:[#allocation3 + $0x4] sm:$0xff] }
 0x4d6   : > { %4334 = vmatpush.bf16.msrb.mxu3 %v4141_v3  ;;  %4347 = vmatpush.bf16.msra.mxu0 %v4143_v44 }
 0x4d8   : > { %4398 = vrot.lane.b32.xlu0 %v4358_v53, %s7820_s10  ;;  %v4380_v15 = vld.sshfl [vmem:[#allocation1 + $0x8] sm:$0xff pattern:$0x73625140]  ;;  %v4378_v26 = vld.sshfl [vmem:[#allocation1] sm:$0xff pattern:$0x73625140] }
 0x4d9   : > { %v4384_v31 = vld.sshfl [vmem:[#allocation1 + $0x18] sm:$0xff pattern:$0x73625140]  ;;  %v4382_v61 = vld.sshfl [vmem:[#allocation1 + $0x10] sm:$0xff pattern:$0x73625140] }
 0x4da   : > { %4395 = vst [vmem:[#allocation1] ss:$4 sm:$0xff] %v4076_v7  ;;  %7631 = vmatmul.msk.bf16.vlgmr.msrb.gmra.mxu2 %vm4108_vm10, %v9433_v6  ;;  %7630 = vmatmul.msk.bf16.vlgmr.msrb.gmra.mxu1 %vm4108_vm10, %v9433_v6 }
 0x4db   : > { %v4366_v21 = vld.sshfl [vmem:[#allocation1 + $0x20] sm:$0xff pattern:$0x73625140]  ;;  %v4368_v33 = vld.sshfl [vmem:[#allocation1 + $0x28] sm:$0xff pattern:$0x73625140]  ;;  %7632 = vmatmul.msk.bf16.vlgmr.msrb.gmra.mxu3 %vm4108_vm10, %v9433_v6  ;;  %7633 = vmatmul.msk.bf16.vlgmr.msra.gmra.mxu0 %vm4108_vm10, %v9433_v6 }
 0x4dc   : > { %v4370_v45 = vld.sshfl [vmem:[#allocation1 + $0x30] sm:$0xff pattern:$0x73625140]  ;;  %v4372_v29 = vld.sshfl [vmem:[#allocation1 + $0x38] sm:$0xff pattern:$0x73625140]  ;;  %4408 = vrot.lane.b32.xlu2 %v4368_v33, %s7820_s10  ;;  %4406 = vrot.lane.b32.xlu1 %v4366_v21, %s7820_s10 }
 0x4dd   : > { %4377 = vst [vmem:[#allocation1 + $0x20] ss:$4 sm:$0xff] %v4075_v18  ;;  %v4713_v59 = vld [vmem:[#allocation3 + $0x22] sm:$0x3] }
 0x4de   : > { %v5090_v43 = vld [vmem:[#allocation3 + $0x22] sm:$0x3] }
 0x4df   : > { %v5466_v49 = vld [vmem:[#allocation3 + $0x1c] sm:$0xff] }
 0x4e0   : > { %4410 = vrot.lane.b32.xlu0 %v4370_v45, %s7820_s10 }
 0x4e1   : > { %v4396_v58 = vld.sshfl [vmem:[#allocation1] sm:$0xff pattern:$0x73625140] }
 0x4e2   : > { %4715 = vst [vmem:[#allocation1] ss:$4 sm:$0xff] %v9388_v17 }
 0x4e4   : > { %v4386_v32 = vld.sshfl [vmem:[#allocation1 + $0x20] sm:$0xff pattern:$0x73625140]  ;;  %v4388_v54 = vld.sshfl [vmem:[#allocation1 + $0x28] sm:$0xff pattern:$0x73625140]  ;;  %4414 = vrot.lane.b32.xlu2 %v4378_v26, %s7820_s10  ;;  %4412 = vrot.lane.b32.xlu1 %v4372_v29, %s7820_s10 }
 0x4e5   : > { %v4390_v13 = vld.sshfl [vmem:[#allocation1 + $0x30] sm:$0xff pattern:$0x73625140]  ;;  %v4392_v55 = vld.sshfl [vmem:[#allocation1 + $0x38] sm:$0xff pattern:$0x73625140] }
 0x4e6   : > { %4718 = vst [vmem:[#allocation1 + $0x20] ss:$4 sm:$0xff] %v9417_v14 }
 0x4e8   : > { %4416 = vrot.lane.b32.xlu0 %v4380_v15, %s7820_s10  ;;  %v9597_v15 = vld [vmem:[#allocation3 + $0x14] sm:$0xff] }
 0x4e9   : > { %v4723_v36 = vld.sshfl [vmem:[#allocation1 + $0x10] sm:$0xff pattern:$0x73625140]  ;;  %v4721_v42 = vld.sshfl [vmem:[#allocation1 + $0x8] sm:$0xff pattern:$0x73625140] }
 0x4ea   : > { %v4725_v52 = vld.sshfl [vmem:[#allocation1 + $0x18] sm:$0xff pattern:$0x73625140]  ;;  %v4719_v1 = vld.sshfl [vmem:[#allocation1] sm:$0xff pattern:$0x73625140] }
 0x4eb   : > { %4736 = vst [vmem:[#allocation1] ss:$4 sm:$0xff] %v9446_v63 }
 0x4ec   : > { %4420 = vrot.lane.b32.xlu2 %v4384_v31, %s7820_s10  ;;  %4418 = vrot.lane.b32.xlu1 %v4382_v61, %s7820_s10 }
 0x4ed   : > { %v4727_v60 = vld.sshfl [vmem:[#allocation1 + $0x20] sm:$0xff pattern:$0x73625140]  ;;  %v4729_v51 = vld.sshfl [vmem:[#allocation1 + $0x28] sm:$0xff pattern:$0x73625140] }
 0x4ee   : > { %v4731_v23 = vld.sshfl [vmem:[#allocation1 + $0x30] sm:$0xff pattern:$0x73625140]  ;;  %v4733_v41 = vld.sshfl [vmem:[#allocation1 + $0x38] sm:$0xff pattern:$0x73625140] }
 0x4ef   : > { %4738 = vst [vmem:[#allocation1 + $0x20] ss:$4 sm:$0xff] %v9468_v25 }
 0x4f0   : > { %4422 = vrot.lane.b32.xlu0 %v4386_v32, %s7820_s10 }
 0x4f2   : > { %v4743_v11 = vld.sshfl [vmem:[#allocation1 + $0x10] sm:$0xff pattern:$0x73625140]  ;;  %v4741_v46 = vld.sshfl [vmem:[#allocation1 + $0x8] sm:$0xff pattern:$0x73625140] }
 0x4f3   : > { %v4739_v28 = vld.sshfl [vmem:[#allocation1] sm:$0xff pattern:$0x73625140]  ;;  %v4745_v40 = vld.sshfl [vmem:[#allocation1 + $0x18] sm:$0xff pattern:$0x73625140] }
 0x4f4   : > { %4756 = vst [vmem:[#allocation1] ss:$4 sm:$0xff] %v4713_v59  ;;  %4426 = vrot.lane.b32.xlu2 %v4390_v13, %s7820_s10  ;;  %4424 = vrot.lane.b32.xlu1 %v4388_v54, %s7820_s10 }
 0x4f6   : > { %v4747_v6 = vld.sshfl [vmem:[#allocation1 + $0x20] sm:$0xff pattern:$0x73625140]  ;;  %v4749_v27 = vld.sshfl [vmem:[#allocation1 + $0x28] sm:$0xff pattern:$0x73625140] }
 0x4f7   : > { %v9517_v19 = vld.sshfl [vmem:[#allocation1 + $0x30] sm:$0xff pattern:$0x73625140]  ;;  %v9519_v38 = vld.sshfl [vmem:[#allocation1 + $0x38] sm:$0xff pattern:$0x73625140] }
 0x4f8   : > { %4428 = vrot.lane.b32.xlu0 %v4392_v55, %s7820_s10  ;;  %5095 = vst [vmem:[#allocation1 + $0x20] ss:$4 sm:$0xff] %v9417_v14 }
 0x4fb   : > { %v9523_v30 = vld.sshfl [vmem:[#allocation1] sm:$0xff pattern:$0x73625140] }
 0x4fc   : > { %5092 = vst [vmem:[#allocation1] ss:$4 sm:$0xff] %v9388_v17  ;;  %4430 = vrot.lane.b32.xlu1 %v4396_v58, %s7820_s10  ;;  %4761 = vrot.lane.b32.xlu2 %v4721_v42, %s7821_s23 }
 0x4ff   : > { %v9528_v37 = vld.sshfl [vmem:[#allocation1 + $0x20] sm:$0xff pattern:$0x73625140]  ;;  %v9530_v0 = vld.sshfl [vmem:[#allocation1 + $0x28] sm:$0xff pattern:$0x73625140] }
 0x500   : > { %4763 = vrot.lane.b32.xlu0 %v4723_v36, %s7821_s23  ;;  %v9533_v12 = vld.sshfl [vmem:[#allocation1 + $0x30] sm:$0xff pattern:$0x73625140]  ;;  %v9535_v4 = vld.sshfl [vmem:[#allocation1 + $0x38] sm:$0xff pattern:$0x73625140] }
 0x501   : > { %5115 = vst [vmem:[#allocation1 + $0x20] ss:$4 sm:$0xff] %v9468_v25 }
 0x503   : > { %v9538_v14 = vld.sshfl [vmem:[#allocation1 + $0x18] sm:$0xff pattern:$0x73625140]  ;;  %v5100_v48 = vld.sshfl [vmem:[#allocation1 + $0x10] sm:$0xff pattern:$0x73625140] }
 0x504   : > { %v5098_v17 = vld.sshfl [vmem:[#allocation1 + $0x8] sm:$0xff pattern:$0x73625140]  ;;  %v9540_v9 = vld.sshfl [vmem:[#allocation1] sm:$0xff pattern:$0x73625140]  ;;  %4765 = vrot.lane.b32.xlu1 %v4725_v52, %s7821_s23  ;;  %4759 = vrot.lane.b32.xlu2 %v4719_v1, %s7821_s23 }
 0x505   : > { %5113 = vst [vmem:[#allocation1] ss:$4 sm:$0xff] %v9446_v63 }
 0x508   : > { %4767 = vrot.lane.b32.xlu0 %v4727_v60, %s7821_s23  ;;  %v9546_v34 = vld.sshfl [vmem:[#allocation1 + $0x20] sm:$0xff pattern:$0x73625140]  ;;  %v9548_v8 = vld.sshfl [vmem:[#allocation1 + $0x28] sm:$0xff pattern:$0x73625140] }
 0x509   : > { %v9550_v25 = vld.sshfl [vmem:[#allocation1 + $0x30] sm:$0xff pattern:$0x73625140]  ;;  %v9552_v20 = vld.sshfl [vmem:[#allocation1 + $0x38] sm:$0xff pattern:$0x73625140] }
 0x50a   : > { %5471 = vst [vmem:[#allocation1 + $0x20] ss:$4 sm:$0xff] %v5464_v2 }
 0x50c   : > { %v9554_v16 = vld.sshfl [vmem:[#allocation1] sm:$0xff pattern:$0x73625140]  ;;  %v9556_v24 = vld.sshfl [vmem:[#allocation1 + $0x10] sm:$0xff pattern:$0x73625140]  ;;  %4769 = vrot.lane.b32.xlu1 %v4729_v51, %s7821_s23  ;;  %4771 = vrot.lane.b32.xlu2 %v4731_v23, %s7821_s23 }
 0x50d   : > { %v9560_v63 = vld.sshfl [vmem:[#allocation1 + $0x8] sm:$0xff pattern:$0x73625140]  ;;  %v9562_v47 = vld.sshfl [vmem:[#allocation1 + $0x18] sm:$0xff pattern:$0x73625140] }
 0x50e   : > { %5133 = vst [vmem:[#allocation1] ss:$4 sm:$0xff] %v5090_v43 }
 0x510   : > { %4773 = vrot.lane.b32.xlu0 %v4733_v41, %s7821_s23 }
 0x511   : > { %v9565_v53 = vld.sshfl [vmem:[#allocation1 + $0x20] sm:$0xff pattern:$0x73625140]  ;;  %v9567_v39 = vld.sshfl [vmem:[#allocation1 + $0x28] sm:$0xff pattern:$0x73625140] }
 0x512   : > { %v9569_v56 = vld.sshfl [vmem:[#allocation1 + $0x30] sm:$0xff pattern:$0x73625140]  ;;  %v9571_v62 = vld.sshfl [vmem:[#allocation1 + $0x38] sm:$0xff pattern:$0x73625140] }
 0x513   : > { %5483 = vst [vmem:[#allocation1 + $0x20] ss:$4 sm:$0xff] %v5466_v49 }
 0x514   : > { %4777 = vrot.lane.b32.xlu2 %v4741_v46, %s7821_s23  ;;  %4775 = vrot.lane.b32.xlu1 %v4739_v28, %s7821_s23  ;;  %v5757_v46 = vld [vmem:[#allocation3 + $0x24] sm:$0x3] }
 0x515   : > { %v9577_v57 = vld.sshfl [vmem:[#allocation1] sm:$0xff pattern:$0x73625140] }
 0x516   : > { %5468 = vst [vmem:[#allocation1] ss:$4 sm:$0xff] %v9573_v10 }
 0x518   : > { %4779 = vrot.lane.b32.xlu0 %v4743_v11, %s7821_s23 }
 0x51a   : > { %v9581_v50 = vld.sshfl [vmem:[#allocation1 + $0x20] sm:$0xff pattern:$0x73625140]  ;;  %v9583_v5 = vld.sshfl [vmem:[#allocation1 + $0x28] sm:$0xff pattern:$0x73625140] }
 0x51b   : > { %10915 = vst [vmem:[#allocation4_spill] sm:$0xff] %v9581_v50  ;;  %v9585_v35 = vld.sshfl [vmem:[#allocation1 + $0x30] sm:$0xff pattern:$0x73625140] }
 0x51c   : > { %v9587_v22 = vld.sshfl [vmem:[#allocation1 + $0x38] sm:$0xff pattern:$0x73625140]  ;;  %4783 = vrot.lane.b32.xlu2 %v4747_v6, %s7821_s23  ;;  %4781 = vrot.lane.b32.xlu1 %v4745_v40, %s7821_s23 }
 0x51d   : > { %10916 = vst [vmem:[#allocation5_spill] sm:$0xff] %v9587_v22  ;;  %v9591_v3 = vld.sshfl [vmem:[#allocation1] sm:$0xff pattern:$0x73625140]  ;;  %v6134_v22 = vld [vmem:[#allocation3 + $0x24] sm:$0x3] }
 0x51e   : > { %5762 = vst [vmem:[#allocation1 + $0x20] ss:$4 sm:$0xff] %v5464_v2  ;;  %v9593_v44 = vld.sshfl [vmem:[#allocation1 + $0x8] sm:$0xff pattern:$0x73625140] }
 0x51f   : > { %v9595_v7 = vld.sshfl [vmem:[#allocation1 + $0x10] sm:$0xff pattern:$0x73625140]  ;;  %v9599_v26 = vld.sshfl [vmem:[#allocation1 + $0x18] sm:$0xff pattern:$0x73625140] }
 0x520   : > { %4785 = vrot.lane.b32.xlu0 %v4749_v27, %s7821_s23  ;;  %5481 = vst [vmem:[#allocation1] ss:$4 sm:$0xff] %v9597_v15 }
 0x524   : > { %4789 = vrot.lane.b32.xlu2 %v9519_v38, %s7821_s23  ;;  %4787 = vrot.lane.b32.xlu1 %v9517_v19, %s7821_s23  ;;  %v6508_v19 = vld [vmem:[#allocation3 + $0xe] sm:$0xff] }
 0x525   : > { %v9603_v31 = vld.sshfl [vmem:[#allocation1 + $0x20] sm:$0xff pattern:$0x73625140]  ;;  %v9605_v61 = vld.sshfl [vmem:[#allocation1 + $0x28] sm:$0xff pattern:$0x73625140] }
 0x526   : > { %v9607_v18 = vld.sshfl [vmem:[#allocation1 + $0x30] sm:$0xff pattern:$0x73625140]  ;;  %v9609_v21 = vld.sshfl [vmem:[#allocation1 + $0x38] sm:$0xff pattern:$0x73625140] }
 0x527   : > { %5782 = vst [vmem:[#allocation1 + $0x20] ss:$4 sm:$0xff] %v5466_v49  ;;  %v9615_v33 = vld.sshfl [vmem:[#allocation1] sm:$0xff pattern:$0x73625140] }
 0x528   : > { %v9617_v45 = vld.sshfl [vmem:[#allocation1 + $0x8] sm:$0xff pattern:$0x73625140]  ;;  %4791 = vrot.lane.b32.xlu0 %v9523_v30, %s7821_s23  ;;  %v9621_v29 = vld.sshfl [vmem:[#allocation1 + $0x10] sm:$0xff pattern:$0x73625140] }
 0x529   : > { %v9623_v58 = vld.sshfl [vmem:[#allocation1 + $0x18] sm:$0xff pattern:$0x73625140]  ;;  %v9636_v36 = vpop.permute.xlu2 %4404 }
 0x52a   : > { %5759 = vst [vmem:[#allocation1] ss:$4 sm:$0xff] %v9573_v10 }
 0x52c   : > { %5140 = vrot.lane.b32.xlu2 %v5100_v48, %s7820_s10  ;;  %5138 = vrot.lane.b32.xlu1 %v5098_v17, %s7820_s10 }
 0x52e   : > { %v9626_v32 = vld.sshfl [vmem:[#allocation1 + $0x20] sm:$0xff pattern:$0x73625140]  ;;  %v9628_v54 = vld.sshfl [vmem:[#allocation1 + $0x28] sm:$0xff pattern:$0x73625140] }
 0x52f   : > { %v9632_v13 = vld.sshfl [vmem:[#allocation1 + $0x30] sm:$0xff pattern:$0x73625140]  ;;  %v9634_v55 = vld.sshfl [vmem:[#allocation1 + $0x38] sm:$0xff pattern:$0x73625140] }
 0x530   : > { %6139 = vst [vmem:[#allocation1 + $0x20] ss:$4 sm:$0xff] %v5464_v2  ;;  %5142 = vrot.lane.b32.xlu0 %v9538_v14, %s7820_s10 }
 0x531   : > { %v9640_v42 = vld.sshfl [vmem:[#allocation1 + $0x8] sm:$0xff pattern:$0x73625140]  ;;  %v9642_v52 = vld.sshfl [vmem:[#allocation1 + $0x18] sm:$0xff pattern:$0x73625140] }
 0x532   : > { %v9644_v1 = vld.sshfl [vmem:[#allocation1 + $0x10] sm:$0xff pattern:$0x73625140]  ;;  %v9646_v60 = vld.sshfl [vmem:[#allocation1] sm:$0xff pattern:$0x73625140] }
 0x533   : > { %5780 = vst [vmem:[#allocation1] ss:$4 sm:$0xff] %v9597_v15 }
 0x534   : > { %5144 = vrot.lane.b32.xlu2 %v9528_v37, %s7820_s10  ;;  %5136 = vrot.lane.b32.xlu1 %v9540_v9, %s7820_s10 }
 0x536   : > { %v9661_v11 = vpop.permute.xlu2 %4408 }
 0x537   : > { %v9653_v51 = vld.sshfl [vmem:[#allocation1 + $0x20] sm:$0xff pattern:$0x73625140]  ;;  %v9655_v23 = vld.sshfl [vmem:[#allocation1 + $0x28] sm:$0xff pattern:$0x73625140] }
 0x538   : > { %v9657_v41 = vld.sshfl [vmem:[#allocation1 + $0x30] sm:$0xff pattern:$0x73625140]  ;;  %v9659_v59 = vld.sshfl [vmem:[#allocation1 + $0x38] sm:$0xff pattern:$0x73625140]  ;;  %5146 = vrot.lane.b32.xlu0 %v9530_v0, %s7820_s10 }
 0x539   : > { %6159 = vst [vmem:[#allocation1 + $0x20] ss:$4 sm:$0xff] %v5466_v49  ;;  %v9706_v49 = vld [vmem:[#allocation3 + $0x1e] sm:$0xff] }
 0x53a   : > { %v9665_v28 = vld.sshfl [vmem:[#allocation1 + $0x8] sm:$0xff pattern:$0x73625140]  ;;  %v9667_v40 = vld.sshfl [vmem:[#allocation1] sm:$0xff pattern:$0x73625140] }
 0x53b   : > { %v9669_v6 = vld.sshfl [vmem:[#allocation1 + $0x10] sm:$0xff pattern:$0x73625140]  ;;  %v9671_v27 = vld.sshfl [vmem:[#allocation1 + $0x18] sm:$0xff pattern:$0x73625140] }
 0x53c   : > { %5800 = vst [vmem:[#allocation1] ss:$4 sm:$0xff] %v5757_v46  ;;  %5150 = vrot.lane.b32.xlu2 %v9535_v4, %s7820_s10  ;;  %5148 = vrot.lane.b32.xlu1 %v9533_v12, %s7820_s10 }
 0x53e   : > { %v9687_v14 = vpop.permute.xlu2 %4414 }
 0x540   : > { %v9677_v38 = vld.sshfl [vmem:[#allocation1 + $0x20] sm:$0xff pattern:$0x73625140]  ;;  %v9679_v30 = vld.sshfl [vmem:[#allocation1 + $0x28] sm:$0xff pattern:$0x73625140]  ;;  %5152 = vrot.lane.b32.xlu0 %v9554_v16, %s7820_s10 }
 0x541   : > { %v9681_v37 = vld.sshfl [vmem:[#allocation1 + $0x30] sm:$0xff pattern:$0x73625140]  ;;  %v9683_v0 = vld.sshfl [vmem:[#allocation1 + $0x38] sm:$0xff pattern:$0x73625140]  ;;  %v4403_v48 = vpop.permute.xlu1 %4402 }
 0x542   : > { %6515 = vst [vmem:[#allocation1 + $0x20] ss:$4 sm:$0xff] %v6508_v19  ;;  %v4434_v4 = vsel %vm1283_vm6, %v4403_v48, %v9636_v36  ;;  %v4401_v12 = vpop.permute.xlu0 %4400  ;;  %v9700_v16 = vld [vmem:[%s10910_s7] sm:$0x3] }
 0x543   : > { %v9691_v17 = vld.sshfl [vmem:[#allocation1] sm:$0xff pattern:$0x73625140]  ;;  %v4458_v9 = vsel %vm4112_vm9, %v4434_v4, 0  ;;  %v4433_v2 = vsel %vm1283_vm6, %v4401_v12, %v4403_v48 }
 0x544   : > { %6136 = vst [vmem:[#allocation1] ss:$4 sm:$0xff] %v9573_v10  ;;  %v4455_v43 = vsel %vm4112_vm9, %v4433_v2, 0  ;;  %4532 = vmatpush.bf16.msra.mxu3 %v4458_v9  ;;  %5156 = vrot.lane.b32.xlu2 %v9556_v24, %s7820_s10 }
 0x545   : > { %4519 = vmatpush.bf16.msra.mxu2 %v4455_v43  ;;  %5154 = vrot.lane.b32.xlu1 %v9560_v63, %s7820_s10 }
 0x546   : > { %v9723_v4 = vpop.permute.xlu2 %4420 }
 0x547   : > { %7636 = vmatmul.msk.bf16.vlgmr.msra.gmra.mxu3 %vm4108_vm10, %v9700_v16 }
 0x548   : > { %7635 = vmatmul.msk.bf16.vlgmr.msra.gmra.mxu2 %vm4108_vm10, %v9700_v16  ;;  %5158 = vrot.lane.b32.xlu0 %v9562_v47, %s7820_s10 }
 0x549   : > { %v9710_v10 = vld.sshfl [vmem:[#allocation1 + $0x20] sm:$0xff pattern:$0x73625140]  ;;  %v9712_v46 = vld.sshfl [vmem:[#allocation1 + $0x28] sm:$0xff pattern:$0x73625140] }
 0x54a   : > { %10917 = vst [vmem:[#allocation6_spill] sm:$0xff] %v9710_v10  ;;  %v9718_v48 = vld.sshfl [vmem:[#allocation1 + $0x30] sm:$0xff pattern:$0x73625140]  ;;  %v4399_v63 = vpop.permute.xlu0 %4398 }
 0x54b   : > { %10918 = vst [vmem:[#allocation7_spill] sm:$0xff] %v9712_v46  ;;  %v9720_v24 = vld.sshfl [vmem:[#allocation1 + $0x38] sm:$0xff pattern:$0x73625140]  ;;  %v4432_v2 = vsel %vm1283_vm6, %v4399_v63, %v4401_v12 }
 0x54c   : > { %10919 = vst [vmem:[#allocation8_spill] sm:$0xff] %v9718_v48  ;;  %v9725_v9 = vld.sshfl [vmem:[#allocation1 + $0x10] sm:$0xff pattern:$0x73625140]  ;;  %v4452_v46 = vsel %vm4112_vm9, %v4432_v2, 0  ;;  %5162 = vrot.lane.b32.xlu2 %v9548_v8, %s7820_s10 }
 0x54d   : > { %10920 = vst [vmem:[#allocation9_spill] sm:$0xff] %v9720_v24  ;;  %v9728_v43 = vld.sshfl [vmem:[#allocation1 + $0x8] sm:$0xff pattern:$0x73625140]  ;;  %4506 = vmatpush.bf16.msra.mxu1 %v4452_v46  ;;  %5160 = vrot.lane.b32.xlu1 %v9546_v34, %s7820_s10 }
 0x54e   : > { %6527 = vst [vmem:[#allocation1 + $0x20] ss:$4 sm:$0xff] %v9706_v49  ;;  %v9730_v10 = vld.sshfl [vmem:[#allocation1 + $0x18] sm:$0xff pattern:$0x73625140]  ;;  %v4407_v24 = vpop.permute.xlu1 %4406  ;;  %v9761_v50 = vpop.permute.xlu2 %4426 }
 0x54f   : > { %v9733_v47 = vld.sshfl [vmem:[#allocation1] sm:$0xff pattern:$0x73625140]  ;;  %v4435_v12 = vsel %vm1283_vm6, %v9636_v36, %v4407_v24  ;;  %v4436_v46 = vsel %vm1283_vm6, %v4407_v24, %v9661_v11 }
 0x550   : > { %6157 = vst [vmem:[#allocation1] ss:$4 sm:$0xff] %v9597_v15  ;;  %7634 = vmatmul.msk.bf16.vlgmr.msra.gmra.mxu1 %vm4108_vm10, %v9700_v16  ;;  %5164 = vrot.lane.b32.xlu0 %v9550_v25, %s7820_s10  ;;  %v4461_v25 = vsel %vm4112_vm9, %v4435_v12, 0  ;;  %v4464_v36 = vsel %vm4112_vm9, %v4436_v46, 0 }
 0x551   : > { %4545 = vmatpush.bf16.msrb.mxu0 %v4461_v25  ;;  %4558 = vmatpush.bf16.msrb.mxu1 %v4464_v36 }
 0x552   : > { %v4411_v2 = vpop.permute.xlu0 %4410 }
 0x553   : > { %v4437_v48 = vsel %vm1283_vm6, %v9661_v11, %v4411_v2 }
 0x554   : > { %v4467_v24 = vsel %vm4112_vm9, %v4437_v48, 0  ;;  %5168 = vrot.lane.b32.xlu2 %v9577_v57, %s7820_s10  ;;  %7637 = vmatmul.msk.bf16.vlgmr.msrb.gmra.mxu0 %vm4108_vm10, %v9700_v16 }
 0x555   : > { %v9748_v63 = vld.sshfl [vmem:[#allocation1 + $0x20] sm:$0xff pattern:$0x73625140]  ;;  %v9750_v8 = vld.sshfl [vmem:[#allocation1 + $0x28] sm:$0xff pattern:$0x73625140]  ;;  %4571 = vmatpush.bf16.msrb.mxu2 %v4467_v24  ;;  %5166 = vrot.lane.b32.xlu1 %v9552_v20, %s7820_s10 }
 0x556   : > { %10921 = vst [vmem:[#allocation10_spill] sm:$0xff] %v9748_v63  ;;  %v9752_v15 = vld.sshfl [vmem:[#allocation1 + $0x30] sm:$0xff pattern:$0x73625140]  ;;  %v4413_v48 = vpop.permute.xlu1 %4412 }
 0x557   : > { %10922 = vst [vmem:[#allocation11_spill] sm:$0xff] %v9750_v8  ;;  %v9754_v34 = vld.sshfl [vmem:[#allocation1 + $0x38] sm:$0xff pattern:$0x73625140]  ;;  %v4438_v57 = vsel %vm1283_vm6, %v4411_v2, %v4413_v48  ;;  %v4439_v46 = vsel %vm1283_vm6, %v4413_v48, %v9687_v14 }
 0x558   : > { %10923 = vst [vmem:[#allocation12_spill] sm:$0xff] %v9752_v15  ;;  %v9763_v63 = vld.sshfl [vmem:[#allocation1 + $0x10] sm:$0xff pattern:$0x73625140]  ;;  %5805 = vrot.lane.b32.xlu0 %v9640_v42, %s7821_s23  ;;  %7639 = vmatmul.msk.bf16.vlgmr.msrb.gmra.mxu2 %vm4108_vm10, %v9700_v16  ;;  %v4470_v20 = vsel %vm4112_vm9, %v4438_v57, 0  ;;  %v4473_v25 = vsel %vm4112_vm9, %v4439_v46, 0  ;;  %v9800_v46 = vpop.permute.xlu2 %4761 }
 0x559   : > { %10924 = vst [vmem:[#allocation13_spill] sm:$0xff] %v9754_v34  ;;  %v9769_v11 = vld.sshfl [vmem:[#allocation1] sm:$0xff pattern:$0x73625140]  ;;  %4584 = vmatpush.bf16.msrb.mxu3 %v4470_v20  ;;  %4597 = vmatpush.bf16.msra.mxu0 %v4473_v25  ;;  %v9820_v15 = vld [vmem:[#allocation3 + $0x16] sm:$0xff] }
 0x55a   : > { %6806 = vst [vmem:[#allocation1 + $0x20] ss:$4 sm:$0xff] %v6508_v19  ;;  %v9767_v19 = vld.sshfl [vmem:[#allocation1 + $0x8] sm:$0xff pattern:$0x73625140]  ;;  %v4417_v36 = vpop.permute.xlu0 %4416  ;;  %v6507_v57 = vld [vmem:[#allocation3 + $0x6] sm:$0xff] }
 0x55b   : > { %v9773_v12 = vld.sshfl [vmem:[#allocation1 + $0x18] sm:$0xff pattern:$0x73625140]  ;;  %v4440_v42 = vsel %vm1283_vm6, %v9687_v14, %v4417_v36 }
 0x55c   : > { %6177 = vst [vmem:[#allocation1] ss:$4 sm:$0xff] %v6134_v22  ;;  %v4476_v48 = vsel %vm4112_vm9, %v4440_v42, 0  ;;  %5809 = vrot.lane.b32.xlu2 %v9642_v52, %s7821_s23  ;;  %7640 = vmatmul.msk.bf16.vlgmr.msrb.gmra.mxu3 %vm4108_vm10, %v9700_v16 }
 0x55d   : > { %4610 = vmatpush.bf16.msra.mxu1 %v4476_v48  ;;  %5807 = vrot.lane.b32.xlu1 %v9644_v1, %s7821_s23 }
 0x55e   : > { %v4419_v20 = vpop.permute.xlu1 %4418 }
 0x55f   : > { %v4441_v52 = vsel %vm1283_vm6, %v4417_v36, %v4419_v20 }
 0x560   : > { %5803 = vrot.lane.b32.xlu0 %v9646_v60, %s7821_s23  ;;  %7638 = vmatmul.msk.bf16.vlgmr.msrb.gmra.mxu1 %vm4108_vm10, %v9700_v16  ;;  %v4479_v1 = vsel %vm4112_vm9, %v4441_v52, 0 }
 0x561   : > { %v9786_v24 = vld.sshfl [vmem:[#allocation1 + $0x28] sm:$0xff pattern:$0x73625140]  ;;  %v9788_v22 = vld.sshfl [vmem:[#allocation1 + $0x20] sm:$0xff pattern:$0x73625140]  ;;  %4623 = vmatpush.bf16.msra.mxu2 %v4479_v1  ;;  %v4760_v1 = vpop.permute.xlu2 %4759 }
 0x562   : > { %v9792_v34 = vld.sshfl [vmem:[#allocation1 + $0x38] sm:$0xff pattern:$0x73625140]  ;;  %v9794_v2 = vld.sshfl [vmem:[#allocation1 + $0x30] sm:$0xff pattern:$0x73625140]  ;;  %v4423_v42 = vpop.permute.xlu0 %4422 }
 0x563   : > { %6826 = vst [vmem:[#allocation1 + $0x20] ss:$4 sm:$0xff] %v9706_v49  ;;  %v9806_v14 = vld.sshfl [vmem:[#allocation1] sm:$0xff pattern:$0x73625140]  ;;  %v4442_v49 = vsel %vm1283_vm6, %v4419_v20, %v9723_v4  ;;  %v4443_v48 = vsel %vm1283_vm6, %v9723_v4, %v4423_v42 }
 0x564   : > { %6512 = vst [vmem:[#allocation1] ss:$4 sm:$0xff] %v6507_v57  ;;  %v4482_v25 = vsel %vm4112_vm9, %v4442_v49, 0  ;;  %v4485_v60 = vsel %vm4112_vm9, %v4443_v48, 0  ;;  %5813 = vrot.lane.b32.xlu2 %v9605_v61, %s7821_s23  ;;  %7641 = vmatmul.msk.bf16.vlgmr.msra.gmra.mxu0 %vm4108_vm10, %v9700_v16 }
 0x565   : > { %4636 = vmatpush.bf16.msra.mxu3 %v4482_v25  ;;  %4649 = vmatpush.bf16.msrb.mxu0 %v4485_v60 }
 0x566   : > { %5811 = vrot.lane.b32.xlu1 %v9603_v31, %s7821_s23  ;;  %v4425_v52 = vpop.permute.xlu1 %4424 }
 0x567   : > { %v4444_v31 = vsel %vm1283_vm6, %v4423_v42, %v4425_v52  ;;  %v4445_v61 = vsel %vm1283_vm6, %v4425_v52, %v9761_v50  ;;  %v9853_v52 = vpop.f32.mrf.mxu3 }
 0x568   : > { %5815 = vrot.lane.b32.xlu0 %v9607_v18, %s7821_s23  ;;  %7643 = vmatmul.msk.bf16.vlgmr.msra.gmra.mxu2 %vm4108_vm10, %v9700_v16  ;;  %v4488_v25 = vsel %vm4112_vm9, %v4444_v31, 0  ;;  %v4491_v48 = vsel %vm4112_vm9, %v4445_v61, 0  ;;  %v4793_v18 = vsel %vm1647_vm7, %v4760_v1, %v9800_v46  ;;  %v9857_v31 = vpop.f32.mrf.mxu1 }
 0x569   : > { %4662 = vmatpush.bf16.msrb.mxu1 %v4488_v25  ;;  %4675 = vmatpush.bf16.msrb.mxu2 %v4491_v48  ;;  %v4813_v61 = vsel %vm4112_vm9, %v4793_v18, 0 }
 0x56a   : > { %v4429_v60 = vpop.permute.xlu0 %4428 }
 0x56b   : > { %v9826_v36 = vld.sshfl [vmem:[#allocation1] sm:$0xff pattern:$0x73625140]  ;;  %v9828_v20 = vld.sshfl [vmem:[#allocation1 + $0x8] sm:$0xff pattern:$0x73625140]  ;;  %v4446_v8 = vsel %vm1283_vm6, %v9761_v50, %v4429_v60 }
 0x56c   : > { %10925 = vst [vmem:[#allocation14_spill] sm:$0xff] %v9826_v36  ;;  %v9832_v4 = vld.sshfl [vmem:[#allocation1 + $0x10] sm:$0xff pattern:$0x73625140]  ;;  %v4494_v42 = vsel %vm4112_vm9, %v4446_v8, 0  ;;  %5819 = vrot.lane.b32.xlu2 %v9667_v40, %s7821_s23  ;;  %7644 = vmatmul.msk.bf16.vlgmr.msra.gmra.mxu3 %vm4108_vm10, %v9700_v16 }
 0x56d   : > { %10926 = vst [vmem:[#allocation15_spill] sm:$0xff] %v9832_v4  ;;  %v9834_v49 = vld.sshfl [vmem:[#allocation1 + $0x18] sm:$0xff pattern:$0x73625140]  ;;  %4688 = vmatpush.bf16.msrb.mxu3 %v4494_v42 }
 0x56e   : > { %10927 = vst [vmem:[#allocation16_spill] sm:$0xff] %v9834_v49  ;;  %v9851_v49 = vpop.f32.mrf.mxu2  ;;  %5817 = vrot.lane.b32.xlu1 %v9609_v21, %s7821_s23  ;;  %v4431_v50 = vpop.permute.xlu1 %4430 }
 0x56f   : > { %6525 = vst [vmem:[#allocation1] ss:$4 sm:$0xff] %v9820_v15  ;;  %v4447_v40 = vsel %vm1283_vm6, %v4429_v60, %v4431_v50  ;;  %v9883_v50 = vpop.f32.mrf.mxu0 }
 0x570   : > { %5821 = vrot.lane.b32.xlu0 %v9665_v28, %s7821_s23  ;;  %7642 = vmatmul.msk.bf16.vlgmr.msra.gmra.mxu1 %vm4108_vm10, %v9700_v16  ;;  %v4497_v21 = vsel %vm4112_vm9, %v4447_v40, 0  ;;  %v4156_v60 = vpop.f32.mrf.mxu1 }
 0x571   : > { %4867 = vmatpush.bf16.msra.mxu1 %v4813_v61  ;;  %4701 = vmatpush.bf16.msra.mxu0 %v4497_v21 }
 0x572   : > { %v4764_v18 = vpop.permute.xlu0 %4763 }
 0x573   : > { %v4794_v42 = vsel %vm1647_vm7, %v9800_v46, %v4764_v18 }
 0x574   : > { %v4816_v28 = vsel %vm4112_vm9, %v4794_v42, 0  ;;  %5825 = vrot.lane.b32.xlu2 %v9671_v27, %s7821_s23  ;;  %7645 = vmatmul.msk.bf16.vlgmr.msrb.gmra.mxu0 %vm4108_vm10, %v9700_v16 }
 0x575   : > { %4880 = vmatpush.bf16.msra.mxu2 %v4816_v28 }
 0x576   : > { %v9864_v8 = vld.sshfl [vmem:[#allocation1] sm:$0xff pattern:$0x73625140]  ;;  %v9866_v1 = vld.sshfl [vmem:[#allocation1 + $0x8] sm:$0xff pattern:$0x73625140]  ;;  %5823 = vrot.lane.b32.xlu1 %v9669_v6, %s7821_s23 }
 0x577   : > { %10928 = vst [vmem:[#allocation17_spill] sm:$0xff] %v9864_v8  ;;  %v9873_v25 = vld.sshfl [vmem:[#allocation1 + $0x10] sm:$0xff pattern:$0x73625140]  ;;  %v4169_v8 = vpop.f32.mrf.mxu2  ;;  %v4195_v60 = vpop.f32.mrf.mxu0 }
 0x578   : > { %10929 = vst [vmem:[#allocation18_spill] sm:$0xff] %v9866_v1  ;;  %v9875_v48 = vld.sshfl [vmem:[#allocation1 + $0x18] sm:$0xff pattern:$0x73625140]  ;;  %v4182_v1 = vpop.f32.mrf.mxu3  ;;  %5827 = vrot.lane.b32.xlu0 %v9626_v32, %s7821_s23  ;;  %7647 = vmatmul.msk.bf16.vlgmr.msrb.gmra.mxu2 %vm4108_vm10, %v9700_v16  ;;  %v4772_v8 = vpop.permute.xlu2 %4771 }
 0x579   : > { %10930 = vst [vmem:[#allocation19_spill] sm:$0xff] %v9873_v25 }
 0x57a   : > { %10931 = vst [vmem:[#allocation20_spill] sm:$0xff] %v9875_v48  ;;  %v4768_v40 = vpop.permute.xlu0 %4767 }
 0x57b   : > { %6803 = vst [vmem:[#allocation1] ss:$4 sm:$0xff] %v6507_v57  ;;  %v4766_v57 = vpop.permute.xlu1 %4765 }
 0x57c   : > { %v4795_v46 = vsel %vm1647_vm7, %v4764_v18, %v4766_v57  ;;  %v4796_v32 = vsel %vm1647_vm7, %v4766_v57, %v4768_v40  ;;  %5831 = vrot.lane.b32.xlu2 %v9632_v13, %s7821_s23  ;;  %7648 = vmatmul.msk.bf16.vlgmr.msrb.gmra.mxu3 %vm4108_vm10, %v9700_v16 }
 0x57d   : > { %v4819_v1 = vsel %vm4112_vm9, %v4795_v46, 0  ;;  %v4822_v42 = vsel %vm4112_vm9, %v4796_v32, 0  ;;  %v9912_v46 = vpop.f32.mrf.mxu1 }
 0x57e   : > { %4893 = vmatpush.bf16.msra.mxu3 %v4819_v1  ;;  %4906 = vmatpush.bf16.msrb.mxu0 %v4822_v42  ;;  %v6801_v1 = vld [vmem:[#allocation3 + $0x26] sm:$0x3] }
 0x57f   : > { %v9906_v18 = vpop.f32.mrf.mxu2  ;;  %5829 = vrot.lane.b32.xlu1 %v9628_v54, %s7821_s23 }
 0x580   : > { %v9908_v28 = vpop.f32.mrf.mxu3  ;;  %5833 = vrot.lane.b32.xlu0 %v9634_v55, %s7821_s23  ;;  %7646 = vmatmul.msk.bf16.vlgmr.msrb.gmra.mxu1 %vm4108_vm10, %v9700_v16  ;;  %v4778_v55 = vpop.permute.xlu2 %4777 }
 0x582   : > { %v9894_v61 = vld.sshfl [vmem:[#allocation1 + $0x18] sm:$0xff pattern:$0x73625140]  ;;  %v9896_v27 = vld.sshfl [vmem:[#allocation1 + $0x10] sm:$0xff pattern:$0x73625140]  ;;  %v4774_v54 = vpop.permute.xlu0 %4773 }
 0x583   : > { %v9899_v6 = vld.sshfl [vmem:[#allocation1 + $0x8] sm:$0xff pattern:$0x73625140]  ;;  %v9901_v21 = vld.sshfl [vmem:[#allocation1] sm:$0xff pattern:$0x73625140]  ;;  %v4799_v25 = vsel %vm1647_vm7, %v4772_v8, %v4774_v54 }
 0x584   : > { %6824 = vst [vmem:[#allocation1] ss:$4 sm:$0xff] %v9820_v15  ;;  %v4770_v15 = vpop.permute.xlu1 %4769  ;;  %6182 = vrot.lane.b32.xlu2 %v9728_v43, %s7820_s10  ;;  %7649 = vmatmul.msk.bf16.vlgmr.msra.gmra.mxu0 %vm4108_vm10, %v9700_v16 }
 0x585   : > { %v4797_v57 = vsel %vm1647_vm7, %v4768_v40, %v4770_v15  ;;  %v4798_v13 = vsel %vm1647_vm7, %v4770_v15, %v4772_v8  ;;  %v4831_v15 = vsel %vm4112_vm9, %v4799_v25, 0  ;;  %v9943_v8 = vpop.f32.mrf.mxu0 }
 0x586   : > { %v4825_v32 = vsel %vm4112_vm9, %v4797_v57, 0  ;;  %v4828_v42 = vsel %vm4112_vm9, %v4798_v13, 0  ;;  %4945 = vmatpush.bf16.msrb.mxu3 %v4831_v15  ;;  %v9941_v13 = vld [vmem:[%s10910_s7 + $0x4] sm:$0x3] }
 0x587   : > { %4919 = vmatpush.bf16.msrb.mxu1 %v4825_v32  ;;  %4932 = vmatpush.bf16.msrb.mxu2 %v4828_v42  ;;  %v4221_v4 = vpop.f32.mrf.mxu2  ;;  %v4208_v32 = vpop.f32.mrf.mxu1 }
 0x588   : > { %v4234_v57 = vpop.f32.mrf.mxu3  ;;  %5835 = vrot.lane.b32.xlu1 %v9691_v17, %s7821_s23  ;;  %6184 = vrot.lane.b32.xlu0 %v9725_v9, %s7820_s10  ;;  %v4784_v32 = vpop.permute.xlu2 %4783 }
 0x589   : > { %7652 = vmatmul.msk.bf16.vlgmr.msra.gmra.mxu2 %vm4108_vm10, %v9941_v13 }
 0x58b   : > { %v9926_v60 = vld.sshfl [vmem:[#allocation1] sm:$0xff pattern:$0x73625140]  ;;  %v9928_v48 = vld.sshfl [vmem:[#allocation1 + $0x10] sm:$0xff pattern:$0x73625140] }
 0x58c   : > { %v9931_v36 = vld.sshfl [vmem:[#allocation1 + $0x8] sm:$0xff pattern:$0x73625140]  ;;  %v9933_v40 = vld.sshfl [vmem:[#allocation1 + $0x18] sm:$0xff pattern:$0x73625140]  ;;  %v4776_v4 = vpop.permute.xlu1 %4775  ;;  %6180 = vrot.lane.b32.xlu2 %v9733_v47, %s7820_s10  ;;  %7653 = vmatmul.msk.bf16.vlgmr.msra.gmra.mxu3 %vm4108_vm10, %v9941_v13 }
 0x58d   : > { %6844 = vst [vmem:[#allocation1] ss:$4 sm:$0xff] %v6801_v1  ;;  %v4800_v43 = vsel %vm1647_vm7, %v4774_v54, %v4776_v4  ;;  %v4780_v1 = vpop.permute.xlu0 %4779  ;;  %v4801_v57 = vsel %vm1647_vm7, %v4776_v4, %v4778_v55  ;;  %v4247_v9 = vpop.f32.mrf.mxu0 }
 0x58e   : > { %v4834_v25 = vsel %vm4112_vm9, %v4800_v43, 0  ;;  %v4802_v42 = vsel %vm1647_vm7, %v4778_v55, %v4780_v1 }
 0x58f   : > { %4958 = vmatpush.bf16.msra.mxu0 %v4834_v25  ;;  %v4840_v17 = vsel %vm4112_vm9, %v4802_v42, 0  ;;  %v9957_v15 = vpop.f32.mrf.mxu2  ;;  %v9964_v54 = vpop.f32.mrf.mxu1  ;;  %v4837_v25 = vsel %vm4112_vm9, %v4801_v57, 0 }
 0x590   : > { %v9959_v16 = vpop.f32.mrf.mxu3  ;;  %4984 = vmatpush.bf16.msra.mxu2 %v4840_v17  ;;  %6186 = vrot.lane.b32.xlu1 %v9730_v10, %s7820_s10 }
 0x591   : > { %6188 = vrot.lane.b32.xlu0 %v9653_v51, %s7820_s10  ;;  %7651 = vmatmul.msk.bf16.vlgmr.msra.gmra.mxu1 %vm4108_vm10, %v9941_v13 }
 0x592   : > { %4971 = vmatpush.bf16.msra.mxu1 %v4837_v25 }
 0x594   : > { %v4782_v43 = vpop.permute.xlu1 %4781  ;;  %6192 = vrot.lane.b32.xlu2 %v9657_v41, %s7820_s10  ;;  %7654 = vmatmul.msk.bf16.vlgmr.msrb.gmra.mxu0 %vm4108_vm10, %v9941_v13 }
 0x595   : > { %v4803_v47 = vsel %vm1647_vm7, %v4780_v1, %v4782_v43  ;;  %v4786_v10 = vpop.permute.xlu0 %4785  ;;  %v4804_v17 = vsel %vm1647_vm7, %v4782_v43, %v4784_v32  ;;  %v9980_v9 = vpop.f32.mrf.mxu0 }
 0x596   : > { %v4843_v55 = vsel %vm4112_vm9, %v4803_v47, 0  ;;  %v4846_v1 = vsel %vm4112_vm9, %v4804_v17, 0  ;;  %v4790_v43 = vpop.permute.xlu2 %4789 }
 0x597   : > { %4997 = vmatpush.bf16.msra.mxu3 %v4843_v55  ;;  %v4273_v4 = vpop.f32.mrf.mxu2  ;;  %v4260_v57 = vpop.f32.mrf.mxu1  ;;  %5010 = vmatpush.bf16.msrb.mxu0 %v4846_v1 }
 0x598   : > { %v4286_v42 = vpop.f32.mrf.mxu3  ;;  %6190 = vrot.lane.b32.xlu1 %v9655_v23, %s7820_s10  ;;  %v4805_v4 = vsel %vm1647_vm7, %v4784_v32, %v4786_v10 }
 0x599   : > { %6194 = vrot.lane.b32.xlu0 %v9659_v59, %s7820_s10  ;;  %7656 = vmatmul.msk.bf16.vlgmr.msrb.gmra.mxu2 %vm4108_vm10, %v9941_v13  ;;  %v4849_v1 = vsel %vm4112_vm9, %v4805_v4, 0 }
 0x59c   : > { %v4788_v51 = vpop.permute.xlu1 %4787  ;;  %6198 = vrot.lane.b32.xlu2 %v9767_v19, %s7820_s10  ;;  %7657 = vmatmul.msk.bf16.vlgmr.msrb.gmra.mxu3 %vm4108_vm10, %v9941_v13 }
 0x59d   : > { %v4806_v41 = vsel %vm1647_vm7, %v4786_v10, %v4788_v51  ;;  %v4807_v23 = vsel %vm1647_vm7, %v4788_v51, %v4790_v43  ;;  %v4299_v59 = vpop.f32.mrf.mxu0  ;;  %v4792_v57 = vpop.permute.xlu0 %4791 }
 0x59e   : > { %v4852_v25 = vsel %vm4112_vm9, %v4806_v41, 0  ;;  %v4855_v17 = vsel %vm4112_vm9, %v4807_v23, 0  ;;  %v5141_v19 = vpop.permute.xlu2 %5140  ;;  %v4808_v41 = vsel %vm1647_vm7, %v4790_v43, %v4792_v57 }
 0x59f   : > { %5036 = vmatpush.bf16.msrb.mxu2 %v4852_v25  ;;  %v9994_v47 = vpop.f32.mrf.mxu2  ;;  %v10001_v42 = vpop.f32.mrf.mxu1  ;;  %5049 = vmatpush.bf16.msrb.mxu3 %v4855_v17 }
 0x5a0   : > { %v9996_v55 = vpop.f32.mrf.mxu3  ;;  %6196 = vrot.lane.b32.xlu1 %v9769_v11, %s7820_s10 }
 0x5a1   : > { %6200 = vrot.lane.b32.xlu0 %v9763_v63, %s7820_s10  ;;  %7655 = vmatmul.msk.bf16.vlgmr.msrb.gmra.mxu1 %vm4108_vm10, %v9941_v13  ;;  %v4858_v63 = vsel %vm4112_vm9, %v4808_v41, 0 }
 0x5a2   : > { %5023 = vmatpush.bf16.msrb.mxu1 %v4849_v1 }
 0x5a4   : > { %v5139_v51 = vpop.permute.xlu1 %5138  ;;  %6204 = vrot.lane.b32.xlu2 %v9677_v38, %s7820_s10  ;;  %7658 = vmatmul.msk.bf16.vlgmr.msra.gmra.mxu0 %vm4108_vm10, %v9941_v13 }
 0x5a5   : > { %v5171_v11 = vsel %vm1283_vm6, %v5139_v51, %v5141_v19  ;;  %v10017_v23 = vpop.f32.mrf.mxu0  ;;  %v5143_v4 = vpop.permute.xlu0 %5142  ;;  %5062 = vmatpush.bf16.msra.mxu0 %v4858_v63 }
 0x5a6   : > { %v5193_v59 = vsel %vm4112_vm9, %v5171_v11, 0  ;;  %v5172_v43 = vsel %vm1283_vm6, %v5141_v19, %v5143_v4 }
 0x5a7   : > { %v4325_v32 = vpop.f32.mrf.mxu2  ;;  %v4312_v25 = vpop.f32.mrf.mxu1  ;;  %v5196_v57 = vsel %vm4112_vm9, %v5172_v43, 0 }
 0x5a8   : > { %v4338_v10 = vpop.f32.mrf.mxu3  ;;  %6202 = vrot.lane.b32.xlu1 %v9773_v12, %s7820_s10 }
 0x5a9   : > { %6206 = vrot.lane.b32.xlu0 %v9679_v30, %s7820_s10  ;;  %7660 = vmatmul.msk.bf16.vlgmr.msra.gmra.mxu2 %vm4108_vm10, %v9941_v13  ;;  %v5145_v30 = vpop.permute.xlu2 %5144 }
 0x5aa   : > { %5257 = vmatpush.bf16.msra.mxu2 %v5193_v59  ;;  %v5173_v19 = vsel %vm1283_vm6, %v5143_v4, %v5145_v30 }
 0x5ac   : > { %v5137_v38 = vpop.permute.xlu1 %5136  ;;  %6210 = vrot.lane.b32.xlu2 %v9683_v0, %s7820_s10  ;;  %7661 = vmatmul.msk.bf16.vlgmr.msra.gmra.mxu3 %vm4108_vm10, %v9941_v13 }
 0x5ad   : > { %v5170_v12 = vsel %vm1283_vm6, %v5137_v38, %v5139_v51  ;;  %v4351_v17 = vpop.f32.mrf.mxu0  ;;  %5270 = vmatpush.bf16.msra.mxu3 %v5196_v57  ;;  %v5147_v51 = vpop.permute.xlu0 %5146 }
 0x5ae   : > { %v5190_v1 = vsel %vm4112_vm9, %v5170_v12, 0 }
 0x5b0   : > { %6208 = vrot.lane.b32.xlu1 %v9681_v37, %s7820_s10 }
 0x5b1   : > { %6212 = vrot.lane.b32.xlu0 %v9806_v14, %s7820_s10  ;;  %7659 = vmatmul.msk.bf16.vlgmr.msra.gmra.mxu1 %vm4108_vm10, %v9941_v13  ;;  %v5199_v14 = vsel %vm4112_vm9, %v5173_v19, 0  ;;  %v5151_v10 = vpop.permute.xlu2 %5150 }
 0x5b2   : > { %5244 = vmatpush.bf16.msra.mxu1 %v5190_v1 }
 0x5b4   : > { %v5149_v0 = vpop.permute.xlu1 %5148  ;;  %6851 = vrot.lane.b32.xlu2 %v9896_v27, %s7821_s23  ;;  %7662 = vmatmul.msk.bf16.vlgmr.msrb.gmra.mxu0 %vm4108_vm10, %v9941_v13 }
 0x5b5   : > { %v5175_v37 = vsel %vm1283_vm6, %v5147_v51, %v5149_v0  ;;  %5283 = vmatpush.bf16.msrb.mxu0 %v5199_v14  ;;  %v5176_v27 = vsel %vm1283_vm6, %v5149_v0, %v5151_v10  ;;  %v5153_v11 = vpop.permute.xlu0 %5152 }
 0x5b6   : > { %v5205_v32 = vsel %vm4112_vm9, %v5175_v37, 0  ;;  %v5208_v41 = vsel %vm4112_vm9, %v5176_v27, 0  ;;  %v5177_v63 = vsel %vm1283_vm6, %v5151_v10, %v5153_v11 }
 0x5b8   : > { %6849 = vrot.lane.b32.xlu1 %v9899_v6, %s7821_s23  ;;  %v5174_v6 = vsel %vm1283_vm6, %v5145_v30, %v5147_v51 }
 0x5b9   : > { %6853 = vrot.lane.b32.xlu0 %v9894_v61, %s7821_s23  ;;  %7664 = vmatmul.msk.bf16.vlgmr.msrb.gmra.mxu2 %vm4108_vm10, %v9941_v13  ;;  %v5202_v61 = vsel %vm4112_vm9, %v5174_v6, 0  ;;  %v5157_v25 = vpop.permute.xlu2 %5156 }
 0x5ba   : > { %5309 = vmatpush.bf16.msrb.mxu2 %v5205_v32  ;;  %v6835_v32 = vld.sshfl [vmem:[#allocation1 + $0x20] sm:$0xff pattern:$0x73625140] }
 0x5bc   : > { %6855 = vrot.lane.b32.xlu2 %v9788_v22, %s7821_s23  ;;  %7665 = vmatmul.msk.bf16.vlgmr.msrb.gmra.mxu3 %vm4108_vm10, %v9941_v13  ;;  %v5155_v22 = vpop.permute.xlu1 %5154 }
 0x5bd   : > { %5322 = vmatpush.bf16.msrb.mxu3 %v5208_v41  ;;  %v5179_v4 = vsel %vm1283_vm6, %v5155_v22, %v5157_v25  ;;  %v5159_v38 = vpop.permute.xlu0 %5158  ;;  %v6845_v41 = vld.sshfl [vmem:[#allocation1] sm:$0xff pattern:$0x73625140] }
 0x5be   : > { %v5217_v59 = vsel %vm4112_vm9, %v5179_v4, 0  ;;  %v6841_v4 = vld.sshfl [vmem:[#allocation1 + $0x38] sm:$0xff pattern:$0x73625140] }
 0x5c0   : > { %6847 = vrot.lane.b32.xlu1 %v9901_v21, %s7821_s23  ;;  %v10078_v21 = vld [vmem:[%s10910_s7 + $0x6] sm:$0x3] }
 0x5c1   : > { %6857 = vrot.lane.b32.xlu0 %v9786_v24, %s7821_s23  ;;  %7663 = vmatmul.msk.bf16.vlgmr.msrb.gmra.mxu1 %vm4108_vm10, %v9941_v13  ;;  %v5211_v24 = vsel %vm4112_vm9, %v5177_v63, 0  ;;  %v5163_v0 = vpop.permute.xlu2 %5162 }
 0x5c2   : > { %5296 = vmatpush.bf16.msrb.mxu1 %v5202_v61 }
 0x5c4   : > { %6861 = vrot.lane.b32.xlu2 %v9792_v34, %s7821_s23  ;;  %7666 = vmatmul.msk.bf16.vlgmr.msra.gmra.mxu0 %vm4108_vm10, %v9941_v13  ;;  %v5178_v13 = vsel %vm1283_vm6, %v5153_v11, %v5155_v22  ;;  %v5161_v17 = vpop.permute.xlu1 %5160 }
 0x5c5   : > { %5335 = vmatpush.bf16.msra.mxu0 %v5211_v24  ;;  %v5214_v57 = vsel %vm4112_vm9, %v5178_v13, 0  ;;  %v5181_v19 = vsel %vm1283_vm6, %v5159_v38, %v5161_v17  ;;  %v7172_v24 = vld [vmem:[%s10911_s8] sm:$0xf] }
 0x5c6   : > { %v5223_v10 = vsel %vm4112_vm9, %v5181_v19, 0 }
 0x5c8   : > { %6859 = vrot.lane.b32.xlu1 %v9794_v2, %s7821_s23  ;;  %v5180_v2 = vsel %vm1283_vm6, %v5157_v25, %v5159_v38  ;;  %v5182_v25 = vsel %vm1283_vm6, %v5161_v17, %v5163_v0 }
 0x5c9   : > { %6863 = vrot.lane.b32.xlu0 %v9926_v60, %s7821_s23  ;;  %7669 = vmatmul.msk.bf16.vlgmr.msra.gmra.mxu2 %vm4108_vm10, %v10078_v21  ;;  %v5220_v60 = vsel %vm4112_vm9, %v5180_v2, 0  ;;  %v5226_v38 = vsel %vm4112_vm9, %v5182_v25, 0  ;;  %v5169_v13 = vpop.permute.xlu2 %5168 }
 0x5ca   : > { %5361 = vmatpush.bf16.msra.mxu2 %v5217_v59  ;;  %v10090_v34 = vpop.f32.mrf.mxu3 }
 0x5cb   : > { %v10093_v43 = vpop.f32.mrf.mxu2 }
 0x5cc   : > { %6867 = vrot.lane.b32.xlu2 %v9928_v48, %s7821_s23  ;;  %7670 = vmatmul.msk.bf16.vlgmr.msra.gmra.mxu3 %vm4108_vm10, %v10078_v21  ;;  %v5165_v48 = vpop.permute.xlu0 %5164  ;;  %v5167_v6 = vpop.permute.xlu1 %5166 }
 0x5cd   : > { %v10096_v12 = vpop.f32.mrf.mxu1  ;;  %5374 = vmatpush.bf16.msra.mxu3 %v5220_v60  ;;  %v5183_v37 = vsel %vm1283_vm6, %v5163_v0, %v5165_v48  ;;  %v5184_v11 = vsel %vm1283_vm6, %v5165_v48, %v5167_v6  ;;  %v5185_v17 = vsel %vm1283_vm6, %v5167_v6, %v5169_v13 }
 0x5ce   : > { %v5229_v27 = vsel %vm4112_vm9, %v5183_v37, 0  ;;  %v5232_v59 = vsel %vm4112_vm9, %v5184_v11, 0 }
 0x5d0   : > { %6865 = vrot.lane.b32.xlu1 %v9931_v36, %s7821_s23  ;;  %v6837_v36 = vld.sshfl [vmem:[#allocation1 + $0x28] sm:$0xff pattern:$0x73625140] }
 0x5d1   : > { %6869 = vrot.lane.b32.xlu0 %v9933_v40, %s7821_s23  ;;  %7668 = vmatmul.msk.bf16.vlgmr.msra.gmra.mxu1 %vm4108_vm10, %v10078_v21  ;;  %v10110_v51 = vpop.f32.mrf.mxu0  ;;  %v6839_v40 = vld.sshfl [vmem:[#allocation1 + $0x30] sm:$0xff pattern:$0x73625140] }
 0x5d2   : > { %5348 = vmatpush.bf16.msra.mxu1 %v5214_v57  ;;  %v4536_v30 = vpop.f32.mrf.mxu3 }
 0x5d3   : > { %v4523_v1 = vpop.f32.mrf.mxu2  ;;  %v5235_v30 = vsel %vm4112_vm9, %v5185_v17, 0 }
 0x5d4   : > { %6873 = vrot.lane.b32.xlu2 %v6837_v36, %s7821_s23  ;;  %7671 = vmatmul.msk.bf16.vlgmr.msrb.gmra.mxu0 %vm4108_vm10, %v10078_v21  ;;  %v5497_v1 = vsel %vm4112_vm9, %v9593_v44, 0  ;;  %v5495_v44 = vsel %vm4112_vm9, %v9591_v3, 0  ;;  %v5505_v3 = vsel %vm4112_vm9, %v9567_v39, 0  ;;  %v5503_v39 = vsel %vm4112_vm9, %v9565_v53, 0 }
 0x5d5   : > { %v4510_v14 = vpop.f32.mrf.mxu1  ;;  %5387 = vmatpush.bf16.msrb.mxu0 %v5223_v10  ;;  %v5513_v53 = vsel %vm4112_vm9, %v9617_v45, 0  ;;  %v5515_v45 = vsel %vm4112_vm9, %v9621_v29, 0 }
 0x5d6   : > { %v5499_v14 = vsel %vm4112_vm9, %v9595_v7, 0  ;;  %v5501_v7 = vsel %vm4112_vm9, %v9599_v26, 0  ;;  %v5507_v26 = vsel %vm4112_vm9, %v9569_v56, 0  ;;  %v5509_v56 = vsel %vm4112_vm9, %v9571_v62, 0 }
 0x5d8   : > { %6871 = vrot.lane.b32.xlu1 %v6835_v32, %s7821_s23 }
 0x5d9   : > { %6875 = vrot.lane.b32.xlu0 %v6839_v40, %s7821_s23  ;;  %7673 = vmatmul.msk.bf16.vlgmr.msrb.gmra.mxu2 %vm4108_vm10, %v10078_v21  ;;  %v4549_v22 = vpop.f32.mrf.mxu0 }
 0x5da   : > { %5413 = vmatpush.bf16.msrb.mxu2 %v5229_v27 }
 0x5db   : > { %v10124_v61 = vpop.f32.mrf.mxu2 }
 0x5dc   : > { %6879 = vrot.lane.b32.xlu2 %v6845_v41, %s7821_s23  ;;  %7674 = vmatmul.msk.bf16.vlgmr.msrb.gmra.mxu3 %vm4108_vm10, %v10078_v21 }
 0x5dd   : > { %v10127_v63 = vpop.f32.mrf.mxu1  ;;  %5426 = vmatpush.bf16.msrb.mxu3 %v5232_v59 }
 0x5df   : > { %v10140_v2 = vpop.f32.mrf.mxu3 }
 0x5e0   : > { %6877 = vrot.lane.b32.xlu1 %v6841_v4, %s7821_s23  ;;  %s10810_s23 = scalar_lea.vmem %s10912_s9, %s7888_s13 }
 0x5e1   : > { %7175 = vperm.xlu0 %7796, %v7172_v24   ;;  %7672 = vmatmul.msk.bf16.vlgmr.msrb.gmra.mxu1 %vm4108_vm10, %v10078_v21  ;;  %v10143_v57 = vpop.f32.mrf.mxu0 }
 0x5e2   : > { %5400 = vmatpush.bf16.msrb.mxu1 %v5226_v38  ;;  %v10195_v38 = vld [vmem:[%s10910_s7 + $0x8] sm:$0x3] }
 0x5e3   : > { %v4575_v60 = vpop.f32.mrf.mxu2 }
 0x5e4   : > { %7675 = vmatmul.msk.bf16.vlgmr.msra.gmra.mxu0 %vm4108_vm10, %v10078_v21  ;;  %v4522_v60 = vadd.f32 %v10093_v43, %v9851_v49  ;;  %v4535_v49 = vadd.f32 %v10090_v34, %v9853_v52  ;;  %v5517_v52 = vsel %vm4112_vm9, %v9623_v58, 0  ;;  %v4574_v34 = vadd.f32 %v10124_v61, %v9906_v18 }
 0x5e5   : > { %v4562_v48 = vpop.f32.mrf.mxu1  ;;  %5439 = vmatpush.bf16.msra.mxu0 %v5235_v30  ;;  %v4587_v18 = vadd.f32 %v10140_v2, %v9908_v28  ;;  %v10933_v2 = vld [vmem:[#allocation5_spill] sm:$0xff] }
 0x5e6   : > { %v4509_v48 = vadd.f32 %v10096_v12, %v9857_v31  ;;  %v5511_v31 = vsel %vm4112_vm9, %v9615_v33, 0  ;;  %v5521_v33 = vsel %vm4112_vm9, %v9583_v5, 0  ;;  %v5523_v5 = vsel %vm4112_vm9, %v9585_v35, 0 }
 0x5e7   : > { %v4588_v0 = vpop.f32.mrf.mxu3 }
 0x5e8   : > { %v4548_v0 = vadd.f32 %v10110_v51, %v9883_v50 }
 0x5e9   : > { %7677 = vmatmul.msk.bf16.vlgmr.msra.gmra.mxu2 %vm4108_vm10, %v10078_v21  ;;  %v4601_v19 = vpop.f32.mrf.mxu0 }
 0x5ea   : > { %5547 = vmatpush.bf16.msra.mxu2 %v5497_v1 }
 0x5eb   : > { %v10152_v36 = vpop.f32.mrf.mxu2 }
 0x5ec   : > { %7678 = vmatmul.msk.bf16.vlgmr.msra.gmra.mxu3 %vm4108_vm10, %v10078_v21 }
 0x5ed   : > { %v10154_v37 = vpop.f32.mrf.mxu1  ;;  %5560 = vmatpush.bf16.msra.mxu3 %v5499_v14 }
 0x5ef   : > { %v10164_v32 = vpop.f32.mrf.mxu3 }
 0x5f1   : > { %7676 = vmatmul.msk.bf16.vlgmr.msra.gmra.mxu1 %vm4108_vm10, %v10078_v21  ;;  %v10166_v10 = vpop.f32.mrf.mxu0 }
 0x5f2   : > { %5534 = vmatpush.bf16.msra.mxu1 %v5495_v44 }
 0x5f3   : > { %v4627_v40 = vpop.f32.mrf.mxu2 }
 0x5f4   : > { %7679 = vmatmul.msk.bf16.vlgmr.msrb.gmra.mxu0 %vm4108_vm10, %v10078_v21  ;;  %v4561_v40 = vadd.f32 %v10127_v63, %v9912_v46  ;;  %v10932_v46 = vld [vmem:[#allocation4_spill] sm:$0xff] }
 0x5f5   : > { %v4614_v27 = vpop.f32.mrf.mxu1  ;;  %5573 = vmatpush.bf16.msrb.mxu0 %v5501_v7  ;;  %v5519_v61 = vsel %vm4112_vm9, %v10932_v46, 0 }
 0x5f7   : > { %v4640_v6 = vpop.f32.mrf.mxu3 }
 0x5f9   : > { %7681 = vmatmul.msk.bf16.vlgmr.msrb.gmra.mxu2 %vm4108_vm10, %v10078_v21  ;;  %v4653_v11 = vpop.f32.mrf.mxu0 }
 0x5fa   : > { %5599 = vmatpush.bf16.msrb.mxu2 %v5505_v3  ;;  %v5806_v3 = vpop.permute.xlu0 %5805  ;;  %v5808_v11 = vpop.permute.xlu1 %5807 }
 0x5fb   : > { %v10176_v41 = vpop.f32.mrf.mxu2 }
 0x5fc   : > { %7682 = vmatmul.msk.bf16.vlgmr.msrb.gmra.mxu3 %vm4108_vm10, %v10078_v21 }
 0x5fd   : > { %v10178_v22 = vpop.f32.mrf.mxu1  ;;  %5612 = vmatpush.bf16.msrb.mxu3 %v5507_v26 }
 0x5fe   : > { %v4665_v46 = vadd.f32 %v10178_v22, %v10001_v42 }
 0x5ff   : > { %v10188_v25 = vpop.f32.mrf.mxu3 }
 0x600   : > { %v4691_v42 = vadd.f32 %v10188_v25, %v9996_v55  ;;  %v10330_v25 = vld [vmem:[%s10910_s7 + $0xa] sm:$0x3] }
 0x601   : > { %7680 = vmatmul.msk.bf16.vlgmr.msrb.gmra.mxu1 %vm4108_vm10, %v10078_v21  ;;  %v10190_v24 = vpop.f32.mrf.mxu0 }
 0x602   : > { %5586 = vmatpush.bf16.msrb.mxu1 %v5503_v39  ;;  %v4600_v39 = vadd.f32 %v10143_v57, %v9943_v8  ;;  %v5810_v57 = vpop.permute.xlu2 %5809 }
 0x603   : > { %v4679_v4 = vpop.f32.mrf.mxu2 }
 0x604   : > { %7683 = vmatmul.msk.bf16.vlgmr.msra.gmra.mxu0 %vm4108_vm10, %v10078_v21 }
 0x605   : > { %v4666_v59 = vpop.f32.mrf.mxu1  ;;  %5625 = vmatpush.bf16.msra.mxu0 %v5509_v56 }
 0x606   : > { %v5838_v59 = vsel %vm1647_vm7, %v5806_v3, %v5808_v11 }
 0x607   : > { %v4692_v13 = vpop.f32.mrf.mxu3 }
 0x608   : > { %v5860_v13 = vsel %vm4112_vm9, %v5838_v59, 0 }
 0x609   : > { %7686 = vmatmul.msk.bf16.vlgmr.msra.gmra.mxu2 %vm4108_vm10, %v10195_v38  ;;  %v4705_v30 = vpop.f32.mrf.mxu0 }
 0x60a   : > { %5651 = vmatpush.bf16.msra.mxu2 %v5513_v53  ;;  %v5525_v53 = vsel %vm4112_vm9, %v10933_v2, 0  ;;  %v4704_v2 = vadd.f32 %v10190_v24, %v10017_v23 }
 0x60c   : > { %v4882_v17 = vpop.f32.mrf.mxu2  ;;  %7687 = vmatmul.msk.bf16.vlgmr.msra.gmra.mxu3 %vm4108_vm10, %v10195_v38 }
 0x60d   : > { %v10209_v21 = vadd.f32 %v4882_v17, %v4522_v60  ;;  %5664 = vmatpush.bf16.msra.mxu3 %v5515_v45  ;;  %v5804_v60 = vpop.permute.xlu0 %5803  ;;  %v4626_v17 = vadd.f32 %v10152_v36, %v9957_v15 }
 0x60e   : > { %v4869_v62 = vpop.f32.mrf.mxu1 }
 0x60f   : > { %v10211_v1 = vadd.f32 %v4869_v62, %v4509_v48  ;;  %v4895_v43 = vpop.f32.mrf.mxu3  ;;  %v5839_v48 = vsel %vm1647_vm7, %v5808_v11, %v5810_v57  ;;  %v4613_v62 = vadd.f32 %v10154_v37, %v9964_v54  ;;  %v4639_v54 = vadd.f32 %v10164_v32, %v9959_v16 }
 0x610   : > { %v10223_v12 = vadd.f32 %v4895_v43, %v4535_v49 }
 0x611   : > { %7685 = vmatmul.msk.bf16.vlgmr.msra.gmra.mxu1 %vm4108_vm10, %v10195_v38  ;;  %v4908_v14 = vpop.f32.mrf.mxu0 }
 0x612   : > { %5638 = vmatpush.bf16.msra.mxu1 %v5511_v31  ;;  %v10227_v44 = vadd.f32 %v4908_v14, %v4548_v0  ;;  %v5837_v31 = vsel %vm1647_vm7, %v5804_v60, %v5806_v3  ;;  %v5863_v0 = vsel %vm4112_vm9, %v5839_v48, 0 }
 0x613   : > { %v5857_v15 = vsel %vm4112_vm9, %v5837_v31, 0 }
 0x614   : > { %v4884_v19 = vpop.f32.mrf.mxu2  ;;  %7688 = vmatmul.msk.bf16.vlgmr.msrb.gmra.mxu0 %vm4108_vm10, %v10195_v38 }
 0x615   : > { %5677 = vmatpush.bf16.msrb.mxu0 %v5517_v52  ;;  %v5812_v19 = vpop.permute.xlu1 %5811  ;;  %v5816_v37 = vpop.permute.xlu0 %5815  ;;  %v4652_v52 = vadd.f32 %v10166_v10, %v9980_v9  ;;  %v4678_v10 = vadd.f32 %v10176_v41, %v9994_v47 }
 0x616   : > { %v4871_v29 = vpop.f32.mrf.mxu1 }
 0x617   : > { %v4897_v50 = vpop.f32.mrf.mxu3 }
 0x618   : > { %v5814_v50 = vpop.permute.xlu2 %5813 }
 0x619   : > { %7690 = vmatmul.msk.bf16.vlgmr.msrb.gmra.mxu2 %vm4108_vm10, %v10195_v38  ;;  %v4910_v7 = vpop.f32.mrf.mxu0  ;;  %v5841_v11 = vsel %vm1647_vm7, %v5812_v19, %v5814_v50 }
 0x61a   : > { %5703 = vmatpush.bf16.msrb.mxu2 %v5521_v33  ;;  %v5869_v41 = vsel %vm4112_vm9, %v5841_v11, 0 }
 0x61c   : > { %v4934_v51 = vpop.f32.mrf.mxu2  ;;  %7691 = vmatmul.msk.bf16.vlgmr.msrb.gmra.mxu3 %vm4108_vm10, %v10195_v38 }
 0x61d   : > { %v10241_v27 = vadd.f32 %v4934_v51, %v4574_v34  ;;  %5716 = vmatpush.bf16.msrb.mxu3 %v5523_v5  ;;  %v5840_v34 = vsel %vm1647_vm7, %v5810_v57, %v5812_v19  ;;  %v5818_v3 = vpop.permute.xlu1 %5817  ;;  %v5822_v60 = vpop.permute.xlu0 %5821 }
 0x61e   : > { %v4921_v58 = vpop.f32.mrf.mxu1  ;;  %v5866_v32 = vsel %vm4112_vm9, %v5840_v34, 0  ;;  %v5843_v5 = vsel %vm1647_vm7, %v5816_v37, %v5818_v3 }
 0x61f   : > { %v10243_v6 = vadd.f32 %v4921_v58, %v4561_v40  ;;  %v4947_v63 = vpop.f32.mrf.mxu3  ;;  %v5842_v40 = vsel %vm1647_vm7, %v5814_v50, %v5816_v37 }
 0x620   : > { %v10255_v26 = vadd.f32 %v4947_v63, %v4587_v18  ;;  %v5872_v58 = vsel %vm4112_vm9, %v5842_v40, 0  ;;  %v5820_v47 = vpop.permute.xlu2 %5819 }
 0x621   : > { %7689 = vmatmul.msk.bf16.vlgmr.msrb.gmra.mxu1 %vm4108_vm10, %v10195_v38  ;;  %v4960_v35 = vpop.f32.mrf.mxu0 }
 0x622   : > { %5690 = vmatpush.bf16.msrb.mxu1 %v5519_v61  ;;  %v10260_v28 = vadd.f32 %v4960_v35, %v4600_v39 }
 0x624   : > { %v4936_v4 = vpop.f32.mrf.mxu2  ;;  %7692 = vmatmul.msk.bf16.vlgmr.msra.gmra.mxu0 %vm4108_vm10, %v10195_v38 }
 0x625   : > { %5729 = vmatpush.bf16.msra.mxu0 %v5525_v53  ;;  %v5875_v4 = vsel %vm4112_vm9, %v5843_v5, 0  ;;  %v5824_v59 = vpop.permute.xlu1 %5823 }
 0x626   : > { %v4923_v56 = vpop.f32.mrf.mxu1  ;;  %v5846_v57 = vsel %vm1647_vm7, %v5822_v60, %v5824_v59 }
 0x627   : > { %v4949_v8 = vpop.f32.mrf.mxu3  ;;  %v5884_v23 = vsel %vm4112_vm9, %v5846_v57, 0 }
 0x629   : > { %7694 = vmatmul.msk.bf16.vlgmr.msra.gmra.mxu2 %vm4108_vm10, %v10195_v38  ;;  %v4962_v49 = vpop.f32.mrf.mxu0 }
 0x62a   : > { %5924 = vmatpush.bf16.msra.mxu2 %v5860_v13  ;;  %v5844_v13 = vsel %vm1647_vm7, %v5818_v3, %v5820_v47 }
 0x62b   : > { %v5878_v48 = vsel %vm4112_vm9, %v5844_v13, 0 }
 0x62c   : > { %v4986_v30 = vpop.f32.mrf.mxu2  ;;  %7695 = vmatmul.msk.bf16.vlgmr.msra.gmra.mxu3 %vm4108_vm10, %v10195_v38 }
 0x62d   : > { %v10274_v45 = vadd.f32 %v4986_v30, %v4626_v17  ;;  %5937 = vmatpush.bf16.msra.mxu3 %v5863_v0  ;;  %v5826_v30 = vpop.permute.xlu2 %5825  ;;  %v5845_v0 = vsel %vm1647_vm7, %v5820_v47, %v5822_v60  ;;  %v5830_v37 = vpop.permute.xlu1 %5829 }
 0x62e   : > { %v4973_v43 = vpop.f32.mrf.mxu1 }
 0x62f   : > { %v10278_v14 = vadd.f32 %v4973_v43, %v4613_v62  ;;  %v4999_v36 = vpop.f32.mrf.mxu3  ;;  %v5847_v62 = vsel %vm1647_vm7, %v5824_v59, %v5826_v30 }
 0x630   : > { %v10287_v29 = vadd.f32 %v4999_v36, %v4639_v54  ;;  %v5881_v36 = vsel %vm4112_vm9, %v5845_v0, 0 }
 0x631   : > { %7693 = vmatmul.msk.bf16.vlgmr.msra.gmra.mxu1 %vm4108_vm10, %v10195_v38  ;;  %v5012_v51 = vpop.f32.mrf.mxu0 }
 0x632   : > { %5911 = vmatpush.bf16.msra.mxu1 %v5857_v15  ;;  %v10293_v16 = vadd.f32 %v5012_v51, %v4652_v52  ;;  %v5828_v15 = vpop.permute.xlu0 %5827 }
 0x634   : > { %v4988_v33 = vpop.f32.mrf.mxu2  ;;  %7696 = vmatmul.msk.bf16.vlgmr.msrb.gmra.mxu0 %vm4108_vm10, %v10195_v38 }
 0x635   : > { %5950 = vmatpush.bf16.msrb.mxu0 %v5866_v32  ;;  %v5832_v50 = vpop.permute.xlu2 %5831  ;;  %v5836_v11 = vpop.permute.xlu1 %5835 }
 0x636   : > { %v4975_v7 = vpop.f32.mrf.mxu1  ;;  %v5850_v51 = vsel %vm1647_vm7, %v5830_v37, %v5832_v50 }
 0x637   : > { %v5001_v9 = vpop.f32.mrf.mxu3 }
 0x639   : > { %7698 = vmatmul.msk.bf16.vlgmr.msrb.gmra.mxu2 %vm4108_vm10, %v10195_v38  ;;  %v5014_v63 = vpop.f32.mrf.mxu0 }
 0x63a   : > { %5976 = vmatpush.bf16.msrb.mxu2 %v5872_v58  ;;  %v5896_v58 = vsel %vm4112_vm9, %v5850_v51, 0 }
 0x63c   : > { %v5038_v18 = vpop.f32.mrf.mxu2  ;;  %7699 = vmatmul.msk.bf16.vlgmr.msrb.gmra.mxu3 %vm4108_vm10, %v10195_v38 }
 0x63d   : > { %v10306_v61 = vadd.f32 %v5038_v18, %v4678_v10  ;;  %5989 = vmatpush.bf16.msrb.mxu3 %v5875_v4  ;;  %v5849_v18 = vsel %vm1647_vm7, %v5828_v15, %v5830_v37  ;;  %v6183_v4 = vpop.permute.xlu2 %6182  ;;  %v6187_v57 = vpop.permute.xlu1 %6186 }
 0x63e   : > { %v5025_v39 = vpop.f32.mrf.mxu1  ;;  %v5893_v47 = vsel %vm4112_vm9, %v5849_v18, 0 }
 0x63f   : > { %v10310_v35 = vadd.f32 %v5025_v39, %v4665_v46  ;;  %v5051_v22 = vpop.f32.mrf.mxu3 }
 0x640   : > { %v10319_v56 = vadd.f32 %v5051_v22, %v4691_v42 }
 0x641   : > { %7697 = vmatmul.msk.bf16.vlgmr.msrb.gmra.mxu1 %vm4108_vm10, %v10195_v38  ;;  %v5064_v8 = vpop.f32.mrf.mxu0 }
 0x642   : > { %5963 = vmatpush.bf16.msrb.mxu1 %v5869_v41  ;;  %v10325_v55 = vadd.f32 %v5064_v8, %v4704_v2 }
 0x644   : > { %v5040_v53 = vpop.f32.mrf.mxu2  ;;  %7700 = vmatmul.msk.bf16.vlgmr.msra.gmra.mxu0 %vm4108_vm10, %v10195_v38  ;;  %v5887_v38 = vsel %vm4112_vm9, %v5847_v62, 0 }
 0x645   : > { %6002 = vmatpush.bf16.msra.mxu0 %v5878_v48 }
 0x646   : > { %v5027_v17 = vpop.f32.mrf.mxu1 }
 0x647   : > { %v5053_v24 = vpop.f32.mrf.mxu3  ;;  %v6181_v17 = vpop.permute.xlu2 %6180 }
 0x649   : > { %7703 = vmatmul.msk.bf16.vlgmr.msra.gmra.mxu2 %vm4108_vm10, %v10330_v25  ;;  %v5066_v43 = vpop.f32.mrf.mxu0 }
 0x64a   : > { %6028 = vmatpush.bf16.msra.mxu2 %v5884_v23 }
 0x64c   : > { %v5259_v49 = vpop.f32.mrf.mxu2  ;;  %7704 = vmatmul.msk.bf16.vlgmr.msra.gmra.mxu3 %vm4108_vm10, %v10330_v25 }
 0x64d   : > { %v10340_v31 = vadd.f32 %v5259_v49, %v10209_v21  ;;  %6041 = vmatpush.bf16.msra.mxu3 %v5887_v38  ;;  %v6191_v38 = vpop.permute.xlu1 %6190 }
 0x64e   : > { %v5246_v19 = vpop.f32.mrf.mxu1 }
 0x64f   : > { %v10345_v54 = vadd.f32 %v5246_v19, %v10211_v1  ;;  %v5272_v21 = vpop.f32.mrf.mxu3  ;;  %v5848_v1 = vsel %vm1647_vm7, %v5826_v30, %v5828_v15  ;;  %v6214_v30 = vsel %vm1283_vm6, %v6181_v17, %v6183_v4 }
 0x650   : > { %v10353_v52 = vadd.f32 %v5272_v21, %v10223_v12  ;;  %v5890_v32 = vsel %vm4112_vm9, %v5848_v1, 0  ;;  %v5834_v12 = vpop.permute.xlu0 %5833  ;;  %v6234_v19 = vsel %vm4112_vm9, %v6214_v30, 0  ;;  %v6193_v21 = vpop.permute.xlu2 %6192 }
 0x651   : > { %7702 = vmatmul.msk.bf16.vlgmr.msra.gmra.mxu1 %vm4108_vm10, %v10330_v25  ;;  %v5285_v34 = vpop.f32.mrf.mxu0  ;;  %v5851_v9 = vsel %vm1647_vm7, %v5832_v50, %v5834_v12 }
 0x652   : > { %6015 = vmatpush.bf16.msra.mxu1 %v5881_v36  ;;  %v10358_v7 = vadd.f32 %v5285_v34, %v10227_v44  ;;  %v5899_v63 = vsel %vm4112_vm9, %v5851_v9, 0 }
 0x654   : > { %v5261_v33 = vpop.f32.mrf.mxu2  ;;  %7705 = vmatmul.msk.bf16.vlgmr.msrb.gmra.mxu0 %vm4108_vm10, %v10330_v25 }
 0x655   : > { %6054 = vmatpush.bf16.msrb.mxu0 %v5890_v32  ;;  %v6219_v33 = vsel %vm1283_vm6, %v6191_v38, %v6193_v21 }
 0x656   : > { %v5248_v40 = vpop.f32.mrf.mxu1  ;;  %v6249_v51 = vsel %vm4112_vm9, %v6219_v33, 0 }
 0x657   : > { %v5274_v3 = vpop.f32.mrf.mxu3 }
 0x658   : > { %v6185_v41 = vpop.permute.xlu0 %6184 }
 0x659   : > { %7707 = vmatmul.msk.bf16.vlgmr.msrb.gmra.mxu2 %vm4108_vm10, %v10330_v25  ;;  %v5287_v5 = vpop.f32.mrf.mxu0  ;;  %v6215_v2 = vsel %vm1283_vm6, %v6183_v4, %v6185_v41  ;;  %v6216_v48 = vsel %vm1283_vm6, %v6185_v41, %v6187_v57 }
 0x65a   : > { %6080 = vmatpush.bf16.msrb.mxu2 %v5896_v58  ;;  %v6237_v8 = vsel %vm4112_vm9, %v6215_v2, 0  ;;  %v6240_v49 = vsel %vm4112_vm9, %v6216_v48, 0  ;;  %v6197_v5 = vpop.permute.xlu1 %6196 }
 0x65c   : > { %v5311_v10 = vpop.f32.mrf.mxu2  ;;  %7708 = vmatmul.msk.bf16.vlgmr.msrb.gmra.mxu3 %vm4108_vm10, %v10330_v25 }
 0x65d   : > { %v10368_v44 = vadd.f32 %v5311_v10, %v10241_v27  ;;  %6093 = vmatpush.bf16.msrb.mxu3 %v5899_v63 }
 0x65e   : > { %v5298_v46 = vpop.f32.mrf.mxu1 }
 0x65f   : > { %v10373_v39 = vadd.f32 %v5298_v46, %v10243_v6  ;;  %v5324_v27 = vpop.f32.mrf.mxu3  ;;  %v5852_v6 = vsel %vm1647_vm7, %v5834_v12, %v5836_v11 }
 0x660   : > { %v10381_v42 = vadd.f32 %v5324_v27, %v10255_v26  ;;  %v5902_v60 = vsel %vm4112_vm9, %v5852_v6, 0  ;;  %v6189_v43 = vpop.permute.xlu0 %6188 }
 0x661   : > { %7706 = vmatmul.msk.bf16.vlgmr.msrb.gmra.mxu1 %vm4108_vm10, %v10330_v25  ;;  %v5337_v59 = vpop.f32.mrf.mxu0  ;;  %v6218_v3 = vsel %vm1283_vm6, %v6189_v43, %v6191_v38 }
 0x662   : > { %6067 = vmatpush.bf16.msrb.mxu1 %v5893_v47  ;;  %v10386_v13 = vadd.f32 %v5337_v59, %v10260_v28  ;;  %v6246_v46 = vsel %vm4112_vm9, %v6218_v3, 0  ;;  %v6199_v47 = vpop.permute.xlu2 %6198  ;;  %v10447_v59 = vld [vmem:[%s10910_s7 + $0xc] sm:$0x3] }
 0x663   : > { %v6222_v17 = vsel %vm1283_vm6, %v6197_v5, %v6199_v47 }
 0x664   : > { %v5313_v22 = vpop.f32.mrf.mxu2  ;;  %7709 = vmatmul.msk.bf16.vlgmr.msra.gmra.mxu0 %vm4108_vm10, %v10330_v25  ;;  %v6258_v30 = vsel %vm4112_vm9, %v6222_v17, 0 }
 0x665   : > { %6106 = vmatpush.bf16.msra.mxu0 %v5902_v60 }
 0x666   : > { %v5300_v53 = vpop.f32.mrf.mxu1 }
 0x667   : > { %v5326_v26 = vpop.f32.mrf.mxu3  ;;  %v6203_v53 = vpop.permute.xlu1 %6202 }
 0x669   : > { %7711 = vmatmul.msk.bf16.vlgmr.msra.gmra.mxu2 %vm4108_vm10, %v10330_v25  ;;  %v5339_v24 = vpop.f32.mrf.mxu0 }
 0x66a   : > { %6301 = vmatpush.bf16.msra.mxu2 %v6237_v8  ;;  %v6205_v24 = vpop.permute.xlu2 %6204 }
 0x66c   : > { %v5363_v23 = vpop.f32.mrf.mxu2  ;;  %7712 = vmatmul.msk.bf16.vlgmr.msra.gmra.mxu3 %vm4108_vm10, %v10330_v25 }
 0x66d   : > { %v10396_v28 = vadd.f32 %v5363_v23, %v10274_v45  ;;  %6314 = vmatpush.bf16.msra.mxu3 %v6240_v49 }
 0x66e   : > { %v5350_v62 = vpop.f32.mrf.mxu1 }
 0x66f   : > { %v10401_v0 = vadd.f32 %v5350_v62, %v10278_v14  ;;  %v5376_v45 = vpop.f32.mrf.mxu3  ;;  %v6217_v14 = vsel %vm1283_vm6, %v6187_v57, %v6189_v43  ;;  %v6209_v62 = vpop.permute.xlu1 %6208 }
 0x670   : > { %v10409_v15 = vadd.f32 %v5376_v45, %v10287_v29  ;;  %v6243_v34 = vsel %vm4112_vm9, %v6217_v14, 0  ;;  %v6195_v29 = vpop.permute.xlu0 %6194 }
 0x671   : > { %7710 = vmatmul.msk.bf16.vlgmr.msra.gmra.mxu1 %vm4108_vm10, %v10330_v25  ;;  %v5389_v37 = vpop.f32.mrf.mxu0  ;;  %v6220_v32 = vsel %vm1283_vm6, %v6193_v21, %v6195_v29 }
 0x672   : > { %6288 = vmatpush.bf16.msra.mxu1 %v6234_v19  ;;  %v10414_v1 = vadd.f32 %v5389_v37, %v10293_v16  ;;  %v6252_v10 = vsel %vm4112_vm9, %v6220_v32, 0  ;;  %v6211_v33 = vpop.permute.xlu2 %6210 }
 0x674   : > { %v5365_v36 = vpop.f32.mrf.mxu2  ;;  %7713 = vmatmul.msk.bf16.vlgmr.msrb.gmra.mxu0 %vm4108_vm10, %v10330_v25 }
 0x675   : > { %6327 = vmatpush.bf16.msrb.mxu0 %v6243_v34 }
 0x676   : > { %v5352_v50 = vpop.f32.mrf.mxu1 }
 0x677   : > { %v5378_v40 = vpop.f32.mrf.mxu3  ;;  %v6228_v50 = vsel %vm1283_vm6, %v6209_v62, %v6211_v33 }
 0x678   : > { %v6201_v63 = vpop.permute.xlu0 %6200  ;;  %v6276_v32 = vsel %vm4112_vm9, %v6228_v50, 0 }
 0x679   : > { %7715 = vmatmul.msk.bf16.vlgmr.msrb.gmra.mxu2 %vm4108_vm10, %v10330_v25  ;;  %v5391_v12 = vpop.f32.mrf.mxu0  ;;  %v6223_v41 = vsel %vm1283_vm6, %v6199_v47, %v6201_v63  ;;  %v6224_v60 = vsel %vm1283_vm6, %v6201_v63, %v6203_v53 }
 0x67a   : > { %6353 = vmatpush.bf16.msrb.mxu2 %v6249_v51 }
 0x67c   : > { %v5415_v58 = vpop.f32.mrf.mxu2  ;;  %7716 = vmatmul.msk.bf16.vlgmr.msrb.gmra.mxu3 %vm4108_vm10, %v10330_v25 }
 0x67d   : > { %v10424_v16 = vadd.f32 %v5415_v58, %v10306_v61  ;;  %6366 = vmatpush.bf16.msrb.mxu3 %v6252_v10 }
 0x67e   : > { %v5402_v9 = vpop.f32.mrf.mxu1 }
 0x67f   : > { %v10429_v18 = vadd.f32 %v5402_v9, %v10310_v35  ;;  %v5428_v61 = vpop.f32.mrf.mxu3  ;;  %v6221_v35 = vsel %vm1283_vm6, %v6195_v29, %v6197_v5 }
 0x680   : > { %v10437_v11 = vadd.f32 %v5428_v61, %v10319_v56  ;;  %v6255_v2 = vsel %vm4112_vm9, %v6221_v35, 0  ;;  %v6261_v56 = vsel %vm4112_vm9, %v6223_v41, 0  ;;  %v6207_v19 = vpop.permute.xlu0 %6206 }
 0x681   : > { %7714 = vmatmul.msk.bf16.vlgmr.msrb.gmra.mxu1 %vm4108_vm10, %v10330_v25  ;;  %v5441_v27 = vpop.f32.mrf.mxu0  ;;  %v6227_v38 = vsel %vm1283_vm6, %v6207_v19, %v6209_v62  ;;  %v6226_v29 = vsel %vm1283_vm6, %v6205_v24, %v6207_v19 }
 0x682   : > { %6340 = vmatpush.bf16.msrb.mxu1 %v6246_v46  ;;  %v10442_v6 = vadd.f32 %v5441_v27, %v10325_v55  ;;  %v6273_v37 = vsel %vm4112_vm9, %v6227_v38, 0  ;;  %v6270_v12 = vsel %vm4112_vm9, %v6226_v29, 0 }
 0x684   : > { %v5417_v4 = vpop.f32.mrf.mxu2  ;;  %7717 = vmatmul.msk.bf16.vlgmr.msra.gmra.mxu0 %vm4108_vm10, %v10330_v25  ;;  %v6264_v25 = vsel %vm4112_vm9, %v6224_v60, 0 }
 0x685   : > { %6379 = vmatpush.bf16.msra.mxu0 %v6255_v2 }
 0x686   : > { %v5404_v22 = vpop.f32.mrf.mxu1 }
 0x687   : > { %v5430_v55 = vpop.f32.mrf.mxu3  ;;  %v10934_v22 = vld [vmem:[#allocation15_spill] sm:$0xff] }
 0x688   : > { %v6543_v2 = vsel %vm4112_vm9, %v10934_v22, 0 }
 0x689   : > { %7720 = vmatmul.msk.bf16.vlgmr.msra.gmra.mxu2 %vm4108_vm10, %v10447_v59  ;;  %v5443_v26 = vpop.f32.mrf.mxu0 }
 0x68a   : > { %6405 = vmatpush.bf16.msra.mxu2 %v6261_v56  ;;  %v10936_v26 = vld [vmem:[#allocation16_spill] sm:$0xff] }
 0x68b   : > { %v6545_v17 = vsel %vm4112_vm9, %v10936_v26, 0 }
 0x68c   : > { %v5549_v8 = vpop.f32.mrf.mxu2  ;;  %7721 = vmatmul.msk.bf16.vlgmr.msra.gmra.mxu3 %vm4108_vm10, %v10447_v59 }
 0x68d   : > { %v10457_v57 = vadd.f32 %v5549_v8, %v10340_v31  ;;  %6418 = vmatpush.bf16.msra.mxu3 %v6264_v25 }
 0x68e   : > { %v5536_v48 = vpop.f32.mrf.mxu1 }
 0x68f   : > { %v10462_v23 = vadd.f32 %v5536_v48, %v10345_v54  ;;  %v5562_v31 = vpop.f32.mrf.mxu3  ;;  %v6225_v54 = vsel %vm1283_vm6, %v6203_v53, %v6205_v24  ;;  %v10937_v48 = vld [vmem:[#allocation7_spill] sm:$0xff] }
 0x690   : > { %v10470_v49 = vadd.f32 %v5562_v31, %v10353_v52  ;;  %v6267_v14 = vsel %vm4112_vm9, %v6225_v54, 0  ;;  %v10939_v54 = vld [vmem:[#allocation6_spill] sm:$0xff] }
 0x691   : > { %7719 = vmatmul.msk.bf16.vlgmr.msra.gmra.mxu1 %vm4108_vm10, %v10447_v59  ;;  %v5575_v45 = vpop.f32.mrf.mxu0 }
 0x692   : > { %6392 = vmatpush.bf16.msra.mxu1 %v6258_v30  ;;  %v10475_v21 = vadd.f32 %v5575_v45, %v10358_v7  ;;  %v6547_v45 = vsel %vm4112_vm9, %v10939_v54, 0 }
 0x694   : > { %v5551_v43 = vpop.f32.mrf.mxu2  ;;  %7722 = vmatmul.msk.bf16.vlgmr.msrb.gmra.mxu0 %vm4108_vm10, %v10447_v59 }
 0x695   : > { %6431 = vmatpush.bf16.msrb.mxu0 %v6267_v14  ;;  %v10938_v43 = vld [vmem:[#allocation8_spill] sm:$0xff] }
 0x696   : > { %v5538_v36 = vpop.f32.mrf.mxu1  ;;  %v6551_v19 = vsel %vm4112_vm9, %v10938_v43, 0 }
 0x697   : > { %v5564_v52 = vpop.f32.mrf.mxu3 }
 0x698   : > { %v10562_v52 = vld [vmem:[%s10910_s7 + $0xe] sm:$0x3] }
 0x699   : > { %7724 = vmatmul.msk.bf16.vlgmr.msrb.gmra.mxu2 %vm4108_vm10, %v10447_v59  ;;  %v5577_v51 = vpop.f32.mrf.mxu0 }
 0x69a   : > { %6457 = vmatpush.bf16.msrb.mxu2 %v6273_v37 }
 0x69c   : > { %v5601_v34 = vpop.f32.mrf.mxu2  ;;  %7725 = vmatmul.msk.bf16.vlgmr.msrb.gmra.mxu3 %vm4108_vm10, %v10447_v59 }
 0x69d   : > { %v10485_v7 = vadd.f32 %v5601_v34, %v10368_v44  ;;  %6470 = vmatpush.bf16.msrb.mxu3 %v6276_v32  ;;  %v6213_v44 = vpop.permute.xlu0 %6212 }
 0x69e   : > { %v5588_v40 = vpop.f32.mrf.mxu1  ;;  %v6229_v5 = vsel %vm1283_vm6, %v6211_v33, %v6213_v44  ;;  %v10940_v33 = vld [vmem:[#allocation9_spill] sm:$0xff] }
 0x69f   : > { %v10490_v58 = vadd.f32 %v5588_v40, %v10373_v39  ;;  %v5614_v3 = vpop.f32.mrf.mxu3  ;;  %v6279_v63 = vsel %vm4112_vm9, %v6229_v5, 0  ;;  %v6553_v50 = vsel %vm4112_vm9, %v10940_v33, 0 }
 0x6a0   : > { %v10498_v9 = vadd.f32 %v5614_v3, %v10381_v42  ;;  %v6541_v42 = vsel %vm4112_vm9, %v9828_v20, 0  ;;  %v10935_v20 = vld [vmem:[#allocation14_spill] sm:$0xff]  ;;  %v10943_v3 = vld [vmem:[#allocation17_spill] sm:$0xff] }
 0x6a1   : > { %7723 = vmatmul.msk.bf16.vlgmr.msrb.gmra.mxu1 %vm4108_vm10, %v10447_v59  ;;  %v5627_v39 = vpop.f32.mrf.mxu0  ;;  %v6539_v56 = vsel %vm4112_vm9, %v10935_v20, 0  ;;  %v6850_v20 = vpop.permute.xlu1 %6849 }
 0x6a2   : > { %6444 = vmatpush.bf16.msrb.mxu1 %v6270_v12  ;;  %v10502_v61 = vadd.f32 %v5627_v39, %v10386_v13  ;;  %v10942_v12 = vld [vmem:[#allocation19_spill] sm:$0xff] }
 0x6a3   : > { %v6559_v44 = vsel %vm4112_vm9, %v10942_v12, 0 }
 0x6a4   : > { %v5603_v10 = vpop.f32.mrf.mxu2  ;;  %7726 = vmatmul.msk.bf16.vlgmr.msra.gmra.mxu0 %vm4108_vm10, %v10447_v59 }
 0x6a5   : > { %6483 = vmatpush.bf16.msra.mxu0 %v6279_v63  ;;  %v6555_v10 = vsel %vm4112_vm9, %v10943_v3, 0  ;;  %v6854_v43 = vpop.permute.xlu0 %6853 }
 0x6a6   : > { %v5590_v46 = vpop.f32.mrf.mxu1 }
 0x6a7   : > { %v5616_v4 = vpop.f32.mrf.mxu3 }
 0x6a9   : > { %7728 = vmatmul.msk.bf16.vlgmr.msra.gmra.mxu2 %vm4108_vm10, %v10447_v59  ;;  %v5629_v13 = vpop.f32.mrf.mxu0 }
 0x6aa   : > { %6591 = vmatpush.bf16.msra.mxu2 %v6541_v42  ;;  %v10944_v42 = vld [vmem:[#allocation20_spill] sm:$0xff] }
 0x6ab   : > { %v6561_v4 = vsel %vm4112_vm9, %v10944_v42, 0 }
 0x6ac   : > { %v5653_v47 = vpop.f32.mrf.mxu2  ;;  %7729 = vmatmul.msk.bf16.vlgmr.msra.gmra.mxu3 %vm4108_vm10, %v10447_v59 }
 0x6ad   : > { %v10512_v35 = vadd.f32 %v5653_v47, %v10396_v28  ;;  %6604 = vmatpush.bf16.msra.mxu3 %v6543_v2  ;;  %v10945_v47 = vld [vmem:[#allocation11_spill] sm:$0xff] }
 0x6ae   : > { %v5640_v27 = vpop.f32.mrf.mxu1 }
 0x6af   : > { %v10515_v41 = vadd.f32 %v5640_v27, %v10401_v0  ;;  %v5666_v28 = vpop.f32.mrf.mxu3 }
 0x6b0   : > { %v10526_v53 = vadd.f32 %v5666_v28, %v10409_v15  ;;  %v6549_v15 = vsel %vm4112_vm9, %v10937_v48, 0  ;;  %v10946_v28 = vld [vmem:[#allocation12_spill] sm:$0xff] }
 0x6b1   : > { %7727 = vmatmul.msk.bf16.vlgmr.msra.gmra.mxu1 %vm4108_vm10, %v10447_v59  ;;  %v5679_v55 = vpop.f32.mrf.mxu0 }
 0x6b2   : > { %6578 = vmatpush.bf16.msra.mxu1 %v6539_v56  ;;  %v10529_v8 = vadd.f32 %v5679_v55, %v10414_v1  ;;  %v10947_v55 = vld [vmem:[#allocation10_spill] sm:$0xff] }
 0x6b4   : > { %v5655_v0 = vpop.f32.mrf.mxu2  ;;  %7730 = vmatmul.msk.bf16.vlgmr.msrb.gmra.mxu0 %vm4108_vm10, %v10447_v59 }
 0x6b5   : > { %6617 = vmatpush.bf16.msrb.mxu0 %v6545_v17  ;;  %v6567_v0 = vsel %vm4112_vm9, %v10946_v28, 0  ;;  %v6852_v17 = vpop.permute.xlu2 %6851 }
 0x6b6   : > { %v5642_v60 = vpop.f32.mrf.mxu1 }
 0x6b7   : > { %v5668_v25 = vpop.f32.mrf.mxu3 }
 0x6b9   : > { %7732 = vmatmul.msk.bf16.vlgmr.msrb.gmra.mxu2 %vm4108_vm10, %v10447_v59  ;;  %v5681_v1 = vpop.f32.mrf.mxu0 }
 0x6ba   : > { %6643 = vmatpush.bf16.msrb.mxu2 %v6549_v15  ;;  %v6882_v15 = vsel %vm1647_vm7, %v6850_v20, %v6852_v17  ;;  %v10948_v1 = vld [vmem:[#allocation13_spill] sm:$0xff] }
 0x6bc   : > { %v5705_v24 = vpop.f32.mrf.mxu2  ;;  %7733 = vmatmul.msk.bf16.vlgmr.msrb.gmra.mxu3 %vm4108_vm10, %v10447_v59 }
 0x6bd   : > { %v10540_v30 = vadd.f32 %v5705_v24, %v10424_v16  ;;  %6656 = vmatpush.bf16.msrb.mxu3 %v6551_v19  ;;  %v6904_v19 = vsel %vm4112_vm9, %v6882_v15, 0 }
 0x6be   : > { %v5692_v31 = vpop.f32.mrf.mxu1 }
 0x6bf   : > { %v10543_v62 = vadd.f32 %v5692_v31, %v10429_v18  ;;  %v5718_v16 = vpop.f32.mrf.mxu3  ;;  %v6569_v31 = vsel %vm4112_vm9, %v10948_v1, 0 }
 0x6c0   : > { %v10554_v38 = vadd.f32 %v5718_v16, %v10437_v11  ;;  %v10941_v11 = vld [vmem:[#allocation18_spill] sm:$0xff] }
 0x6c1   : > { %7731 = vmatmul.msk.bf16.vlgmr.msrb.gmra.mxu1 %vm4108_vm10, %v10447_v59  ;;  %v5731_v36 = vpop.f32.mrf.mxu0  ;;  %v6557_v34 = vsel %vm4112_vm9, %v10941_v11, 0  ;;  %v6856_v11 = vpop.permute.xlu2 %6855 }
 0x6c2   : > { %6630 = vmatpush.bf16.msrb.mxu1 %v6547_v45  ;;  %v10557_v37 = vadd.f32 %v5731_v36, %v10442_v6  ;;  %v6883_v45 = vsel %vm1647_vm7, %v6852_v17, %v6854_v43 }
 0x6c3   : > { %v6907_v33 = vsel %vm4112_vm9, %v6883_v45, 0 }
 0x6c4   : > { %v5707_v18 = vpop.f32.mrf.mxu2  ;;  %7734 = vmatmul.msk.bf16.vlgmr.msra.gmra.mxu0 %vm4108_vm10, %v10447_v59 }
 0x6c5   : > { %6669 = vmatpush.bf16.msra.mxu0 %v6553_v50 }
 0x6c6   : > { %v5694_v14 = vpop.f32.mrf.mxu1 }
 0x6c7   : > { %v5720_v6 = vpop.f32.mrf.mxu3 }
 0x6c9   : > { %7737 = vmatmul.msk.bf16.vlgmr.msra.gmra.mxu2 %vm4108_vm10, %v10562_v52  ;;  %v5733_v40 = vpop.f32.mrf.mxu0 }
 0x6ca   : > { %6695 = vmatpush.bf16.msra.mxu2 %v6557_v34 }
 0x6cc   : > { %v5926_v51 = vpop.f32.mrf.mxu2  ;;  %7738 = vmatmul.msk.bf16.vlgmr.msra.gmra.mxu3 %vm4108_vm10, %v10562_v52 }
 0x6cd   : > { %v10573_v29 = vadd.f32 %v5926_v51, %v10457_v57  ;;  %6708 = vmatpush.bf16.msra.mxu3 %v6559_v44 }
 0x6ce   : > { %v5913_v32 = vpop.f32.mrf.mxu1 }
 0x6cf   : > { %v10576_v59 = vadd.f32 %v5913_v32, %v10462_v23  ;;  %v5939_v57 = vpop.f32.mrf.mxu3  ;;  %v6858_v32 = vpop.permute.xlu0 %6857 }
 0x6d0   : > { %v10587_v5 = vadd.f32 %v5939_v57, %v10470_v49  ;;  %v6565_v49 = vsel %vm4112_vm9, %v10945_v47, 0  ;;  %v6885_v47 = vsel %vm1647_vm7, %v6856_v11, %v6858_v32 }
 0x6d1   : > { %7736 = vmatmul.msk.bf16.vlgmr.msra.gmra.mxu1 %vm4108_vm10, %v10562_v52  ;;  %v5952_v39 = vpop.f32.mrf.mxu0 }
 0x6d2   : > { %6682 = vmatpush.bf16.msra.mxu1 %v6555_v10  ;;  %v10590_v63 = vadd.f32 %v5952_v39, %v10475_v21  ;;  %v6862_v39 = vpop.permute.xlu2 %6861 }
 0x6d4   : > { %v5928_v23 = vpop.f32.mrf.mxu2  ;;  %7739 = vmatmul.msk.bf16.vlgmr.msrb.gmra.mxu0 %vm4108_vm10, %v10562_v52 }
 0x6d5   : > { %6721 = vmatpush.bf16.msrb.mxu0 %v6561_v4 }
 0x6d6   : > { %v5915_v46 = vpop.f32.mrf.mxu1 }
 0x6d7   : > { %v5941_v13 = vpop.f32.mrf.mxu3 }
 0x6d9   : > { %7741 = vmatmul.msk.bf16.vlgmr.msrb.gmra.mxu2 %vm4108_vm10, %v10562_v52  ;;  %v5954_v21 = vpop.f32.mrf.mxu0 }
 0x6da   : > { %6747 = vmatpush.bf16.msrb.mxu2 %v6565_v49 }
 0x6dc   : > { %v5978_v27 = vpop.f32.mrf.mxu2  ;;  %7742 = vmatmul.msk.bf16.vlgmr.msrb.gmra.mxu3 %vm4108_vm10, %v10562_v52 }
 0x6dd   : > { %v10601_v22 = vadd.f32 %v5978_v27, %v10485_v7  ;;  %6760 = vmatpush.bf16.msrb.mxu3 %v6567_v0  ;;  %v6563_v7 = vsel %vm4112_vm9, %v10947_v55, 0  ;;  %v6864_v27 = vpop.permute.xlu0 %6863  ;;  %v6868_v55 = vpop.permute.xlu2 %6867 }
 0x6de   : > { %v5965_v2 = vpop.f32.mrf.mxu1 }
 0x6df   : > { %v10604_v56 = vadd.f32 %v5965_v2, %v10490_v58  ;;  %v5991_v60 = vpop.f32.mrf.mxu3  ;;  %v6913_v2 = vsel %vm4112_vm9, %v6885_v47, 0 }
 0x6e0   : > { %v10615_v26 = vadd.f32 %v5991_v60, %v10498_v9  ;;  %v6848_v9 = vpop.permute.xlu1 %6847 }
 0x6e1   : > { %7740 = vmatmul.msk.bf16.vlgmr.msrb.gmra.mxu1 %vm4108_vm10, %v10562_v52  ;;  %v6004_v48 = vpop.f32.mrf.mxu0  ;;  %v6881_v36 = vsel %vm1647_vm7, %v6848_v9, %v6850_v20 }
 0x6e2   : > { %6734 = vmatpush.bf16.msrb.mxu1 %v6563_v7  ;;  %v10619_v24 = vadd.f32 %v6004_v48, %v10502_v61  ;;  %v6901_v34 = vsel %vm4112_vm9, %v6881_v36, 0  ;;  %v10681_v48 = vld [vmem:[%s10910_s7 + $0x10] sm:$0x3] }
 0x6e4   : > { %v5980_v58 = vpop.f32.mrf.mxu2  ;;  %7743 = vmatmul.msk.bf16.vlgmr.msra.gmra.mxu0 %vm4108_vm10, %v10562_v52 }
 0x6e5   : > { %6773 = vmatpush.bf16.msra.mxu0 %v6569_v31 }
 0x6e6   : > { %v5967_v25 = vpop.f32.mrf.mxu1 }
 0x6e7   : > { %v5993_v54 = vpop.f32.mrf.mxu3  ;;  %v6870_v25 = vpop.permute.xlu0 %6869 }
 0x6e8   : > { %v6860_v6 = vpop.permute.xlu1 %6859  ;;  %v6891_v1 = vsel %vm1647_vm7, %v6868_v55, %v6870_v25 }
 0x6e9   : > { %7745 = vmatmul.msk.bf16.vlgmr.msra.gmra.mxu2 %vm4108_vm10, %v10562_v52  ;;  %v6006_v18 = vpop.f32.mrf.mxu0  ;;  %v6886_v44 = vsel %vm1647_vm7, %v6858_v32, %v6860_v6  ;;  %v6887_v46 = vsel %vm1647_vm7, %v6860_v6, %v6862_v39 }
 0x6ea   : > { %6968 = vmatpush.bf16.msra.mxu2 %v6904_v19  ;;  %v6916_v23 = vsel %vm4112_vm9, %v6886_v44, 0  ;;  %v6919_v13 = vsel %vm4112_vm9, %v6887_v46, 0 }
 0x6ec   : > { %v6030_v61 = vpop.f32.mrf.mxu2  ;;  %7746 = vmatmul.msk.bf16.vlgmr.msra.gmra.mxu3 %vm4108_vm10, %v10562_v52 }
 0x6ed   : > { %v10630_v16 = vadd.f32 %v6030_v61, %v10512_v35  ;;  %6981 = vmatpush.bf16.msra.mxu3 %v6907_v33 }
 0x6ee   : > { %v6017_v14 = vpop.f32.mrf.mxu1 }
 0x6ef   : > { %v10635_v50 = vadd.f32 %v6017_v14, %v10515_v41  ;;  %v6043_v35 = vpop.f32.mrf.mxu3  ;;  %v6884_v41 = vsel %vm1647_vm7, %v6854_v43, %v6856_v11  ;;  %v6876_v36 = vpop.permute.xlu0 %6875 }
 0x6f0   : > { %v10643_v51 = vadd.f32 %v6043_v35, %v10526_v53  ;;  %v6910_v57 = vsel %vm4112_vm9, %v6884_v41, 0  ;;  %v6866_v20 = vpop.permute.xlu1 %6865  ;;  %v6874_v11 = vpop.permute.xlu2 %6873 }
 0x6f1   : > { %7744 = vmatmul.msk.bf16.vlgmr.msra.gmra.mxu1 %vm4108_vm10, %v10562_v52  ;;  %v6056_v12 = vpop.f32.mrf.mxu0  ;;  %v6890_v60 = vsel %vm1647_vm7, %v6866_v20, %v6868_v55  ;;  %v6889_v9 = vsel %vm1647_vm7, %v6864_v27, %v6866_v20  ;;  %v6894_v35 = vsel %vm1647_vm7, %v6874_v11, %v6876_v36 }
 0x6f2   : > { %6955 = vmatpush.bf16.msra.mxu1 %v6901_v34  ;;  %v10648_v10 = vadd.f32 %v6056_v12, %v10529_v8  ;;  %v6925_v18 = vsel %vm4112_vm9, %v6889_v9, 0  ;;  %v6940_v32 = vsel %vm4112_vm9, %v6894_v35, 0 }
 0x6f4   : > { %v6032_v40 = vpop.f32.mrf.mxu2  ;;  %7747 = vmatmul.msk.bf16.vlgmr.msrb.gmra.mxu0 %vm4108_vm10, %v10562_v52 }
 0x6f5   : > { %6994 = vmatpush.bf16.msrb.mxu0 %v6910_v57 }
 0x6f6   : > { %v6019_v3 = vpop.f32.mrf.mxu1 }
 0x6f7   : > { %v6045_v53 = vpop.f32.mrf.mxu3 }
 0x6f8   : > { %v6872_v45 = vpop.permute.xlu1 %6871 }
 0x6f9   : > { %7749 = vmatmul.msk.bf16.vlgmr.msrb.gmra.mxu2 %vm4108_vm10, %v10562_v52  ;;  %v6058_v4 = vpop.f32.mrf.mxu0 }
 0x6fa   : > { %7020 = vmatpush.bf16.msrb.mxu2 %v6916_v23  ;;  %v6893_v23 = vsel %vm1647_vm7, %v6872_v45, %v6874_v11 }
 0x6fc   : > { %v6082_v42 = vpop.f32.mrf.mxu2  ;;  %7750 = vmatmul.msk.bf16.vlgmr.msrb.gmra.mxu3 %vm4108_vm10, %v10562_v52 }
 0x6fd   : > { %v10658_v8 = vadd.f32 %v6082_v42, %v10540_v30  ;;  %7033 = vmatpush.bf16.msrb.mxu3 %v6919_v13  ;;  %v6937_v42 = vsel %vm4112_vm9, %v6893_v23, 0 }
 0x6fe   : > { %v6069_v49 = vpop.f32.mrf.mxu1 }
 0x6ff   : > { %v10663_v21 = vadd.f32 %v6069_v49, %v10543_v62  ;;  %v6095_v30 = vpop.f32.mrf.mxu3  ;;  %v6888_v62 = vsel %vm1647_vm7, %v6862_v39, %v6864_v27 }
 0x700   : > { %v10671_v28 = vadd.f32 %v6095_v30, %v10554_v38  ;;  %v6922_v15 = vsel %vm4112_vm9, %v6888_v62, 0  ;;  %v6928_v38 = vsel %vm4112_vm9, %v6890_v60, 0 }
 0x701   : > { %7748 = vmatmul.msk.bf16.vlgmr.msrb.gmra.mxu1 %vm4108_vm10, %v10562_v52  ;;  %v6108_v7 = vpop.f32.mrf.mxu0 }
 0x702   : > { %7007 = vmatpush.bf16.msrb.mxu1 %v6913_v2  ;;  %v10676_v17 = vadd.f32 %v6108_v7, %v10557_v37 }
 0x704   : > { %v6084_v0 = vpop.f32.mrf.mxu2  ;;  %7751 = vmatmul.msk.bf16.vlgmr.msra.gmra.mxu0 %vm4108_vm10, %v10562_v52  ;;  %v6931_v52 = vsel %vm4112_vm9, %v6891_v1, 0 }
 0x705   : > { %7046 = vmatpush.bf16.msra.mxu0 %v6922_v15 }
 0x706   : > { %v6071_v58 = vpop.f32.mrf.mxu1 }
 0x707   : > { %v6097_v37 = vpop.f32.mrf.mxu3 }
 0x709   : > { %7754 = vmatmul.msk.bf16.vlgmr.msra.gmra.mxu2 %vm4108_vm10, %v10681_v48  ;;  %v6110_v19 = vpop.f32.mrf.mxu0 }
 0x70a   : > { %7072 = vmatpush.bf16.msra.mxu2 %v6928_v38 }
 0x70c   : > { %v6303_v31 = vpop.f32.mrf.mxu2  ;;  %7755 = vmatmul.msk.bf16.vlgmr.msra.gmra.mxu3 %vm4108_vm10, %v10681_v48 }
 0x70d   : > { %v10691_v43 = vadd.f32 %v6303_v31, %v10573_v29  ;;  %7085 = vmatpush.bf16.msra.mxu3 %v6931_v52 }
 0x70e   : > { %v6290_v54 = vpop.f32.mrf.mxu1 }
 0x70f   : > { %v10696_v61 = vadd.f32 %v6290_v54, %v10576_v59  ;;  %v6316_v29 = vpop.f32.mrf.mxu3  ;;  %v6892_v59 = vsel %vm1647_vm7, %v6870_v25, %v6872_v45 }
 0x710   : > { %v10704_v14 = vadd.f32 %v6316_v29, %v10587_v5  ;;  %v6934_v41 = vsel %vm4112_vm9, %v6892_v59, 0  ;;  %v6878_v5 = vpop.permute.xlu1 %6877 }
 0x711   : > { %7753 = vmatmul.msk.bf16.vlgmr.msra.gmra.mxu1 %vm4108_vm10, %v10681_v48  ;;  %v6329_v34 = vpop.f32.mrf.mxu0  ;;  %v6895_v44 = vsel %vm1647_vm7, %v6876_v36, %v6878_v5 }
 0x712   : > { %7059 = vmatpush.bf16.msra.mxu1 %v6925_v18  ;;  %v10709_v40 = vadd.f32 %v6329_v34, %v10590_v63  ;;  %v6943_v39 = vsel %vm4112_vm9, %v6895_v44, 0 }
 0x714   : > { %v6305_v33 = vpop.f32.mrf.mxu2  ;;  %7756 = vmatmul.msk.bf16.vlgmr.msrb.gmra.mxu0 %vm4108_vm10, %v10681_v48 }
 0x715   : > { %7098 = vmatpush.bf16.msrb.mxu0 %v6934_v41 }
 0x716   : > { %v6292_v6 = vpop.f32.mrf.mxu1 }
 0x717   : > { %v6318_v12 = vpop.f32.mrf.mxu3 }
 0x719   : > { %7758 = vmatmul.msk.bf16.vlgmr.msrb.gmra.mxu2 %vm4108_vm10, %v10681_v48  ;;  %v6331_v57 = vpop.f32.mrf.mxu0 }
 0x71a   : > { %7124 = vmatpush.bf16.msrb.mxu2 %v6940_v32 }
 0x71c   : > { %v6355_v3 = vpop.f32.mrf.mxu2  ;;  %7759 = vmatmul.msk.bf16.vlgmr.msrb.gmra.mxu3 %vm4108_vm10, %v10681_v48 }
 0x71d   : > { %v10719_v63 = vadd.f32 %v6355_v3, %v10601_v22  ;;  %7137 = vmatpush.bf16.msrb.mxu3 %v6943_v39  ;;  %v6880_v22 = vpop.permute.xlu2 %6879 }
 0x71e   : > { %v6342_v53 = vpop.f32.mrf.mxu1  ;;  %v6896_v13 = vsel %vm1647_vm7, %v6878_v5, %v6880_v22 }
 0x71f   : > { %v10724_v46 = vadd.f32 %v6342_v53, %v10604_v56  ;;  %v6368_v4 = vpop.f32.mrf.mxu3  ;;  %v6946_v30 = vsel %vm4112_vm9, %v6896_v13, 0 }
 0x720   : > { %v10732_v47 = vadd.f32 %v6368_v4, %v10615_v26 }
 0x721   : > { %7757 = vmatmul.msk.bf16.vlgmr.msrb.gmra.mxu1 %vm4108_vm10, %v10681_v48  ;;  %v6381_v56 = vpop.f32.mrf.mxu0 }
 0x722   : > { %7111 = vmatpush.bf16.msrb.mxu1 %v6937_v42  ;;  %v6496_v2 = vadd.f32 %v6381_v56, %v10619_v24 }
 0x724   : > { %v6357_v49 = vpop.f32.mrf.mxu2  ;;  %7760 = vmatmul.msk.bf16.vlgmr.msra.gmra.mxu0 %vm4108_vm10, %v10681_v48 }
 0x725   : > { %7150 = vmatpush.bf16.msra.mxu0 %v6946_v30 }
 0x726   : > { %v6344_v27 = vpop.f32.mrf.mxu1 }
 0x727   : > { %v6370_v20 = vpop.f32.mrf.mxu3 }
 0x729   : > { %7762 = vmatmul.msk.bf16.vlgmr.msra.gmra.mxu2 %vm4108_vm10, %v10681_v48  ;;  %v6383_v55 = vpop.f32.mrf.mxu0 }
 0x72c   : > { %v6407_v0 = vpop.f32.mrf.mxu2  ;;  %7763 = vmatmul.msk.bf16.vlgmr.msra.gmra.mxu3 %vm4108_vm10, %v10681_v48 }
 0x72d   : > { %v10742_v26 = vadd.f32 %v6407_v0, %v10630_v16 }
 0x72e   : > { %v6394_v62 = vpop.f32.mrf.mxu1 }
 0x72f   : > { %v10745_v7 = vadd.f32 %v6394_v62, %v10635_v50  ;;  %v6420_v24 = vpop.f32.mrf.mxu3 }
 0x730   : > { %v10752_v60 = vadd.f32 %v6420_v24, %v10643_v51 }
 0x731   : > { %7761 = vmatmul.msk.bf16.vlgmr.msra.gmra.mxu1 %vm4108_vm10, %v10681_v48  ;;  %v6433_v15 = vpop.f32.mrf.mxu0 }
 0x732   : > { %v10755_v16 = vadd.f32 %v6433_v15, %v10648_v10  ;;  %v10801_v15 = vpop.permute.xlu0 %7175 }
 0x734   : > { %v6409_v58 = vpop.f32.mrf.mxu2  ;;  %7764 = vmatmul.msk.bf16.vlgmr.msrb.gmra.mxu0 %vm4108_vm10, %v10681_v48 }
 0x736   : > { %v6396_v38 = vpop.f32.mrf.mxu1 }
 0x737   : > { %v6422_v50 = vpop.f32.mrf.mxu3 }
 0x739   : > { %7766 = vmatmul.msk.bf16.vlgmr.msrb.gmra.mxu2 %vm4108_vm10, %v10681_v48  ;;  %v6435_v1 = vpop.f32.mrf.mxu0 }
 0x73c   : > { %v6459_v25 = vpop.f32.mrf.mxu2  ;;  %7767 = vmatmul.msk.bf16.vlgmr.msrb.gmra.mxu3 %vm4108_vm10, %v10681_v48 }
 0x73d   : > { %v10762_v37 = vadd.f32 %v6459_v25, %v10658_v8 }
 0x73e   : > { %v6446_v51 = vpop.f32.mrf.mxu1 }
 0x73f   : > { %v10765_v31 = vadd.f32 %v6446_v51, %v10663_v21  ;;  %v6472_v10 = vpop.f32.mrf.mxu3 }
 0x740   : > { %v10772_v19 = vadd.f32 %v6472_v10, %v10671_v28 }
 0x741   : > { %7765 = vmatmul.msk.bf16.vlgmr.msrb.gmra.mxu1 %vm4108_vm10, %v10681_v48  ;;  %v6485_v54 = vpop.f32.mrf.mxu0 }
 0x742   : > { %v10775_v8 = vadd.f32 %v6485_v54, %v10676_v17 }
 0x744   : > { %v6461_v9 = vpop.f32.mrf.mxu2  ;;  %7768 = vmatmul.msk.bf16.vlgmr.msra.gmra.mxu0 %vm4108_vm10, %v10681_v48 }
 0x746   : > { %v6448_v52 = vpop.f32.mrf.mxu1 }
 0x747   : > { %v6474_v21 = vpop.f32.mrf.mxu3 }
 0x749   : > { %v6487_v18 = vpop.f32.mrf.mxu0 }
 0x74c   : > { %v6593_v45 = vpop.f32.mrf.mxu2 }
 0x74d   : > { %v6780_v0 = vadd.f32 %v6593_v45, %v10691_v43 }
 0x74e   : > { %v6580_v29 = vpop.f32.mrf.mxu1 }
 0x74f   : > { %v6606_v36 = vpop.f32.mrf.mxu3  ;;  %v6779_v62 = vadd.f32 %v6580_v29, %v10696_v61 }
 0x750   : > { %v6781_v1 = vadd.f32 %v6606_v36, %v10704_v14 }
 0x751   : > { %v6619_v11 = vpop.f32.mrf.mxu0 }
 0x752   : > { %v6782_v61 = vadd.f32 %v6619_v11, %v10709_v40 }
 0x754   : > { %v6595_v33 = vpop.f32.mrf.mxu2 }
 0x756   : > { %v6582_v59 = vpop.f32.mrf.mxu1 }
 0x757   : > { %v6608_v34 = vpop.f32.mrf.mxu3 }
 0x759   : > { %v6621_v35 = vpop.f32.mrf.mxu0 }
 0x75c   : > { %v6645_v28 = vpop.f32.mrf.mxu2 }
 0x75d   : > { %v6784_v11 = vadd.f32 %v6645_v28, %v10719_v63 }
 0x75e   : > { %v6632_v6 = vpop.f32.mrf.mxu1 }
 0x75f   : > { %v10779_v41 = vpop.f32.mrf.mxu3 }
 0x760   : > { %v6785_v63 = vadd.f32 %v10779_v41, %v10732_v47 }
 0x761   : > { %v6671_v17 = vpop.f32.mrf.mxu0 }
 0x762   : > { %v10781_v12 = vadd.f32 %v6671_v17, %v6496_v2 }
 0x764   : > { %v6647_v32 = vpop.f32.mrf.mxu2 }
 0x766   : > { %v6634_v5 = vpop.f32.mrf.mxu1 }
 0x767   : > { %v6660_v48 = vpop.f32.mrf.mxu3 }
 0x769   : > { %v6673_v3 = vpop.f32.mrf.mxu0 }
 0x76c   : > { %v10783_v44 = vpop.f32.mrf.mxu2 }
 0x76e   : > { %v10785_v57 = vpop.f32.mrf.mxu1 }
 0x76f   : > { %v10787_v23 = vpop.f32.mrf.mxu3 }
 0x771   : > { %v10789_v39 = vpop.f32.mrf.mxu0 }
 0x774   : > { %v6699_v53 = vpop.f32.mrf.mxu2 }
 0x775   : > { %v6783_v53 = vadd.f32 %v6632_v6, %v10724_v46 }
 0x776   : > { %v6686_v42 = vpop.f32.mrf.mxu1 }
 0x777   : > { %v6712_v22 = vpop.f32.mrf.mxu3 }
 0x779   : > { %v6725_v49 = vpop.f32.mrf.mxu0 }
 0x77c   : > { %v10791_v4 = vpop.f32.mrf.mxu2 }
 0x77e   : > { %v10793_v13 = vpop.f32.mrf.mxu1 }
 0x77f   : > { %v10795_v56 = vpop.f32.mrf.mxu3 }
 0x781   : > { %v10797_v2 = vpop.f32.mrf.mxu0 }
 0x784   : > { %v6751_v27 = vpop.f32.mrf.mxu2 }
 0x786   : > { %v6738_v30 = vpop.f32.mrf.mxu1 }
 0x787   : > { %v6764_v20 = vpop.f32.mrf.mxu3 }
 0x789   : > { %v6777_v58 = vpop.f32.mrf.mxu0 }
 0x78c   : > { %v6970_v55 = vpop.f32.mrf.mxu2 }
 0x78d   : > { %v7157_v24 = vadd.f32 %v6970_v55, %v6780_v0 }
 0x78e   : > { %v6957_v38 = vpop.f32.mrf.mxu1 }
 0x78f   : > { %v7179_v50 = vadd.f32 %v10801_v15, %v7157_v24  ;;  %v7156_v25 = vadd.f32 %v6957_v38, %v6779_v62  ;;  %v6983_v9 = vpop.f32.mrf.mxu3 }
 0x790   : > { %v7158_v52 = vadd.f32 %v6983_v9, %v6781_v1 }
 0x791   : > { %v7195_v51 = vmax.f32 %v7179_v50, 0.0  ;;  %v7178_v10 = vadd.f32 %v10801_v15, %v7156_v25  ;;  %v6996_v29 = vpop.f32.mrf.mxu0 }
 0x792   : > { %v7180_v14 = vadd.f32 %v10801_v15, %v7158_v52  ;;  %v7159_v33 = vadd.f32 %v6996_v29, %v6782_v61  ;;  %v6788_v61 = vadd.f32 %v10783_v44, %v10742_v26 }
 0x793   : > { %v7212_v54 = vpack.c.bf16 %v7195_v51, %v7195_v51  ;;  %v7194_v43 = vmax.f32 %v7178_v10, 0.0 }
 0x794   : > { %v6972_v21 = vpop.f32.mrf.mxu2  ;;  %v7196_v59 = vmax.f32 %v7180_v14, 0.0  ;;  %v7181_v35 = vadd.f32 %v10801_v15, %v7159_v33 }
 0x795   : > { %v7214_v45 = vrot.slane %v7212_v54, 2  ;;  %v7210_v18 = vpack.c.bf16 %v7194_v43, %v7194_v43 }
 0x796   : > { %v6959_v36 = vpop.f32.mrf.mxu1  ;;  %v7224_v32 = vpack.c.bf16 %v7196_v59, %v7196_v59  ;;  %v7197_v17 = vmax.f32 %v7181_v35, 0.0  ;;  %v6789_v35 = vadd.f32 %v10787_v23, %v10752_v60 }
 0x797   : > { %7211 = vst.msk [vmem:[%s10810_s23] sm:$0x3] %vm479_vm5, %v7210_v18  ;;  %v7217_v34 = vsel %vm4112_vm9, %v7212_v54, %v7214_v45  ;;  %v6985_v40 = vpop.f32.mrf.mxu3  ;;  %v6787_v18 = vadd.f32 %v10785_v57, %v10745_v7 }
 0x798   : > { %7219 = vrot.lane.b32.xlu1 %v7217_v34, %s7817_s17  ;;  %v7226_v5 = vrot.slane %v7224_v32, 2  ;;  %v7236_v48 = vpack.c.bf16 %v7197_v17, %v7197_v17  ;;  %v6790_v40 = vadd.f32 %v10789_v39, %v10755_v16  ;;  %v6792_v39 = vadd.f32 %v10791_v4, %v10762_v37 }
 0x799   : > { %v6998_v22 = vpop.f32.mrf.mxu0 }
 0x79a   : > { %v7229_v49 = vsel %vm4112_vm9, %v7224_v32, %v7226_v5  ;;  %v7238_v27 = vrot.slane %v7236_v48, 2 }
 0x79b   : > { %7231 = vrot.lane.b32.xlu0 %v7229_v49, %s7818_s18 }
 0x79c   : > { %v7022_v3 = vpop.f32.mrf.mxu2  ;;  %v7241_v55 = vsel %vm4112_vm9, %v7236_v48, %v7238_v27 }
 0x79d   : > { %v7161_v42 = vadd.f32 %v7022_v3, %v6784_v11  ;;  %7243 = vrot.lane.b32.xlu2 %v7241_v55, %s7819_s19 }
 0x79e   : > { %v7009_v30 = vpop.f32.mrf.mxu1 }
 0x79f   : > { %v7183_v20 = vadd.f32 %v10801_v15, %v7161_v42  ;;  %v7160_v0 = vadd.f32 %v7009_v30, %v6783_v53  ;;  %v7035_v46 = vpop.f32.mrf.mxu3 }
 0x7a0   : > { %v7162_v58 = vadd.f32 %v7035_v46, %v6785_v63 }
 0x7a1   : > { %v7199_v28 = vmax.f32 %v7183_v20, 0.0  ;;  %v7182_v62 = vadd.f32 %v10801_v15, %v7160_v0  ;;  %v7048_v51 = vpop.f32.mrf.mxu0 }
 0x7a2   : > { %v7184_v1 = vadd.f32 %v10801_v15, %v7162_v58  ;;  %v7163_v20 = vadd.f32 %v7048_v51, %v10781_v12 }
 0x7a3   : > { %v7260_v6 = vpack.c.bf16 %v7199_v28, %v7199_v28  ;;  %v7198_v24 = vmax.f32 %v7182_v62, 0.0  ;;  %v6791_v28 = vadd.f32 %v10793_v13, %v10765_v31 }
 0x7a4   : > { %v7024_v38 = vpop.f32.mrf.mxu2  ;;  %v7200_v54 = vmax.f32 %v7184_v1, 0.0 }
 0x7a5   : > { %v7262_v50 = vrot.slane %v7260_v6, 2  ;;  %v7248_v25 = vpack.c.bf16 %v7198_v24, %v7198_v24  ;;  %v7185_v38 = vadd.f32 %v10801_v15, %v7163_v20 }
 0x7a6   : > { %v7011_v10 = vpop.f32.mrf.mxu1  ;;  %v7272_v41 = vpack.c.bf16 %v7200_v54, %v7200_v54  ;;  %v6794_v54 = vadd.f32 %v10797_v2, %v10775_v8 }
 0x7a7   : > { %v7250_v9 = vrot.slane %v7248_v25, 2  ;;  %v7265_v47 = vsel %vm4112_vm9, %v7260_v6, %v7262_v50  ;;  %v7037_v52 = vpop.f32.mrf.mxu3  ;;  %v6793_v50 = vadd.f32 %v10795_v56, %v10772_v19  ;;  %v7201_v1 = vmax.f32 %v7185_v38, 0.0 }
 0x7a8   : > { %7267 = vrot.lane.b32.xlu0 %v7265_v47, %s7816_s16  ;;  %v7274_v21 = vrot.slane %v7272_v41, 2 }
 0x7a9   : > { %v7253_v43 = vsel %vm4112_vm9, %v7248_v25, %v7250_v9  ;;  %v7050_v29 = vpop.f32.mrf.mxu0 }
 0x7aa   : > { %7255 = vrot.lane.b32.xlu1 %v7253_v43, %s7815_s15  ;;  %v7277_v36 = vsel %vm4112_vm9, %v7272_v41, %v7274_v21  ;;  %v7284_v21 = vpack.c.bf16 %v7201_v1, %v7201_v1 }
 0x7ab   : > { %7279 = vrot.lane.b32.xlu2 %v7277_v36, %s7812_s11 }
 0x7ac   : > { %v7074_v45 = vpop.f32.mrf.mxu2 }
 0x7ad   : > { %v7165_v14 = vadd.f32 %v7074_v45, %v6788_v61 }
 0x7ae   : > { %v7061_v33 = vpop.f32.mrf.mxu1 }
 0x7af   : > { %v7187_v59 = vadd.f32 %v10801_v15, %v7165_v14  ;;  %v7164_v34 = vadd.f32 %v7061_v33, %v6787_v18  ;;  %v7087_v32 = vpop.f32.mrf.mxu3 }
 0x7b0   : > { %v7166_v57 = vadd.f32 %v7087_v32, %v6789_v35 }
 0x7b1   : > { %v7203_v26 = vmax.f32 %v7187_v59, 0.0  ;;  %v7186_v44 = vadd.f32 %v10801_v15, %v7164_v34  ;;  %v7100_v53 = vpop.f32.mrf.mxu0  ;;  %v7286_v59 = vrot.slane %v7284_v21, 2 }
 0x7b2   : > { %v7188_v3 = vadd.f32 %v10801_v15, %v7166_v57  ;;  %v7167_v22 = vadd.f32 %v7100_v53, %v6790_v40 }
 0x7b3   : > { %v7298_v17 = vpack.c.bf16 %v7203_v26, %v7203_v26  ;;  %v7202_v7 = vmax.f32 %v7186_v44, 0.0 }
 0x7b4   : > { %v7076_v11 = vpop.f32.mrf.mxu2  ;;  %v7204_v60 = vmax.f32 %v7188_v3, 0.0  ;;  %v7189_v49 = vadd.f32 %v10801_v15, %v7167_v22 }
 0x7b5   : > { %v7300_v5 = vrot.slane %v7298_v17, 2  ;;  %v7296_v48 = vpack.c.bf16 %v7202_v7, %v7202_v7 }
 0x7b6   : > { %v7063_v42 = vpop.f32.mrf.mxu1  ;;  %v7309_v27 = vpack.c.bf16 %v7204_v60, %v7204_v60  ;;  %v7205_v30 = vmax.f32 %v7189_v49, 0.0 }
 0x7b7   : > { %7297 = vst.msk [vmem:[%s10810_s23 + $0x2] sm:$0x3] %vm479_vm5, %v7296_v48  ;;  %v7303_v23 = vsel %vm4112_vm9, %v7298_v17, %v7300_v5  ;;  %v7089_v16 = vpop.f32.mrf.mxu3 }
 0x7b8   : > { %7305 = vrot.lane.b32.xlu2 %v7303_v23, %s7817_s17  ;;  %v7311_v0 = vrot.slane %v7309_v27, 2  ;;  %v7320_v55 = vpack.c.bf16 %v7205_v30, %v7205_v30 }
 0x7b9   : > { %v7102_v46 = vpop.f32.mrf.mxu0 }
 0x7ba   : > { %v7314_v6 = vsel %vm4112_vm9, %v7309_v27, %v7311_v0  ;;  %v7322_v24 = vrot.slane %v7320_v55, 2 }
 0x7bb   : > { %7316 = vrot.lane.b32.xlu1 %v7314_v6, %s7818_s18 }
 0x7bc   : > { %v7126_v63 = vpop.f32.mrf.mxu2  ;;  %v7325_v12 = vsel %vm4112_vm9, %v7320_v55, %v7322_v24 }
 0x7bd   : > { %v7169_v62 = vadd.f32 %v7126_v63, %v6792_v39  ;;  %7327 = vrot.lane.b32.xlu0 %v7325_v12, %s7819_s19 }
 0x7be   : > { %v7113_v58 = vpop.f32.mrf.mxu1 }
 0x7bf   : > { %v7191_v37 = vadd.f32 %v10801_v15, %v7169_v62  ;;  %v7168_v4 = vadd.f32 %v7113_v58, %v6791_v28  ;;  %v7139_v13 = vpop.f32.mrf.mxu3 }
 0x7c0   : > { %v7170_v9 = vadd.f32 %v7139_v13, %v6793_v50 }
 0x7c1   : > { %v7207_v25 = vmax.f32 %v7191_v37, 0.0  ;;  %v7190_v31 = vadd.f32 %v10801_v15, %v7168_v4  ;;  %v7152_v61 = vpop.f32.mrf.mxu0 }
 0x7c2   : > { %v7192_v52 = vadd.f32 %v10801_v15, %v7170_v9  ;;  %v7171_v19 = vadd.f32 %v7152_v61, %v6794_v54 }
 0x7c3   : > { %v7342_v51 = vpack.c.bf16 %v7207_v25, %v7207_v25  ;;  %v7206_v10 = vmax.f32 %v7190_v31, 0.0 }
 0x7c4   : > { %v7128_v47 = vpop.f32.mrf.mxu2  ;;  %v7208_v18 = vmax.f32 %v7192_v52, 0.0  ;;  %v7193_v29 = vadd.f32 %v10801_v15, %v7171_v19  ;;  %v7289_v15 = vsel %vm4112_vm9, %v7284_v21, %v7286_v59 }
 0x7c5   : > { %v7344_v41 = vrot.slane %v7342_v51, 2  ;;  %v7331_v43 = vpack.c.bf16 %v7206_v10, %v7206_v10 }
 0x7c6   : > { %v7115_v56 = vpop.f32.mrf.mxu1  ;;  %v7353_v36 = vpack.c.bf16 %v7208_v18, %v7208_v18  ;;  %v7209_v2 = vmax.f32 %v7193_v29, 0.0 }
 0x7c7   : > { %v7333_v45 = vrot.slane %v7331_v43, 2  ;;  %v7347_v14 = vsel %vm4112_vm9, %v7342_v51, %v7344_v41  ;;  %v7141_v33 = vpop.f32.mrf.mxu3 }
 0x7c8   : > { %7349 = vrot.lane.b32.xlu1 %v7347_v14, %s7816_s16  ;;  %v7355_v34 = vrot.slane %v7353_v36, 2  ;;  %v7364_v35 = vpack.c.bf16 %v7209_v2, %v7209_v2 }
 0x7c9   : > { %v7336_v8 = vsel %vm4112_vm9, %v7331_v43, %v7333_v45  ;;  %v7154_v44 = vpop.f32.mrf.mxu0 }
 0x7ca   : > { %7338 = vrot.lane.b32.xlu2 %v7336_v8, %s7815_s15  ;;  %v7358_v26 = vsel %vm4112_vm9, %v7353_v36, %v7355_v34  ;;  %v7366_v32 = vrot.slane %v7364_v35, 2 }
 0x7cb   : > { %7360 = vrot.lane.b32.xlu0 %v7358_v26, %s7812_s11 }
 0x7cc   : > { %v7369_v17 = vsel %vm4112_vm9, %v7364_v35, %v7366_v32 }
 0x7d0   : > { %7291 = vrot.lane.b32.xlu1 %v7289_v15, %s7813_s12 }
 0x7d2   : > { %7371 = vrot.lane.b32.xlu2 %v7369_v17, %s7813_s12 }
 0x7f7   : > { %v7244_v7 = vpop.permute.xlu2 %7243 }
 0x805   : > { %v7280_v57 = vpop.permute.xlu2 %7279 }
 0x80a   : > { %v7220_v40 = vpop.permute.xlu1 %7219 }
 0x80b   : > { %7223 = vst.msk [vmem:[%s10810_s23] sm:$0x3] %vm7222_vm11, %v7220_v40 }
 0x80d   : > { %v7232_v11 = vpop.permute.xlu0 %7231 }
 0x80e   : > { %7235 = vst.msk [vmem:[%s10810_s23] sm:$0x3] %vm7234_vm12, %v7232_v11 }
 0x80f   : > { %7247 = vst.msk [vmem:[%s10810_s23] sm:$0x3] %vm7246_vm13, %v7244_v7 }
 0x812   : > { %v7306_v5 = vpop.permute.xlu2 %7305 }
 0x813   : > { %7308 = vst.msk [vmem:[%s10810_s23 + $0x2] sm:$0x3] %vm7222_vm11, %v7306_v5 }
 0x81a   : > { %v7268_v3 = vpop.permute.xlu0 %7267 }
 0x81c   : > { %v7256_v48 = vpop.permute.xlu1 %7255 }
 0x81d   : > { %7259 = vst.msk [vmem:[%s10810_s23] sm:$0x3] %vm7258_vm14, %v7256_v48 }
 0x81e   : > { %7271 = vst.msk [vmem:[%s10810_s23] sm:$0x3] %vm7270_vm15, %v7268_v3 }
 0x81f   : > { %7283 = vst.msk [vmem:[%s10810_s23] sm:$0x3] %vm7282_vm0, %v7280_v57 }
 0x824   : > { %v7339_v22 = vpop.permute.xlu2 %7338 }
 0x82c   : > { %v7372_v49 = vpop.permute.xlu2 %7371 }
 0x82d   : > { %v7317_v53 = vpop.permute.xlu1 %7316 }
 0x82e   : > { %7319 = vst.msk [vmem:[%s10810_s23 + $0x2] sm:$0x3] %vm7234_vm12, %v7317_v53 }
 0x82f   : > { %v7328_v42 = vpop.permute.xlu0 %7327 }
 0x830   : > { %7330 = vst.msk [vmem:[%s10810_s23 + $0x2] sm:$0x3] %vm7246_vm13, %v7328_v42 }
 0x831   : > { %7341 = vst.msk [vmem:[%s10810_s23 + $0x2] sm:$0x3] %vm7258_vm14, %v7339_v22 }
 0x83a   : > { %v7350_v60 = vpop.permute.xlu1 %7349 }
 0x83b   : > { %7352 = vst.msk [vmem:[%s10810_s23 + $0x2] sm:$0x3] %vm7270_vm15, %v7350_v60 }
 0x83d   : > { %v7361_v23 = vpop.permute.xlu0 %7360 }
 0x83e   : > { %7363 = vst.msk [vmem:[%s10810_s23 + $0x2] sm:$0x3] %vm7282_vm0, %v7361_v23 }
 0x83f   : > { %7374 = vst.msk [vmem:[%s10810_s23 + $0x2] sm:$0x3] %vm7294_vm1, %v7372_v49 }
 0x842   : > { %v7292_v27 = vpop.permute.xlu1 %7291 }
 0x843   : > { %7295 = vst.msk [vmem:[%s10810_s23] sm:$0x3] %vm7294_vm1, %v7292_v27 }
 0x844 PF: > { %s19_s30 = sadd.s32 1, %s7806_s30  }
 0x845   : > { %p16_p4 = scmp.ge.s32.totalorder %s19_s30, 4  }
 0x847   :  { %18 = sbr.rel (!%p16_p4) target bundleno = 1 (0x1), region = 130 }

</bundles_post_ra>
